<compile_context>
chip_gen: v5e
topology: v5e:2x2
jax: 0.10.0
libtpu: 0.0.40
codegen_flags: <defaults>
</compile_context>

<pallas_src>
import numpy as np
import jax
import jax.numpy as jnp
from jax.experimental import pallas as pl
from jax.experimental.pallas import tpu as pltpu

EPS = 1e-5   # torch BatchNorm2d default
K = 5        # every conv / conv-transpose in FCAE is 5x5 (z layers use z_dim)


def _ceil_to(x, m):
    return -(-x // m) * m


# ---------------------------------------------------------------------------
# Host-side, once-per-model constant builders (pure numpy)
# ---------------------------------------------------------------------------
def _t_conv_to_conv(wt):
    """ConvTranspose2d weight (Ci, Co, K, K) -> equivalent Conv2d weight."""
    return np.transpose(wt, (1, 0, 2, 3))[:, :, ::-1, ::-1].copy()


def _stacked_banded(weq, wi, wo, w_off, out_pad=0):
    """Stacked banded weight for the one-matmul conv.

    Row block kh (lane-padded to 128) multiplies the kh-shifted row window of
    the input slab; columns are (w_out, c_out) [+ optional zero lane pad].
    M[kh*blk + i*Ci + ci, o*Co + co] = weq[co, ci, kh, i + w_off - o].
    """
    co_n, ci_n, kk, _ = weq.shape
    wcin = wi * ci_n
    blk = _ceil_to(wcin, 128)
    out_w = wo * co_n + out_pad
    m = np.zeros((kk, blk, out_w), np.float32)
    for kh in range(kk):
        for o in range(wo):
            for i in range(wi):
                kw = i + w_off - o
                if 0 <= kw < kk:
                    m[kh, i * ci_n:(i + 1) * ci_n,
                      o * co_n:(o + 1) * co_n] = weq[:, :, kh, kw].T
    return m.reshape(kk * blk, out_w)


def _chan_share(w, c):
    """(w*c, w*c) 0/1 matrix: one matmul = per-channel reduce AND broadcast."""
    j = np.arange(w * c)
    return (j[:, None] % c == j[None, :] % c).astype(np.float32)


def _pool_col_mats(w_in, c):
    """Column (width) selectors for 2x2 pooling on a (w, c) lane layout."""
    wp = w_in // 2
    cs = np.zeros((2, w_in * c, wp * c), np.float32)
    for d in range(2):
        for wo in range(wp):
            for cc in range(c):
                cs[d, (2 * wo + d) * c + cc, wo * c + cc] = 1.0
    gather = np.concatenate([cs[0], cs[1]], axis=1)        # (w_in*c, 2*wp*c)
    return gather, cs[0].T.copy(), cs[1].T.copy()           # scatter even/odd


def _tile_chan(v, width, pad_to=None):
    row = np.tile(np.asarray(v, np.float32), width)[None, :]
    if pad_to is not None and pad_to > row.shape[1]:
        row = np.concatenate(
            [row, np.zeros((1, pad_to - row.shape[1]), np.float32)], axis=1)
    return row


def _bn_pack(bias, gamma, beta, width):
    return np.concatenate([_tile_chan(bias, width),
                           _tile_chan(gamma, width),
                           _tile_chan(beta, width)], axis=0)


def prepare_fcae(params, in_shape, n_z):
    """Torch-layout FCAE weights -> batch-independent kernel constants."""
    c, h, w = in_shape
    assert h == w and h % 4 == 0 and h >= 16, "FCAE needs square h % 4 == 0"
    z_dim = h // 4 - 3
    h1 = h - K + 1           # conv_enc1 output spatial
    hp1 = h1 // 2            # pool1 output spatial
    h2 = hp1 - K + 1         # conv_enc2 output spatial
    hp2 = h2 // 2            # pool2 output spatial
    assert hp2 == z_dim

    p = {k: np.asarray(v, np.float32) for k, v in params.items()}
    out_pad = _ceil_to(w * c, 128) - w * c    # lane-dense x_bar output

    prep = (
        # conv_enc1 (+ bn_enc1)
        _stacked_banded(p['w_enc1'], h, h1, 0),
        _bn_pack(p['b_enc1'], p['g_enc1'], p['bt_enc1'], h1),
        _chan_share(h1, 6),
        # conv_enc2 (+ bn_enc2)
        _stacked_banded(p['w_enc2'], hp1, h2, 0),
        _bn_pack(p['b_enc2'], p['g_enc2'], p['bt_enc2'], h2),
        _chan_share(h2, 16),
        # z_layer
        _stacked_banded(p['w_z'], hp2, 1, 0),
        _tile_chan(p['b_z'], 1),
        # z_develop (+ bn_z_dev)
        _stacked_banded(_t_conv_to_conv(p['w_zdev']), 1, z_dim, z_dim - 1),
        _bn_pack(p['b_zdev'], p['g_zdev'], p['bt_zdev'], z_dim),
        _chan_share(z_dim, 16),
        # conv_dec2 (+ bn_dec2)
        _stacked_banded(_t_conv_to_conv(p['w_dec2']), h2, hp1, K - 1),
        _bn_pack(p['b_dec2'], p['g_dec2'], p['bt_dec2'], hp1),
        _chan_share(hp1, 6),
        # conv_dec1 (lane-padded output)
        _stacked_banded(_t_conv_to_conv(p['w_dec1']), h1, h, K - 1, out_pad),
        _tile_chan(p['b_dec1'], h, pad_to=w * c + out_pad),
    )
    prep = prep + _pool_col_mats(h1, 6) + _pool_col_mats(h2, 16)
    return tuple(jnp.asarray(a) for a in prep)


# ---------------------------------------------------------------------------
# The fused kernel
# ---------------------------------------------------------------------------
def _make_fcae_kernel(in_shape, n_z, batch):
    c, h, w = in_shape
    z_dim = h // 4 - 3
    h1 = h - K + 1
    hp1 = h1 // 2
    h2 = hp1 - K + 1
    hp2 = h2 // 2
    B = batch

    def im2col_matmul(x, cat_ref, m_ref, bias, hin, hout, kk, off, wcin):
        """conv/convT as ONE matmul: scatter kh-shifted row windows into the
        lane-padded im2col scratch (zero rows give implicit vertical padding
        for the transposed convs), then a single MXU matmul."""
        blk = _ceil_to(wcin, 128)
        cat_ref[...] = jnp.zeros(cat_ref.shape, jnp.float32)
        for kh in range(kk):
            lo = max(0, off - kh)
            hi = min(hout, hin + off - kh)
            cat_ref[lo * B:hi * B, kh * blk:kh * blk + wcin] = (
                x[(lo + kh - off) * B:(hi + kh - off) * B, :])
        return jnp.dot(cat_ref[...], m_ref[...],
                       preferred_element_type=jnp.float32) + bias

    def batchnorm(t, sch_ref, count, gamma, beta):
        """Training-mode BatchNorm2d (batch stats, biased variance)."""
        s = jnp.sum(t, axis=0, keepdims=True)
        s2 = jnp.sum(t * t, axis=0, keepdims=True)
        ridx = jax.lax.broadcasted_iota(jnp.int32, (2, t.shape[1]), 0)
        stacked = jnp.where(ridx == 0, s, s2)                    # (2, W*C)
        red = jnp.dot(stacked, sch_ref[...],
                      preferred_element_type=jnp.float32) * (1.0 / float(count))
        mean = red[0:1, :]
        var = jnp.maximum(red[1:2, :] - mean * mean, 0.0)        # clamp >= 0
        return (t - mean) * jax.lax.rsqrt(var + EPS) * gamma + beta

    def maxpool(a, prc_ref, cs_ref, hpool):
        """2x2/2 max-pool + boolean first-match argmax masks (torch style)."""
        for i in range(hpool):
            prc_ref[i * B:(i + 1) * B, :] = a[(2 * i) * B:(2 * i + 1) * B, :]
            prc_ref[(hpool + i) * B:(hpool + i + 1) * B, :] = (
                a[(2 * i + 1) * B:(2 * i + 2) * B, :])
        pc = jnp.dot(prc_ref[...], cs_ref[...],
                     preferred_element_type=jnp.float32)
        hr = hpool * B
        oc = cs_ref.shape[1] // 2
        p00, p01 = pc[:hr, :oc], pc[:hr, oc:]
        p10, p11 = pc[hr:, :oc], pc[hr:, oc:]
        m = jnp.maximum(jnp.maximum(p00, p01), jnp.maximum(p10, p11))
        e00 = p00 == m
        e01 = (p01 == m) & (~e00)
        e10 = (p10 == m) & ~(e00 | e01)
        e11 = (p11 == m) & ~(e00 | e01 | e10)
        return m, (e00, e01, e10, e11)

    def maxunpool(y, masks, s0_ref, s1_ref, ui_ref, hpool):
        """Scatter pooled values back to their argmax positions (zeros else)."""
        e00, e01, e10, e11 = masks
        zero = jnp.zeros_like(y)
        s0, s1 = s0_ref[...], s1_ref[...]
        u0 = (jnp.dot(jnp.where(e00, y, zero), s0,
                      preferred_element_type=jnp.float32)
              + jnp.dot(jnp.where(e01, y, zero), s1,
                        preferred_element_type=jnp.float32))
        u1 = (jnp.dot(jnp.where(e10, y, zero), s0,
                      preferred_element_type=jnp.float32)
              + jnp.dot(jnp.where(e11, y, zero), s1,
                        preferred_element_type=jnp.float32))
        for i in range(hpool):
            ui_ref[(2 * i) * B:(2 * i + 1) * B, :] = u0[i * B:(i + 1) * B, :]
            ui_ref[(2 * i + 1) * B:(2 * i + 2) * B, :] = u1[i * B:(i + 1) * B, :]
        return ui_ref[...]

    def kernel(x_ref,
               m_e1, bn_e1, sch_e1,
               m_e2, bn_e2, sch_e2,
               m_z, b_z,
               m_zd, bn_zd, sch_zd,
               m_d2, bn_d2, sch_d2,
               m_d1, b_d1,
               cs1, s1a, s1b, cs2, s2a, s2b,
               xbar_ref, z_ref,
               cat_e1, cat_e2, cat_z, cat_zd, cat_d2, cat_d1,
               prc1, prc2, ui2, ui1):
        x = x_ref[...]

        # enc1, idx1 = pool(bn_enc1(relu(conv_enc1(x))))
        bn1 = bn_e1[...]
        a1 = jnp.maximum(
            im2col_matmul(x, cat_e1, m_e1, bn1[0:1, :], h, h1, K, 0, h * c), 0.0)
        a1 = batchnorm(a1, sch_e1, B * h1 * h1, bn1[1:2, :], bn1[2:3, :])
        p1, masks1 = maxpool(a1, prc1, cs1, h1 // 2)

        # enc2, idx2 = pool(bn_enc2(relu(conv_enc2(enc1))))
        bn2 = bn_e2[...]
        a2 = jnp.maximum(
            im2col_matmul(p1, cat_e2, m_e2, bn2[0:1, :], hp1, h2, K, 0,
                          hp1 * 6), 0.0)
        a2 = batchnorm(a2, sch_e2, B * h2 * h2, bn2[1:2, :], bn2[2:3, :])
        p2, masks2 = maxpool(a2, prc2, cs2, h2 // 2)

        # z = z_layer(enc2); z_flat = z.view(B, -1)
        z = im2col_matmul(p2, cat_z, m_z, b_z[...], hp2, 1, z_dim, 0, hp2 * 16)
        z_ref[...] = z

        # dec2 = bn_z_dev(relu(z_develop(z)))
        bnz = bn_zd[...]
        d0 = jnp.maximum(
            im2col_matmul(z, cat_zd, m_zd, bnz[0:1, :], 1, z_dim, z_dim,
                          z_dim - 1, n_z), 0.0)
        d0 = batchnorm(d0, sch_zd, B * hp2 * hp2, bnz[1:2, :], bnz[2:3, :])

        # dec1 = bn_dec2(relu(conv_dec2(unpool(dec2, idx2))))
        u2 = maxunpool(d0, masks2, s2a, s2b, ui2, h2 // 2)
        bnd = bn_d2[...]
        d1 = jnp.maximum(
            im2col_matmul(u2, cat_d2, m_d2, bnd[0:1, :], h2, hp1, K, K - 1,
                          h2 * 16), 0.0)
        d1 = batchnorm(d1, sch_d2, B * hp1 * hp1, bnd[1:2, :], bnd[2:3, :])

        # x_bar = sigmoid(conv_dec1(unpool(dec1, idx1)))   [lane-dense store]
        u1 = maxunpool(d1, masks1, s1a, s1b, ui1, h1 // 2)
        xb = im2col_matmul(u1, cat_d1, m_d1, b_d1[...], h1, h, K, K - 1,
                           h1 * 6)
        xbar_ref[...] = pl.reciprocal(1.0 + jnp.exp(-xb), approx=True)

    scratch = [
        pltpu.VMEM((h1 * B, K * _ceil_to(h * c, 128)), jnp.float32),       # cat_e1
        pltpu.VMEM((h2 * B, K * _ceil_to(hp1 * 6, 128)), jnp.float32),     # cat_e2
        pltpu.VMEM((1 * B, z_dim * _ceil_to(hp2 * 16, 128)), jnp.float32), # cat_z
        pltpu.VMEM((z_dim * B, z_dim * _ceil_to(n_z, 128)), jnp.float32),  # cat_zd
        pltpu.VMEM((hp1 * B, K * _ceil_to(h2 * 16, 128)), jnp.float32),    # cat_d2
        pltpu.VMEM((h * B, K * _ceil_to(h1 * 6, 128)), jnp.float32),       # cat_d1
        pltpu.VMEM((h1 * B, h1 * 6), jnp.float32),     # prc1 (pool1 rows)
        pltpu.VMEM((h2 * B, h2 * 16), jnp.float32),    # prc2 (pool2 rows)
        pltpu.VMEM((h2 * B, h2 * 16), jnp.float32),    # ui2  (unpool2 out)
        pltpu.VMEM((h1 * B, h1 * 6), jnp.float32),     # ui1  (unpool1 out)
    ]
    return kernel, scratch


# ---------------------------------------------------------------------------
# Forward builder
# ---------------------------------------------------------------------------
def make_fcae_forward(in_shape, n_z, batch):
    c, h, w = in_shape
    wc = w * c
    wc_pad = _ceil_to(wc, 128)
    kernel, scratch = _make_fcae_kernel(in_shape, n_z, batch)
    out_shape = (
        jax.ShapeDtypeStruct((h * batch, wc_pad), jnp.float32),  # x_bar slab
        jax.ShapeDtypeStruct((batch, n_z), jnp.float32),         # z_flat
    )
    vmem = pl.BlockSpec(memory_space=pltpu.MemorySpace.VMEM)

    @jax.jit
    def forward(prep, x_nchw):
        # NCHW -> 2-D slab: rows = (h, n) h-major, cols = (w, c).
        xs = jnp.transpose(x_nchw, (2, 0, 3, 1)).astype(jnp.float32)
        xs = xs.reshape(h * batch, wc)
        xbar_slab, z_flat = pl.pallas_call(
            kernel,
            out_shape=out_shape,
            in_specs=[vmem] * (1 + len(prep)),
            out_specs=(vmem, vmem),
            scratch_shapes=scratch,
            compiler_params=pltpu.CompilerParams(
                vmem_limit_bytes=64 * 1024 * 1024),
        )(xs, *prep)
        xbar = xbar_slab[:, :wc].reshape(h, batch, w, c)
        x_bar = jnp.transpose(xbar, (1, 3, 0, 2))
        return x_bar, z_flat

    return forward


# ---------------------------------------------------------------------------
# Deterministic parameter init (mimics torch default init; BN gamma=1, beta=0)
# ---------------------------------------------------------------------------
def _uniform(key, shape, bound):
    return jax.random.uniform(key, shape, jnp.float32, minval=-bound,
                              maxval=bound)


def init_fcae_params(key, in_shape, n_z):
    c, h, w = in_shape
    z_dim = h // 2 ** 2 - 3
    ks = jax.random.split(key, 12)

    def conv(kw_, kb_, co, ci, k):
        bound = 1.0 / np.sqrt(ci * k * k)
        return _uniform(kw_, (co, ci, k, k), bound), _uniform(kb_, (co,), bound)

    def convT(kw_, kb_, ci, co, k):
        bound = 1.0 / np.sqrt(co * k * k)
        return _uniform(kw_, (ci, co, k, k), bound), _uniform(kb_, (co,), bound)

    p = {}
    p['w_enc1'], p['b_enc1'] = conv(ks[0], ks[1], 6, c, 5)
    p['w_enc2'], p['b_enc2'] = conv(ks[2], ks[3], 16, 6, 5)
    p['w_z'], p['b_z'] = conv(ks[4], ks[5], n_z, 16, z_dim)
    p['w_zdev'], p['b_zdev'] = convT(ks[6], ks[7], n_z, 16, z_dim)
    p['w_dec2'], p['b_dec2'] = convT(ks[8], ks[9], 16, 6, 5)
    p['w_dec1'], p['b_dec1'] = convT(ks[10], ks[11], 6, c, 5)
    p['g_enc1'], p['bt_enc1'] = jnp.ones((6,), jnp.float32), jnp.zeros((6,), jnp.float32)
    p['g_enc2'], p['bt_enc2'] = jnp.ones((16,), jnp.float32), jnp.zeros((16,), jnp.float32)
    p['g_zdev'], p['bt_zdev'] = jnp.ones((16,), jnp.float32), jnp.zeros((16,), jnp.float32)
    p['g_dec2'], p['bt_dec2'] = jnp.ones((6,), jnp.float32), jnp.zeros((6,), jnp.float32)
    return p


# ---------------------------------------------------------------------------
if __name__ == "__main__":
    root = jax.random.PRNGKey(0)
    k_param, k_x = jax.random.split(root)

    N, C, H, W = 2, 3, 32, 32          # in_shape = (3, 32, 32) -> z_dim = 5
    n_z = 8

    params = init_fcae_params(k_param, (C, H, W), n_z)
    prep = prepare_fcae(params, (C, H, W), n_z)
    forward = make_fcae_forward((C, H, W), n_z, N)

    x = jax.random.normal(k_x, (N, C, H, W), dtype=jnp.float32)
    x_bar, z_flat = forward(prep, x)
    jax.block_until_ready((x_bar, z_flat))

    assert x_bar.shape == (N, C, H, W), x_bar.shape
    assert z_flat.shape == (N, n_z), z_flat.shape
    assert bool(jnp.all(jnp.isfinite(x_bar))) and bool(jnp.all(jnp.isfinite(z_flat)))
    # sigmoid range (tiny slack for the approx-EUP reciprocal epilogue)
    assert bool(jnp.all((x_bar >= -1e-6) & (x_bar <= 1.0 + 1e-3)))
    print("KERNEL_OK")
</pallas_src>

<mosaic_0001>
module attributes {stable_mosaic.version = 11 : i64} {
  func.func @kernel(%arg0: memref<64x96xf32, #tpu.memory_space<vmem>>, %arg1: memref<640x168xf32, #tpu.memory_space<vmem>>, %arg2: memref<3x168xf32, #tpu.memory_space<vmem>>, %arg3: memref<168x168xf32, #tpu.memory_space<vmem>>, %arg4: memref<640x160xf32, #tpu.memory_space<vmem>>, %arg5: memref<3x160xf32, #tpu.memory_space<vmem>>, %arg6: memref<160x160xf32, #tpu.memory_space<vmem>>, %arg7: memref<640x8xf32, #tpu.memory_space<vmem>>, %arg8: memref<1x8xf32, #tpu.memory_space<vmem>>, %arg9: memref<640x80xf32, #tpu.memory_space<vmem>>, %arg10: memref<3x80xf32, #tpu.memory_space<vmem>>, %arg11: memref<80x80xf32, #tpu.memory_space<vmem>>, %arg12: memref<1280x84xf32, #tpu.memory_space<vmem>>, %arg13: memref<3x84xf32, #tpu.memory_space<vmem>>, %arg14: memref<84x84xf32, #tpu.memory_space<vmem>>, %arg15: memref<1280x128xf32, #tpu.memory_space<vmem>>, %arg16: memref<1x128xf32, #tpu.memory_space<vmem>>, %arg17: memref<168x168xf32, #tpu.memory_space<vmem>>, %arg18: memref<84x168xf32, #tpu.memory_space<vmem>>, %arg19: memref<84x168xf32, #tpu.memory_space<vmem>>, %arg20: memref<160x160xf32, #tpu.memory_space<vmem>>, %arg21: memref<80x160xf32, #tpu.memory_space<vmem>>, %arg22: memref<80x160xf32, #tpu.memory_space<vmem>>, %arg23: memref<64x128xf32, #tpu.memory_space<vmem>>, %arg24: memref<2x8xf32, #tpu.memory_space<vmem>>, %arg25: memref<56x640xf32, #tpu.memory_space<vmem>>, %arg26: memref<20x640xf32, #tpu.memory_space<vmem>>, %arg27: memref<2x640xf32, #tpu.memory_space<vmem>>, %arg28: memref<10x640xf32, #tpu.memory_space<vmem>>, %arg29: memref<28x1280xf32, #tpu.memory_space<vmem>>, %arg30: memref<64x1280xf32, #tpu.memory_space<vmem>>, %arg31: memref<56x168xf32, #tpu.memory_space<vmem>>, %arg32: memref<20x160xf32, #tpu.memory_space<vmem>>, %arg33: memref<20x160xf32, #tpu.memory_space<vmem>>, %arg34: memref<56x168xf32, #tpu.memory_space<vmem>>) attributes {dimension_semantics = [], scalar_prefetch = 0 : i64, scratch_operands = 10 : i64, tpu.core_type = #tpu.core_type<tc>} {
    %c0 = arith.constant 0 : index
    %c0_0 = arith.constant 0 : index
    %0 = vector.load %arg0[%c0, %c0_0] : memref<64x96xf32, #tpu.memory_space<vmem>>, vector<64x96xf32>
    %c0_1 = arith.constant 0 : index
    %c0_2 = arith.constant 0 : index
    %1 = vector.load %arg2[%c0_1, %c0_2] : memref<3x168xf32, #tpu.memory_space<vmem>>, vector<3x168xf32>
    %2 = vector.extract_strided_slice %1 {offsets = [0, 0], sizes = [1, 168], strides = [1, 1]} : vector<3x168xf32> to vector<1x168xf32>
    %cst = arith.constant 0.000000e+00 : f32
    %3 = vector.broadcast %cst : f32 to vector<56x640xf32>
    %c0_3 = arith.constant 0 : index
    %c0_4 = arith.constant 0 : index
    %4 = vector.load %arg25[%c0_3, %c0_4] : memref<56x640xf32, #tpu.memory_space<vmem>>, vector<56x640xf32>
    tpu.vector_store %arg25[%c0_3, %c0_4], %3 {strides = array<i32>} : memref<56x640xf32, #tpu.memory_space<vmem>>, vector<56x640xf32>,
    %5 = vector.extract_strided_slice %0 {offsets = [0, 0], sizes = [56, 96], strides = [1, 1]} : vector<64x96xf32> to vector<56x96xf32>
    %c0_5 = arith.constant 0 : index
    %c0_6 = arith.constant 0 : index
    %6 = vector.load %arg25[%c0_5, %c0_6] : memref<56x640xf32, #tpu.memory_space<vmem>>, vector<56x96xf32>
    tpu.vector_store %arg25[%c0_5, %c0_6], %5 {strides = array<i32>} : memref<56x640xf32, #tpu.memory_space<vmem>>, vector<56x96xf32>,
    %7 = vector.extract_strided_slice %0 {offsets = [2, 0], sizes = [56, 96], strides = [1, 1]} : vector<64x96xf32> to vector<56x96xf32>
    %c0_7 = arith.constant 0 : index
    %c128 = arith.constant 128 : index
    %8 = vector.load %arg25[%c0_7, %c128] : memref<56x640xf32, #tpu.memory_space<vmem>>, vector<56x96xf32>
    tpu.vector_store %arg25[%c0_7, %c128], %7 {strides = array<i32>} : memref<56x640xf32, #tpu.memory_space<vmem>>, vector<56x96xf32>,
    %9 = vector.extract_strided_slice %0 {offsets = [4, 0], sizes = [56, 96], strides = [1, 1]} : vector<64x96xf32> to vector<56x96xf32>
    %c0_8 = arith.constant 0 : index
    %c256 = arith.constant 256 : index
    %10 = vector.load %arg25[%c0_8, %c256] : memref<56x640xf32, #tpu.memory_space<vmem>>, vector<56x96xf32>
    tpu.vector_store %arg25[%c0_8, %c256], %9 {strides = array<i32>} : memref<56x640xf32, #tpu.memory_space<vmem>>, vector<56x96xf32>,
    %11 = vector.extract_strided_slice %0 {offsets = [6, 0], sizes = [56, 96], strides = [1, 1]} : vector<64x96xf32> to vector<56x96xf32>
    %c0_9 = arith.constant 0 : index
    %c384 = arith.constant 384 : index
    %12 = vector.load %arg25[%c0_9, %c384] : memref<56x640xf32, #tpu.memory_space<vmem>>, vector<56x96xf32>
    tpu.vector_store %arg25[%c0_9, %c384], %11 {strides = array<i32>} : memref<56x640xf32, #tpu.memory_space<vmem>>, vector<56x96xf32>,
    %13 = vector.extract_strided_slice %0 {offsets = [8, 0], sizes = [56, 96], strides = [1, 1]} : vector<64x96xf32> to vector<56x96xf32>
    %c0_10 = arith.constant 0 : index
    %c512 = arith.constant 512 : index
    %14 = vector.load %arg25[%c0_10, %c512] : memref<56x640xf32, #tpu.memory_space<vmem>>, vector<56x96xf32>
    tpu.vector_store %arg25[%c0_10, %c512], %13 {strides = array<i32>} : memref<56x640xf32, #tpu.memory_space<vmem>>, vector<56x96xf32>,
    %c0_11 = arith.constant 0 : index
    %c0_12 = arith.constant 0 : index
    %15 = vector.load %arg25[%c0_11, %c0_12] : memref<56x640xf32, #tpu.memory_space<vmem>>, vector<56x640xf32>
    %c0_13 = arith.constant 0 : index
    %c0_14 = arith.constant 0 : index
    %16 = vector.load %arg1[%c0_13, %c0_14] : memref<640x168xf32, #tpu.memory_space<vmem>>, vector<640x168xf32>
    %cst_15 = arith.constant dense<0.000000e+00> : vector<56x168xf32>
    %17 = tpu.matmul %15, %16, %cst_15 {dimension_numbers = #tpu.dot_dimension_numbers<[1], [0], [0], [1], [0, 0, 1, 1], [], []>} : vector<56x640xf32>, vector<640x168xf32>, vector<56x168xf32> -> vector<56x168xf32>
    %18 = vector.broadcast %2 : vector<1x168xf32> to vector<56x168xf32>
    %19 = arith.addf %17, %18 : vector<56x168xf32>
    %cst_16 = arith.constant 0.000000e+00 : f32
    %20 = vector.broadcast %cst_16 : f32 to vector<56x168xf32>
    %21 = arith.maximumf %19, %20 : vector<56x168xf32>
    %22 = vector.extract_strided_slice %1 {offsets = [1, 0], sizes = [1, 168], strides = [1, 1]} : vector<3x168xf32> to vector<1x168xf32>
    %23 = vector.extract_strided_slice %1 {offsets = [2, 0], sizes = [1, 168], strides = [1, 1]} : vector<3x168xf32> to vector<1x168xf32>
    %cst_17 = arith.constant dense<0.000000e+00> : vector<168xf32>
    %24 = vector.multi_reduction <add>, %21, %cst_17 [0] : vector<56x168xf32> to vector<168xf32>
    %25 = vector.shape_cast %24 : vector<168xf32> to vector<1x168xf32>
    %26 = arith.mulf %21, %21 : vector<56x168xf32>
    %cst_18 = arith.constant dense<0.000000e+00> : vector<168xf32>
    %27 = vector.multi_reduction <add>, %26, %cst_18 [0] : vector<56x168xf32> to vector<168xf32>
    %28 = vector.shape_cast %27 : vector<168xf32> to vector<1x168xf32>
    %29 = tpu.iota {dimensions = array<i32: 0>} : vector<2x168xi32>
    %c0_i32 = arith.constant 0 : i32
    %30 = vector.broadcast %c0_i32 : i32 to vector<2x168xi32>
    %31 = arith.cmpi eq, %29, %30 : vector<2x168xi32>
    %32 = vector.shape_cast %25 : vector<1x168xf32> to vector<1x168xf32>
    %33 = vector.broadcast %32 : vector<1x168xf32> to vector<2x168xf32>
    %34 = vector.shape_cast %28 : vector<1x168xf32> to vector<1x168xf32>
    %35 = vector.broadcast %34 : vector<1x168xf32> to vector<2x168xf32>
    %36 = arith.select %31, %33, %35 : vector<2x168xi1>, vector<2x168xf32>
    %c0_19 = arith.constant 0 : index
    %c0_20 = arith.constant 0 : index
    %37 = vector.load %arg3[%c0_19, %c0_20] : memref<168x168xf32, #tpu.memory_space<vmem>>, vector<168x168xf32>
    %cst_21 = arith.constant dense<0.000000e+00> : vector<2x168xf32>
    %38 = tpu.matmul %36, %37, %cst_21 {dimension_numbers = #tpu.dot_dimension_numbers<[1], [0], [0], [1], [0, 0, 1, 1], [], []>} : vector<2x168xf32>, vector<168x168xf32>, vector<2x168xf32> -> vector<2x168xf32>
    %cst_22 = arith.constant 6.37755089E-4 : f32
    %39 = vector.broadcast %cst_22 : f32 to vector<2x168xf32>
    %40 = arith.mulf %38, %39 : vector<2x168xf32>
    %41 = vector.extract_strided_slice %40 {offsets = [0, 0], sizes = [1, 168], strides = [1, 1]} : vector<2x168xf32> to vector<1x168xf32>
    %42 = vector.extract_strided_slice %40 {offsets = [1, 0], sizes = [1, 168], strides = [1, 1]} : vector<2x168xf32> to vector<1x168xf32>
    %43 = arith.mulf %41, %41 : vector<1x168xf32>
    %44 = arith.subf %42, %43 : vector<1x168xf32>
    %cst_23 = arith.constant 0.000000e+00 : f32
    %45 = vector.broadcast %cst_23 : f32 to vector<1x168xf32>
    %46 = arith.maximumf %44, %45 : vector<1x168xf32>
    %47 = vector.broadcast %41 : vector<1x168xf32> to vector<56x168xf32>
    %48 = arith.subf %21, %47 : vector<56x168xf32>
    %cst_24 = arith.constant 9.99999974E-6 : f32
    %49 = vector.broadcast %cst_24 : f32 to vector<1x168xf32>
    %50 = arith.addf %46, %49 : vector<1x168xf32>
    %51 = math.rsqrt %50 : vector<1x168xf32>
    %52 = vector.broadcast %51 : vector<1x168xf32> to vector<56x168xf32>
    %53 = arith.mulf %48, %52 : vector<56x168xf32>
    %54 = vector.broadcast %22 : vector<1x168xf32> to vector<56x168xf32>
    %55 = arith.mulf %53, %54 : vector<56x168xf32>
    %56 = vector.broadcast %23 : vector<1x168xf32> to vector<56x168xf32>
    %57 = arith.addf %55, %56 : vector<56x168xf32>
    %58 = vector.extract_strided_slice %57 {offsets = [0, 0], sizes = [2, 168], strides = [1, 1]} : vector<56x168xf32> to vector<2x168xf32>
    %c0_25 = arith.constant 0 : index
    %c0_26 = arith.constant 0 : index
    %59 = vector.load %arg31[%c0_25, %c0_26] : memref<56x168xf32, #tpu.memory_space<vmem>>, vector<2x168xf32>
    tpu.vector_store %arg31[%c0_25, %c0_26], %58 {strides = array<i32>} : memref<56x168xf32, #tpu.memory_space<vmem>>, vector<2x168xf32>,
    %60 = vector.extract_strided_slice %57 {offsets = [2, 0], sizes = [2, 168], strides = [1, 1]} : vector<56x168xf32> to vector<2x168xf32>
    %c28 = arith.constant 28 : index
    %c0_27 = arith.constant 0 : index
    %61 = vector.load %arg31[%c28, %c0_27] : memref<56x168xf32, #tpu.memory_space<vmem>>, vector<2x168xf32>
    tpu.vector_store %arg31[%c28, %c0_27], %60 {strides = array<i32>} : memref<56x168xf32, #tpu.memory_space<vmem>>, vector<2x168xf32>,
    %62 = vector.extract_strided_slice %57 {offsets = [4, 0], sizes = [2, 168], strides = [1, 1]} : vector<56x168xf32> to vector<2x168xf32>
    %c2 = arith.constant 2 : index
    %c0_28 = arith.constant 0 : index
    %63 = vector.load %arg31[%c2, %c0_28] : memref<56x168xf32, #tpu.memory_space<vmem>>, vector<2x168xf32>
    tpu.vector_store %arg31[%c2, %c0_28], %62 {strides = array<i32>} : memref<56x168xf32, #tpu.memory_space<vmem>>, vector<2x168xf32>,
    %64 = vector.extract_strided_slice %57 {offsets = [6, 0], sizes = [2, 168], strides = [1, 1]} : vector<56x168xf32> to vector<2x168xf32>
    %c30 = arith.constant 30 : index
    %c0_29 = arith.constant 0 : index
    %65 = vector.load %arg31[%c30, %c0_29] : memref<56x168xf32, #tpu.memory_space<vmem>>, vector<2x168xf32>
    tpu.vector_store %arg31[%c30, %c0_29], %64 {strides = array<i32>} : memref<56x168xf32, #tpu.memory_space<vmem>>, vector<2x168xf32>,
    %66 = vector.extract_strided_slice %57 {offsets = [8, 0], sizes = [2, 168], strides = [1, 1]} : vector<56x168xf32> to vector<2x168xf32>
    %c4 = arith.constant 4 : index
    %c0_30 = arith.constant 0 : index
    %67 = vector.load %arg31[%c4, %c0_30] : memref<56x168xf32, #tpu.memory_space<vmem>>, vector<2x168xf32>
    tpu.vector_store %arg31[%c4, %c0_30], %66 {strides = array<i32>} : memref<56x168xf32, #tpu.memory_space<vmem>>, vector<2x168xf32>,
    %68 = vector.extract_strided_slice %57 {offsets = [10, 0], sizes = [2, 168], strides = [1, 1]} : vector<56x168xf32> to vector<2x168xf32>
    %c32 = arith.constant 32 : index
    %c0_31 = arith.constant 0 : index
    %69 = vector.load %arg31[%c32, %c0_31] : memref<56x168xf32, #tpu.memory_space<vmem>>, vector<2x168xf32>
    tpu.vector_store %arg31[%c32, %c0_31], %68 {strides = array<i32>} : memref<56x168xf32, #tpu.memory_space<vmem>>, vector<2x168xf32>,
    %70 = vector.extract_strided_slice %57 {offsets = [12, 0], sizes = [2, 168], strides = [1, 1]} : vector<56x168xf32> to vector<2x168xf32>
    %c6 = arith.constant 6 : index
    %c0_32 = arith.constant 0 : index
    %71 = vector.load %arg31[%c6, %c0_32] : memref<56x168xf32, #tpu.memory_space<vmem>>, vector<2x168xf32>
    tpu.vector_store %arg31[%c6, %c0_32], %70 {strides = array<i32>} : memref<56x168xf32, #tpu.memory_space<vmem>>, vector<2x168xf32>,
    %72 = vector.extract_strided_slice %57 {offsets = [14, 0], sizes = [2, 168], strides = [1, 1]} : vector<56x168xf32> to vector<2x168xf32>
    %c34 = arith.constant 34 : index
    %c0_33 = arith.constant 0 : index
    %73 = vector.load %arg31[%c34, %c0_33] : memref<56x168xf32, #tpu.memory_space<vmem>>, vector<2x168xf32>
    tpu.vector_store %arg31[%c34, %c0_33], %72 {strides = array<i32>} : memref<56x168xf32, #tpu.memory_space<vmem>>, vector<2x168xf32>,
    %74 = vector.extract_strided_slice %57 {offsets = [16, 0], sizes = [2, 168], strides = [1, 1]} : vector<56x168xf32> to vector<2x168xf32>
    %c8 = arith.constant 8 : index
    %c0_34 = arith.constant 0 : index
    %75 = vector.load %arg31[%c8, %c0_34] : memref<56x168xf32, #tpu.memory_space<vmem>>, vector<2x168xf32>
    tpu.vector_store %arg31[%c8, %c0_34], %74 {strides = array<i32>} : memref<56x168xf32, #tpu.memory_space<vmem>>, vector<2x168xf32>,
    %76 = vector.extract_strided_slice %57 {offsets = [18, 0], sizes = [2, 168], strides = [1, 1]} : vector<56x168xf32> to vector<2x168xf32>
    %c36 = arith.constant 36 : index
    %c0_35 = arith.constant 0 : index
    %77 = vector.load %arg31[%c36, %c0_35] : memref<56x168xf32, #tpu.memory_space<vmem>>, vector<2x168xf32>
    tpu.vector_store %arg31[%c36, %c0_35], %76 {strides = array<i32>} : memref<56x168xf32, #tpu.memory_space<vmem>>, vector<2x168xf32>,
    %78 = vector.extract_strided_slice %57 {offsets = [20, 0], sizes = [2, 168], strides = [1, 1]} : vector<56x168xf32> to vector<2x168xf32>
    %c10 = arith.constant 10 : index
    %c0_36 = arith.constant 0 : index
    %79 = vector.load %arg31[%c10, %c0_36] : memref<56x168xf32, #tpu.memory_space<vmem>>, vector<2x168xf32>
    tpu.vector_store %arg31[%c10, %c0_36], %78 {strides = array<i32>} : memref<56x168xf32, #tpu.memory_space<vmem>>, vector<2x168xf32>,
    %80 = vector.extract_strided_slice %57 {offsets = [22, 0], sizes = [2, 168], strides = [1, 1]} : vector<56x168xf32> to vector<2x168xf32>
    %c38 = arith.constant 38 : index
    %c0_37 = arith.constant 0 : index
    %81 = vector.load %arg31[%c38, %c0_37] : memref<56x168xf32, #tpu.memory_space<vmem>>, vector<2x168xf32>
    tpu.vector_store %arg31[%c38, %c0_37], %80 {strides = array<i32>} : memref<56x168xf32, #tpu.memory_space<vmem>>, vector<2x168xf32>,
    %82 = vector.extract_strided_slice %57 {offsets = [24, 0], sizes = [2, 168], strides = [1, 1]} : vector<56x168xf32> to vector<2x168xf32>
    %c12 = arith.constant 12 : index
    %c0_38 = arith.constant 0 : index
    %83 = vector.load %arg31[%c12, %c0_38] : memref<56x168xf32, #tpu.memory_space<vmem>>, vector<2x168xf32>
    tpu.vector_store %arg31[%c12, %c0_38], %82 {strides = array<i32>} : memref<56x168xf32, #tpu.memory_space<vmem>>, vector<2x168xf32>,
    %84 = vector.extract_strided_slice %57 {offsets = [26, 0], sizes = [2, 168], strides = [1, 1]} : vector<56x168xf32> to vector<2x168xf32>
    %c40 = arith.constant 40 : index
    %c0_39 = arith.constant 0 : index
    %85 = vector.load %arg31[%c40, %c0_39] : memref<56x168xf32, #tpu.memory_space<vmem>>, vector<2x168xf32>
    tpu.vector_store %arg31[%c40, %c0_39], %84 {strides = array<i32>} : memref<56x168xf32, #tpu.memory_space<vmem>>, vector<2x168xf32>,
    %86 = vector.extract_strided_slice %57 {offsets = [28, 0], sizes = [2, 168], strides = [1, 1]} : vector<56x168xf32> to vector<2x168xf32>
    %c14 = arith.constant 14 : index
    %c0_40 = arith.constant 0 : index
    %87 = vector.load %arg31[%c14, %c0_40] : memref<56x168xf32, #tpu.memory_space<vmem>>, vector<2x168xf32>
    tpu.vector_store %arg31[%c14, %c0_40], %86 {strides = array<i32>} : memref<56x168xf32, #tpu.memory_space<vmem>>, vector<2x168xf32>,
    %88 = vector.extract_strided_slice %57 {offsets = [30, 0], sizes = [2, 168], strides = [1, 1]} : vector<56x168xf32> to vector<2x168xf32>
    %c42 = arith.constant 42 : index
    %c0_41 = arith.constant 0 : index
    %89 = vector.load %arg31[%c42, %c0_41] : memref<56x168xf32, #tpu.memory_space<vmem>>, vector<2x168xf32>
    tpu.vector_store %arg31[%c42, %c0_41], %88 {strides = array<i32>} : memref<56x168xf32, #tpu.memory_space<vmem>>, vector<2x168xf32>,
    %90 = vector.extract_strided_slice %57 {offsets = [32, 0], sizes = [2, 168], strides = [1, 1]} : vector<56x168xf32> to vector<2x168xf32>
    %c16 = arith.constant 16 : index
    %c0_42 = arith.constant 0 : index
    %91 = vector.load %arg31[%c16, %c0_42] : memref<56x168xf32, #tpu.memory_space<vmem>>, vector<2x168xf32>
    tpu.vector_store %arg31[%c16, %c0_42], %90 {strides = array<i32>} : memref<56x168xf32, #tpu.memory_space<vmem>>, vector<2x168xf32>,
    %92 = vector.extract_strided_slice %57 {offsets = [34, 0], sizes = [2, 168], strides = [1, 1]} : vector<56x168xf32> to vector<2x168xf32>
    %c44 = arith.constant 44 : index
    %c0_43 = arith.constant 0 : index
    %93 = vector.load %arg31[%c44, %c0_43] : memref<56x168xf32, #tpu.memory_space<vmem>>, vector<2x168xf32>
    tpu.vector_store %arg31[%c44, %c0_43], %92 {strides = array<i32>} : memref<56x168xf32, #tpu.memory_space<vmem>>, vector<2x168xf32>,
    %94 = vector.extract_strided_slice %57 {offsets = [36, 0], sizes = [2, 168], strides = [1, 1]} : vector<56x168xf32> to vector<2x168xf32>
    %c18 = arith.constant 18 : index
    %c0_44 = arith.constant 0 : index
    %95 = vector.load %arg31[%c18, %c0_44] : memref<56x168xf32, #tpu.memory_space<vmem>>, vector<2x168xf32>
    tpu.vector_store %arg31[%c18, %c0_44], %94 {strides = array<i32>} : memref<56x168xf32, #tpu.memory_space<vmem>>, vector<2x168xf32>,
    %96 = vector.extract_strided_slice %57 {offsets = [38, 0], sizes = [2, 168], strides = [1, 1]} : vector<56x168xf32> to vector<2x168xf32>
    %c46 = arith.constant 46 : index
    %c0_45 = arith.constant 0 : index
    %97 = vector.load %arg31[%c46, %c0_45] : memref<56x168xf32, #tpu.memory_space<vmem>>, vector<2x168xf32>
    tpu.vector_store %arg31[%c46, %c0_45], %96 {strides = array<i32>} : memref<56x168xf32, #tpu.memory_space<vmem>>, vector<2x168xf32>,
    %98 = vector.extract_strided_slice %57 {offsets = [40, 0], sizes = [2, 168], strides = [1, 1]} : vector<56x168xf32> to vector<2x168xf32>
    %c20 = arith.constant 20 : index
    %c0_46 = arith.constant 0 : index
    %99 = vector.load %arg31[%c20, %c0_46] : memref<56x168xf32, #tpu.memory_space<vmem>>, vector<2x168xf32>
    tpu.vector_store %arg31[%c20, %c0_46], %98 {strides = array<i32>} : memref<56x168xf32, #tpu.memory_space<vmem>>, vector<2x168xf32>,
    %100 = vector.extract_strided_slice %57 {offsets = [42, 0], sizes = [2, 168], strides = [1, 1]} : vector<56x168xf32> to vector<2x168xf32>
    %c48 = arith.constant 48 : index
    %c0_47 = arith.constant 0 : index
    %101 = vector.load %arg31[%c48, %c0_47] : memref<56x168xf32, #tpu.memory_space<vmem>>, vector<2x168xf32>
    tpu.vector_store %arg31[%c48, %c0_47], %100 {strides = array<i32>} : memref<56x168xf32, #tpu.memory_space<vmem>>, vector<2x168xf32>,
    %102 = vector.extract_strided_slice %57 {offsets = [44, 0], sizes = [2, 168], strides = [1, 1]} : vector<56x168xf32> to vector<2x168xf32>
    %c22 = arith.constant 22 : index
    %c0_48 = arith.constant 0 : index
    %103 = vector.load %arg31[%c22, %c0_48] : memref<56x168xf32, #tpu.memory_space<vmem>>, vector<2x168xf32>
    tpu.vector_store %arg31[%c22, %c0_48], %102 {strides = array<i32>} : memref<56x168xf32, #tpu.memory_space<vmem>>, vector<2x168xf32>,
    %104 = vector.extract_strided_slice %57 {offsets = [46, 0], sizes = [2, 168], strides = [1, 1]} : vector<56x168xf32> to vector<2x168xf32>
    %c50 = arith.constant 50 : index
    %c0_49 = arith.constant 0 : index
    %105 = vector.load %arg31[%c50, %c0_49] : memref<56x168xf32, #tpu.memory_space<vmem>>, vector<2x168xf32>
    tpu.vector_store %arg31[%c50, %c0_49], %104 {strides = array<i32>} : memref<56x168xf32, #tpu.memory_space<vmem>>, vector<2x168xf32>,
    %106 = vector.extract_strided_slice %57 {offsets = [48, 0], sizes = [2, 168], strides = [1, 1]} : vector<56x168xf32> to vector<2x168xf32>
    %c24 = arith.constant 24 : index
    %c0_50 = arith.constant 0 : index
    %107 = vector.load %arg31[%c24, %c0_50] : memref<56x168xf32, #tpu.memory_space<vmem>>, vector<2x168xf32>
    tpu.vector_store %arg31[%c24, %c0_50], %106 {strides = array<i32>} : memref<56x168xf32, #tpu.memory_space<vmem>>, vector<2x168xf32>,
    %108 = vector.extract_strided_slice %57 {offsets = [50, 0], sizes = [2, 168], strides = [1, 1]} : vector<56x168xf32> to vector<2x168xf32>
    %c52 = arith.constant 52 : index
    %c0_51 = arith.constant 0 : index
    %109 = vector.load %arg31[%c52, %c0_51] : memref<56x168xf32, #tpu.memory_space<vmem>>, vector<2x168xf32>
    tpu.vector_store %arg31[%c52, %c0_51], %108 {strides = array<i32>} : memref<56x168xf32, #tpu.memory_space<vmem>>, vector<2x168xf32>,
    %110 = vector.extract_strided_slice %57 {offsets = [52, 0], sizes = [2, 168], strides = [1, 1]} : vector<56x168xf32> to vector<2x168xf32>
    %c26 = arith.constant 26 : index
    %c0_52 = arith.constant 0 : index
    %111 = vector.load %arg31[%c26, %c0_52] : memref<56x168xf32, #tpu.memory_space<vmem>>, vector<2x168xf32>
    tpu.vector_store %arg31[%c26, %c0_52], %110 {strides = array<i32>} : memref<56x168xf32, #tpu.memory_space<vmem>>, vector<2x168xf32>,
    %112 = vector.extract_strided_slice %57 {offsets = [54, 0], sizes = [2, 168], strides = [1, 1]} : vector<56x168xf32> to vector<2x168xf32>
    %c54 = arith.constant 54 : index
    %c0_53 = arith.constant 0 : index
    %113 = vector.load %arg31[%c54, %c0_53] : memref<56x168xf32, #tpu.memory_space<vmem>>, vector<2x168xf32>
    tpu.vector_store %arg31[%c54, %c0_53], %112 {strides = array<i32>} : memref<56x168xf32, #tpu.memory_space<vmem>>, vector<2x168xf32>,
    %c0_54 = arith.constant 0 : index
    %c0_55 = arith.constant 0 : index
    %114 = vector.load %arg31[%c0_54, %c0_55] : memref<56x168xf32, #tpu.memory_space<vmem>>, vector<56x168xf32>
    %c0_56 = arith.constant 0 : index
    %c0_57 = arith.constant 0 : index
    %115 = vector.load %arg17[%c0_56, %c0_57] : memref<168x168xf32, #tpu.memory_space<vmem>>, vector<168x168xf32>
    %cst_58 = arith.constant dense<0.000000e+00> : vector<56x168xf32>
    %116 = tpu.matmul %114, %115, %cst_58 {dimension_numbers = #tpu.dot_dimension_numbers<[1], [0], [0], [1], [0, 0, 1, 1], [], []>} : vector<56x168xf32>, vector<168x168xf32>, vector<56x168xf32> -> vector<56x168xf32>
    %117 = vector.extract_strided_slice %116 {offsets = [0, 0], sizes = [28, 84], strides = [1, 1]} : vector<56x168xf32> to vector<28x84xf32>
    %118 = vector.extract_strided_slice %116 {offsets = [0, 84], sizes = [28, 84], strides = [1, 1]} : vector<56x168xf32> to vector<28x84xf32>
    %119 = vector.extract_strided_slice %116 {offsets = [28, 0], sizes = [28, 84], strides = [1, 1]} : vector<56x168xf32> to vector<28x84xf32>
    %120 = vector.extract_strided_slice %116 {offsets = [28, 84], sizes = [28, 84], strides = [1, 1]} : vector<56x168xf32> to vector<28x84xf32>
    %121 = arith.maximumf %117, %118 : vector<28x84xf32>
    %122 = arith.maximumf %119, %120 : vector<28x84xf32>
    %123 = arith.maximumf %121, %122 : vector<28x84xf32>
    %124 = arith.cmpf oeq, %117, %123 : vector<28x84xf32>
    %125 = arith.cmpf oeq, %118, %123 : vector<28x84xf32>
    %cst_59 = arith.constant dense<true> : vector<28x84xi1>
    %126 = arith.xori %124, %cst_59 : vector<28x84xi1>
    %127 = arith.andi %125, %126 : vector<28x84xi1>
    %128 = arith.cmpf oeq, %119, %123 : vector<28x84xf32>
    %129 = arith.ori %124, %127 : vector<28x84xi1>
    %cst_60 = arith.constant dense<true> : vector<28x84xi1>
    %130 = arith.xori %129, %cst_60 : vector<28x84xi1>
    %131 = arith.andi %128, %130 : vector<28x84xi1>
    %132 = arith.cmpf oeq, %120, %123 : vector<28x84xf32>
    %133 = arith.ori %124, %127 : vector<28x84xi1>
    %134 = arith.ori %133, %131 : vector<28x84xi1>
    %cst_61 = arith.constant dense<true> : vector<28x84xi1>
    %135 = arith.xori %134, %cst_61 : vector<28x84xi1>
    %136 = arith.andi %132, %135 : vector<28x84xi1>
    %c0_62 = arith.constant 0 : index
    %c0_63 = arith.constant 0 : index
    %137 = vector.load %arg5[%c0_62, %c0_63] : memref<3x160xf32, #tpu.memory_space<vmem>>, vector<3x160xf32>
    %138 = vector.extract_strided_slice %137 {offsets = [0, 0], sizes = [1, 160], strides = [1, 1]} : vector<3x160xf32> to vector<1x160xf32>
    %cst_64 = arith.constant 0.000000e+00 : f32
    %139 = vector.broadcast %cst_64 : f32 to vector<20x640xf32>
    %c0_65 = arith.constant 0 : index
    %c0_66 = arith.constant 0 : index
    %140 = vector.load %arg26[%c0_65, %c0_66] : memref<20x640xf32, #tpu.memory_space<vmem>>, vector<20x640xf32>
    tpu.vector_store %arg26[%c0_65, %c0_66], %139 {strides = array<i32>} : memref<20x640xf32, #tpu.memory_space<vmem>>, vector<20x640xf32>,
    %141 = vector.extract_strided_slice %123 {offsets = [0, 0], sizes = [20, 84], strides = [1, 1]} : vector<28x84xf32> to vector<20x84xf32>
    %c0_67 = arith.constant 0 : index
    %c0_68 = arith.constant 0 : index
    %142 = vector.load %arg26[%c0_67, %c0_68] : memref<20x640xf32, #tpu.memory_space<vmem>>, vector<20x84xf32>
    tpu.vector_store %arg26[%c0_67, %c0_68], %141 {strides = array<i32>} : memref<20x640xf32, #tpu.memory_space<vmem>>, vector<20x84xf32>,
    %143 = vector.extract_strided_slice %123 {offsets = [2, 0], sizes = [20, 84], strides = [1, 1]} : vector<28x84xf32> to vector<20x84xf32>
    %c0_69 = arith.constant 0 : index
    %c128_70 = arith.constant 128 : index
    %144 = vector.load %arg26[%c0_69, %c128_70] : memref<20x640xf32, #tpu.memory_space<vmem>>, vector<20x84xf32>
    tpu.vector_store %arg26[%c0_69, %c128_70], %143 {strides = array<i32>} : memref<20x640xf32, #tpu.memory_space<vmem>>, vector<20x84xf32>,
    %145 = vector.extract_strided_slice %123 {offsets = [4, 0], sizes = [20, 84], strides = [1, 1]} : vector<28x84xf32> to vector<20x84xf32>
    %c0_71 = arith.constant 0 : index
    %c256_72 = arith.constant 256 : index
    %146 = vector.load %arg26[%c0_71, %c256_72] : memref<20x640xf32, #tpu.memory_space<vmem>>, vector<20x84xf32>
    tpu.vector_store %arg26[%c0_71, %c256_72], %145 {strides = array<i32>} : memref<20x640xf32, #tpu.memory_space<vmem>>, vector<20x84xf32>,
    %147 = vector.extract_strided_slice %123 {offsets = [6, 0], sizes = [20, 84], strides = [1, 1]} : vector<28x84xf32> to vector<20x84xf32>
    %c0_73 = arith.constant 0 : index
    %c384_74 = arith.constant 384 : index
    %148 = vector.load %arg26[%c0_73, %c384_74] : memref<20x640xf32, #tpu.memory_space<vmem>>, vector<20x84xf32>
    tpu.vector_store %arg26[%c0_73, %c384_74], %147 {strides = array<i32>} : memref<20x640xf32, #tpu.memory_space<vmem>>, vector<20x84xf32>,
    %149 = vector.extract_strided_slice %123 {offsets = [8, 0], sizes = [20, 84], strides = [1, 1]} : vector<28x84xf32> to vector<20x84xf32>
    %c0_75 = arith.constant 0 : index
    %c512_76 = arith.constant 512 : index
    %150 = vector.load %arg26[%c0_75, %c512_76] : memref<20x640xf32, #tpu.memory_space<vmem>>, vector<20x84xf32>
    tpu.vector_store %arg26[%c0_75, %c512_76], %149 {strides = array<i32>} : memref<20x640xf32, #tpu.memory_space<vmem>>, vector<20x84xf32>,
    %c0_77 = arith.constant 0 : index
    %c0_78 = arith.constant 0 : index
    %151 = vector.load %arg26[%c0_77, %c0_78] : memref<20x640xf32, #tpu.memory_space<vmem>>, vector<20x640xf32>
    %c0_79 = arith.constant 0 : index
    %c0_80 = arith.constant 0 : index
    %152 = vector.load %arg4[%c0_79, %c0_80] : memref<640x160xf32, #tpu.memory_space<vmem>>, vector<640x160xf32>
    %cst_81 = arith.constant dense<0.000000e+00> : vector<20x160xf32>
    %153 = tpu.matmul %151, %152, %cst_81 {dimension_numbers = #tpu.dot_dimension_numbers<[1], [0], [0], [1], [0, 0, 1, 1], [], []>} : vector<20x640xf32>, vector<640x160xf32>, vector<20x160xf32> -> vector<20x160xf32>
    %154 = vector.broadcast %138 : vector<1x160xf32> to vector<20x160xf32>
    %155 = arith.addf %153, %154 : vector<20x160xf32>
    %cst_82 = arith.constant 0.000000e+00 : f32
    %156 = vector.broadcast %cst_82 : f32 to vector<20x160xf32>
    %157 = arith.maximumf %155, %156 : vector<20x160xf32>
    %158 = vector.extract_strided_slice %137 {offsets = [1, 0], sizes = [1, 160], strides = [1, 1]} : vector<3x160xf32> to vector<1x160xf32>
    %159 = vector.extract_strided_slice %137 {offsets = [2, 0], sizes = [1, 160], strides = [1, 1]} : vector<3x160xf32> to vector<1x160xf32>
    %cst_83 = arith.constant dense<0.000000e+00> : vector<160xf32>
    %160 = vector.multi_reduction <add>, %157, %cst_83 [0] : vector<20x160xf32> to vector<160xf32>
    %161 = vector.shape_cast %160 : vector<160xf32> to vector<1x160xf32>
    %162 = arith.mulf %157, %157 : vector<20x160xf32>
    %cst_84 = arith.constant dense<0.000000e+00> : vector<160xf32>
    %163 = vector.multi_reduction <add>, %162, %cst_84 [0] : vector<20x160xf32> to vector<160xf32>
    %164 = vector.shape_cast %163 : vector<160xf32> to vector<1x160xf32>
    %165 = tpu.iota {dimensions = array<i32: 0>} : vector<2x160xi32>
    %c0_i32_85 = arith.constant 0 : i32
    %166 = vector.broadcast %c0_i32_85 : i32 to vector<2x160xi32>
    %167 = arith.cmpi eq, %165, %166 : vector<2x160xi32>
    %168 = vector.shape_cast %161 : vector<1x160xf32> to vector<1x160xf32>
    %169 = vector.broadcast %168 : vector<1x160xf32> to vector<2x160xf32>
    %170 = vector.shape_cast %164 : vector<1x160xf32> to vector<1x160xf32>
    %171 = vector.broadcast %170 : vector<1x160xf32> to vector<2x160xf32>
    %172 = arith.select %167, %169, %171 : vector<2x160xi1>, vector<2x160xf32>
    %c0_86 = arith.constant 0 : index
    %c0_87 = arith.constant 0 : index
    %173 = vector.load %arg6[%c0_86, %c0_87] : memref<160x160xf32, #tpu.memory_space<vmem>>, vector<160x160xf32>
    %cst_88 = arith.constant dense<0.000000e+00> : vector<2x160xf32>
    %174 = tpu.matmul %172, %173, %cst_88 {dimension_numbers = #tpu.dot_dimension_numbers<[1], [0], [0], [1], [0, 0, 1, 1], [], []>} : vector<2x160xf32>, vector<160x160xf32>, vector<2x160xf32> -> vector<2x160xf32>
    %cst_89 = arith.constant 5.000000e-03 : f32
    %175 = vector.broadcast %cst_89 : f32 to vector<2x160xf32>
    %176 = arith.mulf %174, %175 : vector<2x160xf32>
    %177 = vector.extract_strided_slice %176 {offsets = [0, 0], sizes = [1, 160], strides = [1, 1]} : vector<2x160xf32> to vector<1x160xf32>
    %178 = vector.extract_strided_slice %176 {offsets = [1, 0], sizes = [1, 160], strides = [1, 1]} : vector<2x160xf32> to vector<1x160xf32>
    %179 = arith.mulf %177, %177 : vector<1x160xf32>
    %180 = arith.subf %178, %179 : vector<1x160xf32>
    %cst_90 = arith.constant 0.000000e+00 : f32
    %181 = vector.broadcast %cst_90 : f32 to vector<1x160xf32>
    %182 = arith.maximumf %180, %181 : vector<1x160xf32>
    %183 = vector.broadcast %177 : vector<1x160xf32> to vector<20x160xf32>
    %184 = arith.subf %157, %183 : vector<20x160xf32>
    %cst_91 = arith.constant 9.99999974E-6 : f32
    %185 = vector.broadcast %cst_91 : f32 to vector<1x160xf32>
    %186 = arith.addf %182, %185 : vector<1x160xf32>
    %187 = math.rsqrt %186 : vector<1x160xf32>
    %188 = vector.broadcast %187 : vector<1x160xf32> to vector<20x160xf32>
    %189 = arith.mulf %184, %188 : vector<20x160xf32>
    %190 = vector.broadcast %158 : vector<1x160xf32> to vector<20x160xf32>
    %191 = arith.mulf %189, %190 : vector<20x160xf32>
    %192 = vector.broadcast %159 : vector<1x160xf32> to vector<20x160xf32>
    %193 = arith.addf %191, %192 : vector<20x160xf32>
    %194 = vector.extract_strided_slice %193 {offsets = [0, 0], sizes = [2, 160], strides = [1, 1]} : vector<20x160xf32> to vector<2x160xf32>
    %c0_92 = arith.constant 0 : index
    %c0_93 = arith.constant 0 : index
    %195 = vector.load %arg32[%c0_92, %c0_93] : memref<20x160xf32, #tpu.memory_space<vmem>>, vector<2x160xf32>
    tpu.vector_store %arg32[%c0_92, %c0_93], %194 {strides = array<i32>} : memref<20x160xf32, #tpu.memory_space<vmem>>, vector<2x160xf32>,
    %196 = vector.extract_strided_slice %193 {offsets = [2, 0], sizes = [2, 160], strides = [1, 1]} : vector<20x160xf32> to vector<2x160xf32>
    %c10_94 = arith.constant 10 : index
    %c0_95 = arith.constant 0 : index
    %197 = vector.load %arg32[%c10_94, %c0_95] : memref<20x160xf32, #tpu.memory_space<vmem>>, vector<2x160xf32>
    tpu.vector_store %arg32[%c10_94, %c0_95], %196 {strides = array<i32>} : memref<20x160xf32, #tpu.memory_space<vmem>>, vector<2x160xf32>,
    %198 = vector.extract_strided_slice %193 {offsets = [4, 0], sizes = [2, 160], strides = [1, 1]} : vector<20x160xf32> to vector<2x160xf32>
    %c2_96 = arith.constant 2 : index
    %c0_97 = arith.constant 0 : index
    %199 = vector.load %arg32[%c2_96, %c0_97] : memref<20x160xf32, #tpu.memory_space<vmem>>, vector<2x160xf32>
    tpu.vector_store %arg32[%c2_96, %c0_97], %198 {strides = array<i32>} : memref<20x160xf32, #tpu.memory_space<vmem>>, vector<2x160xf32>,
    %200 = vector.extract_strided_slice %193 {offsets = [6, 0], sizes = [2, 160], strides = [1, 1]} : vector<20x160xf32> to vector<2x160xf32>
    %c12_98 = arith.constant 12 : index
    %c0_99 = arith.constant 0 : index
    %201 = vector.load %arg32[%c12_98, %c0_99] : memref<20x160xf32, #tpu.memory_space<vmem>>, vector<2x160xf32>
    tpu.vector_store %arg32[%c12_98, %c0_99], %200 {strides = array<i32>} : memref<20x160xf32, #tpu.memory_space<vmem>>, vector<2x160xf32>,
    %202 = vector.extract_strided_slice %193 {offsets = [8, 0], sizes = [2, 160], strides = [1, 1]} : vector<20x160xf32> to vector<2x160xf32>
    %c4_100 = arith.constant 4 : index
    %c0_101 = arith.constant 0 : index
    %203 = vector.load %arg32[%c4_100, %c0_101] : memref<20x160xf32, #tpu.memory_space<vmem>>, vector<2x160xf32>
    tpu.vector_store %arg32[%c4_100, %c0_101], %202 {strides = array<i32>} : memref<20x160xf32, #tpu.memory_space<vmem>>, vector<2x160xf32>,
    %204 = vector.extract_strided_slice %193 {offsets = [10, 0], sizes = [2, 160], strides = [1, 1]} : vector<20x160xf32> to vector<2x160xf32>
    %c14_102 = arith.constant 14 : index
    %c0_103 = arith.constant 0 : index
    %205 = vector.load %arg32[%c14_102, %c0_103] : memref<20x160xf32, #tpu.memory_space<vmem>>, vector<2x160xf32>
    tpu.vector_store %arg32[%c14_102, %c0_103], %204 {strides = array<i32>} : memref<20x160xf32, #tpu.memory_space<vmem>>, vector<2x160xf32>,
    %206 = vector.extract_strided_slice %193 {offsets = [12, 0], sizes = [2, 160], strides = [1, 1]} : vector<20x160xf32> to vector<2x160xf32>
    %c6_104 = arith.constant 6 : index
    %c0_105 = arith.constant 0 : index
    %207 = vector.load %arg32[%c6_104, %c0_105] : memref<20x160xf32, #tpu.memory_space<vmem>>, vector<2x160xf32>
    tpu.vector_store %arg32[%c6_104, %c0_105], %206 {strides = array<i32>} : memref<20x160xf32, #tpu.memory_space<vmem>>, vector<2x160xf32>,
    %208 = vector.extract_strided_slice %193 {offsets = [14, 0], sizes = [2, 160], strides = [1, 1]} : vector<20x160xf32> to vector<2x160xf32>
    %c16_106 = arith.constant 16 : index
    %c0_107 = arith.constant 0 : index
    %209 = vector.load %arg32[%c16_106, %c0_107] : memref<20x160xf32, #tpu.memory_space<vmem>>, vector<2x160xf32>
    tpu.vector_store %arg32[%c16_106, %c0_107], %208 {strides = array<i32>} : memref<20x160xf32, #tpu.memory_space<vmem>>, vector<2x160xf32>,
    %210 = vector.extract_strided_slice %193 {offsets = [16, 0], sizes = [2, 160], strides = [1, 1]} : vector<20x160xf32> to vector<2x160xf32>
    %c8_108 = arith.constant 8 : index
    %c0_109 = arith.constant 0 : index
    %211 = vector.load %arg32[%c8_108, %c0_109] : memref<20x160xf32, #tpu.memory_space<vmem>>, vector<2x160xf32>
    tpu.vector_store %arg32[%c8_108, %c0_109], %210 {strides = array<i32>} : memref<20x160xf32, #tpu.memory_space<vmem>>, vector<2x160xf32>,
    %212 = vector.extract_strided_slice %193 {offsets = [18, 0], sizes = [2, 160], strides = [1, 1]} : vector<20x160xf32> to vector<2x160xf32>
    %c18_110 = arith.constant 18 : index
    %c0_111 = arith.constant 0 : index
    %213 = vector.load %arg32[%c18_110, %c0_111] : memref<20x160xf32, #tpu.memory_space<vmem>>, vector<2x160xf32>
    tpu.vector_store %arg32[%c18_110, %c0_111], %212 {strides = array<i32>} : memref<20x160xf32, #tpu.memory_space<vmem>>, vector<2x160xf32>,
    %c0_112 = arith.constant 0 : index
    %c0_113 = arith.constant 0 : index
    %214 = vector.load %arg32[%c0_112, %c0_113] : memref<20x160xf32, #tpu.memory_space<vmem>>, vector<20x160xf32>
    %c0_114 = arith.constant 0 : index
    %c0_115 = arith.constant 0 : index
    %215 = vector.load %arg20[%c0_114, %c0_115] : memref<160x160xf32, #tpu.memory_space<vmem>>, vector<160x160xf32>
    %cst_116 = arith.constant dense<0.000000e+00> : vector<20x160xf32>
    %216 = tpu.matmul %214, %215, %cst_116 {dimension_numbers = #tpu.dot_dimension_numbers<[1], [0], [0], [1], [0, 0, 1, 1], [], []>} : vector<20x160xf32>, vector<160x160xf32>, vector<20x160xf32> -> vector<20x160xf32>
    %217 = vector.extract_strided_slice %216 {offsets = [0, 0], sizes = [10, 80], strides = [1, 1]} : vector<20x160xf32> to vector<10x80xf32>
    %218 = vector.extract_strided_slice %216 {offsets = [0, 80], sizes = [10, 80], strides = [1, 1]} : vector<20x160xf32> to vector<10x80xf32>
    %219 = vector.extract_strided_slice %216 {offsets = [10, 0], sizes = [10, 80], strides = [1, 1]} : vector<20x160xf32> to vector<10x80xf32>
    %220 = vector.extract_strided_slice %216 {offsets = [10, 80], sizes = [10, 80], strides = [1, 1]} : vector<20x160xf32> to vector<10x80xf32>
    %221 = arith.maximumf %217, %218 : vector<10x80xf32>
    %222 = arith.maximumf %219, %220 : vector<10x80xf32>
    %223 = arith.maximumf %221, %222 : vector<10x80xf32>
    %224 = arith.cmpf oeq, %217, %223 : vector<10x80xf32>
    %225 = arith.cmpf oeq, %218, %223 : vector<10x80xf32>
    %cst_117 = arith.constant dense<true> : vector<10x80xi1>
    %226 = arith.xori %224, %cst_117 : vector<10x80xi1>
    %227 = arith.andi %225, %226 : vector<10x80xi1>
    %228 = arith.cmpf oeq, %219, %223 : vector<10x80xf32>
    %229 = arith.ori %224, %227 : vector<10x80xi1>
    %cst_118 = arith.constant dense<true> : vector<10x80xi1>
    %230 = arith.xori %229, %cst_118 : vector<10x80xi1>
    %231 = arith.andi %228, %230 : vector<10x80xi1>
    %232 = arith.cmpf oeq, %220, %223 : vector<10x80xf32>
    %233 = arith.ori %224, %227 : vector<10x80xi1>
    %234 = arith.ori %233, %231 : vector<10x80xi1>
    %cst_119 = arith.constant dense<true> : vector<10x80xi1>
    %235 = arith.xori %234, %cst_119 : vector<10x80xi1>
    %236 = arith.andi %232, %235 : vector<10x80xi1>
    %c0_120 = arith.constant 0 : index
    %c0_121 = arith.constant 0 : index
    %237 = vector.load %arg8[%c0_120, %c0_121] : memref<1x8xf32, #tpu.memory_space<vmem>>, vector<1x8xf32>
    %cst_122 = arith.constant 0.000000e+00 : f32
    %238 = vector.broadcast %cst_122 : f32 to vector<2x640xf32>
    %c0_123 = arith.constant 0 : index
    %c0_124 = arith.constant 0 : index
    %239 = vector.load %arg27[%c0_123, %c0_124] : memref<2x640xf32, #tpu.memory_space<vmem>>, vector<2x640xf32>
    tpu.vector_store %arg27[%c0_123, %c0_124], %238 {strides = array<i32>} : memref<2x640xf32, #tpu.memory_space<vmem>>, vector<2x640xf32>,
    %240 = vector.extract_strided_slice %223 {offsets = [0, 0], sizes = [2, 80], strides = [1, 1]} : vector<10x80xf32> to vector<2x80xf32>
    %c0_125 = arith.constant 0 : index
    %c0_126 = arith.constant 0 : index
    %241 = vector.load %arg27[%c0_125, %c0_126] : memref<2x640xf32, #tpu.memory_space<vmem>>, vector<2x80xf32>
    tpu.vector_store %arg27[%c0_125, %c0_126], %240 {strides = array<i32>} : memref<2x640xf32, #tpu.memory_space<vmem>>, vector<2x80xf32>,
    %242 = vector.extract_strided_slice %223 {offsets = [2, 0], sizes = [2, 80], strides = [1, 1]} : vector<10x80xf32> to vector<2x80xf32>
    %c0_127 = arith.constant 0 : index
    %c128_128 = arith.constant 128 : index
    %243 = vector.load %arg27[%c0_127, %c128_128] : memref<2x640xf32, #tpu.memory_space<vmem>>, vector<2x80xf32>
    tpu.vector_store %arg27[%c0_127, %c128_128], %242 {strides = array<i32>} : memref<2x640xf32, #tpu.memory_space<vmem>>, vector<2x80xf32>,
    %244 = vector.extract_strided_slice %223 {offsets = [4, 0], sizes = [2, 80], strides = [1, 1]} : vector<10x80xf32> to vector<2x80xf32>
    %c0_129 = arith.constant 0 : index
    %c256_130 = arith.constant 256 : index
    %245 = vector.load %arg27[%c0_129, %c256_130] : memref<2x640xf32, #tpu.memory_space<vmem>>, vector<2x80xf32>
    tpu.vector_store %arg27[%c0_129, %c256_130], %244 {strides = array<i32>} : memref<2x640xf32, #tpu.memory_space<vmem>>, vector<2x80xf32>,
    %246 = vector.extract_strided_slice %223 {offsets = [6, 0], sizes = [2, 80], strides = [1, 1]} : vector<10x80xf32> to vector<2x80xf32>
    %c0_131 = arith.constant 0 : index
    %c384_132 = arith.constant 384 : index
    %247 = vector.load %arg27[%c0_131, %c384_132] : memref<2x640xf32, #tpu.memory_space<vmem>>, vector<2x80xf32>
    tpu.vector_store %arg27[%c0_131, %c384_132], %246 {strides = array<i32>} : memref<2x640xf32, #tpu.memory_space<vmem>>, vector<2x80xf32>,
    %248 = vector.extract_strided_slice %223 {offsets = [8, 0], sizes = [2, 80], strides = [1, 1]} : vector<10x80xf32> to vector<2x80xf32>
    %c0_133 = arith.constant 0 : index
    %c512_134 = arith.constant 512 : index
    %249 = vector.load %arg27[%c0_133, %c512_134] : memref<2x640xf32, #tpu.memory_space<vmem>>, vector<2x80xf32>
    tpu.vector_store %arg27[%c0_133, %c512_134], %248 {strides = array<i32>} : memref<2x640xf32, #tpu.memory_space<vmem>>, vector<2x80xf32>,
    %c0_135 = arith.constant 0 : index
    %c0_136 = arith.constant 0 : index
    %250 = vector.load %arg27[%c0_135, %c0_136] : memref<2x640xf32, #tpu.memory_space<vmem>>, vector<2x640xf32>
    %c0_137 = arith.constant 0 : index
    %c0_138 = arith.constant 0 : index
    %251 = vector.load %arg7[%c0_137, %c0_138] : memref<640x8xf32, #tpu.memory_space<vmem>>, vector<640x8xf32>
    %cst_139 = arith.constant dense<0.000000e+00> : vector<2x8xf32>
    %252 = tpu.matmul %250, %251, %cst_139 {dimension_numbers = #tpu.dot_dimension_numbers<[1], [0], [0], [1], [0, 0, 1, 1], [], []>} : vector<2x640xf32>, vector<640x8xf32>, vector<2x8xf32> -> vector<2x8xf32>
    %253 = vector.broadcast %237 : vector<1x8xf32> to vector<2x8xf32>
    %254 = arith.addf %252, %253 : vector<2x8xf32>
    %c0_140 = arith.constant 0 : index
    %c0_141 = arith.constant 0 : index
    %255 = vector.load %arg24[%c0_140, %c0_141] : memref<2x8xf32, #tpu.memory_space<vmem>>, vector<2x8xf32>
    tpu.vector_store %arg24[%c0_140, %c0_141], %254 {strides = array<i32>} : memref<2x8xf32, #tpu.memory_space<vmem>>, vector<2x8xf32>,
    %c0_142 = arith.constant 0 : index
    %c0_143 = arith.constant 0 : index
    %256 = vector.load %arg10[%c0_142, %c0_143] : memref<3x80xf32, #tpu.memory_space<vmem>>, vector<3x80xf32>
    %257 = vector.extract_strided_slice %256 {offsets = [0, 0], sizes = [1, 80], strides = [1, 1]} : vector<3x80xf32> to vector<1x80xf32>
    %cst_144 = arith.constant 0.000000e+00 : f32
    %258 = vector.broadcast %cst_144 : f32 to vector<10x640xf32>
    %c0_145 = arith.constant 0 : index
    %c0_146 = arith.constant 0 : index
    %259 = vector.load %arg28[%c0_145, %c0_146] : memref<10x640xf32, #tpu.memory_space<vmem>>, vector<10x640xf32>
    tpu.vector_store %arg28[%c0_145, %c0_146], %258 {strides = array<i32>} : memref<10x640xf32, #tpu.memory_space<vmem>>, vector<10x640xf32>,
    %c8_147 = arith.constant 8 : index
    %c0_148 = arith.constant 0 : index
    %260 = vector.load %arg28[%c8_147, %c0_148] : memref<10x640xf32, #tpu.memory_space<vmem>>, vector<2x8xf32>
    tpu.vector_store %arg28[%c8_147, %c0_148], %254 {strides = array<i32>} : memref<10x640xf32, #tpu.memory_space<vmem>>, vector<2x8xf32>,
    %c6_149 = arith.constant 6 : index
    %c128_150 = arith.constant 128 : index
    %261 = vector.load %arg28[%c6_149, %c128_150] : memref<10x640xf32, #tpu.memory_space<vmem>>, vector<2x8xf32>
    tpu.vector_store %arg28[%c6_149, %c128_150], %254 {strides = array<i32>} : memref<10x640xf32, #tpu.memory_space<vmem>>, vector<2x8xf32>,
    %c4_151 = arith.constant 4 : index
    %c256_152 = arith.constant 256 : index
    %262 = vector.load %arg28[%c4_151, %c256_152] : memref<10x640xf32, #tpu.memory_space<vmem>>, vector<2x8xf32>
    tpu.vector_store %arg28[%c4_151, %c256_152], %254 {strides = array<i32>} : memref<10x640xf32, #tpu.memory_space<vmem>>, vector<2x8xf32>,
    %c2_153 = arith.constant 2 : index
    %c384_154 = arith.constant 384 : index
    %263 = vector.load %arg28[%c2_153, %c384_154] : memref<10x640xf32, #tpu.memory_space<vmem>>, vector<2x8xf32>
    tpu.vector_store %arg28[%c2_153, %c384_154], %254 {strides = array<i32>} : memref<10x640xf32, #tpu.memory_space<vmem>>, vector<2x8xf32>,
    %c0_155 = arith.constant 0 : index
    %c512_156 = arith.constant 512 : index
    %264 = vector.load %arg28[%c0_155, %c512_156] : memref<10x640xf32, #tpu.memory_space<vmem>>, vector<2x8xf32>
    tpu.vector_store %arg28[%c0_155, %c512_156], %254 {strides = array<i32>} : memref<10x640xf32, #tpu.memory_space<vmem>>, vector<2x8xf32>,
    %c0_157 = arith.constant 0 : index
    %c0_158 = arith.constant 0 : index
    %265 = vector.load %arg28[%c0_157, %c0_158] : memref<10x640xf32, #tpu.memory_space<vmem>>, vector<10x640xf32>
    %c0_159 = arith.constant 0 : index
    %c0_160 = arith.constant 0 : index
    %266 = vector.load %arg9[%c0_159, %c0_160] : memref<640x80xf32, #tpu.memory_space<vmem>>, vector<640x80xf32>
    %cst_161 = arith.constant dense<0.000000e+00> : vector<10x80xf32>
    %267 = tpu.matmul %265, %266, %cst_161 {dimension_numbers = #tpu.dot_dimension_numbers<[1], [0], [0], [1], [0, 0, 1, 1], [], []>} : vector<10x640xf32>, vector<640x80xf32>, vector<10x80xf32> -> vector<10x80xf32>
    %268 = vector.broadcast %257 : vector<1x80xf32> to vector<10x80xf32>
    %269 = arith.addf %267, %268 : vector<10x80xf32>
    %cst_162 = arith.constant 0.000000e+00 : f32
    %270 = vector.broadcast %cst_162 : f32 to vector<10x80xf32>
    %271 = arith.maximumf %269, %270 : vector<10x80xf32>
    %272 = vector.extract_strided_slice %256 {offsets = [1, 0], sizes = [1, 80], strides = [1, 1]} : vector<3x80xf32> to vector<1x80xf32>
    %273 = vector.extract_strided_slice %256 {offsets = [2, 0], sizes = [1, 80], strides = [1, 1]} : vector<3x80xf32> to vector<1x80xf32>
    %cst_163 = arith.constant dense<0.000000e+00> : vector<80xf32>
    %274 = vector.multi_reduction <add>, %271, %cst_163 [0] : vector<10x80xf32> to vector<80xf32>
    %275 = vector.shape_cast %274 : vector<80xf32> to vector<1x80xf32>
    %276 = arith.mulf %271, %271 : vector<10x80xf32>
    %cst_164 = arith.constant dense<0.000000e+00> : vector<80xf32>
    %277 = vector.multi_reduction <add>, %276, %cst_164 [0] : vector<10x80xf32> to vector<80xf32>
    %278 = vector.shape_cast %277 : vector<80xf32> to vector<1x80xf32>
    %279 = tpu.iota {dimensions = array<i32: 0>} : vector<2x80xi32>
    %c0_i32_165 = arith.constant 0 : i32
    %280 = vector.broadcast %c0_i32_165 : i32 to vector<2x80xi32>
    %281 = arith.cmpi eq, %279, %280 : vector<2x80xi32>
    %282 = vector.shape_cast %275 : vector<1x80xf32> to vector<1x80xf32>
    %283 = vector.broadcast %282 : vector<1x80xf32> to vector<2x80xf32>
    %284 = vector.shape_cast %278 : vector<1x80xf32> to vector<1x80xf32>
    %285 = vector.broadcast %284 : vector<1x80xf32> to vector<2x80xf32>
    %286 = arith.select %281, %283, %285 : vector<2x80xi1>, vector<2x80xf32>
    %c0_166 = arith.constant 0 : index
    %c0_167 = arith.constant 0 : index
    %287 = vector.load %arg11[%c0_166, %c0_167] : memref<80x80xf32, #tpu.memory_space<vmem>>, vector<80x80xf32>
    %cst_168 = arith.constant dense<0.000000e+00> : vector<2x80xf32>
    %288 = tpu.matmul %286, %287, %cst_168 {dimension_numbers = #tpu.dot_dimension_numbers<[1], [0], [0], [1], [0, 0, 1, 1], [], []>} : vector<2x80xf32>, vector<80x80xf32>, vector<2x80xf32> -> vector<2x80xf32>
    %cst_169 = arith.constant 2.000000e-02 : f32
    %289 = vector.broadcast %cst_169 : f32 to vector<2x80xf32>
    %290 = arith.mulf %288, %289 : vector<2x80xf32>
    %291 = vector.extract_strided_slice %290 {offsets = [0, 0], sizes = [1, 80], strides = [1, 1]} : vector<2x80xf32> to vector<1x80xf32>
    %292 = vector.extract_strided_slice %290 {offsets = [1, 0], sizes = [1, 80], strides = [1, 1]} : vector<2x80xf32> to vector<1x80xf32>
    %293 = arith.mulf %291, %291 : vector<1x80xf32>
    %294 = arith.subf %292, %293 : vector<1x80xf32>
    %cst_170 = arith.constant 0.000000e+00 : f32
    %295 = vector.broadcast %cst_170 : f32 to vector<1x80xf32>
    %296 = arith.maximumf %294, %295 : vector<1x80xf32>
    %297 = vector.broadcast %291 : vector<1x80xf32> to vector<10x80xf32>
    %298 = arith.subf %271, %297 : vector<10x80xf32>
    %cst_171 = arith.constant 9.99999974E-6 : f32
    %299 = vector.broadcast %cst_171 : f32 to vector<1x80xf32>
    %300 = arith.addf %296, %299 : vector<1x80xf32>
    %301 = math.rsqrt %300 : vector<1x80xf32>
    %302 = vector.broadcast %301 : vector<1x80xf32> to vector<10x80xf32>
    %303 = arith.mulf %298, %302 : vector<10x80xf32>
    %304 = vector.broadcast %272 : vector<1x80xf32> to vector<10x80xf32>
    %305 = arith.mulf %303, %304 : vector<10x80xf32>
    %306 = vector.broadcast %273 : vector<1x80xf32> to vector<10x80xf32>
    %307 = arith.addf %305, %306 : vector<10x80xf32>
    %cst_172 = arith.constant 0.000000e+00 : f32
    %308 = vector.broadcast %cst_172 : f32 to vector<10x80xf32>
    %c0_173 = arith.constant 0 : index
    %c0_174 = arith.constant 0 : index
    %309 = vector.load %arg21[%c0_173, %c0_174] : memref<80x160xf32, #tpu.memory_space<vmem>>, vector<80x160xf32>
    %c0_175 = arith.constant 0 : index
    %c0_176 = arith.constant 0 : index
    %310 = vector.load %arg22[%c0_175, %c0_176] : memref<80x160xf32, #tpu.memory_space<vmem>>, vector<80x160xf32>
    %311 = arith.select %224, %307, %308 : vector<10x80xi1>, vector<10x80xf32>
    %cst_177 = arith.constant dense<0.000000e+00> : vector<10x160xf32>
    %312 = tpu.matmul %311, %309, %cst_177 {dimension_numbers = #tpu.dot_dimension_numbers<[1], [0], [0], [1], [0, 0, 1, 1], [], []>} : vector<10x80xf32>, vector<80x160xf32>, vector<10x160xf32> -> vector<10x160xf32>
    %313 = arith.select %227, %307, %308 : vector<10x80xi1>, vector<10x80xf32>
    %cst_178 = arith.constant dense<0.000000e+00> : vector<10x160xf32>
    %314 = tpu.matmul %313, %310, %cst_178 {dimension_numbers = #tpu.dot_dimension_numbers<[1], [0], [0], [1], [0, 0, 1, 1], [], []>} : vector<10x80xf32>, vector<80x160xf32>, vector<10x160xf32> -> vector<10x160xf32>
    %315 = arith.addf %312, %314 : vector<10x160xf32>
    %316 = arith.select %231, %307, %308 : vector<10x80xi1>, vector<10x80xf32>
    %cst_179 = arith.constant dense<0.000000e+00> : vector<10x160xf32>
    %317 = tpu.matmul %316, %309, %cst_179 {dimension_numbers = #tpu.dot_dimension_numbers<[1], [0], [0], [1], [0, 0, 1, 1], [], []>} : vector<10x80xf32>, vector<80x160xf32>, vector<10x160xf32> -> vector<10x160xf32>
    %318 = arith.select %236, %307, %308 : vector<10x80xi1>, vector<10x80xf32>
    %cst_180 = arith.constant dense<0.000000e+00> : vector<10x160xf32>
    %319 = tpu.matmul %318, %310, %cst_180 {dimension_numbers = #tpu.dot_dimension_numbers<[1], [0], [0], [1], [0, 0, 1, 1], [], []>} : vector<10x80xf32>, vector<80x160xf32>, vector<10x160xf32> -> vector<10x160xf32>
    %320 = arith.addf %317, %319 : vector<10x160xf32>
    %321 = vector.extract_strided_slice %315 {offsets = [0, 0], sizes = [2, 160], strides = [1, 1]} : vector<10x160xf32> to vector<2x160xf32>
    %c0_181 = arith.constant 0 : index
    %c0_182 = arith.constant 0 : index
    %322 = vector.load %arg33[%c0_181, %c0_182] : memref<20x160xf32, #tpu.memory_space<vmem>>, vector<2x160xf32>
    tpu.vector_store %arg33[%c0_181, %c0_182], %321 {strides = array<i32>} : memref<20x160xf32, #tpu.memory_space<vmem>>, vector<2x160xf32>,
    %323 = vector.extract_strided_slice %320 {offsets = [0, 0], sizes = [2, 160], strides = [1, 1]} : vector<10x160xf32> to vector<2x160xf32>
    %c2_183 = arith.constant 2 : index
    %c0_184 = arith.constant 0 : index
    %324 = vector.load %arg33[%c2_183, %c0_184] : memref<20x160xf32, #tpu.memory_space<vmem>>, vector<2x160xf32>
    tpu.vector_store %arg33[%c2_183, %c0_184], %323 {strides = array<i32>} : memref<20x160xf32, #tpu.memory_space<vmem>>, vector<2x160xf32>,
    %325 = vector.extract_strided_slice %315 {offsets = [2, 0], sizes = [2, 160], strides = [1, 1]} : vector<10x160xf32> to vector<2x160xf32>
    %c4_185 = arith.constant 4 : index
    %c0_186 = arith.constant 0 : index
    %326 = vector.load %arg33[%c4_185, %c0_186] : memref<20x160xf32, #tpu.memory_space<vmem>>, vector<2x160xf32>
    tpu.vector_store %arg33[%c4_185, %c0_186], %325 {strides = array<i32>} : memref<20x160xf32, #tpu.memory_space<vmem>>, vector<2x160xf32>,
    %327 = vector.extract_strided_slice %320 {offsets = [2, 0], sizes = [2, 160], strides = [1, 1]} : vector<10x160xf32> to vector<2x160xf32>
    %c6_187 = arith.constant 6 : index
    %c0_188 = arith.constant 0 : index
    %328 = vector.load %arg33[%c6_187, %c0_188] : memref<20x160xf32, #tpu.memory_space<vmem>>, vector<2x160xf32>
    tpu.vector_store %arg33[%c6_187, %c0_188], %327 {strides = array<i32>} : memref<20x160xf32, #tpu.memory_space<vmem>>, vector<2x160xf32>,
    %329 = vector.extract_strided_slice %315 {offsets = [4, 0], sizes = [2, 160], strides = [1, 1]} : vector<10x160xf32> to vector<2x160xf32>
    %c8_189 = arith.constant 8 : index
    %c0_190 = arith.constant 0 : index
    %330 = vector.load %arg33[%c8_189, %c0_190] : memref<20x160xf32, #tpu.memory_space<vmem>>, vector<2x160xf32>
    tpu.vector_store %arg33[%c8_189, %c0_190], %329 {strides = array<i32>} : memref<20x160xf32, #tpu.memory_space<vmem>>, vector<2x160xf32>,
    %331 = vector.extract_strided_slice %320 {offsets = [4, 0], sizes = [2, 160], strides = [1, 1]} : vector<10x160xf32> to vector<2x160xf32>
    %c10_191 = arith.constant 10 : index
    %c0_192 = arith.constant 0 : index
    %332 = vector.load %arg33[%c10_191, %c0_192] : memref<20x160xf32, #tpu.memory_space<vmem>>, vector<2x160xf32>
    tpu.vector_store %arg33[%c10_191, %c0_192], %331 {strides = array<i32>} : memref<20x160xf32, #tpu.memory_space<vmem>>, vector<2x160xf32>,
    %333 = vector.extract_strided_slice %315 {offsets = [6, 0], sizes = [2, 160], strides = [1, 1]} : vector<10x160xf32> to vector<2x160xf32>
    %c12_193 = arith.constant 12 : index
    %c0_194 = arith.constant 0 : index
    %334 = vector.load %arg33[%c12_193, %c0_194] : memref<20x160xf32, #tpu.memory_space<vmem>>, vector<2x160xf32>
    tpu.vector_store %arg33[%c12_193, %c0_194], %333 {strides = array<i32>} : memref<20x160xf32, #tpu.memory_space<vmem>>, vector<2x160xf32>,
    %335 = vector.extract_strided_slice %320 {offsets = [6, 0], sizes = [2, 160], strides = [1, 1]} : vector<10x160xf32> to vector<2x160xf32>
    %c14_195 = arith.constant 14 : index
    %c0_196 = arith.constant 0 : index
    %336 = vector.load %arg33[%c14_195, %c0_196] : memref<20x160xf32, #tpu.memory_space<vmem>>, vector<2x160xf32>
    tpu.vector_store %arg33[%c14_195, %c0_196], %335 {strides = array<i32>} : memref<20x160xf32, #tpu.memory_space<vmem>>, vector<2x160xf32>,
    %337 = vector.extract_strided_slice %315 {offsets = [8, 0], sizes = [2, 160], strides = [1, 1]} : vector<10x160xf32> to vector<2x160xf32>
    %c16_197 = arith.constant 16 : index
    %c0_198 = arith.constant 0 : index
    %338 = vector.load %arg33[%c16_197, %c0_198] : memref<20x160xf32, #tpu.memory_space<vmem>>, vector<2x160xf32>
    tpu.vector_store %arg33[%c16_197, %c0_198], %337 {strides = array<i32>} : memref<20x160xf32, #tpu.memory_space<vmem>>, vector<2x160xf32>,
    %339 = vector.extract_strided_slice %320 {offsets = [8, 0], sizes = [2, 160], strides = [1, 1]} : vector<10x160xf32> to vector<2x160xf32>
    %c18_199 = arith.constant 18 : index
    %c0_200 = arith.constant 0 : index
    %340 = vector.load %arg33[%c18_199, %c0_200] : memref<20x160xf32, #tpu.memory_space<vmem>>, vector<2x160xf32>
    tpu.vector_store %arg33[%c18_199, %c0_200], %339 {strides = array<i32>} : memref<20x160xf32, #tpu.memory_space<vmem>>, vector<2x160xf32>,
    %c0_201 = arith.constant 0 : index
    %c0_202 = arith.constant 0 : index
    %341 = vector.load %arg33[%c0_201, %c0_202] : memref<20x160xf32, #tpu.memory_space<vmem>>, vector<20x160xf32>
    %c0_203 = arith.constant 0 : index
    %c0_204 = arith.constant 0 : index
    %342 = vector.load %arg13[%c0_203, %c0_204] : memref<3x84xf32, #tpu.memory_space<vmem>>, vector<3x84xf32>
    %343 = vector.extract_strided_slice %342 {offsets = [0, 0], sizes = [1, 84], strides = [1, 1]} : vector<3x84xf32> to vector<1x84xf32>
    %cst_205 = arith.constant 0.000000e+00 : f32
    %344 = vector.broadcast %cst_205 : f32 to vector<28x1280xf32>
    %c0_206 = arith.constant 0 : index
    %c0_207 = arith.constant 0 : index
    %345 = vector.load %arg29[%c0_206, %c0_207] : memref<28x1280xf32, #tpu.memory_space<vmem>>, vector<28x1280xf32>
    tpu.vector_store %arg29[%c0_206, %c0_207], %344 {strides = array<i32>} : memref<28x1280xf32, #tpu.memory_space<vmem>>, vector<28x1280xf32>,
    %c8_208 = arith.constant 8 : index
    %c0_209 = arith.constant 0 : index
    %346 = vector.load %arg29[%c8_208, %c0_209] : memref<28x1280xf32, #tpu.memory_space<vmem>>, vector<20x160xf32>
    tpu.vector_store %arg29[%c8_208, %c0_209], %341 {strides = array<i32>} : memref<28x1280xf32, #tpu.memory_space<vmem>>, vector<20x160xf32>,
    %c6_210 = arith.constant 6 : index
    %c256_211 = arith.constant 256 : index
    %347 = vector.load %arg29[%c6_210, %c256_211] : memref<28x1280xf32, #tpu.memory_space<vmem>>, vector<20x160xf32>
    tpu.vector_store %arg29[%c6_210, %c256_211], %341 {strides = array<i32>} : memref<28x1280xf32, #tpu.memory_space<vmem>>, vector<20x160xf32>,
    %c4_212 = arith.constant 4 : index
    %c512_213 = arith.constant 512 : index
    %348 = vector.load %arg29[%c4_212, %c512_213] : memref<28x1280xf32, #tpu.memory_space<vmem>>, vector<20x160xf32>
    tpu.vector_store %arg29[%c4_212, %c512_213], %341 {strides = array<i32>} : memref<28x1280xf32, #tpu.memory_space<vmem>>, vector<20x160xf32>,
    %c2_214 = arith.constant 2 : index
    %c768 = arith.constant 768 : index
    %349 = vector.load %arg29[%c2_214, %c768] : memref<28x1280xf32, #tpu.memory_space<vmem>>, vector<20x160xf32>
    tpu.vector_store %arg29[%c2_214, %c768], %341 {strides = array<i32>} : memref<28x1280xf32, #tpu.memory_space<vmem>>, vector<20x160xf32>,
    %c0_215 = arith.constant 0 : index
    %c1024 = arith.constant 1024 : index
    %350 = vector.load %arg29[%c0_215, %c1024] : memref<28x1280xf32, #tpu.memory_space<vmem>>, vector<20x160xf32>
    tpu.vector_store %arg29[%c0_215, %c1024], %341 {strides = array<i32>} : memref<28x1280xf32, #tpu.memory_space<vmem>>, vector<20x160xf32>,
    %c0_216 = arith.constant 0 : index
    %c0_217 = arith.constant 0 : index
    %351 = vector.load %arg29[%c0_216, %c0_217] : memref<28x1280xf32, #tpu.memory_space<vmem>>, vector<28x1280xf32>
    %c0_218 = arith.constant 0 : index
    %c0_219 = arith.constant 0 : index
    %352 = vector.load %arg12[%c0_218, %c0_219] : memref<1280x84xf32, #tpu.memory_space<vmem>>, vector<1280x84xf32>
    %cst_220 = arith.constant dense<0.000000e+00> : vector<28x84xf32>
    %353 = tpu.matmul %351, %352, %cst_220 {dimension_numbers = #tpu.dot_dimension_numbers<[1], [0], [0], [1], [0, 0, 1, 1], [], []>} : vector<28x1280xf32>, vector<1280x84xf32>, vector<28x84xf32> -> vector<28x84xf32>
    %354 = vector.broadcast %343 : vector<1x84xf32> to vector<28x84xf32>
    %355 = arith.addf %353, %354 : vector<28x84xf32>
    %cst_221 = arith.constant 0.000000e+00 : f32
    %356 = vector.broadcast %cst_221 : f32 to vector<28x84xf32>
    %357 = arith.maximumf %355, %356 : vector<28x84xf32>
    %358 = vector.extract_strided_slice %342 {offsets = [1, 0], sizes = [1, 84], strides = [1, 1]} : vector<3x84xf32> to vector<1x84xf32>
    %359 = vector.extract_strided_slice %342 {offsets = [2, 0], sizes = [1, 84], strides = [1, 1]} : vector<3x84xf32> to vector<1x84xf32>
    %cst_222 = arith.constant dense<0.000000e+00> : vector<84xf32>
    %360 = vector.multi_reduction <add>, %357, %cst_222 [0] : vector<28x84xf32> to vector<84xf32>
    %361 = vector.shape_cast %360 : vector<84xf32> to vector<1x84xf32>
    %362 = arith.mulf %357, %357 : vector<28x84xf32>
    %cst_223 = arith.constant dense<0.000000e+00> : vector<84xf32>
    %363 = vector.multi_reduction <add>, %362, %cst_223 [0] : vector<28x84xf32> to vector<84xf32>
    %364 = vector.shape_cast %363 : vector<84xf32> to vector<1x84xf32>
    %365 = tpu.iota {dimensions = array<i32: 0>} : vector<2x84xi32>
    %c0_i32_224 = arith.constant 0 : i32
    %366 = vector.broadcast %c0_i32_224 : i32 to vector<2x84xi32>
    %367 = arith.cmpi eq, %365, %366 : vector<2x84xi32>
    %368 = vector.shape_cast %361 : vector<1x84xf32> to vector<1x84xf32>
    %369 = vector.broadcast %368 : vector<1x84xf32> to vector<2x84xf32>
    %370 = vector.shape_cast %364 : vector<1x84xf32> to vector<1x84xf32>
    %371 = vector.broadcast %370 : vector<1x84xf32> to vector<2x84xf32>
    %372 = arith.select %367, %369, %371 : vector<2x84xi1>, vector<2x84xf32>
    %c0_225 = arith.constant 0 : index
    %c0_226 = arith.constant 0 : index
    %373 = vector.load %arg14[%c0_225, %c0_226] : memref<84x84xf32, #tpu.memory_space<vmem>>, vector<84x84xf32>
    %cst_227 = arith.constant dense<0.000000e+00> : vector<2x84xf32>
    %374 = tpu.matmul %372, %373, %cst_227 {dimension_numbers = #tpu.dot_dimension_numbers<[1], [0], [0], [1], [0, 0, 1, 1], [], []>} : vector<2x84xf32>, vector<84x84xf32>, vector<2x84xf32> -> vector<2x84xf32>
    %cst_228 = arith.constant 0.00255102036 : f32
    %375 = vector.broadcast %cst_228 : f32 to vector<2x84xf32>
    %376 = arith.mulf %374, %375 : vector<2x84xf32>
    %377 = vector.extract_strided_slice %376 {offsets = [0, 0], sizes = [1, 84], strides = [1, 1]} : vector<2x84xf32> to vector<1x84xf32>
    %378 = vector.extract_strided_slice %376 {offsets = [1, 0], sizes = [1, 84], strides = [1, 1]} : vector<2x84xf32> to vector<1x84xf32>
    %379 = arith.mulf %377, %377 : vector<1x84xf32>
    %380 = arith.subf %378, %379 : vector<1x84xf32>
    %cst_229 = arith.constant 0.000000e+00 : f32
    %381 = vector.broadcast %cst_229 : f32 to vector<1x84xf32>
    %382 = arith.maximumf %380, %381 : vector<1x84xf32>
    %383 = vector.broadcast %377 : vector<1x84xf32> to vector<28x84xf32>
    %384 = arith.subf %357, %383 : vector<28x84xf32>
    %cst_230 = arith.constant 9.99999974E-6 : f32
    %385 = vector.broadcast %cst_230 : f32 to vector<1x84xf32>
    %386 = arith.addf %382, %385 : vector<1x84xf32>
    %387 = math.rsqrt %386 : vector<1x84xf32>
    %388 = vector.broadcast %387 : vector<1x84xf32> to vector<28x84xf32>
    %389 = arith.mulf %384, %388 : vector<28x84xf32>
    %390 = vector.broadcast %358 : vector<1x84xf32> to vector<28x84xf32>
    %391 = arith.mulf %389, %390 : vector<28x84xf32>
    %392 = vector.broadcast %359 : vector<1x84xf32> to vector<28x84xf32>
    %393 = arith.addf %391, %392 : vector<28x84xf32>
    %cst_231 = arith.constant 0.000000e+00 : f32
    %394 = vector.broadcast %cst_231 : f32 to vector<28x84xf32>
    %c0_232 = arith.constant 0 : index
    %c0_233 = arith.constant 0 : index
    %395 = vector.load %arg18[%c0_232, %c0_233] : memref<84x168xf32, #tpu.memory_space<vmem>>, vector<84x168xf32>
    %c0_234 = arith.constant 0 : index
    %c0_235 = arith.constant 0 : index
    %396 = vector.load %arg19[%c0_234, %c0_235] : memref<84x168xf32, #tpu.memory_space<vmem>>, vector<84x168xf32>
    %397 = arith.select %124, %393, %394 : vector<28x84xi1>, vector<28x84xf32>
    %cst_236 = arith.constant dense<0.000000e+00> : vector<28x168xf32>
    %398 = tpu.matmul %397, %395, %cst_236 {dimension_numbers = #tpu.dot_dimension_numbers<[1], [0], [0], [1], [0, 0, 1, 1], [], []>} : vector<28x84xf32>, vector<84x168xf32>, vector<28x168xf32> -> vector<28x168xf32>
    %399 = arith.select %127, %393, %394 : vector<28x84xi1>, vector<28x84xf32>
    %cst_237 = arith.constant dense<0.000000e+00> : vector<28x168xf32>
    %400 = tpu.matmul %399, %396, %cst_237 {dimension_numbers = #tpu.dot_dimension_numbers<[1], [0], [0], [1], [0, 0, 1, 1], [], []>} : vector<28x84xf32>, vector<84x168xf32>, vector<28x168xf32> -> vector<28x168xf32>
    %401 = arith.addf %398, %400 : vector<28x168xf32>
    %402 = arith.select %131, %393, %394 : vector<28x84xi1>, vector<28x84xf32>
    %cst_238 = arith.constant dense<0.000000e+00> : vector<28x168xf32>
    %403 = tpu.matmul %402, %395, %cst_238 {dimension_numbers = #tpu.dot_dimension_numbers<[1], [0], [0], [1], [0, 0, 1, 1], [], []>} : vector<28x84xf32>, vector<84x168xf32>, vector<28x168xf32> -> vector<28x168xf32>
    %404 = arith.select %136, %393, %394 : vector<28x84xi1>, vector<28x84xf32>
    %cst_239 = arith.constant dense<0.000000e+00> : vector<28x168xf32>
    %405 = tpu.matmul %404, %396, %cst_239 {dimension_numbers = #tpu.dot_dimension_numbers<[1], [0], [0], [1], [0, 0, 1, 1], [], []>} : vector<28x84xf32>, vector<84x168xf32>, vector<28x168xf32> -> vector<28x168xf32>
    %406 = arith.addf %403, %405 : vector<28x168xf32>
    %407 = vector.extract_strided_slice %401 {offsets = [0, 0], sizes = [2, 168], strides = [1, 1]} : vector<28x168xf32> to vector<2x168xf32>
    %c0_240 = arith.constant 0 : index
    %c0_241 = arith.constant 0 : index
    %408 = vector.load %arg34[%c0_240, %c0_241] : memref<56x168xf32, #tpu.memory_space<vmem>>, vector<2x168xf32>
    tpu.vector_store %arg34[%c0_240, %c0_241], %407 {strides = array<i32>} : memref<56x168xf32, #tpu.memory_space<vmem>>, vector<2x168xf32>,
    %409 = vector.extract_strided_slice %406 {offsets = [0, 0], sizes = [2, 168], strides = [1, 1]} : vector<28x168xf32> to vector<2x168xf32>
    %c2_242 = arith.constant 2 : index
    %c0_243 = arith.constant 0 : index
    %410 = vector.load %arg34[%c2_242, %c0_243] : memref<56x168xf32, #tpu.memory_space<vmem>>, vector<2x168xf32>
    tpu.vector_store %arg34[%c2_242, %c0_243], %409 {strides = array<i32>} : memref<56x168xf32, #tpu.memory_space<vmem>>, vector<2x168xf32>,
    %411 = vector.extract_strided_slice %401 {offsets = [2, 0], sizes = [2, 168], strides = [1, 1]} : vector<28x168xf32> to vector<2x168xf32>
    %c4_244 = arith.constant 4 : index
    %c0_245 = arith.constant 0 : index
    %412 = vector.load %arg34[%c4_244, %c0_245] : memref<56x168xf32, #tpu.memory_space<vmem>>, vector<2x168xf32>
    tpu.vector_store %arg34[%c4_244, %c0_245], %411 {strides = array<i32>} : memref<56x168xf32, #tpu.memory_space<vmem>>, vector<2x168xf32>,
    %413 = vector.extract_strided_slice %406 {offsets = [2, 0], sizes = [2, 168], strides = [1, 1]} : vector<28x168xf32> to vector<2x168xf32>
    %c6_246 = arith.constant 6 : index
    %c0_247 = arith.constant 0 : index
    %414 = vector.load %arg34[%c6_246, %c0_247] : memref<56x168xf32, #tpu.memory_space<vmem>>, vector<2x168xf32>
    tpu.vector_store %arg34[%c6_246, %c0_247], %413 {strides = array<i32>} : memref<56x168xf32, #tpu.memory_space<vmem>>, vector<2x168xf32>,
    %415 = vector.extract_strided_slice %401 {offsets = [4, 0], sizes = [2, 168], strides = [1, 1]} : vector<28x168xf32> to vector<2x168xf32>
    %c8_248 = arith.constant 8 : index
    %c0_249 = arith.constant 0 : index
    %416 = vector.load %arg34[%c8_248, %c0_249] : memref<56x168xf32, #tpu.memory_space<vmem>>, vector<2x168xf32>
    tpu.vector_store %arg34[%c8_248, %c0_249], %415 {strides = array<i32>} : memref<56x168xf32, #tpu.memory_space<vmem>>, vector<2x168xf32>,
    %417 = vector.extract_strided_slice %406 {offsets = [4, 0], sizes = [2, 168], strides = [1, 1]} : vector<28x168xf32> to vector<2x168xf32>
    %c10_250 = arith.constant 10 : index
    %c0_251 = arith.constant 0 : index
    %418 = vector.load %arg34[%c10_250, %c0_251] : memref<56x168xf32, #tpu.memory_space<vmem>>, vector<2x168xf32>
    tpu.vector_store %arg34[%c10_250, %c0_251], %417 {strides = array<i32>} : memref<56x168xf32, #tpu.memory_space<vmem>>, vector<2x168xf32>,
    %419 = vector.extract_strided_slice %401 {offsets = [6, 0], sizes = [2, 168], strides = [1, 1]} : vector<28x168xf32> to vector<2x168xf32>
    %c12_252 = arith.constant 12 : index
    %c0_253 = arith.constant 0 : index
    %420 = vector.load %arg34[%c12_252, %c0_253] : memref<56x168xf32, #tpu.memory_space<vmem>>, vector<2x168xf32>
    tpu.vector_store %arg34[%c12_252, %c0_253], %419 {strides = array<i32>} : memref<56x168xf32, #tpu.memory_space<vmem>>, vector<2x168xf32>,
    %421 = vector.extract_strided_slice %406 {offsets = [6, 0], sizes = [2, 168], strides = [1, 1]} : vector<28x168xf32> to vector<2x168xf32>
    %c14_254 = arith.constant 14 : index
    %c0_255 = arith.constant 0 : index
    %422 = vector.load %arg34[%c14_254, %c0_255] : memref<56x168xf32, #tpu.memory_space<vmem>>, vector<2x168xf32>
    tpu.vector_store %arg34[%c14_254, %c0_255], %421 {strides = array<i32>} : memref<56x168xf32, #tpu.memory_space<vmem>>, vector<2x168xf32>,
    %423 = vector.extract_strided_slice %401 {offsets = [8, 0], sizes = [2, 168], strides = [1, 1]} : vector<28x168xf32> to vector<2x168xf32>
    %c16_256 = arith.constant 16 : index
    %c0_257 = arith.constant 0 : index
    %424 = vector.load %arg34[%c16_256, %c0_257] : memref<56x168xf32, #tpu.memory_space<vmem>>, vector<2x168xf32>
    tpu.vector_store %arg34[%c16_256, %c0_257], %423 {strides = array<i32>} : memref<56x168xf32, #tpu.memory_space<vmem>>, vector<2x168xf32>,
    %425 = vector.extract_strided_slice %406 {offsets = [8, 0], sizes = [2, 168], strides = [1, 1]} : vector<28x168xf32> to vector<2x168xf32>
    %c18_258 = arith.constant 18 : index
    %c0_259 = arith.constant 0 : index
    %426 = vector.load %arg34[%c18_258, %c0_259] : memref<56x168xf32, #tpu.memory_space<vmem>>, vector<2x168xf32>
    tpu.vector_store %arg34[%c18_258, %c0_259], %425 {strides = array<i32>} : memref<56x168xf32, #tpu.memory_space<vmem>>, vector<2x168xf32>,
    %427 = vector.extract_strided_slice %401 {offsets = [10, 0], sizes = [2, 168], strides = [1, 1]} : vector<28x168xf32> to vector<2x168xf32>
    %c20_260 = arith.constant 20 : index
    %c0_261 = arith.constant 0 : index
    %428 = vector.load %arg34[%c20_260, %c0_261] : memref<56x168xf32, #tpu.memory_space<vmem>>, vector<2x168xf32>
    tpu.vector_store %arg34[%c20_260, %c0_261], %427 {strides = array<i32>} : memref<56x168xf32, #tpu.memory_space<vmem>>, vector<2x168xf32>,
    %429 = vector.extract_strided_slice %406 {offsets = [10, 0], sizes = [2, 168], strides = [1, 1]} : vector<28x168xf32> to vector<2x168xf32>
    %c22_262 = arith.constant 22 : index
    %c0_263 = arith.constant 0 : index
    %430 = vector.load %arg34[%c22_262, %c0_263] : memref<56x168xf32, #tpu.memory_space<vmem>>, vector<2x168xf32>
    tpu.vector_store %arg34[%c22_262, %c0_263], %429 {strides = array<i32>} : memref<56x168xf32, #tpu.memory_space<vmem>>, vector<2x168xf32>,
    %431 = vector.extract_strided_slice %401 {offsets = [12, 0], sizes = [2, 168], strides = [1, 1]} : vector<28x168xf32> to vector<2x168xf32>
    %c24_264 = arith.constant 24 : index
    %c0_265 = arith.constant 0 : index
    %432 = vector.load %arg34[%c24_264, %c0_265] : memref<56x168xf32, #tpu.memory_space<vmem>>, vector<2x168xf32>
    tpu.vector_store %arg34[%c24_264, %c0_265], %431 {strides = array<i32>} : memref<56x168xf32, #tpu.memory_space<vmem>>, vector<2x168xf32>,
    %433 = vector.extract_strided_slice %406 {offsets = [12, 0], sizes = [2, 168], strides = [1, 1]} : vector<28x168xf32> to vector<2x168xf32>
    %c26_266 = arith.constant 26 : index
    %c0_267 = arith.constant 0 : index
    %434 = vector.load %arg34[%c26_266, %c0_267] : memref<56x168xf32, #tpu.memory_space<vmem>>, vector<2x168xf32>
    tpu.vector_store %arg34[%c26_266, %c0_267], %433 {strides = array<i32>} : memref<56x168xf32, #tpu.memory_space<vmem>>, vector<2x168xf32>,
    %435 = vector.extract_strided_slice %401 {offsets = [14, 0], sizes = [2, 168], strides = [1, 1]} : vector<28x168xf32> to vector<2x168xf32>
    %c28_268 = arith.constant 28 : index
    %c0_269 = arith.constant 0 : index
    %436 = vector.load %arg34[%c28_268, %c0_269] : memref<56x168xf32, #tpu.memory_space<vmem>>, vector<2x168xf32>
    tpu.vector_store %arg34[%c28_268, %c0_269], %435 {strides = array<i32>} : memref<56x168xf32, #tpu.memory_space<vmem>>, vector<2x168xf32>,
    %437 = vector.extract_strided_slice %406 {offsets = [14, 0], sizes = [2, 168], strides = [1, 1]} : vector<28x168xf32> to vector<2x168xf32>
    %c30_270 = arith.constant 30 : index
    %c0_271 = arith.constant 0 : index
    %438 = vector.load %arg34[%c30_270, %c0_271] : memref<56x168xf32, #tpu.memory_space<vmem>>, vector<2x168xf32>
    tpu.vector_store %arg34[%c30_270, %c0_271], %437 {strides = array<i32>} : memref<56x168xf32, #tpu.memory_space<vmem>>, vector<2x168xf32>,
    %439 = vector.extract_strided_slice %401 {offsets = [16, 0], sizes = [2, 168], strides = [1, 1]} : vector<28x168xf32> to vector<2x168xf32>
    %c32_272 = arith.constant 32 : index
    %c0_273 = arith.constant 0 : index
    %440 = vector.load %arg34[%c32_272, %c0_273] : memref<56x168xf32, #tpu.memory_space<vmem>>, vector<2x168xf32>
    tpu.vector_store %arg34[%c32_272, %c0_273], %439 {strides = array<i32>} : memref<56x168xf32, #tpu.memory_space<vmem>>, vector<2x168xf32>,
    %441 = vector.extract_strided_slice %406 {offsets = [16, 0], sizes = [2, 168], strides = [1, 1]} : vector<28x168xf32> to vector<2x168xf32>
    %c34_274 = arith.constant 34 : index
    %c0_275 = arith.constant 0 : index
    %442 = vector.load %arg34[%c34_274, %c0_275] : memref<56x168xf32, #tpu.memory_space<vmem>>, vector<2x168xf32>
    tpu.vector_store %arg34[%c34_274, %c0_275], %441 {strides = array<i32>} : memref<56x168xf32, #tpu.memory_space<vmem>>, vector<2x168xf32>,
    %443 = vector.extract_strided_slice %401 {offsets = [18, 0], sizes = [2, 168], strides = [1, 1]} : vector<28x168xf32> to vector<2x168xf32>
    %c36_276 = arith.constant 36 : index
    %c0_277 = arith.constant 0 : index
    %444 = vector.load %arg34[%c36_276, %c0_277] : memref<56x168xf32, #tpu.memory_space<vmem>>, vector<2x168xf32>
    tpu.vector_store %arg34[%c36_276, %c0_277], %443 {strides = array<i32>} : memref<56x168xf32, #tpu.memory_space<vmem>>, vector<2x168xf32>,
    %445 = vector.extract_strided_slice %406 {offsets = [18, 0], sizes = [2, 168], strides = [1, 1]} : vector<28x168xf32> to vector<2x168xf32>
    %c38_278 = arith.constant 38 : index
    %c0_279 = arith.constant 0 : index
    %446 = vector.load %arg34[%c38_278, %c0_279] : memref<56x168xf32, #tpu.memory_space<vmem>>, vector<2x168xf32>
    tpu.vector_store %arg34[%c38_278, %c0_279], %445 {strides = array<i32>} : memref<56x168xf32, #tpu.memory_space<vmem>>, vector<2x168xf32>,
    %447 = vector.extract_strided_slice %401 {offsets = [20, 0], sizes = [2, 168], strides = [1, 1]} : vector<28x168xf32> to vector<2x168xf32>
    %c40_280 = arith.constant 40 : index
    %c0_281 = arith.constant 0 : index
    %448 = vector.load %arg34[%c40_280, %c0_281] : memref<56x168xf32, #tpu.memory_space<vmem>>, vector<2x168xf32>
    tpu.vector_store %arg34[%c40_280, %c0_281], %447 {strides = array<i32>} : memref<56x168xf32, #tpu.memory_space<vmem>>, vector<2x168xf32>,
    %449 = vector.extract_strided_slice %406 {offsets = [20, 0], sizes = [2, 168], strides = [1, 1]} : vector<28x168xf32> to vector<2x168xf32>
    %c42_282 = arith.constant 42 : index
    %c0_283 = arith.constant 0 : index
    %450 = vector.load %arg34[%c42_282, %c0_283] : memref<56x168xf32, #tpu.memory_space<vmem>>, vector<2x168xf32>
    tpu.vector_store %arg34[%c42_282, %c0_283], %449 {strides = array<i32>} : memref<56x168xf32, #tpu.memory_space<vmem>>, vector<2x168xf32>,
    %451 = vector.extract_strided_slice %401 {offsets = [22, 0], sizes = [2, 168], strides = [1, 1]} : vector<28x168xf32> to vector<2x168xf32>
    %c44_284 = arith.constant 44 : index
    %c0_285 = arith.constant 0 : index
    %452 = vector.load %arg34[%c44_284, %c0_285] : memref<56x168xf32, #tpu.memory_space<vmem>>, vector<2x168xf32>
    tpu.vector_store %arg34[%c44_284, %c0_285], %451 {strides = array<i32>} : memref<56x168xf32, #tpu.memory_space<vmem>>, vector<2x168xf32>,
    %453 = vector.extract_strided_slice %406 {offsets = [22, 0], sizes = [2, 168], strides = [1, 1]} : vector<28x168xf32> to vector<2x168xf32>
    %c46_286 = arith.constant 46 : index
    %c0_287 = arith.constant 0 : index
    %454 = vector.load %arg34[%c46_286, %c0_287] : memref<56x168xf32, #tpu.memory_space<vmem>>, vector<2x168xf32>
    tpu.vector_store %arg34[%c46_286, %c0_287], %453 {strides = array<i32>} : memref<56x168xf32, #tpu.memory_space<vmem>>, vector<2x168xf32>,
    %455 = vector.extract_strided_slice %401 {offsets = [24, 0], sizes = [2, 168], strides = [1, 1]} : vector<28x168xf32> to vector<2x168xf32>
    %c48_288 = arith.constant 48 : index
    %c0_289 = arith.constant 0 : index
    %456 = vector.load %arg34[%c48_288, %c0_289] : memref<56x168xf32, #tpu.memory_space<vmem>>, vector<2x168xf32>
    tpu.vector_store %arg34[%c48_288, %c0_289], %455 {strides = array<i32>} : memref<56x168xf32, #tpu.memory_space<vmem>>, vector<2x168xf32>,
    %457 = vector.extract_strided_slice %406 {offsets = [24, 0], sizes = [2, 168], strides = [1, 1]} : vector<28x168xf32> to vector<2x168xf32>
    %c50_290 = arith.constant 50 : index
    %c0_291 = arith.constant 0 : index
    %458 = vector.load %arg34[%c50_290, %c0_291] : memref<56x168xf32, #tpu.memory_space<vmem>>, vector<2x168xf32>
    tpu.vector_store %arg34[%c50_290, %c0_291], %457 {strides = array<i32>} : memref<56x168xf32, #tpu.memory_space<vmem>>, vector<2x168xf32>,
    %459 = vector.extract_strided_slice %401 {offsets = [26, 0], sizes = [2, 168], strides = [1, 1]} : vector<28x168xf32> to vector<2x168xf32>
    %c52_292 = arith.constant 52 : index
    %c0_293 = arith.constant 0 : index
    %460 = vector.load %arg34[%c52_292, %c0_293] : memref<56x168xf32, #tpu.memory_space<vmem>>, vector<2x168xf32>
    tpu.vector_store %arg34[%c52_292, %c0_293], %459 {strides = array<i32>} : memref<56x168xf32, #tpu.memory_space<vmem>>, vector<2x168xf32>,
    %461 = vector.extract_strided_slice %406 {offsets = [26, 0], sizes = [2, 168], strides = [1, 1]} : vector<28x168xf32> to vector<2x168xf32>
    %c54_294 = arith.constant 54 : index
    %c0_295 = arith.constant 0 : index
    %462 = vector.load %arg34[%c54_294, %c0_295] : memref<56x168xf32, #tpu.memory_space<vmem>>, vector<2x168xf32>
    tpu.vector_store %arg34[%c54_294, %c0_295], %461 {strides = array<i32>} : memref<56x168xf32, #tpu.memory_space<vmem>>, vector<2x168xf32>,
    %c0_296 = arith.constant 0 : index
    %c0_297 = arith.constant 0 : index
    %463 = vector.load %arg34[%c0_296, %c0_297] : memref<56x168xf32, #tpu.memory_space<vmem>>, vector<56x168xf32>
    %c0_298 = arith.constant 0 : index
    %c0_299 = arith.constant 0 : index
    %464 = vector.load %arg16[%c0_298, %c0_299] : memref<1x128xf32, #tpu.memory_space<vmem>>, vector<1x128xf32>
    %cst_300 = arith.constant 0.000000e+00 : f32
    %465 = vector.broadcast %cst_300 : f32 to vector<64x1280xf32>
    %c0_301 = arith.constant 0 : index
    %c0_302 = arith.constant 0 : index
    %466 = vector.load %arg30[%c0_301, %c0_302] : memref<64x1280xf32, #tpu.memory_space<vmem>>, vector<64x1280xf32>
    tpu.vector_store %arg30[%c0_301, %c0_302], %465 {strides = array<i32>} : memref<64x1280xf32, #tpu.memory_space<vmem>>, vector<64x1280xf32>,
    %c8_303 = arith.constant 8 : index
    %c0_304 = arith.constant 0 : index
    %467 = vector.load %arg30[%c8_303, %c0_304] : memref<64x1280xf32, #tpu.memory_space<vmem>>, vector<56x168xf32>
    tpu.vector_store %arg30[%c8_303, %c0_304], %463 {strides = array<i32>} : memref<64x1280xf32, #tpu.memory_space<vmem>>, vector<56x168xf32>,
    %c6_305 = arith.constant 6 : index
    %c256_306 = arith.constant 256 : index
    %468 = vector.load %arg30[%c6_305, %c256_306] : memref<64x1280xf32, #tpu.memory_space<vmem>>, vector<56x168xf32>
    tpu.vector_store %arg30[%c6_305, %c256_306], %463 {strides = array<i32>} : memref<64x1280xf32, #tpu.memory_space<vmem>>, vector<56x168xf32>,
    %c4_307 = arith.constant 4 : index
    %c512_308 = arith.constant 512 : index
    %469 = vector.load %arg30[%c4_307, %c512_308] : memref<64x1280xf32, #tpu.memory_space<vmem>>, vector<56x168xf32>
    tpu.vector_store %arg30[%c4_307, %c512_308], %463 {strides = array<i32>} : memref<64x1280xf32, #tpu.memory_space<vmem>>, vector<56x168xf32>,
    %c2_309 = arith.constant 2 : index
    %c768_310 = arith.constant 768 : index
    %470 = vector.load %arg30[%c2_309, %c768_310] : memref<64x1280xf32, #tpu.memory_space<vmem>>, vector<56x168xf32>
    tpu.vector_store %arg30[%c2_309, %c768_310], %463 {strides = array<i32>} : memref<64x1280xf32, #tpu.memory_space<vmem>>, vector<56x168xf32>,
    %c0_311 = arith.constant 0 : index
    %c1024_312 = arith.constant 1024 : index
    %471 = vector.load %arg30[%c0_311, %c1024_312] : memref<64x1280xf32, #tpu.memory_space<vmem>>, vector<56x168xf32>
    tpu.vector_store %arg30[%c0_311, %c1024_312], %463 {strides = array<i32>} : memref<64x1280xf32, #tpu.memory_space<vmem>>, vector<56x168xf32>,
    %c0_313 = arith.constant 0 : index
    %c0_314 = arith.constant 0 : index
    %472 = vector.load %arg30[%c0_313, %c0_314] : memref<64x1280xf32, #tpu.memory_space<vmem>>, vector<64x1280xf32>
    %c0_315 = arith.constant 0 : index
    %c0_316 = arith.constant 0 : index
    %473 = vector.load %arg15[%c0_315, %c0_316] : memref<1280x128xf32, #tpu.memory_space<vmem>>, vector<1280x128xf32>
    %cst_317 = arith.constant dense<0.000000e+00> : vector<64x128xf32>
    %474 = tpu.matmul %472, %473, %cst_317 {dimension_numbers = #tpu.dot_dimension_numbers<[1], [0], [0], [1], [0, 0, 1, 1], [], []>} : vector<64x1280xf32>, vector<1280x128xf32>, vector<64x128xf32> -> vector<64x128xf32>
    %475 = vector.broadcast %464 : vector<1x128xf32> to vector<64x128xf32>
    %476 = arith.addf %474, %475 : vector<64x128xf32>
    %cst_318 = arith.constant 0.000000e+00 : f32
    %477 = vector.broadcast %cst_318 : f32 to vector<64x128xf32>
    %478 = arith.subf %477, %476 : vector<64x128xf32>
    %479 = math.exp %478 : vector<64x128xf32>
    %cst_319 = arith.constant 1.000000e+00 : f32
    %480 = vector.broadcast %cst_319 : f32 to vector<64x128xf32>
    %481 = arith.addf %480, %479 : vector<64x128xf32>
    %482 = tpu.reciprocal %481 {approx = true} : vector<64x128xf32> -> vector<64x128xf32>
    %c0_320 = arith.constant 0 : index
    %c0_321 = arith.constant 0 : index
    %483 = vector.load %arg23[%c0_320, %c0_321] : memref<64x128xf32, #tpu.memory_space<vmem>>, vector<64x128xf32>
    tpu.vector_store %arg23[%c0_320, %c0_321], %482 {strides = array<i32>} : memref<64x128xf32, #tpu.memory_space<vmem>>, vector<64x128xf32>,
    return
  }
}

</mosaic_0001>

<bundles_post_ra>
// kernel: forward.1
= control target key start
LH: loop header
LB: loop body
LE: loop exit
PB: predicated region body
PF: predicated region fallthrough
CT: control target
= control target key end

     0   :  { %s12297_s0 = inlined_call_operand.vmem [shape: f32[64,96], index: 0, kind: input, shape index: {}]   ;;  %s12298_s1 = inlined_call_operand.vmem [shape: f32[640,168], index: 1, kind: input, shape index: {}]   ;;  %s12299_s2 = inlined_call_operand.vmem [shape: f32[3,168], index: 2, kind: input, shape index: {}]   ;;  %s12300_s3 = inlined_call_operand.vmem [shape: f32[168,168], index: 3, kind: input, shape index: {}]   ;;  %s12301_s4 = inlined_call_operand.vmem [shape: f32[640,160], index: 4, kind: input, shape index: {}]   ;;  %s12302_s5 = inlined_call_operand.vmem [shape: f32[3,160], index: 5, kind: input, shape index: {}]   ;;  %s12303_s6 = inlined_call_operand.vmem [shape: f32[160,160], index: 6, kind: input, shape index: {}]   ;;  %s12304_s7 = inlined_call_operand.vmem [shape: f32[640,8], index: 7, kind: input, shape index: {}]   ;;  %s12305_s8 = inlined_call_operand.vmem [shape: f32[1,8], index: 8, kind: input, shape index: {}]   ;;  %s12306_s9 = inlined_call_operand.vmem [shape: f32[640,80], index: 9, kind: input, shape index: {}]   ;;  %s12307_s10 = inlined_call_operand.vmem [shape: f32[3,80], index: 10, kind: input, shape index: {}]   ;;  %s12308_s11 = inlined_call_operand.vmem [shape: f32[80,80], index: 11, kind: input, shape index: {}]   ;;  %s12309_s12 = inlined_call_operand.vmem [shape: f32[1280,84], index: 12, kind: input, shape index: {}]   ;;  %s12310_s13 = inlined_call_operand.vmem [shape: f32[3,84], index: 13, kind: input, shape index: {}]   ;;  %s12311_s14 = inlined_call_operand.vmem [shape: f32[84,84], index: 14, kind: input, shape index: {}]   ;;  %s12312_s15 = inlined_call_operand.vmem [shape: f32[1280,128], index: 15, kind: input, shape index: {}]   ;;  %s12313_s16 = inlined_call_operand.vmem [shape: f32[1,128], index: 16, kind: input, shape index: {}]   ;;  %s12314_s17 = inlined_call_operand.vmem [shape: f32[168,168], index: 17, kind: input, shape index: {}]   ;;  %s12315_s18 = inlined_call_operand.vmem [shape: f32[84,168], index: 18, kind: input, shape index: {}]   ;;  %s12316_s19 = inlined_call_operand.vmem [shape: f32[84,168], index: 19, kind: input, shape index: {}]   ;;  %s12317_s20 = inlined_call_operand.vmem [shape: f32[160,160], index: 20, kind: input, shape index: {}]   ;;  %s12318_s21 = inlined_call_operand.vmem [shape: f32[80,160], index: 21, kind: input, shape index: {}]   ;;  %s12319_s22 = inlined_call_operand.vmem [shape: f32[80,160], index: 22, kind: input, shape index: {}]   ;;  %s12320_s23 = inlined_call_operand.vmem [shape: f32[64,128], index: 23, kind: output, shape index: {0}]   ;;  %s12321_s24 = inlined_call_operand.hbm [shape: f32[2,8], index: 24, kind: output, shape index: {1}]  }
   0x1   :  { %12390 = sst [smem:[#allocation36_spill]] %s12297_s0 }
   0x2   :  { %12391 = sst [smem:[#allocation37_spill]] %s12298_s1 }
   0x3   :  { %12392 = sst [smem:[#allocation38_spill]] %s12299_s2 }
   0x4   :  { %12393 = sst [smem:[#allocation39_spill]] %s12300_s3 }
   0x5   :  { %12394 = sst [smem:[#allocation40_spill]] %s12301_s4 }
   0x6   :  { %12395 = sst [smem:[#allocation41_spill]] %s12302_s5 }
   0x7   :  { %12396 = sst [smem:[#allocation42_spill]] %s12303_s6 }
   0x8   :  { %12397 = sst [smem:[#allocation43_spill]] %s12304_s7 }
   0x9   :  { %12398 = sst [smem:[#allocation44_spill]] %s12305_s8 }
   0xa   :  { %s12399_s27 = sld [smem:[#allocation37_spill]]  ;;  %v6378_v6 = vmov 0.0   ;;  %vm121_vm0 = vcmask 785408  }
   0xb   :  { %86 = vst [vmem:[#allocation2] sm:$0xff] %v6378_v6  ;;  %s12400_s4 = sld [smem:[#allocation36_spill]] }
   0xc   :  { %87 = vst [vmem:[#allocation2 + $0x8] sm:$0xff] %v6378_v6 }
   0xd   :  { %88 = vst [vmem:[#allocation2 + $0x10] sm:$0xff] %v6378_v6 }
   0xe   :  { %89 = vst [vmem:[#allocation2 + $0x18] sm:$0xff] %v6378_v6 }
   0xf   :  { %90 = vst [vmem:[#allocation2 + $0x20] sm:$0xff] %v6378_v6 }
  0x10   :  { %v299_v0 = vld [vmem:[%s12399_s27 + $0xf0] sm:$0xff]  ;;  %v297_v2 = vld [vmem:[%s12399_s27 + $0xe0] sm:$0xff]  ;;  %91 = vst [vmem:[#allocation2 + $0x28] sm:$0xff] %v6378_v6 }
  0x11   :  { %v363_v1 = vld [vmem:[%s12399_s27 + $0x2f0] sm:$0xff]  ;;  %436 = vmatpush.msra.mxu0 %v299_v0  ;;  %v361_v4 = vld [vmem:[%s12399_s27 + $0x2e0] sm:$0xff]  ;;  %92 = vst [vmem:[#allocation2 + $0x30] sm:$0xff] %v6378_v6 }
  0x12   :  { %512 = vmatpush.msra.mxu2 %v363_v1  ;;  %v331_v3 = vld [vmem:[%s12399_s27 + $0x1f0] sm:$0xff]  ;;  %v329_v8 = vld [vmem:[%s12399_s27 + $0x1e0] sm:$0xff]  ;;  %93 = vst [vmem:[#allocation2 + $0x38] sm:$0xff] %v6378_v6 }
  0x13   :  { %v395_v5 = vld [vmem:[%s12399_s27 + $0x3f0] sm:$0xff]  ;;  %474 = vmatpush.msra.mxu1 %v331_v3  ;;  %437 = vmatpush.msra.mxu0 %v297_v2  ;;  %v393_v10 = vld [vmem:[%s12399_s27 + $0x3e0] sm:$0xff]  ;;  %94 = vst [vmem:[#allocation2 + $0x40] sm:$0xff] %v6378_v6 }
  0x14   :  { %550 = vmatpush.msra.mxu3 %v395_v5  ;;  %v295_v7 = vld [vmem:[%s12399_s27 + $0xd0] sm:$0xff]  ;;  %513 = vmatpush.msra.mxu2 %v361_v4  ;;  %v293_v12 = vld [vmem:[%s12399_s27 + $0xc0] sm:$0xff]  ;;  %95 = vst [vmem:[#allocation2 + $0x48] sm:$0xff] %v6378_v6 }
  0x15   :  { %v359_v9 = vld [vmem:[%s12399_s27 + $0x2d0] sm:$0xff]  ;;  %475 = vmatpush.msra.mxu1 %v329_v8  ;;  %v357_v13 = vld [vmem:[%s12399_s27 + $0x2c0] sm:$0xff]  ;;  %438 = vmatpush.msra.mxu0 %v295_v7  ;;  %96 = vst [vmem:[#allocation2 + $0x50] sm:$0xff] %v6378_v6 }
  0x16   :  { %v327_v11 = vld [vmem:[%s12399_s27 + $0x1d0] sm:$0xff]  ;;  %551 = vmatpush.msra.mxu3 %v393_v10  ;;  %514 = vmatpush.msra.mxu2 %v359_v9  ;;  %v325_v15 = vld [vmem:[%s12399_s27 + $0x1c0] sm:$0xff]  ;;  %97 = vst [vmem:[#allocation2 + $0x58] sm:$0xff] %v6378_v6 }
  0x17   :  { %v391_v14 = vld [vmem:[%s12399_s27 + $0x3d0] sm:$0xff]  ;;  %v389_v16 = vld [vmem:[%s12399_s27 + $0x3c0] sm:$0xff]  ;;  %476 = vmatpush.msra.mxu1 %v327_v11  ;;  %439 = vmatpush.msra.mxu0 %v293_v12  ;;  %98 = vst [vmem:[#allocation2 + $0x60] sm:$0xff] %v6378_v6 }
  0x18   :  { %552 = vmatpush.msra.mxu3 %v391_v14  ;;  %v291_v17 = vld [vmem:[%s12399_s27 + $0xb0] sm:$0xff]  ;;  %515 = vmatpush.msra.mxu2 %v357_v13  ;;  %v289_v21 = vld [vmem:[%s12399_s27 + $0xa0] sm:$0xff]  ;;  %99 = vst [vmem:[#allocation2 + $0x68] sm:$0xff] %v6378_v6 }
  0x19   :  { %v355_v18 = vld [vmem:[%s12399_s27 + $0x2b0] sm:$0xff]  ;;  %477 = vmatpush.msra.mxu1 %v325_v15  ;;  %v353_v22 = vld [vmem:[%s12399_s27 + $0x2a0] sm:$0xff]  ;;  %440 = vmatpush.msra.mxu0 %v291_v17  ;;  %100 = vst [vmem:[#allocation2 + $0x70] sm:$0xff] %v6378_v6 }
  0x1a   :  { %v323_v19 = vld [vmem:[%s12399_s27 + $0x1b0] sm:$0xff]  ;;  %553 = vmatpush.msra.mxu3 %v389_v16  ;;  %516 = vmatpush.msra.mxu2 %v355_v18  ;;  %v321_v23 = vld [vmem:[%s12399_s27 + $0x1a0] sm:$0xff]  ;;  %101 = vst [vmem:[#allocation2 + $0x78] sm:$0xff] %v6378_v6 }
  0x1b   :  { %v387_v20 = vld [vmem:[%s12399_s27 + $0x3b0] sm:$0xff]  ;;  %v385_v24 = vld [vmem:[%s12399_s27 + $0x3a0] sm:$0xff]  ;;  %478 = vmatpush.msra.mxu1 %v323_v19  ;;  %441 = vmatpush.msra.mxu0 %v289_v21  ;;  %102 = vst [vmem:[#allocation2 + $0x80] sm:$0xff] %v6378_v6 }
  0x1c   :  { %554 = vmatpush.msra.mxu3 %v387_v20  ;;  %v287_v25 = vld [vmem:[%s12399_s27 + $0x90] sm:$0xff]  ;;  %517 = vmatpush.msra.mxu2 %v353_v22  ;;  %v285_v29 = vld [vmem:[%s12399_s27 + $0x80] sm:$0xff]  ;;  %103 = vst [vmem:[#allocation2 + $0x88] sm:$0xff] %v6378_v6 }
  0x1d   :  { %v351_v26 = vld [vmem:[%s12399_s27 + $0x290] sm:$0xff]  ;;  %479 = vmatpush.msra.mxu1 %v321_v23  ;;  %v349_v30 = vld [vmem:[%s12399_s27 + $0x280] sm:$0xff]  ;;  %442 = vmatpush.msra.mxu0 %v287_v25  ;;  %104 = vst [vmem:[#allocation2 + $0x90] sm:$0xff] %v6378_v6 }
  0x1e   :  { %v319_v27 = vld [vmem:[%s12399_s27 + $0x190] sm:$0xff]  ;;  %555 = vmatpush.msra.mxu3 %v385_v24  ;;  %518 = vmatpush.msra.mxu2 %v351_v26  ;;  %v317_v31 = vld [vmem:[%s12399_s27 + $0x180] sm:$0xff]  ;;  %105 = vst [vmem:[#allocation2 + $0x98] sm:$0xff] %v6378_v6 }
  0x1f   :  { %v383_v28 = vld [vmem:[%s12399_s27 + $0x390] sm:$0xff]  ;;  %v381_v32 = vld [vmem:[%s12399_s27 + $0x380] sm:$0xff]  ;;  %480 = vmatpush.msra.mxu1 %v319_v27  ;;  %443 = vmatpush.msra.mxu0 %v285_v29  ;;  %106 = vst [vmem:[#allocation2 + $0xa0] sm:$0xff] %v6378_v6 }
  0x20   :  { %556 = vmatpush.msra.mxu3 %v383_v28  ;;  %v283_v33 = vld [vmem:[%s12399_s27 + $0x70] sm:$0xff]  ;;  %519 = vmatpush.msra.mxu2 %v349_v30  ;;  %v281_v37 = vld [vmem:[%s12399_s27 + $0x60] sm:$0xff] }
  0x21   :  { %v347_v34 = vld [vmem:[%s12399_s27 + $0x270] sm:$0xff]  ;;  %481 = vmatpush.msra.mxu1 %v317_v31  ;;  %v345_v38 = vld [vmem:[%s12399_s27 + $0x260] sm:$0xff]  ;;  %444 = vmatpush.msra.mxu0 %v283_v33 }
  0x22   :  { %v315_v35 = vld [vmem:[%s12399_s27 + $0x170] sm:$0xff]  ;;  %557 = vmatpush.msra.mxu3 %v381_v32  ;;  %520 = vmatpush.msra.mxu2 %v347_v34  ;;  %v313_v39 = vld [vmem:[%s12399_s27 + $0x160] sm:$0xff] }
  0x23   :  { %v379_v36 = vld [vmem:[%s12399_s27 + $0x370] sm:$0xff]  ;;  %v377_v40 = vld [vmem:[%s12399_s27 + $0x360] sm:$0xff]  ;;  %482 = vmatpush.msra.mxu1 %v315_v35  ;;  %445 = vmatpush.msra.mxu0 %v281_v37 }
  0x24   :  { %558 = vmatpush.msra.mxu3 %v379_v36  ;;  %v279_v41 = vld [vmem:[%s12399_s27 + $0x50] sm:$0xff]  ;;  %521 = vmatpush.msra.mxu2 %v345_v38  ;;  %v277_v43 = vld [vmem:[%s12399_s27 + $0x40] sm:$0xff] }
  0x25   :  { %v343_v42 = vld [vmem:[%s12399_s27 + $0x250] sm:$0xff]  ;;  %483 = vmatpush.msra.mxu1 %v313_v39  ;;  %v341_v46 = vld [vmem:[%s12399_s27 + $0x240] sm:$0xff]  ;;  %446 = vmatpush.msra.mxu0 %v279_v41 }
  0x26   :  { %v311_v44 = vld [vmem:[%s12399_s27 + $0x150] sm:$0xff]  ;;  %559 = vmatpush.msra.mxu3 %v377_v40  ;;  %v6674_v48 = vld [vmem:[%s12400_s4] sm:$0xff]  ;;  %522 = vmatpush.msra.mxu2 %v343_v42 }
  0x27   :  { %v375_v45 = vld [vmem:[%s12399_s27 + $0x350] sm:$0xff]  ;;  %v309_v49 = vld [vmem:[%s12399_s27 + $0x140] sm:$0xff]  ;;  %122 = vst.msk [vmem:[#allocation2] sm:$0xff] %vm121_vm0, %v6674_v48  ;;  %484 = vmatpush.msra.mxu1 %v311_v44 }
  0x28   :  { %v275_v47 = vld [vmem:[%s12399_s27 + $0x30] sm:$0xff]  ;;  %v373_v50 = vld [vmem:[%s12399_s27 + $0x340] sm:$0xff]  ;;  %560 = vmatpush.msra.mxu3 %v375_v45 }
  0x29   :  { %v339_v51 = vld [vmem:[%s12399_s27 + $0x230] sm:$0xff] }
  0x2a   :  { %30 = vsyncpa [#allocation13], 0  ;;  %447 = vmatpush.msra.mxu0 %v277_v43  ;;  %523 = vmatpush.msra.mxu2 %v341_v46  ;;  %v307_v52 = vld [vmem:[%s12399_s27 + $0x130] sm:$0xff]  ;;  %107 = vst [vmem:[#allocation2 + $0xa8] sm:$0xff] %v6378_v6  ;;  %v273_v54 = vld [vmem:[%s12399_s27 + $0x20] sm:$0xff]  ;;  %v168_v10 = vrot.slane %v6674_v48, 4 }
  0x2b   :  { %v371_v53 = vld [vmem:[%s12399_s27 + $0x330] sm:$0xff]  ;;  %485 = vmatpush.msra.mxu1 %v309_v49  ;;  %561 = vmatpush.msra.mxu3 %v373_v50  ;;  %v337_v55 = vld [vmem:[%s12399_s27 + $0x220] sm:$0xff]  ;;  %108 = vst [vmem:[#allocation2 + $0xb0] sm:$0xff] %v6378_v6  ;;  %v78_v9 = vld [vmem:[%s12400_s4 + $0x8] sm:$0xff]  ;;  %vm12336_vm1 = vcmask 1043456   ;;  %v138_v13 = vrot.slane %v6674_v48, 2 }
  0x2c   :  { %448 = vmatpush.msra.mxu0 %v275_v47  ;;  %524 = vmatpush.msra.mxu2 %v339_v51  ;;  %v305_v56 = vld [vmem:[%s12399_s27 + $0x120] sm:$0xff]  ;;  %109 = vst [vmem:[#allocation2 + $0xb8] sm:$0xff] %v6378_v6  ;;  %v271_v58 = vld [vmem:[%s12399_s27 + $0x10] sm:$0xff]  ;;  %v169_v11 = vrot.slane %v78_v9, 4  ;;  %v139_v14 = vrot.slane %v78_v9, 2  ;;  %v332_v16 = vld [vmem:[%s12399_s27 + $0x1f8] sm:$0xff] }
  0x2d   :  { %v369_v57 = vld [vmem:[%s12399_s27 + $0x320] sm:$0xff]  ;;  %486 = vmatpush.msra.mxu1 %v307_v52  ;;  %562 = vmatpush.msra.mxu3 %v371_v53  ;;  %v335_v59 = vld [vmem:[%s12399_s27 + $0x210] sm:$0xff]  ;;  %110 = vst [vmem:[#allocation2 + $0xc0] sm:$0xff] %v6378_v6  ;;  %vm12349_vm2 = vcmask 1045504   ;;  %v198_v19 = vrot.slane %v6674_v48, 6  ;;  %v199_v20 = vrot.slane %v78_v9, 6 }
  0x2e   :  { %449 = vmatpush.msra.mxu0 %v273_v54  ;;  %525 = vmatpush.msra.mxu2 %v337_v55  ;;  %v303_v60 = vld [vmem:[%s12399_s27 + $0x110] sm:$0xff]  ;;  %111 = vst [vmem:[#allocation2 + $0xc8] sm:$0xff] %v6378_v6  ;;  %v269_v62 = vld [vmem:[%s12399_s27] sm:$0xff]  ;;  %v6731_v0 = vld [vmem:[#allocation2] sm:$0xff]  ;;  %v170_v18 = vsel %vm12336_vm1, %v168_v10, %v169_v11  ;;  %vm12348_vm3 = vcmask 1041408   ;;  %v140_v22 = vsel %vm12349_vm2, %v138_v13, %v139_v14  ;;  %s12401_s3 = sld [smem:[#allocation39_spill]] }
  0x2f   :  { %v367_v61 = vld [vmem:[%s12399_s27 + $0x310] sm:$0xff]  ;;  %487 = vmatpush.msra.mxu1 %v305_v56  ;;  %563 = vmatpush.msra.mxu3 %v369_v57  ;;  %v333_v63 = vld [vmem:[%s12399_s27 + $0x200] sm:$0xff]  ;;  %112 = vst [vmem:[#allocation2 + $0xd0] sm:$0xff] %v6378_v6  ;;  %v330_v23 = vld [vmem:[%s12399_s27 + $0x1e8] sm:$0xff]  ;;  %v200_v25 = vsel %vm12348_vm3, %v198_v19, %v199_v20  ;;  %s12402_s6 = sld [smem:[#allocation38_spill]]  ;;  %vm12328_vm5 = vcmask 326656  }
  0x30   :  { %450 = vmatpush.msra.mxu0 %v271_v58  ;;  %526 = vmatpush.msra.mxu2 %v335_v59  ;;  %113 = vst [vmem:[#allocation2 + $0xd8] sm:$0xff] %v6378_v6  ;;  %v427_v1 = vld [vmem:[%s12399_s27 + $0x4f0] sm:$0xff]  ;;  %v301_v2 = vld [vmem:[%s12399_s27 + $0x100] sm:$0xff]  ;;  %v300_v30 = vld [vmem:[%s12399_s27 + $0xf8] sm:$0xff]  ;;  %vm12332_vm12 = vcmask 320512   ;;  %vm12329_vm13 = vcmask 322562  }
  0x31   :  { %488 = vmatpush.msra.mxu1 %v303_v60  ;;  %564 = vmatpush.msra.mxu3 %v367_v61  ;;  %114 = vst [vmem:[#allocation2 + $0xe0] sm:$0xff] %v6378_v6  ;;  %v365_v3 = vld [vmem:[%s12399_s27 + $0x300] sm:$0xff]  ;;  %v423_v5 = vld [vmem:[%s12399_s27 + $0x4d0] sm:$0xff]  ;;  %v328_v31 = vld [vmem:[%s12399_s27 + $0x1d8] sm:$0xff]  ;;  %vm12331_vm14 = vcmask 324612   ;;  %vm12330_vm15 = vcmask 326662  }
  0x32   :  { %451 = vmatpush.msra.mxu0 %v269_v62  ;;  %527 = vmatpush.msra.mxu2 %v333_v63  ;;  %115 = vst [vmem:[#allocation2 + $0xe8] sm:$0xff] %v6378_v6  ;;  %v425_v4 = vld [vmem:[%s12399_s27 + $0x4e0] sm:$0xff]  ;;  %v419_v8 = vld [vmem:[%s12399_s27 + $0x4b0] sm:$0xff]  ;;  %v298_v35 = vld [vmem:[%s12399_s27 + $0xe8] sm:$0xff]  ;;  %s12411_s7 = sld [smem:[#allocation40_spill]]  ;;  %s6381_s0 = smov 80  }
  0x33   :  { %452 = vmatmul.f32.vlgmr.msra.gmra.mxu0 %v6731_v0  ;;  %116 = vst [vmem:[#allocation2 + $0xf0] sm:$0xff] %v6378_v6  ;;  %489 = vmatpush.msra.mxu1 %v301_v2  ;;  %v421_v7 = vld [vmem:[%s12399_s27 + $0x4c0] sm:$0xff]  ;;  %v6868_v12 = vld [vmem:[%s12400_s4 + $0x10] sm:$0xff]  ;;  %v326_v36 = vld [vmem:[%s12399_s27 + $0x1c8] sm:$0xff]  ;;  %s12417_s30 = sld [smem:[#allocation43_spill]]  ;;  %s6385_s25 = smov [#allocation12]  }
  0x34   :  { %117 = vst [vmem:[#allocation2 + $0xf8] sm:$0xff] %v6378_v6  ;;  %588 = vmatpush.msrb.mxu0 %v427_v1  ;;  %565 = vmatpush.msra.mxu3 %v365_v3  ;;  %v417_v15 = vld [vmem:[%s12399_s27 + $0x4a0] sm:$0xff]  ;;  %v415_v17 = vld [vmem:[%s12399_s27 + $0x490] sm:$0xff]  ;;  %v171_v21 = vrot.slane %v6868_v12, 4  ;;  %v141_v26 = vrot.slane %v6868_v12, 2  ;;  %v201_v28 = vrot.slane %v6868_v12, 6 }
  0x35   :  { %118 = vst [vmem:[#allocation2 + $0x100] sm:$0xff] %v6378_v6  ;;  %664 = vmatpush.msrb.mxu2 %v332_v16  ;;  %v413_v24 = vld [vmem:[%s12399_s27 + $0x480] sm:$0xff]  ;;  %v411_v32 = vld [vmem:[%s12399_s27 + $0x470] sm:$0xff]  ;;  %626 = vmatpush.msrb.mxu1 %v300_v30  ;;  %v296_v39 = vld [vmem:[%s12399_s27 + $0xd8] sm:$0xff] }
  0x36   :  { %119 = vst [vmem:[#allocation2 + $0x108] sm:$0xff] %v6378_v6  ;;  %589 = vmatpush.msrb.mxu0 %v425_v4  ;;  %v172_v27 = vsel %vm12336_vm1, %v169_v11, %v171_v21  ;;  %v142_v33 = vsel %vm12349_vm2, %v139_v14, %v141_v26  ;;  %v6921_v34 = vld [vmem:[%s12400_s4 + $0x20] sm:$0xff]  ;;  %v202_v37 = vsel %vm12348_vm3, %v199_v20, %v201_v28  ;;  %v294_v46 = vld [vmem:[%s12399_s27 + $0xc8] sm:$0xff]  ;;  %v324_v55 = vld [vmem:[%s12399_s27 + $0x1b8] sm:$0xff] }
  0x37   :  { %120 = vst [vmem:[#allocation2 + $0x110] sm:$0xff] %v6378_v6  ;;  %665 = vmatpush.msrb.mxu2 %v330_v23  ;;  %627 = vmatpush.msrb.mxu1 %v298_v35  ;;  %v175_v44 = vrot.slane %v6921_v34, 4  ;;  %v409_v45 = vld [vmem:[%s12399_s27 + $0x460] sm:$0xff]  ;;  %v6962_v49 = vld [vmem:[%s12400_s4 + $0x28] sm:$0xff]  ;;  %v145_v52 = vrot.slane %v6921_v34, 2  ;;  %v205_v54 = vrot.slane %v6921_v34, 6 }
  0x38   :  { %1804 = vst [vmem:[#allocation3] sm:$0xff] %v6378_v6  ;;  %590 = vmatpush.msrb.mxu0 %v423_v5  ;;  %v407_v56 = vld [vmem:[%s12399_s27 + $0x450] sm:$0xff]  ;;  %v177_v58 = vrot.slane %v6962_v49, 4  ;;  %v292_v59 = vld [vmem:[%s12399_s27 + $0xb8] sm:$0xff]  ;;  %v290_v60 = vld [vmem:[%s12399_s27 + $0xa8] sm:$0xff]  ;;  %v207_v11 = vrot.slane %v6962_v49, 6 }
  0x39   :  { %1805 = vst [vmem:[#allocation3 + $0x8] sm:$0xff] %v6378_v6  ;;  %666 = vmatpush.msrb.mxu2 %v328_v31  ;;  %628 = vmatpush.msrb.mxu1 %v296_v39  ;;  %v322_v62 = vld [vmem:[%s12399_s27 + $0x1a8] sm:$0xff]  ;;  %v405_v63 = vld [vmem:[%s12399_s27 + $0x440] sm:$0xff]  ;;  %v288_v2 = vld [vmem:[%s12399_s27 + $0x98] sm:$0xff] }
  0x3a   :  { %1806 = vst [vmem:[#allocation3 + $0x10] sm:$0xff] %v6378_v6  ;;  %591 = vmatpush.msrb.mxu0 %v421_v7  ;;  %v7009_v3 = vld [vmem:[%s12400_s4 + $0x30] sm:$0xff]  ;;  %v147_v7 = vrot.slane %v6962_v49, 2  ;;  %v178_v10 = vsel %vm12336_vm1, %v175_v44, %v177_v58  ;;  %v284_v16 = vld [vmem:[%s12399_s27 + $0x78] sm:$0xff]  ;;  %v208_v19 = vsel %vm12348_vm3, %v205_v54, %v207_v11 }
  0x3b   :  { %1807 = vst [vmem:[#allocation3 + $0x18] sm:$0xff] %v6378_v6  ;;  %667 = vmatpush.msrb.mxu2 %v326_v36  ;;  %629 = vmatpush.msrb.mxu1 %v294_v46  ;;  %v179_v13 = vrot.slane %v7009_v3, 4  ;;  %v149_v20 = vrot.slane %v7009_v3, 2  ;;  %v316_v30 = vld [vmem:[%s12399_s27 + $0x178] sm:$0xff]  ;;  %v399_v31 = vld [vmem:[%s12399_s27 + $0x410] sm:$0xff]  ;;  %v314_v46 = vld [vmem:[%s12399_s27 + $0x168] sm:$0xff] }
  0x3c   :  { %1808 = vst [vmem:[#allocation3 + $0x20] sm:$0xff] %v6378_v6  ;;  %592 = vmatpush.msrb.mxu0 %v419_v8  ;;  %v320_v8 = vld [vmem:[%s12399_s27 + $0x198] sm:$0xff]  ;;  %v148_v14 = vsel %vm12349_vm2, %v145_v52, %v147_v7 }
  0x3d   :  { %1809 = vst [vmem:[#allocation3 + $0x28] sm:$0xff] %v6378_v6  ;;  %668 = vmatpush.msrb.mxu2 %v324_v55  ;;  %630 = vmatpush.msrb.mxu1 %v292_v59  ;;  %v180_v23 = vsel %vm12336_vm1, %v177_v58, %v179_v13  ;;  %v312_v55 = vld [vmem:[%s12399_s27 + $0x158] sm:$0xff] }
  0x3e   :  { %1810 = vst [vmem:[#allocation3 + $0x30] sm:$0xff] %v6378_v6  ;;  %593 = vmatpush.msrb.mxu0 %v417_v15  ;;  %v403_v15 = vld [vmem:[%s12399_s27 + $0x430] sm:$0xff]  ;;  %v356_v58 = vld [vmem:[%s12399_s27 + $0x2b8] sm:$0xff] }
  0x3f   :  { %1811 = vst [vmem:[#allocation3 + $0x38] sm:$0xff] %v6378_v6  ;;  %669 = vmatpush.msrb.mxu2 %v322_v62  ;;  %631 = vmatpush.msrb.mxu1 %v290_v60  ;;  %v396_v60 = vld [vmem:[%s12399_s27 + $0x3f8] sm:$0xff]  ;;  %v270_v62 = vld [vmem:[%s12399_s27 + $0x8] sm:$0xff] }
  0x40   :  { %1812 = vst [vmem:[#allocation3 + $0x40] sm:$0xff] %v6378_v6  ;;  %594 = vmatpush.msrb.mxu0 %v415_v17  ;;  %v84_v17 = vld [vmem:[%s12400_s4 + $0x38] sm:$0xff] }
  0x41   :  { %1813 = vst [vmem:[#allocation3 + $0x48] sm:$0xff] %v6378_v6  ;;  %670 = vmatpush.msrb.mxu2 %v320_v8  ;;  %632 = vmatpush.msrb.mxu1 %v288_v2  ;;  %v151_v35 = vrot.slane %v84_v17, 2  ;;  %v352_v2 = vld [vmem:[%s12399_s27 + $0x298] sm:$0xff]  ;;  %v350_v8 = vld [vmem:[%s12399_s27 + $0x288] sm:$0xff] }
  0x42   :  { %1814 = vst [vmem:[#allocation3 + $0x50] sm:$0xf] %v6378_v6  ;;  %595 = vmatpush.msrb.mxu0 %v413_v24  ;;  %v209_v24 = vrot.slane %v7009_v3, 6 }
  0x43   :  { %1815 = vst [vmem:[#allocation3 + $0x58] sm:$0xf] %v6378_v6 }
  0x44   :  { %1816 = vst [vmem:[#allocation3 + $0x60] sm:$0xf] %v6378_v6  ;;  %596 = vmatpush.msrb.mxu0 %v411_v32  ;;  %v210_v36 = vsel %vm12348_vm3, %v207_v11, %v209_v24  ;;  %v308_v11 = vld [vmem:[%s12399_s27 + $0x138] sm:$0xff] }
  0x45   :  { %1817 = vst [vmem:[#allocation3 + $0x68] sm:$0xf] %v6378_v6 }
  0x46   :  { %1818 = vst [vmem:[#allocation3 + $0x70] sm:$0xf] %v6378_v6  ;;  %597 = vmatpush.msrb.mxu0 %v409_v45  ;;  %v152_v45 = vsel %vm12349_vm2, %v149_v20, %v151_v35  ;;  %v384_v35 = vld [vmem:[%s12399_s27 + $0x398] sm:$0xff] }
  0x47   :  { %2889 = vst [vmem:[#allocation4] sm:$0xff] %v6378_v6 }
  0x48   :  { %2890 = vst [vmem:[#allocation4 + $0x8] sm:$0x3] %v6378_v6  ;;  %598 = vmatpush.msrb.mxu0 %v407_v56 }
  0x49   :  { %3112 = vst [vmem:[#allocation5] sm:$0xff] %v6378_v6 }
  0x4a   :  { %3113 = vst [vmem:[#allocation5 + $0x8] sm:$0xff] %v6378_v6  ;;  %599 = vmatpush.msrb.mxu0 %v405_v63  ;;  %v354_v63 = vld [vmem:[%s12399_s27 + $0x2a8] sm:$0xff] }
  0x4b   :  { %3114 = vst [vmem:[#allocation5 + $0x10] sm:$0xff] %v6378_v6 }
  0x4c   :  { %3115 = vst [vmem:[#allocation5 + $0x18] sm:$0xff] %v6378_v6  ;;  %600 = vmatpush.msrb.mxu0 %v403_v15  ;;  %v346_v15 = vld [vmem:[%s12399_s27 + $0x268] sm:$0xff] }
  0x4d   :  { %3116 = vst [vmem:[#allocation5 + $0x20] sm:$0xff] %v6378_v6 }
  0x4e   :  { %3117 = vst [vmem:[#allocation5 + $0x28] sm:$0x3] %v6378_v6 }
  0x4f   :  { %3118 = vst [vmem:[#allocation5 + $0x30] sm:$0x3] %v6378_v6 }
  0x50   :  { %3119 = vst [vmem:[#allocation5 + $0x38] sm:$0x3] %v6378_v6 }
  0x51   :  { %3120 = vst [vmem:[#allocation5 + $0x40] sm:$0x3] %v6378_v6 }
  0x52   :  { %3121 = vst [vmem:[#allocation5 + $0x48] sm:$0x3] %v6378_v6 }
  0x53   :  { %3805 = vst [vmem:[#allocation6 + $0x10] sm:$0xff] %v6378_v6 }
  0x54   :  { %3806 = vst [vmem:[#allocation6 + $0x18] sm:$0xff] %v6378_v6 }
  0x55   :  { %3807 = vst [vmem:[#allocation6 + $0x20] sm:$0xff] %v6378_v6 }
  0x56   :  { %3808 = vst [vmem:[#allocation6 + $0x28] sm:$0xff] %v6378_v6 }
  0x57   :  { %3809 = vst [vmem:[#allocation6 + $0x30] sm:$0xff] %v6378_v6 }
  0x58   :  { %3810 = vst [vmem:[#allocation6 + $0x38] sm:$0xff] %v6378_v6 }
  0x59   :  { %3812 = vst [vmem:[#allocation6 + $0x48] sm:$0xff] %v6378_v6 }
  0x5a   :  { %3814 = vst [vmem:[#allocation6 + $0x58] sm:$0xff] %v6378_v6 }
  0x5b   :  { %3816 = vst [vmem:[#allocation6 + $0x68] sm:$0xff] %v6378_v6 }
  0x5c   :  { %3818 = vst [vmem:[#allocation6 + $0x78] sm:$0xff] %v6378_v6 }
  0x5d   :  { %3820 = vst [vmem:[#allocation6 + $0x88] sm:$0xff] %v6378_v6 }
  0x5e   :  { %3822 = vst [vmem:[#allocation6 + $0x98] sm:$0xff] %v6378_v6 }
  0x5f   :  { %3824 = vst [vmem:[#allocation6 + $0xa8] sm:$0xff] %v6378_v6 }
  0x60   :  { %3826 = vst [vmem:[#allocation6 + $0xb8] sm:$0xff] %v6378_v6 }
  0x61   :  { %3828 = vst [vmem:[#allocation6 + $0xc8] sm:$0xff] %v6378_v6 }
  0x62   :  { %3829 = vst [vmem:[#allocation6 + $0xd0] sm:$0xff] %v6378_v6 }
  0x63   :  { %3830 = vst [vmem:[#allocation6 + $0xd8] sm:$0xff] %v6378_v6 }
  0x64   :  { %3831 = vst [vmem:[#allocation6 + $0xe0] sm:$0xff] %v6378_v6 }
  0x65   :  { %3832 = vst [vmem:[#allocation6 + $0xe8] sm:$0xff] %v6378_v6 }
  0x66   :  { %3833 = vst [vmem:[#allocation6 + $0xf0] sm:$0xf] %v6378_v6 }
  0x67   :  { %3834 = vst [vmem:[#allocation6 + $0xf8] sm:$0xf] %v6378_v6 }
  0x68   :  { %3835 = vst [vmem:[#allocation6 + $0x100] sm:$0xf] %v6378_v6 }
  0x69   :  { %3836 = vst [vmem:[#allocation6 + $0x108] sm:$0xf] %v6378_v6 }
  0x6a   :  { %3837 = vst [vmem:[#allocation6 + $0x110] sm:$0xf] %v6378_v6 }
  0x6b   :  { %3838 = vst [vmem:[#allocation6 + $0x118] sm:$0xf] %v6378_v6 }
  0x6c   :  { %3839 = vst [vmem:[#allocation6 + $0x120] sm:$0xf] %v6378_v6 }
  0x6d   :  { %3840 = vst [vmem:[#allocation6 + $0x128] sm:$0xf] %v6378_v6 }
  0x6e   :  { %3841 = vst [vmem:[#allocation6 + $0x130] sm:$0xf] %v6378_v6 }
  0x6f   :  { %3842 = vst [vmem:[#allocation6 + $0x138] sm:$0xf] %v6378_v6 }
  0x70   :  { %5176 = vst [vmem:[#allocation7 + $0x10] sm:$0xff] %v6378_v6 }
  0x71   :  { %5177 = vst [vmem:[#allocation7 + $0x18] sm:$0xff] %v6378_v6 }
  0x72   :  { %5178 = vst [vmem:[#allocation7 + $0x20] sm:$0xff] %v6378_v6 }
  0x73   :  { %5179 = vst [vmem:[#allocation7 + $0x28] sm:$0xff] %v6378_v6 }
  0x74   :  { %5180 = vst [vmem:[#allocation7 + $0x30] sm:$0xff] %v6378_v6 }
  0x75   :  { %5181 = vst [vmem:[#allocation7 + $0x38] sm:$0xff] %v6378_v6 }
  0x76   :  { %5183 = vst [vmem:[#allocation7 + $0x48] sm:$0xff] %v6378_v6 }
  0x77   :  { %5185 = vst [vmem:[#allocation7 + $0x58] sm:$0xff] %v6378_v6 }
  0x78   :  { %5187 = vst [vmem:[#allocation7 + $0x68] sm:$0xff] %v6378_v6 }
  0x79   :  { %5189 = vst [vmem:[#allocation7 + $0x78] sm:$0xff] %v6378_v6 }
  0x7a   :  { %5191 = vst [vmem:[#allocation7 + $0x88] sm:$0xff] %v6378_v6 }
  0x7b   :  { %5193 = vst [vmem:[#allocation7 + $0x98] sm:$0xff] %v6378_v6 }
  0x7c   :  { %5195 = vst [vmem:[#allocation7 + $0xa8] sm:$0xff] %v6378_v6 }
  0x7d   :  { %5197 = vst [vmem:[#allocation7 + $0xb8] sm:$0xff] %v6378_v6 }
  0x7e   :  { %5199 = vst [vmem:[#allocation7 + $0xc8] sm:$0xff] %v6378_v6 }
  0x7f   :  { %5201 = vst [vmem:[#allocation7 + $0xd8] sm:$0xff] %v6378_v6 }
  0x80   :  { %5203 = vst [vmem:[#allocation7 + $0xe8] sm:$0xff] %v6378_v6 }
  0x81   :  { %5205 = vst [vmem:[#allocation7 + $0xf8] sm:$0xff] %v6378_v6 }
  0x82   :  { %5207 = vst [vmem:[#allocation7 + $0x108] sm:$0xff] %v6378_v6 }
  0x83   :  { %5209 = vst [vmem:[#allocation7 + $0x118] sm:$0xff] %v6378_v6 }
  0x84   :  { %5211 = vst [vmem:[#allocation7 + $0x128] sm:$0xff] %v6378_v6 }
  0x85   :  { %5213 = vst [vmem:[#allocation7 + $0x138] sm:$0xff] %v6378_v6 }
  0x86   :  { %5215 = vst [vmem:[#allocation7 + $0x148] sm:$0xff] %v6378_v6 }
  0x87   :  { %5217 = vst [vmem:[#allocation7 + $0x158] sm:$0xff] %v6378_v6 }
  0x88   :  { %5219 = vst [vmem:[#allocation7 + $0x168] sm:$0xff] %v6378_v6 }
  0x89   :  { %5221 = vst [vmem:[#allocation7 + $0x178] sm:$0xff] %v6378_v6 }
  0x8a   :  { %5223 = vst [vmem:[#allocation7 + $0x188] sm:$0xff] %v6378_v6 }
  0x8b   :  { %5225 = vst [vmem:[#allocation7 + $0x198] sm:$0xff] %v6378_v6 }
  0x8c   :  { %5227 = vst [vmem:[#allocation7 + $0x1a8] sm:$0xff] %v6378_v6 }
  0x8d   :  { %5229 = vst [vmem:[#allocation7 + $0x1b8] sm:$0xff] %v6378_v6 }
  0x8e   :  { %5231 = vst [vmem:[#allocation7 + $0x1c8] sm:$0xff] %v6378_v6 }
  0x8f   :  { %5233 = vst [vmem:[#allocation7 + $0x1d8] sm:$0xff] %v6378_v6 }
  0x90   :  { %5235 = vst [vmem:[#allocation7 + $0x1e8] sm:$0xff] %v6378_v6 }
  0x91   :  { %5237 = vst [vmem:[#allocation7 + $0x1f8] sm:$0xff] %v6378_v6 }
  0x92   :  { %5239 = vst [vmem:[#allocation7 + $0x208] sm:$0xff] %v6378_v6 }
  0x93   :  { %5241 = vst [vmem:[#allocation7 + $0x218] sm:$0xff] %v6378_v6 }
  0x94   :  { %5243 = vst [vmem:[#allocation7 + $0x228] sm:$0xff] %v6378_v6 }
  0x95   :  { %5245 = vst [vmem:[#allocation7 + $0x238] sm:$0xff] %v6378_v6 }
  0x96   :  { %5246 = vst [vmem:[#allocation7 + $0x240] sm:$0xff] %v6378_v6 }
  0x97   :  { %5247 = vst [vmem:[#allocation7 + $0x248] sm:$0xff] %v6378_v6 }
  0x98   :  { %5248 = vst [vmem:[#allocation7 + $0x250] sm:$0xff] %v6378_v6 }
  0x99   :  { %5249 = vst [vmem:[#allocation7 + $0x258] sm:$0xff] %v6378_v6 }
  0x9a   :  { %5250 = vst [vmem:[#allocation7 + $0x260] sm:$0xff] %v6378_v6 }
  0x9b   :  { %5251 = vst [vmem:[#allocation7 + $0x268] sm:$0xff] %v6378_v6  ;;  %v6890_v6 = vld [vmem:[%s12400_s4 + $0x18] sm:$0xff]  ;;  %s12413_s4 = sld [smem:[#allocation42_spill]] }
  0x9c   :  { %190 = vst.msk [vmem:[#allocation2 + $0x10] sm:$0xff] %vm121_vm0, %v170_v18  ;;  %v173_v29 = vrot.slane %v6890_v6, 4  ;;  %v143_v38 = vrot.slane %v6890_v6, 2  ;;  %v203_v42 = vrot.slane %v6890_v6, 6 }
  0x9d   :  { %123 = vst.msk [vmem:[#allocation2 + $0x28] sm:$0xff] %vm121_vm0, %v78_v9 }
  0x9e   :  { %227 = vst.msk [vmem:[#allocation2 + $0x20] sm:$0xff] %vm121_vm0, %v78_v9  ;;  %v174_v41 = vsel %vm12336_vm1, %v171_v21, %v173_v29  ;;  %v144_v48 = vsel %vm12349_vm2, %v141_v26, %v143_v38  ;;  %v204_v51 = vsel %vm12348_vm3, %v201_v28, %v203_v42  ;;  %v176_v53 = vsel %vm12336_vm1, %v173_v29, %v175_v44  ;;  %v282_v21 = vld [vmem:[%s12399_s27 + $0x68] sm:$0xff]  ;;  %v280_v26 = vld [vmem:[%s12399_s27 + $0x58] sm:$0xff] }
  0x9f   :  { %160 = vst.msk [vmem:[#allocation2 + $0x8] sm:$0xff] %vm121_vm0, %v140_v22  ;;  %v146_v1 = vsel %vm12349_vm2, %v143_v38, %v145_v52  ;;  %v206_v5 = vsel %vm12348_vm3, %v203_v42, %v205_v54  ;;  %v318_v22 = vld [vmem:[%s12399_s27 + $0x188] sm:$0xff]  ;;  %v181_v28 = vrot.slane %v84_v17, 4  ;;  %v211_v38 = vrot.slane %v84_v17, 6  ;;  %v276_v42 = vld [vmem:[%s12399_s27 + $0x38] sm:$0xff] }
  0xa0   :  { %220 = vst.msk [vmem:[#allocation2 + $0x18] sm:$0xff] %vm121_vm0, %v200_v25  ;;  %671 = vmatpush.msrb.mxu2 %v318_v22  ;;  %v401_v25 = vld [vmem:[%s12399_s27 + $0x420] sm:$0xff]  ;;  %v360_v44 = vld [vmem:[%s12399_s27 + $0x2d8] sm:$0xff] }
  0xa1   :  { %191 = vst.msk [vmem:[#allocation2 + $0x38] sm:$0xff] %vm121_vm0, %v172_v27  ;;  %601 = vmatpush.msrb.mxu0 %v401_v25  ;;  %v364_v27 = vld [vmem:[%s12399_s27 + $0x2f8] sm:$0xff]  ;;  %v182_v39 = vsel %vm12336_vm1, %v179_v13, %v181_v28  ;;  %v212_v52 = vsel %vm12348_vm3, %v209_v24, %v211_v38  ;;  %v342_v24 = vld [vmem:[%s12399_s27 + $0x248] sm:$0xff] }
  0xa2   :  { %124 = vst.msk [vmem:[#allocation2 + $0x50] sm:$0xff] %vm121_vm0, %v6868_v12  ;;  %702 = vmatpush.msrb.mxu3 %v364_v27  ;;  %672 = vmatpush.msrb.mxu2 %v316_v30  ;;  %v272_v54 = vld [vmem:[%s12399_s27 + $0x18] sm:$0xff]  ;;  %v302_v25 = vld [vmem:[%s12399_s27 + $0x108] sm:$0xff] }
  0xa3   :  { %v6936_v40 = vld [vmem:[#allocation2 + $0x10] sm:$0xff]  ;;  %228 = vst.msk [vmem:[#allocation2 + $0x48] sm:$0xff] %vm121_vm0, %v6868_v12  ;;  %v286_v12 = vld [vmem:[%s12399_s27 + $0x88] sm:$0xff]  ;;  %602 = vmatpush.msrb.mxu0 %v399_v31 }
  0xa4   :  { %528 = vmatmul.f32.vlgmr.msra.gmra.mxu2 %v6936_v40  ;;  %v6943_v43 = vld [vmem:[#allocation2 + $0x28] sm:$0xff]  ;;  %161 = vst.msk [vmem:[#allocation2 + $0x30] sm:$0xff] %vm121_vm0, %v142_v33  ;;  %633 = vmatpush.msrb.mxu1 %v286_v12  ;;  %v150_v33 = vsel %vm12349_vm2, %v147_v7, %v149_v20  ;;  %v348_v13 = vld [vmem:[%s12399_s27 + $0x278] sm:$0xff]  ;;  %v338_v30 = vld [vmem:[%s12399_s27 + $0x228] sm:$0xff] }
  0xa5   :  { %455 = vmatmul.f32.gmra.mxu0 %v6943_v43  ;;  %221 = vst.msk [vmem:[#allocation2 + $0x40] sm:$0xff] %vm121_vm0, %v202_v37  ;;  %v362_v37 = vld [vmem:[%s12399_s27 + $0x2e8] sm:$0xff]  ;;  %673 = vmatpush.msrb.mxu2 %v314_v46  ;;  %v304_v20 = vld [vmem:[%s12399_s27 + $0x118] sm:$0xff] }
  0xa6   :  { %v6955_v47 = vld [vmem:[#allocation2 + $0x8] sm:$0xff]  ;;  %192 = vst.msk [vmem:[#allocation2 + $0x60] sm:$0xff] %vm121_vm0, %v174_v41  ;;  %634 = vmatpush.msrb.mxu1 %v284_v16  ;;  %703 = vmatpush.msrb.mxu3 %v362_v37  ;;  %v306_v16 = vld [vmem:[%s12399_s27 + $0x128] sm:$0xff]  ;;  %v340_v27 = vld [vmem:[%s12399_s27 + $0x238] sm:$0xff] }
  0xa7   :  { %490 = vmatmul.f32.vlgmr.msra.gmra.mxu1 %v6955_v47  ;;  %v6965_v50 = vld [vmem:[#allocation2 + $0x18] sm:$0xff]  ;;  %125 = vst.msk [vmem:[#allocation2 + $0x78] sm:$0xff] %vm121_vm0, %v6890_v6  ;;  %674 = vmatpush.msrb.mxu2 %v312_v55  ;;  %v386_v31 = vld [vmem:[%s12399_s27 + $0x3a8] sm:$0xff]  ;;  %v424_v46 = vld [vmem:[%s12399_s27 + $0x4d8] sm:$0xff] }
  0xa8   :  { %566 = vmatmul.f32.vlgmr.msra.gmra.mxu3 %v6965_v50  ;;  %229 = vst.msk [vmem:[#allocation2 + $0x70] sm:$0xff] %vm121_vm0, %v6890_v6  ;;  %v6982_v57 = vld [vmem:[#allocation2 + $0x38] sm:$0xff]  ;;  %635 = vmatpush.msrb.mxu1 %v282_v21  ;;  %v388_v21 = vld [vmem:[%s12399_s27 + $0x3b8] sm:$0xff]  ;;  %v382_v37 = vld [vmem:[%s12399_s27 + $0x388] sm:$0xff] }
  0xa9   :  { %162 = vst.msk [vmem:[#allocation2 + $0x58] sm:$0xff] %vm121_vm0, %v144_v48  ;;  %v6992_v61 = vld [vmem:[#allocation2 + $0x50] sm:$0xff]  ;;  %v397_v48 = vld [vmem:[%s12399_s27 + $0x400] sm:$0xff]  ;;  %704 = vmatpush.msrb.mxu3 %v360_v44  ;;  %v7252_v38 = vld [vmem:[#allocation2 + $0x20] sm:$0xff] }
  0xaa   :  { %222 = vst.msk [vmem:[#allocation2 + $0x68] sm:$0xff] %vm121_vm0, %v204_v51  ;;  %636 = vmatpush.msrb.mxu1 %v280_v26  ;;  %603 = vmatpush.msrb.mxu0 %v397_v48  ;;  %v380_v48 = vld [vmem:[%s12399_s27 + $0x378] sm:$0xff] }
  0xab   :  { %193 = vst.msk [vmem:[#allocation2 + $0x88] sm:$0xff] %vm121_vm0, %v176_v53  ;;  %v7012_v4 = vld [vmem:[#allocation2 + $0x30] sm:$0xff]  ;;  %v358_v53 = vld [vmem:[%s12399_s27 + $0x2c8] sm:$0xff] }
  0xac   :  { %531 = vmatmul.f32.gmra.mxu2 %v6982_v57  ;;  %126 = vst.msk [vmem:[#allocation2 + $0xa0] sm:$0xff] %vm121_vm0, %v6921_v34  ;;  %v7021_v9 = vld [vmem:[#allocation2 + $0x40] sm:$0xff]  ;;  %705 = vmatpush.msrb.mxu3 %v358_v53  ;;  %v7280_v53 = vld [vmem:[#allocation2 + $0x48] sm:$0xff]  ;;  %v376_v55 = vld [vmem:[%s12399_s27 + $0x358] sm:$0xff] }
  0xad   :  { %458 = vmatmul.f32.gmra.mxu0 %v6992_v61  ;;  %230 = vst.msk [vmem:[#allocation2 + $0x98] sm:$0xff] %vm121_vm0, %v6921_v34  ;;  %v7047_v18 = vld [vmem:[#allocation2 + $0x60] sm:$0xff] }
  0xae   :  { %163 = vst.msk [vmem:[#allocation2 + $0x80] sm:$0xff] %vm121_vm0, %v146_v1  ;;  %v7059_v6 = vld [vmem:[#allocation2 + $0x78] sm:$0xff]  ;;  %v278_v34 = vld [vmem:[%s12399_s27 + $0x48] sm:$0xff]  ;;  %706 = vmatpush.msrb.mxu3 %v356_v58  ;;  %740 = vmatpush.msra.mxu0 %v396_v60  ;;  %v416_v60 = vld [vmem:[%s12399_s27 + $0x498] sm:$0xff] }
  0xaf   :  { %493 = vmatmul.f32.gmra.mxu1 %v7012_v4  ;;  %223 = vst.msk [vmem:[#allocation2 + $0x90] sm:$0xff] %vm121_vm0, %v206_v5  ;;  %v310_v1 = vld [vmem:[%s12399_s27 + $0x148] sm:$0xff] }
  0xb0   :  { %569 = vmatmul.f32.gmra.mxu3 %v7021_v9  ;;  %194 = vst.msk [vmem:[#allocation2 + $0xb0] sm:$0xff] %vm121_vm0, %v178_v10  ;;  %v7076_v29 = vld [vmem:[#allocation2 + $0x58] sm:$0xff]  ;;  %637 = vmatpush.msrb.mxu1 %v278_v34  ;;  %v392_v10 = vld [vmem:[%s12399_s27 + $0x3d8] sm:$0xff]  ;;  %v418_v58 = vld [vmem:[%s12399_s27 + $0x4a8] sm:$0xff] }
  0xb1   :  { %127 = vst.msk [vmem:[#allocation2 + $0xc8] sm:$0xff] %vm121_vm0, %v6962_v49  ;;  %v7085_v32 = vld [vmem:[#allocation2 + $0x68] sm:$0xff]  ;;  %707 = vmatpush.msrb.mxu3 %v354_v63  ;;  %675 = vmatpush.msrb.mxu2 %v310_v1  ;;  %v336_v34 = vld [vmem:[%s12399_s27 + $0x218] sm:$0xff] }
  0xb2   :  { %231 = vst.msk [vmem:[#allocation2 + $0xc0] sm:$0xff] %vm121_vm0, %v6962_v49  ;;  %v7104_v41 = vld [vmem:[#allocation2 + $0x88] sm:$0xff]  ;;  %v274_v49 = vld [vmem:[%s12399_s27 + $0x28] sm:$0xff]  ;;  %638 = vmatpush.msrb.mxu1 %v276_v42  ;;  %v412_v63 = vld [vmem:[%s12399_s27 + $0x478] sm:$0xff] }
  0xb3   :  { %164 = vst.msk [vmem:[#allocation2 + $0xa8] sm:$0xff] %vm121_vm0, %v148_v14  ;;  %v7124_v51 = vld [vmem:[#allocation2 + $0xa0] sm:$0xff]  ;;  %708 = vmatpush.msrb.mxu3 %v352_v2  ;;  %676 = vmatpush.msrb.mxu2 %v308_v11  ;;  %v408_v2 = vld [vmem:[%s12399_s27 + $0x458] sm:$0xff] }
  0xb4   :  { %534 = vmatmul.f32.gmra.mxu2 %v7047_v18  ;;  %224 = vst.msk [vmem:[#allocation2 + $0xb8] sm:$0xff] %vm121_vm0, %v208_v19  ;;  %639 = vmatpush.msrb.mxu1 %v274_v49  ;;  %v344_v19 = vld [vmem:[%s12399_s27 + $0x258] sm:$0xff]  ;;  %v426_v42 = vld [vmem:[%s12399_s27 + $0x4e8] sm:$0xff]  ;;  %v253_v1 = vld [vmem:[#allocation2 + $0x98] sm:$0xff] }
  0xb5   :  { %461 = vmatmul.f32.gmra.mxu0 %v7059_v6  ;;  %195 = vst.msk [vmem:[#allocation2 + $0xd8] sm:$0xff] %vm121_vm0, %v180_v23  ;;  %v7139_v56 = vld [vmem:[#allocation2 + $0x80] sm:$0xff]  ;;  %709 = vmatpush.msrb.mxu3 %v350_v8  ;;  %v404_v8 = vld [vmem:[%s12399_s27 + $0x438] sm:$0xff] }
  0xb6   :  { %128 = vst.msk [vmem:[#allocation2 + $0xf0] sm:$0xff] %vm121_vm0, %v7009_v3  ;;  %v7145_v59 = vld [vmem:[#allocation2 + $0x90] sm:$0xff]  ;;  %640 = vmatpush.msrb.mxu1 %v272_v54  ;;  %677 = vmatpush.msrb.mxu2 %v306_v16  ;;  %v422_v49 = vld [vmem:[%s12399_s27 + $0x4c8] sm:$0xff] }
  0xb7   :  { %496 = vmatmul.f32.gmra.mxu1 %v7076_v29  ;;  %232 = vst.msk [vmem:[#allocation2 + $0xe8] sm:$0xff] %vm121_vm0, %v7009_v3  ;;  %v394_v3 = vld [vmem:[%s12399_s27 + $0x3e8] sm:$0xff]  ;;  %v7169_v5 = vld [vmem:[#allocation2 + $0xb0] sm:$0xff]  ;;  %710 = vmatpush.msrb.mxu3 %v348_v13 }
  0xb8   :  { %572 = vmatmul.f32.gmra.mxu3 %v7085_v32  ;;  %165 = vst.msk [vmem:[#allocation2 + $0xd0] sm:$0xff] %vm121_vm0, %v150_v33  ;;  %641 = vmatpush.msrb.mxu1 %v270_v62  ;;  %v7171_v7 = vld [vmem:[#allocation2 + $0xc8] sm:$0xff]  ;;  %v428_v33 = vld [vmem:[%s12399_s27 + $0x4f8] sm:$0xff] }
  0xb9   :  { %225 = vst.msk [vmem:[#allocation2 + $0xe0] sm:$0xff] %vm121_vm0, %v210_v36  ;;  %741 = vmatpush.msra.mxu0 %v394_v3  ;;  %711 = vmatpush.msrb.mxu3 %v346_v15  ;;  %v420_v54 = vld [vmem:[%s12399_s27 + $0x4b8] sm:$0xff]  ;;  %v406_v3 = vld [vmem:[%s12399_s27 + $0x448] sm:$0xff] }
  0xba   :  { %196 = vst.msk [vmem:[#allocation2 + $0x100] sm:$0xff] %vm121_vm0, %v182_v39  ;;  %v7183_v12 = vld [vmem:[#allocation2 + $0xa8] sm:$0xff]  ;;  %678 = vmatpush.msrb.mxu2 %v304_v20  ;;  %v334_v39 = vld [vmem:[%s12399_s27 + $0x208] sm:$0xff]  ;;  %778 = vmatpush.msra.mxu1 %v428_v33  ;;  %v372_v62 = vld [vmem:[%s12399_s27 + $0x338] sm:$0xff] }
  0xbb   :  { %233 = vst.msk [vmem:[#allocation2 + $0x110] sm:$0xff] %vm121_vm0, %v84_v17  ;;  %742 = vmatpush.msra.mxu0 %v392_v10  ;;  %v7188_v14 = vld [vmem:[#allocation2 + $0xb8] sm:$0xff]  ;;  %v390_v17 = vld [vmem:[%s12399_s27 + $0x3c8] sm:$0xff]  ;;  %712 = vmatpush.msrb.mxu3 %v344_v19 }
  0xbc   :  { %537 = vmatmul.f32.gmra.mxu2 %v7104_v41  ;;  %166 = vst.msk [vmem:[#allocation2 + $0xf8] sm:$0xff] %vm121_vm0, %v152_v45  ;;  %v7211_v22 = vld [vmem:[#allocation2 + $0xd8] sm:$0xff]  ;;  %779 = vmatpush.msra.mxu1 %v426_v42  ;;  %v366_v10 = vld [vmem:[%s12399_s27 + $0x308] sm:$0xff] }
  0xbd   :  { %464 = vmatmul.f32.gmra.mxu0 %v7124_v51  ;;  %226 = vst.msk [vmem:[#allocation2 + $0x108] sm:$0xff] %vm121_vm0, %v212_v52  ;;  %v7213_v23 = vld [vmem:[#allocation2 + $0xf0] sm:$0xff]  ;;  %713 = vmatpush.msrb.mxu3 %v342_v24  ;;  %v378_v52 = vld [vmem:[%s12399_s27 + $0x368] sm:$0xff]  ;;  %v942_v24 = vld [vmem:[%s12401_s3 + $0xf0] sm:$0xff]  ;;  %vm12340_vm0 = vcmask 359424  }
  0xbe   :  { %743 = vmatpush.msra.mxu0 %v390_v17  ;;  %679 = vmatpush.msrb.mxu2 %v302_v25  ;;  %v258_v11 = vld [vmem:[#allocation2 + $0xc0] sm:$0xff]  ;;  %v263_v13 = vld [vmem:[#allocation2 + $0xe8] sm:$0xff] }
  0xbf   :  { %499 = vmatmul.f32.gmra.mxu1 %v7139_v56  ;;  %v7222_v26 = vld [vmem:[#allocation2 + $0xd0] sm:$0xff]  ;;  %714 = vmatpush.msrb.mxu3 %v340_v27  ;;  %v940_v27 = vld [vmem:[%s12401_s3 + $0xe0] sm:$0xff] }
  0xc0   :  { %575 = vmatmul.f32.gmra.mxu3 %v7145_v59  ;;  %744 = vmatpush.msra.mxu0 %v388_v21  ;;  %v7227_v28 = vld [vmem:[#allocation2 + $0xe0] sm:$0xff] }
  0xc1   :  { %v7247_v36 = vld [vmem:[#allocation2 + $0x100] sm:$0xff]  ;;  %715 = vmatpush.msrb.mxu3 %v338_v30  ;;  %6278 = vmatpush.msra.mxu2 %v428_v33  ;;  %v936_v30 = vld [vmem:[%s12401_s3 + $0xc0] sm:$0xff]  ;;  %v934_v33 = vld [vmem:[%s12401_s3 + $0xb0] sm:$0xff] }
  0xc2   :  { %745 = vmatpush.msra.mxu0 %v386_v31  ;;  %780 = vmatpush.msra.mxu1 %v424_v46 }
  0xc3   :  { %716 = vmatpush.msrb.mxu3 %v336_v34  ;;  %6279 = vmatpush.msra.mxu2 %v426_v42  ;;  %v7261_v44 = vld [vmem:[#allocation2 + $0xf8] sm:$0xff] }
  0xc4   :  { %540 = vmatmul.f32.gmra.mxu2 %v7169_v5  ;;  %746 = vmatpush.msra.mxu0 %v384_v35  ;;  %v7263_v45 = vld [vmem:[#allocation2 + $0x108] sm:$0xff] }
  0xc5   :  { %467 = vmatmul.f32.gmra.mxu0 %v7171_v7  ;;  %717 = vmatpush.msrb.mxu3 %v334_v39  ;;  %v928_v39 = vld [vmem:[%s12401_s3 + $0x80] sm:$0xff] }
  0xc6   :  { %747 = vmatpush.msra.mxu0 %v382_v37  ;;  %6280 = vmatpush.msra.mxu2 %v424_v46  ;;  %v932_v37 = vld [vmem:[%s12401_s3 + $0xa0] sm:$0xff] }
  0xc7   :  { %502 = vmatmul.f32.gmra.mxu1 %v7183_v12 }
  0xc8   :  { %578 = vmatmul.f32.gmra.mxu3 %v7188_v14  ;;  %748 = vmatpush.msra.mxu0 %v380_v48  ;;  %v924_v48 = vld [vmem:[%s12401_s3 + $0x60] sm:$0xff] }
  0xc9   :  { %6281 = vmatpush.msra.mxu2 %v422_v49  ;;  %781 = vmatpush.msra.mxu1 %v422_v49  ;;  %v7458_v49 = vld [vmem:[%s12402_s6] sm:$0x77] }
  0xca   :  { %749 = vmatpush.msra.mxu0 %v378_v52 }
  0xcb   :  { %6282 = vmatpush.msra.mxu2 %v420_v54  ;;  %782 = vmatpush.msra.mxu1 %v420_v54  ;;  %v920_v54 = vld [vmem:[%s12401_s3 + $0x40] sm:$0xff] }
  0xcc   :  { %543 = vmatmul.f32.gmra.mxu2 %v7211_v22  ;;  %750 = vmatpush.msra.mxu0 %v376_v55 }
  0xcd   :  { %470 = vmatmul.f32.gmra.mxu0 %v7213_v23  ;;  %6283 = vmatpush.msra.mxu2 %v418_v58 }
  0xce   :  { %783 = vmatpush.msra.mxu1 %v418_v58  ;;  %v430_v58 = vperm.slane %v7458_v49, 0 }
  0xcf   :  { %505 = vmatmul.f32.gmra.mxu1 %v7222_v26  ;;  %6284 = vmatpush.msra.mxu2 %v416_v60 }
  0xd0   :  { %581 = vmatmul.f32.gmra.mxu3 %v7227_v28  ;;  %784 = vmatpush.msra.mxu1 %v416_v60  ;;  %v434_v60 = vperm.slane %v430_v58, 0 }
  0xd4   :  { %546 = vmatmul.f32.gmra.mxu2 %v7247_v36 }
  0xd5   :  { %604 = vmatmul.f32.vlgmr.msrb.gmra.mxu0 %v7252_v38 }
  0xd7   :  { %508 = vmatmul.f32.gmra.mxu1 %v7261_v44 }
  0xd8   :  { %584 = vmatmul.f32.gmra.mxu3 %v7263_v45 }
  0xdc   :  { %680 = vmatmul.f32.vlgmr.msrb.gmra.mxu2 %v6955_v47  ;;  %v374_v47 = vld [vmem:[%s12399_s27 + $0x348] sm:$0xff] }
  0xdd   :  { %607 = vmatmul.f32.gmra.mxu0 %v7280_v53 }
  0xde   :  { %751 = vmatpush.msra.mxu0 %v374_v47  ;;  %v918_v47 = vld [vmem:[%s12401_s3 + $0x30] sm:$0xff] }
  0xdf   :  { %642 = vmatmul.f32.vlgmr.msrb.gmra.mxu1 %v6731_v0  ;;  %v7298_v0 = vld [vmem:[#allocation2 + $0x70] sm:$0xff] }
  0xe0   :  { %718 = vmatmul.f32.vlgmr.msrb.gmra.mxu3 %v6936_v40  ;;  %v414_v40 = vld [vmem:[%s12399_s27 + $0x488] sm:$0xff]  ;;  %752 = vmatpush.msra.mxu0 %v372_v62  ;;  %v916_v62 = vld [vmem:[%s12401_s3 + $0x20] sm:$0xff] }
  0xe1   :  { %785 = vmatpush.msra.mxu1 %v414_v40  ;;  %6285 = vmatpush.msra.mxu2 %v414_v40 }
  0xe3   :  { %786 = vmatpush.msra.mxu1 %v412_v63  ;;  %6286 = vmatpush.msra.mxu2 %v412_v63  ;;  %v914_v63 = vld [vmem:[%s12401_s3 + $0x10] sm:$0xff] }
  0xe4   :  { %683 = vmatmul.f32.gmra.mxu2 %v7012_v4  ;;  %v370_v4 = vld [vmem:[%s12399_s27 + $0x328] sm:$0xff] }
  0xe5   :  { %610 = vmatmul.f32.gmra.mxu0 %v7298_v0 }
  0xe6   :  { %753 = vmatpush.msra.mxu0 %v370_v4  ;;  %v912_v4 = vld [vmem:[%s12401_s3] sm:$0xff] }
  0xe7   :  { %645 = vmatmul.f32.gmra.mxu1 %v6943_v43  ;;  %v410_v43 = vld [vmem:[%s12399_s27 + $0x468] sm:$0xff] }
  0xe8   :  { %721 = vmatmul.f32.gmra.mxu3 %v6982_v57  ;;  %v368_v57 = vld [vmem:[%s12399_s27 + $0x318] sm:$0xff]  ;;  %787 = vmatpush.msra.mxu1 %v410_v43 }
  0xe9   :  { %6287 = vmatpush.msra.mxu2 %v410_v43  ;;  %754 = vmatpush.msra.mxu0 %v368_v57  ;;  %v943_v57 = vld [vmem:[%s12401_s3 + $0xf8] sm:$0xff] }
  0xea   :  { %788 = vmatpush.msra.mxu1 %v408_v2 }
  0xeb   :  { %6288 = vmatpush.msra.mxu2 %v408_v2  ;;  %755 = vmatpush.msra.mxu0 %v366_v10 }
  0xec   :  { %686 = vmatmul.f32.gmra.mxu2 %v7076_v29  ;;  %789 = vmatpush.msra.mxu1 %v406_v3  ;;  %v402_v29 = vld [vmem:[%s12399_s27 + $0x428] sm:$0xff] }
  0xed   :  { %613 = vmatmul.f32.gmra.mxu0 %v253_v1  ;;  %6289 = vmatpush.msra.mxu2 %v406_v3 }
  0xee   :  { %790 = vmatpush.msra.mxu1 %v404_v8 }
  0xef   :  { %648 = vmatmul.f32.gmra.mxu1 %v6992_v61  ;;  %v400_v61 = vld [vmem:[%s12399_s27 + $0x418] sm:$0xff]  ;;  %6290 = vmatpush.msra.mxu2 %v404_v8 }
  0xf0   :  { %724 = vmatmul.f32.gmra.mxu3 %v7047_v18  ;;  %791 = vmatpush.msra.mxu1 %v402_v29  ;;  %v398_v18 = vld [vmem:[%s12399_s27 + $0x408] sm:$0xff]  ;;  %s6184_s27 = sshll.u32 %s12321_s24, 4  ;;  %s6185_s27 = int_to_ptr.hbm [resolvable:$true] %s6184_s27 }
  0xf1   :  { %6291 = vmatpush.msra.mxu2 %v402_v29 }
  0xf2   :  { %792 = vmatpush.msra.mxu1 %v400_v61 }
  0xf3   :  { %6292 = vmatpush.msra.mxu2 %v400_v61  ;;  %v941_v61 = vld [vmem:[%s12401_s3 + $0xe8] sm:$0xff] }
  0xf4   :  { %689 = vmatmul.f32.gmra.mxu2 %v7139_v56  ;;  %793 = vmatpush.msra.mxu1 %v398_v18  ;;  %v268_v56 = vld [vmem:[#allocation2 + $0x110] sm:$0xff] }
  0xf5   :  { %616 = vmatmul.f32.gmra.mxu0 %v258_v11  ;;  %6293 = vmatpush.msra.mxu2 %v398_v18 }
  0xf7   :  { %651 = vmatmul.f32.gmra.mxu1 %v7059_v6  ;;  %v7364_v6 = vpop.f32.mrf.mxu0  ;;  %957 = vmatpush.msrb.mxu2 %v942_v24 }
  0xf8   :  { %727 = vmatmul.f32.gmra.mxu3 %v7104_v41  ;;  %v454_v3 = vadd.f32 %v7364_v6, %v434_v60 }
  0xf9   :  { %958 = vmatpush.msrb.mxu2 %v940_v27 }
  0xfc   :  { %692 = vmatmul.f32.gmra.mxu2 %v7183_v12 }
  0xfd   :  { %619 = vmatmul.f32.gmra.mxu0 %v263_v13 }
  0xff   :  { %654 = vmatmul.f32.gmra.mxu1 %v7124_v51 }
 0x100   :  { %730 = vmatmul.f32.gmra.mxu3 %v7169_v5 }
 0x104   :  { %695 = vmatmul.f32.gmra.mxu2 %v7222_v26 }
 0x105   :  { %622 = vmatmul.f32.gmra.mxu0 %v268_v56 }
 0x107   :  { %657 = vmatmul.f32.gmra.mxu1 %v7171_v7 }
 0x108   :  { %733 = vmatmul.f32.gmra.mxu3 %v7211_v22 }
 0x10c   :  { %698 = vmatmul.f32.gmra.mxu2 %v7261_v44  ;;  %v926_v44 = vld [vmem:[%s12401_s3 + $0x70] sm:$0xff] }
 0x10d   :  { %756 = vmatmul.f32.vlgmr.msra.gmra.mxu0 %v6965_v50 }
 0x10f   :  { %660 = vmatmul.f32.gmra.mxu1 %v7213_v23 }
 0x110   :  { %736 = vmatmul.f32.gmra.mxu3 %v7247_v36 }
 0x114   :  { %803 = vmatmul.f32.vlgmr.msra.gmra.mxu2 %v253_v1 }
 0x115   :  { %759 = vmatmul.f32.gmra.mxu0 %v7021_v9 }
 0x117   :  { %794 = vmatmul.f32.vlgmr.msra.gmra.mxu1 %v7252_v38  ;;  %v930_v38 = vld [vmem:[%s12401_s3 + $0x90] sm:$0xff] }
 0x11c   :  { %806 = vmatmul.f32.gmra.mxu2 %v258_v11 }
 0x11d   :  { %762 = vmatmul.f32.gmra.mxu0 %v7085_v32 }
 0x11f   :  { %797 = vmatmul.f32.gmra.mxu1 %v7280_v53  ;;  %v922_v53 = vld [vmem:[%s12401_s3 + $0x50] sm:$0xff] }
 0x122   :  { %v7368_v41 = vpop.f32.mrf.mxu0 }
 0x123   :  { %v457_v43 = vadd.f32 %v7368_v41, %v434_v60 }
 0x124   :  { %v7370_v51 = vpop.f32.mrf.mxu1  ;;  %809 = vmatmul.f32.gmra.mxu2 %v263_v13 }
 0x125   :  { %765 = vmatmul.f32.gmra.mxu0 %v7145_v59  ;;  %v492_v18 = vadd.f32 %v7370_v51, %v454_v3 }
 0x127   :  { %800 = vmatmul.f32.gmra.mxu1 %v7298_v0  ;;  %v7374_v50 = vpop.f32.mrf.mxu2 }
 0x12a   :  { %v7376_v9 = vpop.f32.mrf.mxu0 }
 0x12b   :  { %v7387_v15 = vpop.f32.mrf.mxu3  ;;  %v460_v8 = vadd.f32 %v7376_v9, %v434_v60  ;;  %v939_v9 = vld [vmem:[%s12401_s3 + $0xd8] sm:$0xff] }
 0x12c   :  { %v7378_v5 = vpop.f32.mrf.mxu1  ;;  %812 = vmatmul.f32.gmra.mxu2 %v268_v56 }
 0x12d   :  { %768 = vmatmul.f32.gmra.mxu0 %v7188_v14  ;;  %v495_v29 = vadd.f32 %v7378_v5, %v457_v43  ;;  %v937_v5 = vld [vmem:[%s12401_s3 + $0xc8] sm:$0xff] }
 0x12f   :  { %v7381_v32 = vpop.f32.mrf.mxu2 }
 0x130   :  { %v533_v56 = vadd.f32 %v7381_v32, %v495_v29 }
 0x132   :  { %v7383_v7 = vpop.f32.mrf.mxu0 }
 0x133   :  { %v7397_v19 = vpop.f32.mrf.mxu3  ;;  %v463_v11 = vadd.f32 %v7383_v7, %v434_v60  ;;  %v530_v7 = vadd.f32 %v7374_v50, %v492_v18 }
 0x134   :  { %v7385_v12 = vpop.f32.mrf.mxu1  ;;  %v571_v27 = vadd.f32 %v7397_v19, %v533_v56  ;;  %v921_v56 = vld [vmem:[%s12401_s3 + $0x48] sm:$0xff] }
 0x135   :  { %771 = vmatmul.f32.gmra.mxu0 %v7227_v28  ;;  %v938_v28 = vld [vmem:[%s12401_s3 + $0xd0] sm:$0xff]  ;;  %v498_v6 = vadd.f32 %v7385_v12, %v460_v8 }
 0x136   :  { %959 = vmatpush.msrb.mxu2 %v938_v28 }
 0x137   :  { %v7390_v59 = vpop.f32.mrf.mxu2 }
 0x138   :  { %960 = vmatpush.msrb.mxu2 %v936_v30  ;;  %v536_v51 = vadd.f32 %v7390_v59, %v498_v6  ;;  %v933_v59 = vld [vmem:[%s12401_s3 + $0xa8] sm:$0xff] }
 0x13a   :  { %v7392_v16 = vpop.f32.mrf.mxu0  ;;  %961 = vmatpush.msrb.mxu2 %v934_v33 }
 0x13b   :  { %v7407_v23 = vpop.f32.mrf.mxu3  ;;  %v466_v41 = vadd.f32 %v7392_v16, %v434_v60  ;;  %v935_v16 = vld [vmem:[%s12401_s3 + $0xb8] sm:$0xff] }
 0x13c   :  { %v7394_v17 = vpop.f32.mrf.mxu1  ;;  %962 = vmatpush.msrb.mxu2 %v932_v37  ;;  %v574_v33 = vadd.f32 %v7407_v23, %v536_v51 }
 0x13d   :  { %774 = vmatmul.f32.gmra.mxu0 %v7263_v45  ;;  %v501_v24 = vadd.f32 %v7394_v17, %v463_v11  ;;  %v568_v17 = vadd.f32 %v7387_v15, %v530_v7  ;;  %v931_v15 = vld [vmem:[%s12401_s3 + $0x98] sm:$0xff] }
 0x13e   :  { %963 = vmatpush.msrb.mxu2 %v930_v38  ;;  %v919_v7 = vld [vmem:[%s12401_s3 + $0x38] sm:$0xff] }
 0x13f   :  { %v7399_v14 = vpop.f32.mrf.mxu2 }
 0x140   :  { %964 = vmatpush.msrb.mxu2 %v928_v39  ;;  %v539_v28 = vadd.f32 %v7399_v14, %v501_v24 }
 0x142   :  { %v7401_v20 = vpop.f32.mrf.mxu0  ;;  %965 = vmatpush.msrb.mxu2 %v926_v44 }
 0x143   :  { %v7432_v35 = vpop.f32.mrf.mxu3  ;;  %v469_v32 = vadd.f32 %v7401_v20, %v434_v60 }
 0x144   :  { %v7403_v21 = vpop.f32.mrf.mxu1  ;;  %966 = vmatpush.msrb.mxu2 %v924_v48 }
 0x145   :  { %v504_v50 = vadd.f32 %v7403_v21, %v466_v41  ;;  %v577_v21 = vadd.f32 %v7432_v35, %v539_v28  ;;  %v929_v35 = vld [vmem:[%s12401_s3 + $0x88] sm:$0xff] }
 0x146   :  { %967 = vmatpush.msrb.mxu2 %v922_v53 }
 0x147   :  { %v7405_v22 = vpop.f32.mrf.mxu2 }
 0x148   :  { %968 = vmatpush.msrb.mxu2 %v920_v54  ;;  %v542_v37 = vadd.f32 %v7405_v22, %v504_v50  ;;  %v917_v50 = vld [vmem:[%s12401_s3 + $0x28] sm:$0xff] }
 0x14a   :  { %v7412_v25 = vpop.f32.mrf.mxu0  ;;  %969 = vmatpush.msrb.mxu2 %v918_v47 }
 0x14b   :  { %v7460_v52 = vpop.f32.mrf.mxu3  ;;  %v472_v23 = vadd.f32 %v7412_v25, %v434_v60  ;;  %v927_v25 = vld [vmem:[%s12401_s3 + $0x78] sm:$0xff] }
 0x14c   :  { %v7414_v26 = vpop.f32.mrf.mxu1  ;;  %970 = vmatpush.msrb.mxu2 %v916_v62  ;;  %v580_v22 = vadd.f32 %v7460_v52, %v542_v37  ;;  %v915_v37 = vld [vmem:[%s12401_s3 + $0x18] sm:$0xff] }
 0x14d   :  { %v507_v38 = vadd.f32 %v7414_v26, %v469_v32 }
 0x14e   :  { %971 = vmatpush.msrb.mxu2 %v914_v63 }
 0x14f   :  { %v7425_v31 = vpop.f32.mrf.mxu2 }
 0x150   :  { %972 = vmatpush.msrb.mxu2 %v912_v4  ;;  %v545_v44 = vadd.f32 %v7425_v31, %v507_v38  ;;  %v925_v4 = vld [vmem:[%s12401_s3 + $0x68] sm:$0xff] }
 0x152   :  { %v7430_v34 = vpop.f32.mrf.mxu0  ;;  %997 = vmatpush.msra.mxu2 %v943_v57 }
 0x153   :  { %v582_v1 = vpop.f32.mrf.mxu3  ;;  %v606_v14 = vadd.f32 %v7430_v34, %v568_v17 }
 0x154   :  { %v7434_v36 = vpop.f32.mrf.mxu1  ;;  %998 = vmatpush.msra.mxu2 %v941_v61  ;;  %v583_v53 = vadd.f32 %v582_v1, %v545_v44 }
 0x155   :  { %v7546_v31 = vmax.f32 %v606_v14, 0.0 }
 0x156   :  { %999 = vmatpush.msra.mxu2 %v939_v9 }
 0x157   :  { %v7445_v42 = vpop.f32.mrf.mxu2  ;;  %v862_v43 = vmul.f32 %v7546_v31, %v7546_v31 }
 0x158   :  { %1000 = vmatpush.msra.mxu2 %v937_v5 }
 0x15a   :  { %v608_v45 = vpop.f32.mrf.mxu0  ;;  %1001 = vmatpush.msra.mxu2 %v935_v16 }
 0x15b   :  { %v585_v30 = vpop.f32.mrf.mxu3  ;;  %v609_v19 = vadd.f32 %v608_v45, %v571_v27 }
 0x15c   :  { %v7450_v46 = vpop.f32.mrf.mxu1  ;;  %1002 = vmatpush.msra.mxu2 %v933_v59  ;;  %v952_v59 = vld [vmem:[%s12401_s3 + $0x140] sm:$0xff] }
 0x15d   :  { %v7539_v26 = vmax.f32 %v609_v19, 0.0  ;;  %988 = vmatpush.msra.mxu3 %v952_v59 }
 0x15e   :  { %1003 = vmatpush.msra.mxu2 %v931_v15 }
 0x15f   :  { %v7468_v55 = vpop.f32.mrf.mxu2  ;;  %v864_v60 = vmul.f32 %v7539_v26, %v7539_v26 }
 0x160   :  { %1004 = vmatpush.msra.mxu2 %v929_v35 }
 0x161   :  { %v876_v29 = vadd.f32 %v864_v60, %v862_v43 }
 0x162   :  { %v611_v0 = vpop.f32.mrf.mxu0  ;;  %1005 = vmatpush.msra.mxu2 %v927_v25 }
 0x163   :  { %v612_v48 = vadd.f32 %v611_v0, %v574_v33  ;;  %v7550_v58 = vpop.f32.mrf.mxu3  ;;  %v510_v0 = vadd.f32 %v7434_v36, %v472_v23  ;;  %v830_v36 = vadd.f32 %v7539_v26, %v7546_v31 }
 0x164   :  { %v7474_v40 = vpop.f32.mrf.mxu1  ;;  %1006 = vmatpush.msra.mxu2 %v925_v4 }
 0x165   :  { %v7548_v54 = vmax.f32 %v612_v48, 0.0  ;;  %v548_v57 = vadd.f32 %v7445_v42, %v510_v0  ;;  %v950_v0 = vld [vmem:[%s12401_s3 + $0x130] sm:$0xff] }
 0x166   :  { %989 = vmatpush.msra.mxu3 %v950_v0 }
 0x167   :  { %v7486_v2 = vpop.f32.mrf.mxu2  ;;  %v866_v3 = vmul.f32 %v7548_v54, %v7548_v54  ;;  %v831_v11 = vadd.f32 %v830_v36, %v7548_v54  ;;  %v586_v6 = vadd.f32 %v585_v30, %v548_v57 }
 0x169   :  { %v877_v41 = vadd.f32 %v876_v29, %v866_v3  ;;  %v948_v29 = vld [vmem:[%s12401_s3 + $0x120] sm:$0xff] }
 0x16a   :  { %v614_v10 = vpop.f32.mrf.mxu0  ;;  %990 = vmatpush.msra.mxu3 %v948_v29 }
 0x16b   :  { %v615_v34 = vadd.f32 %v614_v10, %v577_v21  ;;  %v923_v10 = vld [vmem:[%s12401_s3 + $0x58] sm:$0xff]  ;;  %v7594_v16 = vpop.f32.mrf.mxu3  ;;  %v913_v21 = vld [vmem:[%s12401_s3 + $0x8] sm:$0xff] }
 0x16c   :  { %v7499_v13 = vpop.f32.mrf.mxu1  ;;  %1007 = vmatpush.msra.mxu2 %v923_v10 }
 0x16d   :  { %v7558_v62 = vmax.f32 %v615_v34, 0.0 }
 0x16e   :  { %1008 = vmatpush.msra.mxu2 %v921_v56  ;;  %v431_v56 = vperm.slane %v7458_v49, 4 }
 0x16f   :  { %v7514_v12 = vpop.f32.mrf.mxu2  ;;  %v868_v61 = vmul.f32 %v7558_v62, %v7558_v62  ;;  %v832_v9 = vadd.f32 %v831_v11, %v7558_v62 }
 0x170   :  { %1009 = vmatpush.msra.mxu2 %v919_v7 }
 0x171   :  { %v878_v24 = vadd.f32 %v877_v41, %v868_v61 }
 0x172   :  { %v617_v20 = vpop.f32.mrf.mxu0  ;;  %1010 = vmatpush.msra.mxu2 %v917_v50 }
 0x173   :  { %v618_v52 = vadd.f32 %v617_v20, %v580_v22 }
 0x174   :  { %v7530_v39 = vpop.f32.mrf.mxu1  ;;  %1011 = vmatpush.msra.mxu2 %v915_v37 }
 0x175   :  { %v7572_v8 = vmax.f32 %v618_v52, 0.0  ;;  %v725_v52 = vpop.f32.mrf.mxu3 }
 0x176   :  { %1012 = vmatpush.msra.mxu2 %v913_v21 }
 0x177   :  { %v7541_v45 = vpop.f32.mrf.mxu2  ;;  %v870_v5 = vmul.f32 %v7572_v8, %v7572_v8  ;;  %v833_v32 = vadd.f32 %v832_v9, %v7572_v8 }
 0x179   :  { %v879_v17 = vadd.f32 %v878_v24, %v870_v5  ;;  %v435_v5 = vperm.slane %v431_v56, 0 }
 0x17a   :  { %v620_v47 = vpop.f32.mrf.mxu0 }
 0x17b   :  { %v621_v63 = vadd.f32 %v620_v47, %v583_v53  ;;  %v907_v53 = vlaneseq  ;;  %v647_v24 = vadd.f32 %v7474_v40, %v435_v5  ;;  %v653_v50 = vadd.f32 %v7530_v39, %v435_v5 }
 0x17c   :  { %v7565_v1 = vpop.f32.mrf.mxu1 }
 0x17d   :  { %v7580_v42 = vmax.f32 %v621_v63, 0.0  ;;  %v7625_v4 = vshrl.u32 %v907_v53, 7  ;;  %v728_v41 = vpop.f32.mrf.mxu3  ;;  %v685_v59 = vadd.f32 %v7486_v2, %v647_v24 }
 0x17f   :  { %v7582_v18 = vpop.f32.mrf.mxu2  ;;  %v872_v27 = vmul.f32 %v7580_v42, %v7580_v42  ;;  %v834_v20 = vadd.f32 %v833_v32, %v7580_v42  ;;  %12403 = vst [vmem:[#allocation15_spill] sm:$0xff] %v7625_v4  ;;  %vm12343_vm4 = vcmp.eq.s32.totalorder %v7625_v4, 0  ;;  %v644_v32 = vadd.f32 %v7450_v46, %v435_v5 }
 0x180   :  { %v723_v40 = vadd.f32 %v7594_v16, %v685_v59  ;;  %v691_v46 = vadd.f32 %v7541_v45, %v653_v50  ;;  %v944_v45 = vld [vmem:[%s12401_s3 + $0x100] sm:$0xff] }
 0x181   :  { %v880_v38 = vadd.f32 %v879_v17, %v872_v27  ;;  %v650_v27 = vadd.f32 %v7499_v13, %v435_v5 }
 0x182   :  { %v623_v51 = vpop.f32.mrf.mxu0 }
 0x183   :  { %v624_v28 = vadd.f32 %v623_v51, %v586_v6 }
 0x184   :  { %v7601_v30 = vpop.f32.mrf.mxu1 }
 0x185   :  { %v7607_v33 = vmax.f32 %v624_v28, 0.0  ;;  %v731_v17 = vpop.f32.mrf.mxu3 }
 0x187   :  { %v835_v19 = vadd.f32 %v834_v20, %v7607_v33  ;;  %v874_v14 = vmul.f32 %v7607_v33, %v7607_v33  ;;  %v7618_v44 = vpop.f32.mrf.mxu2  ;;  %v682_v20 = vadd.f32 %v7468_v55, %v644_v32  ;;  %v729_v55 = vadd.f32 %v728_v41, %v691_v46 }
 0x189   :  { %v836_v48 = vrot.slane %v835_v19, 4  ;;  %v881_v15 = vadd.f32 %v880_v38, %v874_v14  ;;  %v656_v38 = vadd.f32 %v7565_v1, %v435_v5  ;;  %v720_v13 = vadd.f32 %v7550_v58, %v682_v20  ;;  %v945_v20 = vld [vmem:[%s12401_s3 + $0x108] sm:$0xff] }
 0x18a   :  { %v757_v22 = vpop.f32.mrf.mxu0 }
 0x18b   :  { %v837_v23 = vadd.f32 %v836_v48, %v835_v19  ;;  %v882_v34 = vrot.slane %v881_v15, 4  ;;  %v688_v19 = vadd.f32 %v7514_v12, %v650_v27  ;;  %v694_v39 = vadd.f32 %v7582_v18, %v656_v38  ;;  %v946_v12 = vld [vmem:[%s12401_s3 + $0x110] sm:$0xff]  ;;  %v947_v27 = vld [vmem:[%s12401_s3 + $0x118] sm:$0xff] }
 0x18c   :  { %v7620_v35 = vpop.f32.mrf.mxu1  ;;  %v758_v2 = vadd.f32 %v757_v22, %v720_v13  ;;  %991 = vmatpush.msra.mxu3 %v946_v12 }
 0x18d   :  { %v838_v25 = vrot.slane %v837_v23, 2  ;;  %v883_v47 = vadd.f32 %v882_v34, %v881_v15  ;;  %v726_v21 = vadd.f32 %v725_v52, %v688_v19  ;;  %v659_v15 = vadd.f32 %v7601_v30, %v435_v5  ;;  %v734_v53 = vpop.f32.mrf.mxu3  ;;  %v953_v30 = vld [vmem:[%s12401_s3 + $0x148] sm:$0xff] }
 0x18e   :  { %v732_v58 = vadd.f32 %v731_v17, %v694_v39  ;;  %992 = vmatpush.msra.mxu3 %v944_v45 }
 0x18f   :  { %v839_v60 = vadd.f32 %v838_v25, %v837_v23  ;;  %v884_v63 = vrot.slane %v883_v47, 2  ;;  %v7627_v3 = vpop.f32.mrf.mxu2  ;;  %v697_v52 = vadd.f32 %v7618_v44, %v659_v15 }
 0x190   :  { %1028 = vmatpush.msrb.mxu3 %v953_v30 }
 0x191   :  { %v840_v43 = vrot.slane %v839_v60, 1  ;;  %v885_v57 = vadd.f32 %v884_v63, %v883_v47  ;;  %v662_v63 = vadd.f32 %v7620_v35, %v435_v5  ;;  %v949_v35 = vld [vmem:[%s12401_s3 + $0x128] sm:$0xff] }
 0x192   :  { %v760_v36 = vpop.f32.mrf.mxu0 }
 0x193   :  { %v886_v10 = vrot.slane %v885_v57, 1  ;;  %v841_v11 = vadd.f32 %v840_v43, %v839_v60  ;;  %v761_v48 = vadd.f32 %v760_v36, %v723_v40  ;;  %v735_v36 = vadd.f32 %v734_v53, %v697_v52 }
 0x194   :  { %v795_v6 = vpop.f32.mrf.mxu1 }
 0x195   :  { %v887_v61 = vadd.f32 %v886_v10, %v885_v57  ;;  %v796_v22 = vadd.f32 %v795_v6, %v758_v2  ;;  %v951_v6 = vld [vmem:[%s12401_s3 + $0x138] sm:$0xff]  ;;  %s6182_s3 = sshll.u32 %s6385_s25, 4  ;;  %s6183_s3 = int_to_ptr.vmem [resolvable:$true] %s6182_s3 }
 0x196   :  { %1029 = vmatpush.msrb.mxu3 %v951_v6 }
 0x197   :  { %v910_v9 = vsel %vm12343_vm4, %v841_v11, %v887_v61  ;;  %v804_v51 = vpop.f32.mrf.mxu2  ;;  %v7662_v43 = vmax.f32 %v796_v22, 0.0 }
 0x198   :  { %973 = vmatmul.f32.vlgmr.msrb.gmra.mxu2 %v910_v9  ;;  %1030 = vmatpush.msrb.mxu3 %v949_v35 }
 0x199   :  { %v863_v41 = vmul.f32 %v7662_v43, %v7662_v43 }
 0x19a   :  { %v763_v7 = vpop.f32.mrf.mxu0  ;;  %1031 = vmatpush.msrb.mxu3 %v947_v27 }
 0x19b   :  { %v764_v23 = vadd.f32 %v763_v7, %v726_v21  ;;  %v888_v19 = vsel %vm12328_vm5, %v863_v41, 0.0 }
 0x19c   :  { %v798_v28 = vpop.f32.mrf.mxu1  ;;  %1032 = vmatpush.msrb.mxu3 %v945_v20  ;;  %v1329_v20 = vld [vmem:[%s12314_s17 + $0xe0] sm:$0xff] }
 0x19d   :  { %v799_v16 = vadd.f32 %v798_v28, %v761_v48  ;;  %v843_v28 = vsel %vm12328_vm5, %v7662_v43, 0.0 }
 0x19f   :  { %v807_v14 = vpop.f32.mrf.mxu2  ;;  %v7659_v0 = vmax.f32 %v799_v16, 0.0 }
 0x1a0   :  { %1013 = vmatmul.f32.vlgmr.msra.gmra.mxu2 %v910_v9  ;;  %v700_v9 = vadd.f32 %v7627_v3, %v662_v63 }
 0x1a1   :  { %v865_v44 = vmul.f32 %v7659_v0, %v7659_v0  ;;  %v844_v5 = vsel %vm12328_vm5, %v7659_v0, 0.0 }
 0x1a2   :  { %v766_v37 = vpop.f32.mrf.mxu0 }
 0x1a3   :  { %v767_v18 = vadd.f32 %v766_v37, %v729_v55  ;;  %v889_v3 = vsel %vm12328_vm5, %v865_v44, 0.0  ;;  %v845_v37 = vadd.f32 %v844_v5, %v843_v28  ;;  %v1332_v28 = vld [vmem:[%s12314_s17 + $0xf8] sm:$0xff] }
 0x1a4   :  { %v801_v34 = vpop.f32.mrf.mxu1  ;;  %1440 = vmatpush.msrb.mxu0 %v1332_v28 }
 0x1a5   :  { %v802_v25 = vadd.f32 %v801_v34, %v764_v23  ;;  %v805_v60 = vadd.f32 %v804_v51, %v767_v18  ;;  %v737_v51 = vpop.f32.mrf.mxu3 }
 0x1a6   :  { %v738_v38 = vadd.f32 %v737_v51, %v700_v9 }
 0x1a7   :  { %v810_v57 = vpop.f32.mrf.mxu2  ;;  %v7664_v10 = vmax.f32 %v802_v25, 0.0  ;;  %v7668_v61 = vmax.f32 %v805_v60, 0.0 }
 0x1a9   :  { %v867_v7 = vmul.f32 %v7664_v10, %v7664_v10  ;;  %v846_v50 = vsel %vm12328_vm5, %v7664_v10, 0.0  ;;  %v869_v59 = vmul.f32 %v7668_v61, %v7668_v61  ;;  %v848_v46 = vsel %vm12328_vm5, %v7668_v61, 0.0 }
 0x1aa   :  { %v769_v1 = vpop.f32.mrf.mxu0  ;;  %v847_v21 = vadd.f32 %v846_v50, %v845_v37 }
 0x1ab   :  { %v770_v47 = vadd.f32 %v769_v1, %v732_v58  ;;  %v891_v40 = vsel %vm12328_vm5, %v867_v7, 0.0  ;;  %v893_v2 = vsel %vm12328_vm5, %v869_v59, 0.0  ;;  %v1330_v59 = vld [vmem:[%s12314_s17 + $0xe8] sm:$0xff] }
 0x1ac   :  { %v849_v1 = vadd.f32 %v848_v46, %v847_v21  ;;  %1441 = vmatpush.msrb.mxu0 %v1330_v59  ;;  %v1326_v46 = vld [vmem:[%s12314_s17 + $0xc8] sm:$0xff]  ;;  %v1324_v21 = vld [vmem:[%s12314_s17 + $0xb8] sm:$0xff]  ;;  %v1303_v59 = vld [vmem:[%s12314_s17 + $0x10] sm:$0xff] }
 0x1ad   :  { %v808_v29 = vadd.f32 %v807_v14, %v770_v47  ;;  %v890_v14 = vadd.f32 %v889_v3, %v888_v19  ;;  %v1331_v3 = vld [vmem:[%s12314_s17 + $0xf0] sm:$0xff] }
 0x1ae   :  { %v1327_v19 = vld [vmem:[%s12314_s17 + $0xd0] sm:$0xff] }
 0x1af   :  { %v7683_v24 = vmax.f32 %v808_v29, 0.0  ;;  %v813_v48 = vpop.f32.mrf.mxu2  ;;  %v892_v34 = vadd.f32 %v891_v40, %v890_v14 }
 0x1b1   :  { %v871_v13 = vmul.f32 %v7683_v24, %v7683_v24  ;;  %v850_v15 = vsel %vm12328_vm5, %v7683_v24, 0.0  ;;  %v894_v16 = vadd.f32 %v893_v2, %v892_v34  ;;  %v1322_v2 = vld [vmem:[%s12314_s17 + $0xa8] sm:$0xff] }
 0x1b2   :  { %v772_v11 = vpop.f32.mrf.mxu0  ;;  %v851_v53 = vadd.f32 %v850_v15, %v849_v1  ;;  %v1321_v15 = vld [vmem:[%s12314_s17 + $0xa0] sm:$0xff]  ;;  %v1320_v1 = vld [vmem:[%s12314_s17 + $0x98] sm:$0xff] }
 0x1b3   :  { %v773_v56 = vadd.f32 %v772_v11, %v735_v36  ;;  %v895_v12 = vsel %vm12328_vm5, %v871_v13, 0.0  ;;  %v1325_v13 = vld [vmem:[%s12314_s17 + $0xc0] sm:$0xff] }
 0x1b4   :  { %v896_v22 = vadd.f32 %v895_v12, %v894_v16  ;;  %v1319_v12 = vld [vmem:[%s12314_s17 + $0x90] sm:$0xff]  ;;  %v1317_v16 = vld [vmem:[%s12314_s17 + $0x80] sm:$0xff] }
 0x1b5   :  { %v811_v32 = vadd.f32 %v810_v57, %v773_v56 }
 0x1b7   :  { %v7695_v17 = vmax.f32 %v811_v32, 0.0 }
 0x1b9   :  { %v873_v55 = vmul.f32 %v7695_v17, %v7695_v17  ;;  %v852_v45 = vsel %vm12328_vm5, %v7695_v17, 0.0 }
 0x1ba   :  { %v775_v39 = vpop.f32.mrf.mxu0  ;;  %v853_v52 = vadd.f32 %v852_v45, %v851_v53  ;;  %v1318_v53 = vld [vmem:[%s12314_s17 + $0x88] sm:$0xff] }
 0x1bb   :  { %v776_v23 = vadd.f32 %v775_v39, %v738_v38  ;;  %v897_v18 = vsel %vm12328_vm5, %v873_v55, 0.0  ;;  %v1328_v38 = vld [vmem:[%s12314_s17 + $0xd8] sm:$0xff]  ;;  %v1323_v39 = vld [vmem:[%s12314_s17 + $0xb0] sm:$0xff] }
 0x1bc   :  { %v898_v60 = vadd.f32 %v897_v18, %v896_v22  ;;  %1442 = vmatpush.msrb.mxu0 %v1328_v38  ;;  %v1301_v38 = vld [vmem:[%s12314_s17] sm:$0xff] }
 0x1bd   :  { %v814_v58 = vadd.f32 %v813_v48, %v776_v23 }
 0x1be   :  { %1443 = vmatpush.msrb.mxu0 %v1326_v46  ;;  %v1338_v46 = vld [vmem:[%s12314_s17 + $0x128] sm:$0xff] }
 0x1bf   :  { %v7715_v30 = vmax.f32 %v814_v58, 0.0 }
 0x1c0   :  { %1444 = vmatpush.msrb.mxu0 %v1324_v21  ;;  %v1337_v21 = vld [vmem:[%s12314_s17 + $0x120] sm:$0xff] }
 0x1c1   :  { %v854_v25 = vsel %vm12328_vm5, %v7715_v30, 0.0  ;;  %v875_v47 = vmul.f32 %v7715_v30, %v7715_v30 }
 0x1c2   :  { %v855_v63 = vadd.f32 %v854_v25, %v853_v52  ;;  %1445 = vmatpush.msrb.mxu0 %v1322_v2  ;;  %v1315_v52 = vld [vmem:[%s12314_s17 + $0x70] sm:$0xff]  ;;  %v1316_v25 = vld [vmem:[%s12314_s17 + $0x78] sm:$0xff]  ;;  %v1105_v2 = vperm.slane %v7458_v49, 1 }
 0x1c3   :  { %v899_v57 = vsel %vm12328_vm5, %v875_v47, 0.0 }
 0x1c4   :  { %v856_v36 = vrot.slane %v855_v63, 4  ;;  %v900_v29 = vadd.f32 %v899_v57, %v898_v60  ;;  %1446 = vmatpush.msrb.mxu0 %v1320_v1  ;;  %v1314_v57 = vld [vmem:[%s12314_s17 + $0x68] sm:$0xff]  ;;  %v1125_v1 = vperm.slane %v7458_v49, 2 }
 0x1c6   :  { %v857_v11 = vadd.f32 %v856_v36, %v855_v63  ;;  %v901_v44 = vrot.slane %v900_v29, 4  ;;  %1447 = vmatpush.msrb.mxu0 %v1318_v53  ;;  %v1313_v63 = vld [vmem:[%s12314_s17 + $0x60] sm:$0xff]  ;;  %v7878_v53 = vperm.slane %v1105_v2, 1 }
 0x1c8   :  { %v858_v56 = vrot.slane %v857_v11, 2  ;;  %v902_v6 = vadd.f32 %v901_v44, %v900_v29  ;;  %1448 = vmatpush.msrb.mxu0 %v1316_v25  ;;  %v1311_v29 = vld [vmem:[%s12314_s17 + $0x50] sm:$0xff]  ;;  %v1342_v44 = vld [vmem:[%s12314_s17 + $0x148] sm:$0xff] }
 0x1c9   :  { %1489 = vmatpush.msrb.mxu1 %v1342_v44 }
 0x1ca   :  { %v859_v35 = vadd.f32 %v858_v56, %v857_v11  ;;  %v903_v41 = vrot.slane %v902_v6, 2  ;;  %1449 = vmatpush.msrb.mxu0 %v1314_v57  ;;  %v1312_v11 = vld [vmem:[%s12314_s17 + $0x58] sm:$0xff]  ;;  %v7892_v57 = vperm.slane %v1125_v1, 2 }
 0x1cc   :  { %v860_v9 = vrot.slane %v859_v35, 1  ;;  %v904_v5 = vadd.f32 %v903_v41, %v902_v6  ;;  %1450 = vmatpush.msrb.mxu0 %v1312_v11  ;;  %v1309_v6 = vld [vmem:[%s12314_s17 + $0x40] sm:$0xff]  ;;  %v1307_v41 = vld [vmem:[%s12314_s17 + $0x30] sm:$0xff] }
 0x1ce   :  { %v905_v7 = vrot.slane %v904_v5, 1  ;;  %v861_v51 = vadd.f32 %v860_v9, %v859_v35  ;;  %v1310_v35 = vld [vmem:[%s12314_s17 + $0x48] sm:$0xff]  ;;  %v1308_v9 = vld [vmem:[%s12314_s17 + $0x38] sm:$0xff] }
 0x1cf   :  { %1451 = vmatpush.msrb.mxu0 %v1310_v35 }
 0x1d0   :  { %v906_v32 = vadd.f32 %v905_v7, %v904_v5  ;;  %v1340_v7 = vld [vmem:[%s12314_s17 + $0x138] sm:$0xff] }
 0x1d1   :  { %1490 = vmatpush.msrb.mxu1 %v1340_v7  ;;  %1452 = vmatpush.msrb.mxu0 %v1308_v9 }
 0x1d2   :  { %v911_v27 = vsel %vm12343_vm4, %v861_v51, %v906_v32  ;;  %v1305_v51 = vld [vmem:[%s12314_s17 + $0x20] sm:$0xff]  ;;  %v1306_v32 = vld [vmem:[%s12314_s17 + $0x28] sm:$0xff] }
 0x1d3   :  { %6195 = vmatmul.msk.f32.vlgmr.msra.gmra.mxu3 %vm12328_vm5, %v911_v27  ;;  %1453 = vmatpush.msrb.mxu0 %v1306_v32 }
 0x1d4   :  { %1364 = vmatpush.msra.mxu3 %v1331_v3  ;;  %1491 = vmatpush.msrb.mxu1 %v1338_v46 }
 0x1d6   :  { %1365 = vmatpush.msra.mxu3 %v1329_v20  ;;  %v1304_v20 = vld [vmem:[%s12314_s17 + $0x18] sm:$0xff] }
 0x1d7   :  { %1454 = vmatpush.msrb.mxu0 %v1304_v20 }
 0x1d8   :  { %1366 = vmatpush.msra.mxu3 %v1327_v19  ;;  %v1302_v19 = vld [vmem:[%s12314_s17 + $0x8] sm:$0xff] }
 0x1d9   :  { %1455 = vmatpush.msrb.mxu0 %v1302_v19 }
 0x1da   :  { %1367 = vmatpush.msra.mxu3 %v1325_v13  ;;  %v1339_v13 = vld [vmem:[%s12314_s17 + $0x130] sm:$0xff] }
 0x1db   :  { %6196 = vmatmul.msk.f32.vlgmr.msrb.gmra.mxu3 %vm12328_vm5, %v911_v27  ;;  %v1341_v27 = vld [vmem:[%s12314_s17 + $0x140] sm:$0xff] }
 0x1dc   :  { %1368 = vmatpush.msra.mxu3 %v1323_v39  ;;  %1413 = vmatpush.msrb.mxu2 %v1341_v27 }
 0x1de   :  { %1369 = vmatpush.msra.mxu3 %v1321_v15  ;;  %1414 = vmatpush.msrb.mxu2 %v1339_v13  ;;  %v1336_v15 = vld [vmem:[%s12314_s17 + $0x118] sm:$0xff] }
 0x1df   :  { %1492 = vmatpush.msrb.mxu1 %v1336_v15 }
 0x1e0   :  { %1370 = vmatpush.msra.mxu3 %v1319_v12  ;;  %1415 = vmatpush.msrb.mxu2 %v1337_v21 }
 0x1e2   :  { %1371 = vmatpush.msra.mxu3 %v1317_v16 }
 0x1e4   :  { %1372 = vmatpush.msra.mxu3 %v1315_v52 }
 0x1e6   :  { %1373 = vmatpush.msra.mxu3 %v1313_v63 }
 0x1e8   :  { %1374 = vmatpush.msra.mxu3 %v1311_v29 }
 0x1ea   :  { %1375 = vmatpush.msra.mxu3 %v1309_v6  ;;  %v1106_v6 = vperm.slane %v7458_v49, 5 }
 0x1ec   :  { %1376 = vmatpush.msra.mxu3 %v1307_v41 }
 0x1ee   :  { %1377 = vmatpush.msra.mxu3 %v1305_v51 }
 0x1f0   :  { %1378 = vmatpush.msra.mxu3 %v1303_v59 }
 0x1f2   :  { %1379 = vmatpush.msra.mxu3 %v1301_v38  ;;  %v1126_v38 = vperm.slane %v7458_v49, 6 }
 0x1f4   :  { %v7948_v13 = vperm.slane %v1126_v38, 2 }
 0x21b   :  { %v974_v50 = vpop.f32.mrf.mxu2 }
 0x223   :  { %v1014_v23 = vpop.f32.mrf.mxu2 }
 0x256   :  { %v994_v37 = vpop.f32.mrf.mxu3 }
 0x257   :  { %v995_v40 = vadd.f32 %v994_v37, %v974_v50 }
 0x259   :  { %v7750_v14 = vmul.f32 0.0006377551, %v995_v40 }
 0x25b   :  { %v1039_v48 = vmul.f32 %v7750_v14, %v7750_v14  ;;  %v7858_v39 = vperm.slane %v7750_v14, 0 }
 0x25d   :  { %v1043_v55 = vrot.slane %v1039_v48, 7  ;;  %v1055_v52 = vsub.f32 %v7539_v26, %v7858_v39  ;;  %v1057_v25 = vsub.f32 %v7548_v54, %v7858_v39  ;;  %v1065_v63 = vsub.f32 %v7607_v33, %v7858_v39 }
 0x25e   :  { %v1034_v34 = vpop.f32.mrf.mxu3 }
 0x25f   :  { %v1047_v45 = vsub.f32 %v7750_v14, %v1043_v55  ;;  %v1035_v58 = vadd.f32 %v1034_v34, %v1014_v23  ;;  %v1335_v23 = vld [vmem:[%s12314_s17 + $0x110] sm:$0xff]  ;;  %v1334_v14 = vld [vmem:[%s12314_s17 + $0x108] sm:$0xff] }
 0x260   :  { %1416 = vmatpush.msrb.mxu2 %v1335_v23  ;;  %1493 = vmatpush.msrb.mxu1 %v1334_v14 }
 0x261   :  { %v1049_v18 = vmax.f32 %v1047_v45, 0.0  ;;  %v7779_v22 = vmul.f32 0.0006377551, %v1035_v58  ;;  %v1333_v45 = vld [vmem:[%s12314_s17 + $0x100] sm:$0xff]  ;;  %v1053_v58 = vsub.f32 %v7546_v31, %v7858_v39  ;;  %v1061_v31 = vsub.f32 %v7572_v8, %v7858_v39  ;;  %s6379_s17 = smov 44  }
 0x262   :  { %1417 = vmatpush.msrb.mxu2 %v1333_v45  ;;  %v1063_v45 = vsub.f32 %v7580_v42, %v7858_v39 }
 0x263   :  { %v7787_v47 = vadd.f32 1e-05, %v1049_v18  ;;  %v1040_v60 = vmul.f32 %v7779_v22, %v7779_v22 }
 0x265   :  { %6304 = vrsqrt.f32 %v7787_v47  ;;  %v1044_v36 = vrot.slane %v1040_v60, 7  ;;  %vm1075_vm7 = vweird.f32 %v7787_v47 }
 0x267   :  { %v1048_v56 = vsub.f32 %v7779_v22, %v1044_v36 }
 0x269   :  { %v1050_v5 = vmax.f32 %v1048_v56, 0.0 }
 0x26b   :  { %v6305_v28 = vpop.eup %6304  ;;  %v7832_v3 = vadd.f32 1e-05, %v1050_v5 }
 0x26c   :  { %v1070_v50 = vmul.f32 %v6305_v28, %v7787_v47  ;;  %vm1076_vm6 = vweird.f32 %v6305_v28  ;;  %v1059_v47 = vsub.f32 %v7558_v62, %v7858_v39  ;;  %v7898_v62 = vperm.slane %v7779_v22, 0 }
 0x26d   :  { %6306 = vrsqrt.f32 %v7832_v3  ;;  %vm1077_vm8 = vmor %vm1075_vm7, %vm1076_vm6  ;;  %vm1085_vm10 = vweird.f32 %v7832_v3  ;;  %vm12334_vm6 = vcmask 687104   ;;  %vm12333_vm7 = vcmask 683008  }
 0x26e   :  { %v1071_v37 = vmul.f32 %v6305_v28, %v1070_v50  ;;  %v1058_v15 = vsub.f32 %v7664_v10, %v7898_v62 }
 0x270   :  { %v1072_v40 = vmul.f32 0.5, %v1071_v37  ;;  %v7931_v37 = vperm.slane %v1106_v6, 1 }
 0x272   :  { %v1073_v48 = vsub.f32 1.5, %v1072_v40 }
 0x273   :  { %v6307_v55 = vpop.eup %6306 }
 0x274   :  { %v1074_v34 = vmul.f32 %v6305_v28, %v1073_v48  ;;  %v1080_v12 = vmul.f32 %v6307_v55, %v7832_v3  ;;  %vm1086_vm9 = vweird.f32 %v6307_v55  ;;  %v1056_v3 = vsub.f32 %v7659_v0, %v7898_v62 }
 0x275   :  { %vm1087_vm11 = vmor %vm1085_vm10, %vm1086_vm9  ;;  %vm12335_vm9 = vcmask 257024  }
 0x276   :  { %v1078_v16 = vsel %vm1077_vm8, %v6305_v28, %v1074_v34  ;;  %v1081_v18 = vmul.f32 %v6307_v55, %v1080_v12  ;;  %v1054_v28 = vsub.f32 %v7662_v43, %v7898_v62  ;;  %v1062_v34 = vsub.f32 %v7683_v24, %v7898_v62 }
 0x277   :  { %v7886_v60 = vperm.slane %v1078_v16, 1  ;;  %vm12337_vm8 = vcmask 261120  }
 0x278   :  { %v1082_v36 = vmul.f32 0.5, %v1081_v18 }
 0x279   :  { %v1091_v26 = vmul.f32 %v7886_v60, %v1053_v58  ;;  %v1093_v29 = vmul.f32 %v7886_v60, %v1055_v52  ;;  %v1095_v54 = vmul.f32 %v7886_v60, %v1057_v25  ;;  %v1099_v11 = vmul.f32 %v7886_v60, %v1061_v31 }
 0x27a   :  { %v1103_v8 = vmul.f32 %v7886_v60, %v1065_v63  ;;  %v1083_v44 = vsub.f32 1.5, %v1082_v36  ;;  %v1097_v35 = vmul.f32 %v7886_v60, %v1059_v47  ;;  %v1066_v58 = vsub.f32 %v7715_v30, %v7898_v62 }
 0x27b   :  { %v1111_v33 = vmul.f32 %v7878_v53, %v1091_v26  ;;  %v1115_v56 = vmul.f32 %v7878_v53, %v1095_v54  ;;  %v1113_v41 = vmul.f32 %v7878_v53, %v1093_v29  ;;  %v1119_v22 = vmul.f32 %v7878_v53, %v1099_v11 }
 0x27c   :  { %v1084_v9 = vmul.f32 %v6307_v55, %v1083_v44  ;;  %v1123_v5 = vmul.f32 %v7878_v53, %v1103_v8  ;;  %v1117_v59 = vmul.f32 %v7878_v53, %v1097_v35  ;;  %v1101_v24 = vmul.f32 %v7886_v60, %v1063_v45 }
 0x27d   :  { %v7911_v7 = vadd.f32 %v7892_v57, %v1111_v33  ;;  %v7914_v51 = vadd.f32 %v7892_v57, %v1115_v56  ;;  %v7917_v27 = vadd.f32 %v7892_v57, %v1119_v22  ;;  %v7928_v20 = vadd.f32 %v7892_v57, %v1113_v41 }
 0x27e   :  { %v1088_v32 = vsel %vm1087_vm11, %v6307_v55, %v1084_v9  ;;  %v7935_v19 = vadd.f32 %v7892_v57, %v1123_v5  ;;  %v7944_v46 = vadd.f32 %v7892_v57, %v1117_v59  ;;  %v1060_v30 = vsub.f32 %v7668_v61, %v7898_v62 }
 0x27f   :  { %1145 = vst [vmem:[#allocation8] sm:$0x3] %v7911_v7  ;;  %v7924_v50 = vperm.slane %v1088_v32, 1  ;;  %v1157_v40 = vrot.slane %v7911_v7, 2  ;;  %v1169_v21 = vrot.slane %v7928_v20, 4  ;;  %v1181_v2 = vrot.slane %v7928_v20, 6 }
 0x280   :  { %1164 = vst [vmem:[#allocation8 + $0x30] sm:$0xc0] %v7911_v7  ;;  %v1199_v55 = vrot.slane %v7914_v51, 2  ;;  %v1209_v14 = vrot.slane %v7944_v46, 4  ;;  %v1221_v10 = vrot.slane %v7944_v46, 6  ;;  %v1121_v60 = vmul.f32 %v7878_v53, %v1101_v24 }
 0x281   :  { %1189 = vst [vmem:[#allocation8 + $0x10] sm:$0x3] %v7914_v51  ;;  %v1092_v0 = vmul.f32 %v7924_v50, %v1054_v28  ;;  %v1094_v43 = vmul.f32 %v7924_v50, %v1056_v3  ;;  %v1096_v1 = vmul.f32 %v7924_v50, %v1058_v15  ;;  %v1100_v16 = vmul.f32 %v7924_v50, %v1062_v34 }
 0x282   :  { %1205 = vst [vmem:[#allocation8 + $0x40] sm:$0xc0] %v7914_v51  ;;  %v1104_v52 = vmul.f32 %v7924_v50, %v1066_v58  ;;  %v1098_v31 = vmul.f32 %v7924_v50, %v1060_v30  ;;  %v8000_v53 = vadd.f32 %v7892_v57, %v1121_v60  ;;  %v1064_v29 = vsub.f32 %v7695_v17, %v7898_v62 }
 0x283   :  { %1229 = vst [vmem:[#allocation8 + $0x20] sm:$0x3] %v7917_v27  ;;  %v1112_v49 = vmul.f32 %v7931_v37, %v1092_v0  ;;  %v1114_v48 = vmul.f32 %v7931_v37, %v1094_v43  ;;  %v1116_v25 = vmul.f32 %v7931_v37, %v1096_v1  ;;  %v1120_v47 = vmul.f32 %v7931_v37, %v1100_v16 }
 0x284   :  { %1245 = vst [vmem:[#allocation8 + $0x50] sm:$0xc0] %v7917_v27  ;;  %v1124_v36 = vmul.f32 %v7931_v37, %v1104_v52  ;;  %v1118_v54 = vmul.f32 %v7931_v37, %v1098_v31  ;;  %v1102_v8 = vmul.f32 %v7924_v50, %v1064_v29  ;;  %v1239_v17 = vrot.slane %v7917_v27, 2 }
 0x285   :  { %1269 = vst [vmem:[#allocation8 + $0x30] sm:$0x3] %v7935_v19  ;;  %v7959_v23 = vadd.f32 %v7948_v13, %v1112_v49  ;;  %v7966_v12 = vadd.f32 %v7948_v13, %v1114_v48  ;;  %v7990_v61 = vadd.f32 %v7948_v13, %v1116_v25  ;;  %v7995_v26 = vadd.f32 %v7948_v13, %v1120_v47 }
 0x286   :  { %1285 = vst [vmem:[#allocation8 + $0x60] sm:$0xc0] %v7935_v19  ;;  %v8007_v11 = vadd.f32 %v7948_v13, %v1124_v36  ;;  %v8018_v57 = vadd.f32 %v7948_v13, %v1118_v54  ;;  %v1249_v44 = vrot.slane %v8000_v53, 4  ;;  %v1261_v56 = vrot.slane %v8000_v53, 6 }
 0x287   :  { %1161 = vst [vmem:[#allocation8] sm:$0xc] %v1157_v40  ;;  %v1158_v18 = vrot.slane %v7959_v23, 2  ;;  %v1170_v42 = vrot.slane %v7966_v12, 4  ;;  %v1182_v39 = vrot.slane %v7966_v12, 6  ;;  %v1122_v6 = vmul.f32 %v7931_v37, %v1102_v8 }
 0x288   :  { %1173 = vst [vmem:[#allocation8] sm:$0x30] %v1169_v21  ;;  %v1200_v35 = vrot.slane %v7990_v61, 2  ;;  %v1210_v41 = vrot.slane %v8018_v57, 4  ;;  %v1222_v22 = vrot.slane %v8018_v57, 6  ;;  %v1150_v5 = vrot.slane %v7911_v7, 6 }
 0x289   :  { %1185 = vst [vmem:[#allocation8] sm:$0xc0] %v1181_v2  ;;  %v1142_v9 = vadd.f32 %v7948_v13, %v1122_v6  ;;  %v1279_v32 = vrot.slane %v7935_v19, 2  ;;  %v1240_v28 = vrot.slane %v7995_v26, 2  ;;  %v1175_v7 = vrot.slane %v7928_v20, 2 }
 0x28a   :  { %1187 = vst [vmem:[#allocation8 + $0x40] sm:$0xc] %v1169_v21  ;;  %v1193_v37 = vrot.slane %v7914_v51, 6  ;;  %v1151_v38 = vrot.slane %v7959_v23, 6  ;;  %v1280_v43 = vrot.slane %v8007_v11, 2  ;;  %v1215_v20 = vrot.slane %v7944_v46, 2 }
 0x28b   :  { %1203 = vst [vmem:[#allocation8 + $0x10] sm:$0xc] %v1199_v55  ;;  %v1250_v3 = vrot.slane %v1142_v9, 4  ;;  %v1262_v50 = vrot.slane %v1142_v9, 6  ;;  %v1233_v40 = vrot.slane %v7917_v27, 6  ;;  %v1176_v51 = vrot.slane %v7966_v12, 2 }
 0x28c   :  { %1213 = vst [vmem:[#allocation8 + $0x10] sm:$0x30] %v1209_v14  ;;  %v1194_v13 = vrot.slane %v7990_v61, 6  ;;  %v1255_v21 = vrot.slane %v8000_v53, 2  ;;  %v1273_v46 = vrot.slane %v7935_v19, 6  ;;  %v1216_v27 = vrot.slane %v8018_v57, 2 }
 0x28d   :  { %1225 = vst [vmem:[#allocation8 + $0x10] sm:$0xc0] %v1221_v10  ;;  %v1234_v2 = vrot.slane %v7995_v26, 6  ;;  %v1256_v15 = vrot.slane %v1142_v9, 2  ;;  %v1274_v55 = vrot.slane %v8007_v11, 6 }
 0x28e   :  { %1227 = vst [vmem:[#allocation8 + $0x50] sm:$0xc] %v1209_v14 }
 0x28f   :  { %1147 = vst.msk [vmem:[#allocation8 + $0x8] sm:$0x3] %vm12332_vm12, %v7959_v23 }
 0x290   :  { %v1287_v63 = vld [vmem:[#allocation8] sm:$0xff]  ;;  %1163 = vst.msk [vmem:[#allocation8 + $0x8] sm:$0xc] %vm12329_vm13, %v1158_v18 }
 0x291   :  { %1380 = vmatmul.f32.vlgmr.msra.gmra.mxu3 %v1287_v63  ;;  %1456 = vmatmul.f32.vlgmr.msrb.gmra.mxu0 %v1287_v63  ;;  %1174 = vst.msk [vmem:[#allocation8 + $0x8] sm:$0x30] %vm12331_vm14, %v1170_v42 }
 0x292   :  { %1186 = vst.msk [vmem:[#allocation8 + $0x8] sm:$0xc0] %vm12330_vm15, %v1182_v39 }
 0x293   :  { %1166 = vst.msk [vmem:[#allocation8 + $0x38] sm:$0xc0] %vm12330_vm15, %v7959_v23 }
 0x294   :  { %1188 = vst.msk [vmem:[#allocation8 + $0x48] sm:$0xc] %vm12329_vm13, %v1170_v42  ;;  %v1289_v62 = vld [vmem:[#allocation8 + $0x10] sm:$0xff] }
 0x295   :  { %1190 = vst.msk [vmem:[#allocation8 + $0x18] sm:$0x3] %vm12332_vm12, %v7990_v61 }
 0x296   :  { %1206 = vst.msk [vmem:[#allocation8 + $0x48] sm:$0xc0] %vm12330_vm15, %v7990_v61 }
 0x297   :  { %1230 = vst.msk [vmem:[#allocation8 + $0x28] sm:$0x3] %vm12332_vm12, %v7995_v26 }
 0x298   :  { %1246 = vst.msk [vmem:[#allocation8 + $0x58] sm:$0xc0] %vm12330_vm15, %v7995_v26 }
 0x299   :  { %1383 = vmatmul.f32.gmra.mxu3 %v1289_v62  ;;  %v1288_v33 = vld [vmem:[#allocation8 + $0x8] sm:$0xff]  ;;  %1270 = vst.msk [vmem:[#allocation8 + $0x38] sm:$0x3] %vm12332_vm12, %v8007_v11  ;;  %1459 = vmatmul.f32.gmra.mxu0 %v1289_v62 }
 0x29a   :  { %6197 = vmatmul.msk.f32.vlgmr.msrb.gmra.mxu2 %vm12328_vm5, %v1288_v33  ;;  %1286 = vst.msk [vmem:[#allocation8 + $0x68] sm:$0xc0] %vm12330_vm15, %v8007_v11  ;;  %6204 = vmatmul.msk.f32.vlgmr.msrb.gmra.mxu1 %vm12328_vm5, %v1288_v33 }
 0x29b   :  { %1243 = vst [vmem:[#allocation8 + $0x20] sm:$0xc] %v1239_v17 }
 0x29c   :  { %1253 = vst [vmem:[#allocation8 + $0x20] sm:$0x30] %v1249_v44 }
 0x29d   :  { %1265 = vst [vmem:[#allocation8 + $0x20] sm:$0xc0] %v1261_v56 }
 0x29e   :  { %1267 = vst [vmem:[#allocation8 + $0x60] sm:$0xc] %v1249_v44 }
 0x29f   :  { %1204 = vst.msk [vmem:[#allocation8 + $0x18] sm:$0xc] %vm12329_vm13, %v1200_v35 }
 0x2a0   :  { %1214 = vst.msk [vmem:[#allocation8 + $0x18] sm:$0x30] %vm12331_vm14, %v1210_v41 }
 0x2a1   :  { %1226 = vst.msk [vmem:[#allocation8 + $0x18] sm:$0xc0] %vm12330_vm15, %v1222_v22 }
 0x2a2   :  { %1228 = vst.msk [vmem:[#allocation8 + $0x58] sm:$0xc] %vm12329_vm13, %v1210_v41 }
 0x2a3   :  { %1154 = vst [vmem:[#allocation8 + $0x30] sm:$0x30] %v1150_v5 }
 0x2a4   :  { %v1291_v59 = vld [vmem:[#allocation8 + $0x20] sm:$0xff]  ;;  %1283 = vst [vmem:[#allocation8 + $0x30] sm:$0xc] %v1279_v32 }
 0x2a5   :  { %1386 = vmatmul.f32.gmra.mxu3 %v1291_v59  ;;  %1462 = vmatmul.f32.gmra.mxu0 %v1291_v59  ;;  %1244 = vst.msk [vmem:[#allocation8 + $0x28] sm:$0xc] %vm12329_vm13, %v1240_v28 }
 0x2a6   :  { %1254 = vst.msk [vmem:[#allocation8 + $0x28] sm:$0x30] %vm12331_vm14, %v1250_v3 }
 0x2a7   :  { %1266 = vst.msk [vmem:[#allocation8 + $0x28] sm:$0xc0] %vm12330_vm15, %v1262_v50  ;;  %vm12345_vm15 = vcmask 392192  }
 0x2a8   :  { %v1290_v0 = vld [vmem:[#allocation8 + $0x18] sm:$0xff]  ;;  %1268 = vst.msk [vmem:[#allocation8 + $0x68] sm:$0xc] %vm12329_vm13, %v1250_v3 }
 0x2a9   :  { %6198 = vmatmul.msk.f32.gmra.mxu2 %vm12328_vm5, %v1290_v0  ;;  %6205 = vmatmul.msk.f32.gmra.mxu1 %vm12328_vm5, %v1290_v0  ;;  %1179 = vst [vmem:[#allocation8 + $0x40] sm:$0x3] %v1175_v7  ;;  %v1900_v0 = vld [vmem:[%s12411_s7 + $0xf0] sm:$0xff] }
 0x2aa   :  { %1197 = vst [vmem:[#allocation8 + $0x40] sm:$0x30] %v1193_v37  ;;  %2037 = vmatpush.msra.mxu2 %v1900_v0  ;;  %v1912_v0 = vld [vmem:[%s12411_s7 + $0x150] sm:$0xff] }
 0x2ab   :  { %1156 = vst.msk [vmem:[#allocation8 + $0x38] sm:$0x30] %vm12331_vm14, %v1151_v38  ;;  %v1293_v49 = vld [vmem:[#allocation8 + $0x30] sm:$0xff] }
 0x2ac   :  { %1284 = vst.msk [vmem:[#allocation8 + $0x38] sm:$0xc] %vm12329_vm13, %v1280_v43  ;;  %v1932_v43 = vld [vmem:[%s12411_s7 + $0x1f0] sm:$0xff]  ;;  %vm12339_vm13 = vcmask 261126  }
 0x2ad   :  { %1389 = vmatmul.f32.gmra.mxu3 %v1293_v49  ;;  %1465 = vmatmul.f32.gmra.mxu0 %v1293_v49  ;;  %1219 = vst [vmem:[#allocation8 + $0x50] sm:$0x3] %v1215_v20  ;;  %v1898_v20 = vld [vmem:[%s12411_s7 + $0xe0] sm:$0xff]  ;;  %v1928_v49 = vld [vmem:[%s12411_s7 + $0x1d0] sm:$0xff] }
 0x2ae   :  { %1237 = vst [vmem:[#allocation8 + $0x50] sm:$0x30] %v1233_v40  ;;  %v1292_v48 = vld [vmem:[#allocation8 + $0x28] sm:$0xff]  ;;  %2063 = vmatpush.msrb.mxu3 %v1932_v43  ;;  %v1896_v40 = vld [vmem:[%s12411_s7 + $0xd0] sm:$0xff]  ;;  %2038 = vmatpush.msra.mxu2 %v1898_v20 }
 0x2af   :  { %1180 = vst.msk [vmem:[#allocation8 + $0x48] sm:$0x3] %vm12332_vm12, %v1176_v51  ;;  %v1930_v51 = vld [vmem:[%s12411_s7 + $0x1e0] sm:$0xff]  ;;  %v2028_v43 = vld [vmem:[%s12411_s7 + $0x4f0] sm:$0xff] }
 0x2b0   :  { %1198 = vst.msk [vmem:[#allocation8 + $0x48] sm:$0x30] %vm12331_vm14, %v1194_v13  ;;  %2064 = vmatpush.msrb.mxu3 %v1930_v51  ;;  %v1894_v13 = vld [vmem:[%s12411_s7 + $0xc0] sm:$0xff]  ;;  %2039 = vmatpush.msra.mxu2 %v1896_v40 }
 0x2b1   :  { %6199 = vmatmul.msk.f32.gmra.mxu2 %vm12328_vm5, %v1292_v48  ;;  %6206 = vmatmul.msk.f32.gmra.mxu1 %vm12328_vm5, %v1292_v48  ;;  %1259 = vst [vmem:[#allocation8 + $0x60] sm:$0x3] %v1255_v21  ;;  %v1295_v19 = vld [vmem:[#allocation8 + $0x40] sm:$0xff]  ;;  %v1946_v20 = vld [vmem:[%s12411_s7 + $0x260] sm:$0xff] }
 0x2b2   :  { %1277 = vst [vmem:[#allocation8 + $0x60] sm:$0x30] %v1273_v46  ;;  %2065 = vmatpush.msrb.mxu3 %v1928_v49  ;;  %v1892_v21 = vld [vmem:[%s12411_s7 + $0xb0] sm:$0xff]  ;;  %2040 = vmatpush.msra.mxu2 %v1894_v13  ;;  %v1890_v46 = vld [vmem:[%s12411_s7 + $0xa0] sm:$0xff] }
 0x2b3   :  { %1220 = vst.msk [vmem:[#allocation8 + $0x58] sm:$0x3] %vm12332_vm12, %v1216_v27  ;;  %v1294_v23 = vld [vmem:[#allocation8 + $0x38] sm:$0xff]  ;;  %v1926_v27 = vld [vmem:[%s12411_s7 + $0x1c0] sm:$0xff] }
 0x2b4   :  { %1238 = vst.msk [vmem:[#allocation8 + $0x58] sm:$0x30] %vm12331_vm14, %v1234_v2  ;;  %2041 = vmatpush.msra.mxu2 %v1892_v21  ;;  %v1888_v48 = vld [vmem:[%s12411_s7 + $0x90] sm:$0xff]  ;;  %2066 = vmatpush.msrb.mxu3 %v1926_v27  ;;  %v1978_v40 = vld [vmem:[%s12411_s7 + $0x360] sm:$0xff] }
 0x2b5   :  { %1392 = vmatmul.f32.gmra.mxu3 %v1295_v19  ;;  %1468 = vmatmul.f32.gmra.mxu0 %v1295_v19  ;;  %1260 = vst.msk [vmem:[#allocation8 + $0x68] sm:$0x3] %vm12332_vm12, %v1256_v15  ;;  %v1297_v14 = vld [vmem:[#allocation8 + $0x50] sm:$0xff]  ;;  %v1924_v2 = vld [vmem:[%s12411_s7 + $0x1b0] sm:$0xff] }
 0x2b6   :  { %1278 = vst.msk [vmem:[#allocation8 + $0x68] sm:$0x30] %vm12331_vm14, %v1274_v55  ;;  %2042 = vmatpush.msra.mxu2 %v1890_v46  ;;  %v1964_v15 = vld [vmem:[%s12411_s7 + $0x2f0] sm:$0xff]  ;;  %v1886_v55 = vld [vmem:[%s12411_s7 + $0x80] sm:$0xff]  ;;  %2067 = vmatpush.msrb.mxu3 %v1924_v2  ;;  %vm12347_vm14 = vcmask 648192  }
 0x2b7   :  { %v1296_v34 = vld [vmem:[#allocation8 + $0x48] sm:$0xff]  ;;  %2089 = vmatpush.msra.mxu0 %v1964_v15  ;;  %v1996_v19 = vld [vmem:[%s12411_s7 + $0x3f0] sm:$0xff] }
 0x2b8   :  { %2043 = vmatpush.msra.mxu2 %v1888_v48  ;;  %2115 = vmatpush.msra.mxu1 %v1996_v19  ;;  %v1910_v51 = vld [vmem:[%s12411_s7 + $0x140] sm:$0xff]  ;;  %v1944_v13 = vld [vmem:[%s12411_s7 + $0x250] sm:$0xff] }
 0x2b9   :  { %6200 = vmatmul.msk.f32.gmra.mxu2 %vm12328_vm5, %v1294_v23  ;;  %6207 = vmatmul.msk.f32.gmra.mxu1 %vm12328_vm5, %v1294_v23  ;;  %v1299_v1 = vld [vmem:[#allocation8 + $0x60] sm:$0xff]  ;;  %v1962_v23 = vld [vmem:[%s12411_s7 + $0x2e0] sm:$0xff] }
 0x2ba   :  { %2090 = vmatpush.msra.mxu0 %v1962_v23  ;;  %2044 = vmatpush.msra.mxu2 %v1886_v55  ;;  %v2026_v49 = vld [vmem:[%s12411_s7 + $0x4e0] sm:$0xff]  ;;  %v1976_v21 = vld [vmem:[%s12411_s7 + $0x350] sm:$0xff] }
 0x2bb   :  { %v1298_v12 = vld [vmem:[#allocation8 + $0x58] sm:$0xff]  ;;  %v1942_v48 = vld [vmem:[%s12411_s7 + $0x240] sm:$0xff] }
 0x2bc   :  { %v1908_v46 = vld [vmem:[%s12411_s7 + $0x130] sm:$0xff]  ;;  %v1974_v55 = vld [vmem:[%s12411_s7 + $0x340] sm:$0xff] }
 0x2bd   :  { %1395 = vmatmul.f32.gmra.mxu3 %v1297_v14  ;;  %1471 = vmatmul.f32.gmra.mxu0 %v1297_v14  ;;  %v1300_v10 = vld [vmem:[#allocation8 + $0x68] sm:$0xff]  ;;  %v2024_v27 = vld [vmem:[%s12411_s7 + $0x4d0] sm:$0xff] }
 0x2be   :  { %v1994_v14 = vld [vmem:[%s12411_s7 + $0x3e0] sm:$0xff] }
 0x2bf   :  { %2116 = vmatpush.msra.mxu1 %v1994_v14  ;;  %v1906_v19 = vld [vmem:[%s12411_s7 + $0x120] sm:$0xff]  ;;  %v1940_v14 = vld [vmem:[%s12411_s7 + $0x230] sm:$0xff] }
 0x2c0   :  { %v2022_v23 = vld [vmem:[%s12411_s7 + $0x4c0] sm:$0xff] }
 0x2c1   :  { %6201 = vmatmul.msk.f32.gmra.mxu2 %vm12328_vm5, %v1296_v34  ;;  %6208 = vmatmul.msk.f32.gmra.mxu1 %vm12328_vm5, %v1296_v34  ;;  %v1884_v34 = vld [vmem:[%s12411_s7 + $0x70] sm:$0xff] }
 0x2c2   :  { %2045 = vmatpush.msra.mxu2 %v1884_v34  ;;  %v1972_v34 = vld [vmem:[%s12411_s7 + $0x330] sm:$0xff] }
 0x2c5   :  { %1398 = vmatmul.f32.gmra.mxu3 %v1299_v1  ;;  %1474 = vmatmul.f32.gmra.mxu0 %v1299_v1  ;;  %v1882_v1 = vld [vmem:[%s12411_s7 + $0x60] sm:$0xff] }
 0x2c6   :  { %2046 = vmatpush.msra.mxu2 %v1882_v1  ;;  %v1904_v1 = vld [vmem:[%s12411_s7 + $0x110] sm:$0xff] }
 0x2c9   :  { %6202 = vmatmul.msk.f32.gmra.mxu2 %vm12328_vm5, %v1298_v12  ;;  %6209 = vmatmul.msk.f32.gmra.mxu1 %vm12328_vm5, %v1298_v12  ;;  %v1922_v12 = vld [vmem:[%s12411_s7 + $0x1a0] sm:$0xff] }
 0x2ca   :  { %2068 = vmatpush.msrb.mxu3 %v1922_v12 }
 0x2d1   :  { %6203 = vmatmul.msk.f32.gmra.mxu2 %vm12328_vm5, %v1300_v10  ;;  %6210 = vmatmul.msk.f32.gmra.mxu1 %vm12328_vm5, %v1300_v10  ;;  %v1960_v10 = vld [vmem:[%s12411_s7 + $0x2d0] sm:$0xff] }
 0x2d2   :  { %2091 = vmatpush.msra.mxu0 %v1960_v10  ;;  %v2020_v10 = vld [vmem:[%s12411_s7 + $0x4b0] sm:$0xff] }
 0x30e   :  { %v1457_v45 = vpop.f32.mrf.mxu0 }
 0x314   :  { %v1381_v58 = vpop.f32.mrf.mxu3 }
 0x316   :  { %v1460_v52 = vpop.f32.mrf.mxu0 }
 0x317   :  { %v1495_v16 = vpop.f32.mrf.mxu1 }
 0x318   :  { %v8079_v24 = vadd.f32 %v1495_v16, %v1457_v45  ;;  %v1992_v45 = vld [vmem:[%s12411_s7 + $0x3d0] sm:$0xff]  ;;  %v1958_v16 = vld [vmem:[%s12411_s7 + $0x2c0] sm:$0xff] }
 0x319   :  { %2117 = vmatpush.msra.mxu1 %v1992_v45  ;;  %2092 = vmatpush.msra.mxu0 %v1958_v16  ;;  %v1938_v45 = vld [vmem:[%s12411_s7 + $0x220] sm:$0xff] }
 0x31a   :  { %1526 = vrot.lane.b32.xlu1 %v8079_v24, %s6379_s17  ;;  %v1902_v16 = vld [vmem:[%s12411_s7 + $0x100] sm:$0xff] }
 0x31c   :  { %v1384_v42 = vpop.f32.mrf.mxu3 }
 0x31d   :  { %v1419_v18 = vpop.f32.mrf.mxu2 }
 0x31e   :  { %v8083_v25 = vadd.f32 %v1419_v18, %v1381_v58  ;;  %v1880_v58 = vld [vmem:[%s12411_s7 + $0x50] sm:$0xff]  ;;  %v1990_v18 = vld [vmem:[%s12411_s7 + $0x3c0] sm:$0xff] }
 0x31f   :  { %2047 = vmatpush.msra.mxu2 %v1880_v58  ;;  %2118 = vmatpush.msra.mxu1 %v1990_v18  ;;  %v1970_v58 = vld [vmem:[%s12411_s7 + $0x320] sm:$0xff] }
 0x320   :  { %1524 = vrot.lane.b32.xlu0 %v8083_v25, %s6379_s17  ;;  %v2018_v18 = vld [vmem:[%s12411_s7 + $0x4a0] sm:$0xff] }
 0x322   :  { %v1463_v39 = vpop.f32.mrf.mxu0 }
 0x326   :  { %v1498_v30 = vpop.f32.mrf.mxu1 }
 0x327   :  { %v8103_v6 = vadd.f32 %v1498_v30, %v1460_v52  ;;  %v1920_v52 = vld [vmem:[%s12411_s7 + $0x190] sm:$0xff] }
 0x328   :  { %v1387_v47 = vpop.f32.mrf.mxu3  ;;  %2069 = vmatpush.msrb.mxu3 %v1920_v52  ;;  %v1956_v30 = vld [vmem:[%s12411_s7 + $0x2b0] sm:$0xff] }
 0x329   :  { %2093 = vmatpush.msra.mxu0 %v1956_v30  ;;  %v1936_v52 = vld [vmem:[%s12411_s7 + $0x210] sm:$0xff] }
 0x32a   :  { %v1466_v36 = vpop.f32.mrf.mxu0 }
 0x32c   :  { %v1422_v60 = vpop.f32.mrf.mxu2 }
 0x32d   :  { %v8087_v31 = vadd.f32 %v1422_v60, %v1384_v42  ;;  %v1878_v42 = vld [vmem:[%s12411_s7 + $0x40] sm:$0xff] }
 0x32e   :  { %v1501_v63 = vpop.f32.mrf.mxu1  ;;  %v1918_v60 = vld [vmem:[%s12411_s7 + $0x180] sm:$0xff]  ;;  %2048 = vmatpush.msra.mxu2 %v1878_v42 }
 0x32f   :  { %1528 = vrot.lane.b32.xlu2 %v8087_v31, %s6379_s17  ;;  %v8131_v38 = vadd.f32 %v1501_v63, %v1463_v39  ;;  %v1988_v39 = vld [vmem:[%s12411_s7 + $0x3b0] sm:$0xff]  ;;  %v1954_v63 = vld [vmem:[%s12411_s7 + $0x2a0] sm:$0xff]  ;;  %2070 = vmatpush.msrb.mxu3 %v1918_v60 }
 0x330   :  { %v1390_v26 = vpop.f32.mrf.mxu3  ;;  %2119 = vmatpush.msra.mxu1 %v1988_v39  ;;  %2094 = vmatpush.msra.mxu0 %v1954_v63  ;;  %v1968_v39 = vld [vmem:[%s12411_s7 + $0x310] sm:$0xff]  ;;  %v1934_v63 = vld [vmem:[%s12411_s7 + $0x200] sm:$0xff] }
 0x331   :  { %v2016_v60 = vld [vmem:[%s12411_s7 + $0x490] sm:$0xff] }
 0x332   :  { %v1469_v54 = vpop.f32.mrf.mxu0 }
 0x334   :  { %v1425_v61 = vpop.f32.mrf.mxu2 }
 0x335   :  { %v8115_v5 = vadd.f32 %v1425_v61, %v1387_v47  ;;  %v1876_v47 = vld [vmem:[%s12411_s7 + $0x30] sm:$0xff] }
 0x336   :  { %v1504_v53 = vpop.f32.mrf.mxu1  ;;  %2049 = vmatpush.msra.mxu2 %v1876_v47  ;;  %v1901_v47 = vld [vmem:[%s12411_s7 + $0xf8] sm:$0xff] }
 0x337   :  { %v8091_v29 = vadd.f32 %v1504_v53, %v1466_v36  ;;  %v1986_v36 = vld [vmem:[%s12411_s7 + $0x3a0] sm:$0xff] }
 0x338   :  { %v1393_v17 = vpop.f32.mrf.mxu3  ;;  %2120 = vmatpush.msra.mxu1 %v1986_v36  ;;  %v1874_v53 = vld [vmem:[%s12411_s7 + $0x20] sm:$0xff] }
 0x339   :  { %12404 = vst [vmem:[#allocation16_spill] sm:$0xff] %v8091_v29  ;;  %1538 = vrot.lane.b32.xlu0 %v8091_v29, %s6379_s17  ;;  %2050 = vmatpush.msra.mxu2 %v1874_v53  ;;  %v1966_v53 = vld [vmem:[%s12411_s7 + $0x300] sm:$0xff] }
 0x33a   :  { %v1472_v33 = vpop.f32.mrf.mxu0 }
 0x33c   :  { %v1428_v11 = vpop.f32.mrf.mxu2 }
 0x33d   :  { %v8095_v57 = vadd.f32 %v1428_v11, %v1390_v26  ;;  %v1984_v11 = vld [vmem:[%s12411_s7 + $0x390] sm:$0xff] }
 0x33e   :  { %v1507_v8 = vpop.f32.mrf.mxu1  ;;  %2121 = vmatpush.msra.mxu1 %v1984_v11 }
 0x33f   :  { %v8097_v62 = vadd.f32 %v1507_v8, %v1469_v54  ;;  %v1952_v54 = vld [vmem:[%s12411_s7 + $0x290] sm:$0xff] }
 0x340   :  { %v1396_v22 = vpop.f32.mrf.mxu3  ;;  %2095 = vmatpush.msra.mxu0 %v1952_v54  ;;  %v1899_v54 = vld [vmem:[%s12411_s7 + $0xe8] sm:$0xff] }
 0x341   :  { %12405 = vst [vmem:[#allocation17_spill] sm:$0xff] %v8097_v62  ;;  %1561 = vrot.lane.b32.xlu1 %v8097_v62, %s6379_s17  ;;  %1536 = vrot.lane.b32.xlu0 %v8095_v57, %s6379_s17 }
 0x342   :  { %v1475_v7 = vpop.f32.mrf.mxu0 }
 0x344   :  { %v1431_v44 = vpop.f32.mrf.mxu2 }
 0x345   :  { %v8107_v41 = vadd.f32 %v1431_v44, %v1393_v17  ;;  %v1916_v44 = vld [vmem:[%s12411_s7 + $0x170] sm:$0xff] }
 0x346   :  { %v1510_v56 = vpop.f32.mrf.mxu1  ;;  %2071 = vmatpush.msrb.mxu3 %v1916_v44 }
 0x347   :  { %v8105_v35 = vadd.f32 %v1510_v56, %v1472_v33  ;;  %12407 = vst [vmem:[#allocation19_spill] sm:$0xff] %v8107_v41  ;;  %v1872_v33 = vld [vmem:[%s12411_s7 + $0x10] sm:$0xff]  ;;  %v1950_v56 = vld [vmem:[%s12411_s7 + $0x280] sm:$0xff] }
 0x348   :  { %v1399_v28 = vpop.f32.mrf.mxu3  ;;  %2051 = vmatpush.msra.mxu2 %v1872_v33  ;;  %2096 = vmatpush.msra.mxu0 %v1950_v56  ;;  %v2014_v33 = vld [vmem:[%s12411_s7 + $0x480] sm:$0xff] }
 0x349   :  { %12406 = vst [vmem:[#allocation18_spill] sm:$0xff] %v8105_v35  ;;  %1565 = vrot.lane.b32.xlu2 %v8105_v35, %s6379_s17  ;;  %1530 = vrot.lane.b32.xlu0 %v8103_v6, %s6379_s17 }
 0x34a   :  { %1559 = vrot.lane.b32.xlu1 %v8107_v41, %s6379_s17 }
 0x34c   :  { %v1434_v9 = vpop.f32.mrf.mxu2 }
 0x34d   :  { %v8117_v32 = vadd.f32 %v1434_v9, %v1396_v22  ;;  %v1982_v9 = vld [vmem:[%s12411_s7 + $0x380] sm:$0xff] }
 0x34e   :  { %v1513_v3 = vpop.f32.mrf.mxu1  ;;  %2122 = vmatpush.msra.mxu1 %v1982_v9 }
 0x34f   :  { %12408 = vst [vmem:[#allocation20_spill] sm:$0xff] %v8117_v32  ;;  %v8125_v37 = vadd.f32 %v1513_v3, %v1475_v7  ;;  %v1870_v3 = vld [vmem:[%s12411_s7] sm:$0xff]  ;;  %v1980_v7 = vld [vmem:[%s12411_s7 + $0x370] sm:$0xff] }
 0x350   :  { %2052 = vmatpush.msra.mxu2 %v1870_v3  ;;  %2123 = vmatpush.msra.mxu1 %v1980_v7  ;;  %v1933_v7 = vld [vmem:[%s12411_s7 + $0x1f8] sm:$0xff] }
 0x351   :  { %1532 = vrot.lane.b32.xlu0 %v8115_v5, %s6379_s17  ;;  %1563 = vrot.lane.b32.xlu2 %v8117_v32, %s6379_s17  ;;  %12410 = vst [vmem:[#allocation22_spill] sm:$0xff] %v8125_v37 }
 0x352   :  { %2141 = vmatpush.msrb.mxu2 %v2028_v43  ;;  %2124 = vmatpush.msra.mxu1 %v1978_v40  ;;  %v1931_v40 = vld [vmem:[%s12411_s7 + $0x1e8] sm:$0xff] }
 0x354   :  { %v1437_v50 = vpop.f32.mrf.mxu2  ;;  %2142 = vmatpush.msrb.mxu2 %v2026_v49  ;;  %2125 = vmatpush.msra.mxu1 %v1976_v21  ;;  %v1893_v21 = vld [vmem:[%s12411_s7 + $0xb8] sm:$0xff] }
 0x355   :  { %v8123_v59 = vadd.f32 %v1437_v50, %v1399_v28  ;;  %v1914_v28 = vld [vmem:[%s12411_s7 + $0x160] sm:$0xff]  ;;  %v1948_v50 = vld [vmem:[%s12411_s7 + $0x270] sm:$0xff] }
 0x356   :  { %2072 = vmatpush.msrb.mxu3 %v1914_v28  ;;  %2097 = vmatpush.msra.mxu0 %v1948_v50  ;;  %v2012_v50 = vld [vmem:[%s12411_s7 + $0x470] sm:$0xff] }
 0x357   :  { %12409 = vst [vmem:[#allocation21_spill] sm:$0xff] %v8123_v59  ;;  %1567 = vrot.lane.b32.xlu1 %v8123_v59, %s6379_s17  ;;  %2143 = vmatpush.msrb.mxu2 %v2024_v27  ;;  %v1961_v27 = vld [vmem:[%s12411_s7 + $0x2d8] sm:$0xff] }
 0x358   :  { %2073 = vmatpush.msrb.mxu3 %v1912_v0  ;;  %2098 = vmatpush.msra.mxu0 %v1946_v20  ;;  %v2010_v20 = vld [vmem:[%s12411_s7 + $0x460] sm:$0xff] }
 0x359   :  { %1569 = vrot.lane.b32.xlu2 %v8125_v37, %s6379_s17  ;;  %2126 = vmatpush.msra.mxu1 %v1974_v55  ;;  %v1927_v55 = vld [vmem:[%s12411_s7 + $0x1c8] sm:$0xff] }
 0x35a   :  { %2074 = vmatpush.msrb.mxu3 %v1910_v51  ;;  %2099 = vmatpush.msra.mxu0 %v1944_v13  ;;  %v1963_v51 = vld [vmem:[%s12411_s7 + $0x2e8] sm:$0xff] }
 0x35b   :  { %2144 = vmatpush.msrb.mxu2 %v2022_v23  ;;  %2127 = vmatpush.msra.mxu1 %v1972_v34  ;;  %v1959_v34 = vld [vmem:[%s12411_s7 + $0x2c8] sm:$0xff] }
 0x35c   :  { %2075 = vmatpush.msrb.mxu3 %v1908_v46  ;;  %2100 = vmatpush.msra.mxu0 %v1942_v48  ;;  %v1929_v46 = vld [vmem:[%s12411_s7 + $0x1d8] sm:$0xff] }
 0x35d   :  { %2145 = vmatpush.msrb.mxu2 %v2020_v10  ;;  %2128 = vmatpush.msra.mxu1 %v1970_v58  ;;  %v1925_v10 = vld [vmem:[%s12411_s7 + $0x1b8] sm:$0xff] }
 0x35e   :  { %2076 = vmatpush.msrb.mxu3 %v1906_v19  ;;  %2101 = vmatpush.msra.mxu0 %v1940_v14  ;;  %v1891_v14 = vld [vmem:[%s12411_s7 + $0xa8] sm:$0xff] }
 0x35f   :  { %1534 = vrot.lane.b32.xlu1 %v8131_v38, %s6379_s17  ;;  %2146 = vmatpush.msrb.mxu2 %v2018_v18 }
 0x360   :  { %2077 = vmatpush.msrb.mxu3 %v1904_v1  ;;  %2102 = vmatpush.msra.mxu0 %v1938_v45  ;;  %v2006_v1 = vld [vmem:[%s12411_s7 + $0x440] sm:$0xff] }
 0x361   :  { %2129 = vmatpush.msra.mxu1 %v1968_v39  ;;  %2147 = vmatpush.msrb.mxu2 %v2016_v60  ;;  %v2004_v39 = vld [vmem:[%s12411_s7 + $0x430] sm:$0xff] }
 0x362   :  { %2078 = vmatpush.msrb.mxu3 %v1902_v16  ;;  %2103 = vmatpush.msra.mxu0 %v1936_v52  ;;  %v1957_v52 = vld [vmem:[%s12411_s7 + $0x2b8] sm:$0xff] }
 0x363   :  { %2130 = vmatpush.msra.mxu1 %v1966_v53  ;;  %2148 = vmatpush.msrb.mxu2 %v2014_v33  ;;  %v1955_v53 = vld [vmem:[%s12411_s7 + $0x2a8] sm:$0xff] }
 0x364   :  { %2167 = vmatpush.msra.mxu3 %v1901_v47  ;;  %2104 = vmatpush.msra.mxu0 %v1934_v63  ;;  %v1923_v47 = vld [vmem:[%s12411_s7 + $0x1a8] sm:$0xff] }
 0x365   :  { %2149 = vmatpush.msrb.mxu2 %v2012_v50 }
 0x366   :  { %2168 = vmatpush.msra.mxu3 %v1899_v54  ;;  %2193 = vmatpush.msrb.mxu0 %v1933_v7  ;;  %v2000_v7 = vld [vmem:[%s12411_s7 + $0x410] sm:$0xff] }
 0x367   :  { %2150 = vmatpush.msrb.mxu2 %v2010_v20 }
 0x368   :  { %2194 = vmatpush.msrb.mxu0 %v1931_v40  ;;  %v1998_v40 = vld [vmem:[%s12411_s7 + $0x400] sm:$0xff] }
 0x36a   :  { %2195 = vmatpush.msrb.mxu0 %v1929_v46 }
 0x36c   :  { %2196 = vmatpush.msrb.mxu0 %v1927_v55  ;;  %v1995_v55 = vld [vmem:[%s12411_s7 + $0x3e8] sm:$0xff] }
 0x36e   :  { %2197 = vmatpush.msrb.mxu0 %v1925_v10  ;;  %v1993_v10 = vld [vmem:[%s12411_s7 + $0x3d8] sm:$0xff] }
 0x370   :  { %2198 = vmatpush.msrb.mxu0 %v1923_v47  ;;  %v1913_v47 = vld [vmem:[%s12411_s7 + $0x158] sm:$0xff] }
 0x389   :  { %v8236_v26 = vpop.permute.xlu2 %1528 }
 0x38c   :  { %v8247_v8 = vpop.permute.xlu1 %1526 }
 0x392   :  { %v8234_v61 = vpop.permute.xlu0 %1524 }
 0x393   :  { %v1541_v9 = vsel %vm12340_vm0, %v8234_v61, %v8247_v8  ;;  %v1895_v61 = vld [vmem:[%s12411_s7 + $0xc8] sm:$0xff] }
 0x394   :  { %v1549_v49 = vmax.f32 %v8083_v25, %v1541_v9  ;;  %v1953_v9 = vld [vmem:[%s12411_s7 + $0x298] sm:$0xff] }
 0x3a3   :  { %v1566_v22 = vpop.permute.xlu2 %1565 }
 0x3ab   :  { %v8249_v17 = vpop.permute.xlu0 %1538  ;;  %v1564_v12 = vpop.permute.xlu2 %1563 }
 0x3ac   :  { %v1572_v42 = vsel %vm12340_vm0, %v1564_v12, %v1566_v22  ;;  %v1897_v22 = vld [vmem:[%s12411_s7 + $0xd8] sm:$0xff] }
 0x3ad   :  { %v1578_v11 = vmax.f32 %v8117_v32, %v1572_v42  ;;  %2169 = vmatpush.msra.mxu3 %v1897_v22  ;;  %v1889_v12 = vld [vmem:[%s12411_s7 + $0x98] sm:$0xff] }
 0x3ae   :  { %v1885_v22 = vld [vmem:[%s12411_s7 + $0x78] sm:$0xff] }
 0x3af   :  { %v8394_v8 = vrot.slane %v1578_v11, 4  ;;  %2170 = vmatpush.msra.mxu3 %v1895_v61  ;;  %v2002_v11 = vld [vmem:[%s12411_s7 + $0x420] sm:$0xff]  ;;  %v1883_v61 = vld [vmem:[%s12411_s7 + $0x68] sm:$0xff] }
 0x3b1   :  { %2171 = vmatpush.msra.mxu3 %v1893_v21  ;;  %v1997_v21 = vld [vmem:[%s12411_s7 + $0x3f8] sm:$0xff] }
 0x3b3   :  { %v1562_v2 = vpop.permute.xlu1 %1561  ;;  %v1537_v15 = vpop.permute.xlu0 %1536  ;;  %2172 = vmatpush.msra.mxu3 %v1891_v14  ;;  %v1915_v14 = vld [vmem:[%s12411_s7 + $0x168] sm:$0xff] }
 0x3b4   :  { %v1544_v30 = vsel %vm12340_vm0, %v1537_v15, %v8249_v17  ;;  %v2008_v15 = vld [vmem:[%s12411_s7 + $0x450] sm:$0xff]  ;;  %v1570_v33 = vpop.permute.xlu2 %1569 }
 0x3b5   :  { %v8367_v17 = vmax.f32 %v8095_v57, %v1544_v30  ;;  %2151 = vmatpush.msrb.mxu2 %v2008_v15  ;;  %2173 = vmatpush.msra.mxu3 %v1889_v12 }
 0x3b7   :  { %v1584_v0 = vrot.slane %v8367_v17, 4  ;;  %2152 = vmatpush.msrb.mxu2 %v2006_v1  ;;  %v1877_v1 = vld [vmem:[%s12411_s7 + $0x38] sm:$0xff] }
 0x3b9   :  { %2153 = vmatpush.msrb.mxu2 %v2004_v39  ;;  %v1875_v39 = vld [vmem:[%s12411_s7 + $0x28] sm:$0xff] }
 0x3bb   :  { %v1531_v36 = vpop.permute.xlu0 %1530  ;;  %2154 = vmatpush.msrb.mxu2 %v2002_v11 }
 0x3bc   :  { %v1560_v44 = vpop.permute.xlu1 %1559  ;;  %v1542_v28 = vsel %vm12340_vm0, %v8236_v26, %v1531_v36  ;;  %v1965_v26 = vld [vmem:[%s12411_s7 + $0x2f8] sm:$0xff]  ;;  %v1887_v36 = vld [vmem:[%s12411_s7 + $0x88] sm:$0xff] }
 0x3bd   :  { %v1571_v56 = vsel %vm12340_vm0, %v1560_v44, %v1562_v2  ;;  %2219 = vmatpush.msrb.mxu1 %v1965_v26  ;;  %v1550_v13 = vmax.f32 %v8087_v31, %v1542_v28  ;;  %v1921_v44 = vld [vmem:[%s12411_s7 + $0x198] sm:$0xff]  ;;  %2174 = vmatpush.msra.mxu3 %v1887_v36 }
 0x3be   :  { %v1577_v3 = vmax.f32 %v8107_v41, %v1571_v56  ;;  %2199 = vmatpush.msrb.mxu0 %v1921_v44  ;;  %2155 = vmatpush.msrb.mxu2 %v2000_v7  ;;  %v1945_v36 = vld [vmem:[%s12411_s7 + $0x258] sm:$0xff]  ;;  %v1987_v7 = vld [vmem:[%s12411_s7 + $0x3a8] sm:$0xff] }
 0x3bf   :  { %2220 = vmatpush.msrb.mxu1 %v1963_v51  ;;  %2175 = vmatpush.msra.mxu3 %v1885_v22  ;;  %v1881_v51 = vld [vmem:[%s12411_s7 + $0x58] sm:$0xff]  ;;  %v1943_v22 = vld [vmem:[%s12411_s7 + $0x248] sm:$0xff] }
 0x3c0   :  { %v1585_v43 = vrot.slane %v1577_v3, 4  ;;  %v1919_v3 = vld [vmem:[%s12411_s7 + $0x188] sm:$0xff]  ;;  %2156 = vmatpush.msrb.mxu2 %v1998_v40 }
 0x3c1   :  { %2221 = vmatpush.msrb.mxu1 %v1961_v27  ;;  %2200 = vmatpush.msrb.mxu0 %v1919_v3  ;;  %v1879_v27 = vld [vmem:[%s12411_s7 + $0x48] sm:$0xff] }
 0x3c2   :  { %v1586_v48 = vsel %vm12336_vm1, %v1584_v0, %v1585_v43  ;;  %v1588_v2 = vsel %vm12336_vm1, %v1585_v43, %v8394_v8  ;;  %v1951_v0 = vld [vmem:[%s12411_s7 + $0x288] sm:$0xff]  ;;  %v1917_v43 = vld [vmem:[%s12411_s7 + $0x178] sm:$0xff]  ;;  %2176 = vmatpush.msra.mxu3 %v1883_v61 }
 0x3c3   :  { %v8426_v19 = vmax.f32 %v1549_v49, %v1586_v48  ;;  %v8428_v23 = vmax.f32 %v1550_v13, %v1588_v2  ;;  %2222 = vmatpush.msrb.mxu1 %v1959_v34  ;;  %2201 = vmatpush.msrb.mxu0 %v1917_v43  ;;  %v1533_v48 = vpop.permute.xlu0 %1532  ;;  %v1985_v43 = vld [vmem:[%s12411_s7 + $0x398] sm:$0xff]  ;;  %v1939_v40 = vld [vmem:[%s12411_s7 + $0x228] sm:$0xff] }
 0x3c4   :  { %2177 = vmatpush.msra.mxu3 %v1881_v51  ;;  %v2027_v51 = vld [vmem:[%s12411_s7 + $0x4e8] sm:$0xff] }
 0x3c5   :  { %v8446_v45 = vrot.slane %v8426_v19, 4  ;;  %v1656_v58 = vrot.slane %v8428_v23, 4  ;;  %1820 = vst.msk [vmem:[#allocation3] sm:$0xff] %vm12334_vm6, %v8426_v19  ;;  %v1824_v16 = vrot.slane %v8426_v19, 2  ;;  %v1825_v18 = vrot.slane %v8428_v23, 2  ;;  %2223 = vmatpush.msrb.mxu1 %v1957_v52  ;;  %2202 = vmatpush.msrb.mxu0 %v1915_v14  ;;  %v1981_v14 = vld [vmem:[%s12411_s7 + $0x378] sm:$0xff] }
 0x3c6   :  { %1821 = vst.msk [vmem:[#allocation3 + $0x28] sm:$0xff] %vm12334_vm6, %v8428_v23  ;;  %v1839_v42 = vrot.slane %v8426_v19, 6  ;;  %v1840_v30 = vrot.slane %v8428_v23, 6  ;;  %2178 = vmatpush.msra.mxu3 %v1879_v27  ;;  %v1983_v27 = vld [vmem:[%s12411_s7 + $0x388] sm:$0xff] }
 0x3c7   :  { %12412 = vst [vmem:[#allocation23_spill] sm:$0xff] %v8446_v45  ;;  %v8470_v60 = vsel %vm12336_vm1, %v8446_v45, %v1656_v58  ;;  %v1826_v63 = vsel %vm12349_vm2, %v1824_v16, %v1825_v18  ;;  %2224 = vmatpush.msrb.mxu1 %v1955_v53  ;;  %v1947_v16 = vld [vmem:[%s12411_s7 + $0x268] sm:$0xff]  ;;  %v1873_v53 = vld [vmem:[%s12411_s7 + $0x18] sm:$0xff]  ;;  %2203 = vmatpush.msrb.mxu0 %v1913_v47 }
 0x3c8   :  { %1852 = vst.msk [vmem:[#allocation3 + $0x20] sm:$0xff] %vm12334_vm6, %v8428_v23  ;;  %v1841_v54 = vsel %vm12348_vm3, %v1839_v42, %v1840_v30  ;;  %2179 = vmatpush.msra.mxu3 %v1877_v1  ;;  %v1977_v47 = vld [vmem:[%s12411_s7 + $0x358] sm:$0xff] }
 0x3c9   :  { %1832 = vst.msk [vmem:[#allocation3 + $0x8] sm:$0xff] %vm12334_vm6, %v1826_v63  ;;  %v1568_v56 = vpop.permute.xlu1 %1567  ;;  %2225 = vmatpush.msrb.mxu1 %v1953_v9 }
 0x3ca   :  { %1836 = vst.msk [vmem:[#allocation3 + $0x10] sm:$0xff] %vm12334_vm6, %v8470_v60  ;;  %v1573_v28 = vsel %vm12340_vm0, %v1568_v56, %v1570_v33  ;;  %2180 = vmatpush.msra.mxu3 %v1875_v39  ;;  %v1989_v33 = vld [vmem:[%s12411_s7 + $0x3b8] sm:$0xff]  ;;  %v1911_v56 = vld [vmem:[%s12411_s7 + $0x148] sm:$0xff] }
 0x3cb   :  { %1849 = vst.msk [vmem:[#allocation3 + $0x18] sm:$0xff] %vm12334_vm6, %v1841_v54  ;;  %v1579_v50 = vmax.f32 %v8123_v59, %v1573_v28  ;;  %2226 = vmatpush.msrb.mxu1 %v1951_v0  ;;  %2204 = vmatpush.msrb.mxu0 %v1911_v56  ;;  %v2021_v39 = vld [vmem:[%s12411_s7 + $0x4b8] sm:$0xff] }
 0x3cc   :  { %v8513_v26 = vld [vmem:[#allocation3] sm:$0xff]  ;;  %2181 = vmatpush.msra.mxu3 %v1873_v53  ;;  %v1975_v53 = vld [vmem:[%s12411_s7 + $0x348] sm:$0xff] }
 0x3cd   :  { %v1589_v20 = vrot.slane %v1579_v50, 4  ;;  %2053 = vmatmul.f32.vlgmr.msra.gmra.mxu2 %v8513_v26  ;;  %v8570_v42 = vld [vmem:[#allocation3 + $0x28] sm:$0xff] }
 0x3ce   :  { %2245 = vmatpush.msra.mxu2 %v1997_v21  ;;  %v1871_v50 = vld [vmem:[%s12411_s7 + $0x8] sm:$0xff] }
 0x3cf   :  { %v8529_v49 = vmax.f32 %v8367_v17, %v1589_v20  ;;  %v1949_v17 = vld [vmem:[%s12411_s7 + $0x278] sm:$0xff]  ;;  %v1590_v52 = vsel %vm12336_vm1, %v8394_v8, %v1589_v20  ;;  %v1991_v8 = vld [vmem:[%s12411_s7 + $0x3c8] sm:$0xff]  ;;  %2182 = vmatpush.msra.mxu3 %v1871_v50 }
 0x3d0   :  { %v8531_v13 = vld [vmem:[#allocation3 + $0x8] sm:$0xff]  ;;  %2227 = vmatpush.msrb.mxu1 %v1949_v17  ;;  %2246 = vmatpush.msra.mxu2 %v1995_v55  ;;  %v1905_v17 = vld [vmem:[%s12411_s7 + $0x118] sm:$0xff] }
 0x3d1   :  { %2079 = vmatmul.f32.vlgmr.msrb.gmra.mxu3 %v8531_v13  ;;  %v8537_v46 = vld [vmem:[#allocation3 + $0x10] sm:$0xff]  ;;  %1854 = vst.msk [vmem:[#allocation3 + $0x70] sm:$0xf] %vm12333_vm7, %v8529_v49  ;;  %v1535_v15 = vpop.permute.xlu1 %1534  ;;  %v1844_v9 = vrot.slane %v8529_v49, 6  ;;  %v1907_v20 = vld [vmem:[%s12411_s7 + $0x128] sm:$0xff]  ;;  %v2013_v50 = vld [vmem:[%s12411_s7 + $0x478] sm:$0xff] }
 0x3d2   :  { %2105 = vmatmul.f32.vlgmr.msra.gmra.mxu0 %v8537_v46  ;;  %v8548_v2 = vld [vmem:[#allocation3 + $0x18] sm:$0xff]  ;;  %v1543_v34 = vsel %vm12340_vm0, %v1533_v48, %v1535_v15  ;;  %2247 = vmatpush.msra.mxu2 %v1993_v10  ;;  %v1935_v10 = vld [vmem:[%s12411_s7 + $0x208] sm:$0xff] }
 0x3d3   :  { %2131 = vmatmul.f32.vlgmr.msra.gmra.mxu1 %v8548_v2  ;;  %v1551_v12 = vmax.f32 %v8115_v5, %v1543_v34  ;;  %v1937_v48 = vld [vmem:[%s12411_s7 + $0x218] sm:$0xff]  ;;  %v1903_v34 = vld [vmem:[%s12411_s7 + $0x108] sm:$0xff] }
 0x3d4   :  { %2228 = vmatpush.msrb.mxu1 %v1947_v16  ;;  %2248 = vmatpush.msra.mxu2 %v1991_v8  ;;  %v2025_v15 = vld [vmem:[%s12411_s7 + $0x4d8] sm:$0xff]  ;;  %v1979_v16 = vld [vmem:[%s12411_s7 + $0x368] sm:$0xff]  ;;  %v1859_v8 = vld [vmem:[#allocation3 + $0x20] sm:$0xff] }
 0x3d5   :  { %v8578_v63 = vmax.f32 %v1551_v12, %v1590_v52  ;;  %2056 = vmatmul.f32.gmra.mxu2 %v8570_v42  ;;  %v2023_v12 = vld [vmem:[%s12411_s7 + $0x4c8] sm:$0xff] }
 0x3d6   :  { %2229 = vmatpush.msrb.mxu1 %v1945_v36  ;;  %2249 = vmatpush.msra.mxu2 %v1989_v33  ;;  %v2019_v36 = vld [vmem:[%s12411_s7 + $0x4a8] sm:$0xff]  ;;  %v1973_v33 = vld [vmem:[%s12411_s7 + $0x338] sm:$0xff] }
 0x3d7   :  { %v8591_v54 = vrot.slane %v8578_v63, 4  ;;  %1823 = vst.msk [vmem:[#allocation3 + $0x50] sm:$0xf] %vm12333_vm7, %v8578_v63  ;;  %v1827_v11 = vrot.slane %v8578_v63, 2  ;;  %v1842_v44 = vrot.slane %v8578_v63, 6 }
 0x3d8   :  { %1853 = vst.msk [vmem:[#allocation3 + $0x48] sm:$0xff] %vm12334_vm6, %v8578_v63  ;;  %2230 = vmatpush.msrb.mxu1 %v1943_v22  ;;  %2250 = vmatpush.msra.mxu2 %v1987_v7  ;;  %v2015_v22 = vld [vmem:[%s12411_s7 + $0x488] sm:$0xff]  ;;  %v1969_v7 = vld [vmem:[%s12411_s7 + $0x318] sm:$0xff] }
 0x3d9   :  { %v8613_v28 = vsel %vm12336_vm1, %v1656_v58, %v8591_v54  ;;  %v1828_v3 = vsel %vm12349_vm2, %v1825_v18, %v1827_v11  ;;  %1834 = vst.msk [vmem:[#allocation3 + $0x58] sm:$0xf] %vm12333_vm7, %v1827_v11  ;;  %v1843_v61 = vsel %vm12348_vm3, %v1840_v30, %v1842_v44  ;;  %v1909_v58 = vld [vmem:[%s12411_s7 + $0x138] sm:$0xff]  ;;  %v1845_v0 = vsel %vm12348_vm3, %v1842_v44, %v1844_v9  ;;  %v1971_v9 = vld [vmem:[%s12411_s7 + $0x328] sm:$0xff] }
 0x3da   :  { %1833 = vst.msk [vmem:[#allocation3 + $0x30] sm:$0xff] %vm12334_vm6, %v1828_v3  ;;  %v1941_v18 = vld [vmem:[%s12411_s7 + $0x238] sm:$0xff]  ;;  %2205 = vmatpush.msrb.mxu0 %v1909_v58  ;;  %2251 = vmatpush.msra.mxu2 %v1985_v43  ;;  %v2011_v58 = vld [vmem:[%s12411_s7 + $0x468] sm:$0xff] }
 0x3db   :  { %1837 = vst.msk [vmem:[#allocation3 + $0x38] sm:$0xff] %vm12334_vm6, %v8613_v28  ;;  %v2029_v30 = vld [vmem:[%s12411_s7 + $0x4f8] sm:$0xff]  ;;  %2231 = vmatpush.msrb.mxu1 %v1941_v18  ;;  %v1967_v18 = vld [vmem:[%s12411_s7 + $0x308] sm:$0xff] }
 0x3dc   :  { %1838 = vst.msk [vmem:[#allocation3 + $0x60] sm:$0xf] %vm12333_vm7, %v8591_v54  ;;  %2271 = vmatpush.msrb.mxu3 %v2029_v30  ;;  %2206 = vmatpush.msrb.mxu0 %v1907_v20  ;;  %v2017_v11 = vld [vmem:[%s12411_s7 + $0x498] sm:$0xff]  ;;  %v2007_v30 = vld [vmem:[%s12411_s7 + $0x448] sm:$0xff]  ;;  %v1869_v20 = vld [vmem:[#allocation3 + $0x70] sm:$0xf] }
 0x3dd   :  { %1850 = vst.msk [vmem:[#allocation3 + $0x40] sm:$0xff] %vm12334_vm6, %v1843_v61  ;;  %2232 = vmatpush.msrb.mxu1 %v1939_v40  ;;  %2252 = vmatpush.msra.mxu2 %v1983_v27  ;;  %v2005_v43 = vld [vmem:[%s12411_s7 + $0x438] sm:$0xff]  ;;  %v2382_v27 = vld [vmem:[%s12413_s4 + $0xe8] sm:$0xff]  ;;  %vm12367_vm6 = vmmov 1  }
 0x3de   :  { %1851 = vst.msk [vmem:[#allocation3 + $0x68] sm:$0xf] %vm12333_vm7, %v1845_v0  ;;  %v8657_v21 = vld [vmem:[#allocation3 + $0x50] sm:$0xf]  ;;  %2272 = vmatpush.msrb.mxu3 %v2027_v51  ;;  %2207 = vmatpush.msrb.mxu0 %v1905_v17  ;;  %v2009_v0 = vld [vmem:[%s12411_s7 + $0x458] sm:$0xff] }
 0x3df   :  { %2059 = vmatmul.f32.gmra.mxu2 %v8657_v21  ;;  %2233 = vmatpush.msrb.mxu1 %v1937_v48  ;;  %v1864_v61 = vld [vmem:[#allocation3 + $0x48] sm:$0xff]  ;;  %v2001_v40 = vld [vmem:[%s12411_s7 + $0x418] sm:$0xff]  ;;  %v2379_v17 = vld [vmem:[%s12413_s4 + $0xd0] sm:$0xff] }
 0x3e0   :  { %2273 = vmatpush.msrb.mxu3 %v2025_v15  ;;  %2253 = vmatpush.msra.mxu2 %v1981_v14  ;;  %v1866_v44 = vld [vmem:[#allocation3 + $0x58] sm:$0xf]  ;;  %v2377_v14 = vld [vmem:[%s12413_s4 + $0xc0] sm:$0xff] }
 0x3e1   :  { %v8672_v55 = vld [vmem:[#allocation3 + $0x30] sm:$0xff]  ;;  %2208 = vmatpush.msrb.mxu0 %v1903_v34  ;;  %2234 = vmatpush.msrb.mxu1 %v1935_v10  ;;  %v2384_v51 = vld [vmem:[%s12413_s4 + $0xf8] sm:$0xff]  ;;  %v2378_v34 = vld [vmem:[%s12413_s4 + $0xc8] sm:$0xff] }
 0x3e2   :  { %2082 = vmatmul.f32.gmra.mxu3 %v8672_v55  ;;  %v8681_v1 = vld [vmem:[#allocation3 + $0x38] sm:$0xff]  ;;  %2254 = vmatpush.msra.mxu2 %v1979_v16 }
 0x3e3   :  { %2108 = vmatmul.f32.gmra.mxu0 %v8681_v1  ;;  %2274 = vmatpush.msrb.mxu3 %v2023_v12  ;;  %v1867_v56 = vld [vmem:[#allocation3 + $0x60] sm:$0xf]  ;;  %v2380_v48 = vld [vmem:[%s12413_s4 + $0xd8] sm:$0xff] }
 0x3e4   :  { %v8693_v52 = vld [vmem:[#allocation3 + $0x40] sm:$0xff]  ;;  %2255 = vmatpush.msra.mxu2 %v1977_v47 }
 0x3e5   :  { %2134 = vmatmul.f32.gmra.mxu1 %v8693_v52  ;;  %2275 = vmatpush.msrb.mxu3 %v2021_v39  ;;  %v1868_v3 = vld [vmem:[#allocation3 + $0x68] sm:$0xf] }
 0x3e6   :  { %2256 = vmatpush.msra.mxu2 %v1975_v53  ;;  %v2376_v53 = vld [vmem:[%s12413_s4 + $0xb8] sm:$0xff] }
 0x3e7   :  { %2157 = vmatmul.f32.vlgmr.msrb.gmra.mxu2 %v1859_v8  ;;  %2276 = vmatpush.msrb.mxu3 %v2019_v36  ;;  %v2375_v36 = vld [vmem:[%s12413_s4 + $0xb0] sm:$0xff] }
 0x3e8   :  { %2257 = vmatpush.msra.mxu2 %v1973_v33 }
 0x3e9   :  { %2277 = vmatpush.msrb.mxu3 %v2017_v11  ;;  %v2373_v11 = vld [vmem:[%s12413_s4 + $0xa0] sm:$0xff] }
 0x3ea   :  { %2085 = vmatmul.f32.gmra.mxu3 %v1866_v44  ;;  %2258 = vmatpush.msra.mxu2 %v1971_v9  ;;  %v2371_v9 = vld [vmem:[%s12413_s4 + $0x90] sm:$0xff] }
 0x3eb   :  { %2111 = vmatmul.f32.gmra.mxu0 %v1867_v56  ;;  %2278 = vmatpush.msrb.mxu3 %v2015_v22 }
 0x3ec   :  { %2259 = vmatpush.msra.mxu2 %v1969_v7  ;;  %v2369_v7 = vld [vmem:[%s12413_s4 + $0x80] sm:$0xff] }
 0x3ed   :  { %2137 = vmatmul.f32.gmra.mxu1 %v1868_v3  ;;  %2279 = vmatpush.msrb.mxu3 %v2013_v50 }
 0x3ee   :  { %2260 = vmatpush.msra.mxu2 %v1967_v18 }
 0x3ef   :  { %2160 = vmatmul.f32.gmra.mxu2 %v1864_v61  ;;  %2280 = vmatpush.msrb.mxu3 %v2011_v58 }
 0x3f0   :  { %2436 = vmatpush.msrb.mxu2 %v2384_v51 }
 0x3f1   :  { %2281 = vmatpush.msrb.mxu3 %v2009_v0 }
 0x3f2   :  { %2183 = vmatmul.f32.vlgmr.msra.gmra.mxu3 %v8513_v26  ;;  %v2003_v26 = vld [vmem:[%s12411_s7 + $0x428] sm:$0xff]  ;;  %2437 = vmatpush.msrb.mxu2 %v2382_v27 }
 0x3f3   :  { %2209 = vmatmul.f32.vlgmr.msrb.gmra.mxu0 %v8531_v13  ;;  %2282 = vmatpush.msrb.mxu3 %v2007_v30  ;;  %v1999_v13 = vld [vmem:[%s12411_s7 + $0x408] sm:$0xff]  ;;  %s12414_s7 = sld [smem:[#allocation41_spill]]  ;;  %v2367_v30 = vld [vmem:[%s12413_s4 + $0x70] sm:$0xff] }
 0x3f4   :  { %2438 = vmatpush.msrb.mxu2 %v2380_v48 }
 0x3f5   :  { %2235 = vmatmul.f32.vlgmr.msrb.gmra.mxu1 %v8537_v46  ;;  %2283 = vmatpush.msrb.mxu3 %v2005_v43  ;;  %v2368_v43 = vld [vmem:[%s12413_s4 + $0x78] sm:$0xff] }
 0x3f6   :  { %2439 = vmatpush.msrb.mxu2 %v2378_v34 }
 0x3f7   :  { %2163 = vmatmul.f32.gmra.mxu2 %v1869_v20  ;;  %2284 = vmatpush.msrb.mxu3 %v2003_v26 }
 0x3f8   :  { %2440 = vmatpush.msrb.mxu2 %v2376_v53 }
 0x3f9   :  { %2285 = vmatpush.msrb.mxu3 %v2001_v40  ;;  %v8780_v15 = vld [vmem:[%s12414_s7] sm:$0x77] }
 0x3fa   :  { %2186 = vmatmul.f32.gmra.mxu3 %v8570_v42  ;;  %v2383_v42 = vld [vmem:[%s12413_s4 + $0xf0] sm:$0xff]  ;;  %v2365_v40 = vld [vmem:[%s12413_s4 + $0x60] sm:$0xff] }
 0x3fb   :  { %2212 = vmatmul.f32.gmra.mxu0 %v8672_v55  ;;  %2286 = vmatpush.msrb.mxu3 %v1999_v13  ;;  %v2366_v13 = vld [vmem:[%s12413_s4 + $0x68] sm:$0xff] }
 0x3fc   :  { %2396 = vmatpush.msra.mxu0 %v2383_v42 }
 0x3fd   :  { %2238 = vmatmul.f32.gmra.mxu1 %v8681_v1  ;;  %v2031_v1 = vperm.slane %v8780_v15, 0 }
 0x3ff   :  { %2261 = vmatmul.f32.vlgmr.msra.gmra.mxu2 %v8548_v2  ;;  %v2381_v2 = vld [vmem:[%s12413_s4 + $0xe0] sm:$0xff]  ;;  %v2035_v16 = vperm.slane %v2031_v1, 0 }
 0x400   :  { %2397 = vmatpush.msra.mxu0 %v2381_v2  ;;  %v2363_v2 = vld [vmem:[%s12413_s4 + $0x50] sm:$0xff] }
 0x402   :  { %2189 = vmatmul.f32.gmra.mxu3 %v8657_v21  ;;  %2398 = vmatpush.msra.mxu0 %v2379_v17 }
 0x403   :  { %2215 = vmatmul.f32.gmra.mxu0 %v1866_v44  ;;  %v2374_v44 = vld [vmem:[%s12413_s4 + $0xa8] sm:$0xff] }
 0x404   :  { %2399 = vmatpush.msra.mxu0 %v2377_v14  ;;  %2441 = vmatpush.msrb.mxu2 %v2374_v44  ;;  %v2362_v14 = vld [vmem:[%s12413_s4 + $0x48] sm:$0xff]  ;;  %v2355_v44 = vld [vmem:[%s12413_s4 + $0x10] sm:$0xff] }
 0x405   :  { %2241 = vmatmul.f32.gmra.mxu1 %v1867_v56 }
 0x406   :  { %2400 = vmatpush.msra.mxu0 %v2375_v36 }
 0x407   :  { %2264 = vmatmul.f32.gmra.mxu2 %v8693_v52 }
 0x408   :  { %2401 = vmatpush.msra.mxu0 %v2373_v11 }
 0x40a   :  { %2287 = vmatmul.f32.vlgmr.msrb.gmra.mxu3 %v1859_v8  ;;  %2402 = vmatpush.msra.mxu0 %v2371_v9  ;;  %v2353_v9 = vld [vmem:[%s12413_s4] sm:$0xff] }
 0x40c   :  { %2403 = vmatpush.msra.mxu0 %v2369_v7 }
 0x40e   :  { %2404 = vmatpush.msra.mxu0 %v2367_v30 }
 0x40f   :  { %2267 = vmatmul.f32.gmra.mxu2 %v1868_v3  ;;  %v2372_v3 = vld [vmem:[%s12413_s4 + $0x98] sm:$0xff] }
 0x410   :  { %2442 = vmatpush.msrb.mxu2 %v2372_v3  ;;  %2405 = vmatpush.msra.mxu0 %v2365_v40  ;;  %v2354_v3 = vld [vmem:[%s12413_s4 + $0x8] sm:$0xff] }
 0x412   :  { %2290 = vmatmul.f32.gmra.mxu3 %v1864_v61  ;;  %v2370_v61 = vld [vmem:[%s12413_s4 + $0x88] sm:$0xff]  ;;  %2406 = vmatpush.msra.mxu0 %v2363_v2 }
 0x413   :  { %2443 = vmatpush.msrb.mxu2 %v2370_v61  ;;  %v2391_v61 = vld [vmem:[%s12413_s4 + $0x130] sm:$0xff] }
 0x414   :  { %2428 = vmatpush.msra.mxu1 %v2391_v61  ;;  %v2385_v61 = vld [vmem:[%s12413_s4 + $0x100] sm:$0xff] }
 0x415   :  { %2444 = vmatpush.msrb.mxu2 %v2368_v43 }
 0x417   :  { %2445 = vmatpush.msrb.mxu2 %v2366_v13  ;;  %v2032_v13 = vperm.slane %v8780_v15, 4 }
 0x41a   :  { %2293 = vmatmul.f32.gmra.mxu3 %v1869_v20 }
 0x44f   :  { %v2106_v12 = vpop.f32.mrf.mxu0 }
 0x450   :  { %v2054_v46 = vpop.f32.mrf.mxu2  ;;  %v2132_v39 = vpop.f32.mrf.mxu1 }
 0x451   :  { %v2055_v47 = vadd.f32 %v2054_v46, %v2035_v16 }
 0x454   :  { %v2080_v55 = vpop.f32.mrf.mxu3 }
 0x455   :  { %v2081_v50 = vadd.f32 %v2080_v55, %v2055_v47  ;;  %v2361_v55 = vld [vmem:[%s12413_s4 + $0x40] sm:$0xff] }
 0x456   :  { %2407 = vmatpush.msra.mxu0 %v2361_v55  ;;  %v2357_v47 = vld [vmem:[%s12413_s4 + $0x20] sm:$0xff] }
 0x457   :  { %v2107_v26 = vadd.f32 %v2106_v12, %v2081_v50 }
 0x458   :  { %v2057_v21 = vpop.f32.mrf.mxu2 }
 0x459   :  { %v2058_v8 = vadd.f32 %v2057_v21, %v2035_v16  ;;  %v2364_v21 = vld [vmem:[%s12413_s4 + $0x58] sm:$0xff]  ;;  %v2133_v17 = vadd.f32 %v2132_v39, %v2107_v26 }
 0x45a   :  { %2446 = vmatpush.msrb.mxu2 %v2364_v21 }
 0x45c   :  { %2447 = vmatpush.msrb.mxu2 %v2362_v14 }
 0x460   :  { %v2109_v33 = vpop.f32.mrf.mxu0 }
 0x462   :  { %v2060_v10 = vpop.f32.mrf.mxu2  ;;  %v2135_v18 = vpop.f32.mrf.mxu1 }
 0x463   :  { %v2061_v20 = vadd.f32 %v2060_v10, %v2035_v16  ;;  %v2359_v10 = vld [vmem:[%s12413_s4 + $0x30] sm:$0xff]  ;;  %v2360_v16 = vld [vmem:[%s12413_s4 + $0x38] sm:$0xff] }
 0x464   :  { %2408 = vmatpush.msra.mxu0 %v2359_v10  ;;  %2448 = vmatpush.msrb.mxu2 %v2360_v16 }
 0x465   :  { %v2083_v52 = vpop.f32.mrf.mxu3 }
 0x466   :  { %v2084_v56 = vadd.f32 %v2083_v52, %v2058_v8  ;;  %v2358_v8 = vld [vmem:[%s12413_s4 + $0x28] sm:$0xff]  ;;  %2409 = vmatpush.msra.mxu0 %v2357_v47 }
 0x467   :  { %2449 = vmatpush.msrb.mxu2 %v2358_v8 }
 0x468   :  { %v2110_v0 = vadd.f32 %v2109_v33, %v2084_v56  ;;  %v2112_v27 = vpop.f32.mrf.mxu0  ;;  %v2356_v33 = vld [vmem:[%s12413_s4 + $0x18] sm:$0xff]  ;;  %2410 = vmatpush.msra.mxu0 %v2355_v44  ;;  %v2389_v44 = vld [vmem:[%s12413_s4 + $0x120] sm:$0xff] }
 0x469   :  { %2450 = vmatpush.msrb.mxu2 %v2356_v33  ;;  %v2387_v33 = vld [vmem:[%s12413_s4 + $0x110] sm:$0xff]  ;;  %2429 = vmatpush.msra.mxu1 %v2389_v44 }
 0x46a   :  { %v2158_v22 = vpop.f32.mrf.mxu2  ;;  %v2136_v42 = vadd.f32 %v2135_v18, %v2110_v0  ;;  %v2138_v52 = vpop.f32.mrf.mxu1  ;;  %2411 = vmatpush.msra.mxu0 %v2353_v9 }
 0x46b   :  { %v2159_v12 = vadd.f32 %v2158_v22, %v2133_v17  ;;  %2451 = vmatpush.msrb.mxu2 %v2354_v3  ;;  %2430 = vmatpush.msra.mxu1 %v2387_v33 }
 0x46d   :  { %v2086_v58 = vpop.f32.mrf.mxu3  ;;  %v8851_v53 = vmax.f32 %v2159_v12, 0.0  ;;  %2431 = vmatpush.msra.mxu1 %v2385_v61 }
 0x46e   :  { %v2087_v46 = vadd.f32 %v2086_v58, %v2061_v20 }
 0x46f   :  { %v2325_v58 = vmul.f32 %v8851_v53, %v8851_v53 }
 0x470   :  { %v2113_v34 = vadd.f32 %v2112_v27, %v2087_v46  ;;  %v2210_v26 = vpop.f32.mrf.mxu0 }
 0x472   :  { %v2161_v51 = vpop.f32.mrf.mxu2  ;;  %v2139_v36 = vadd.f32 %v2138_v52, %v2113_v34 }
 0x473   :  { %v2162_v48 = vadd.f32 %v2161_v51, %v2136_v42  ;;  %v2236_v51 = vpop.f32.mrf.mxu1 }
 0x475   :  { %v2184_v1 = vpop.f32.mrf.mxu3  ;;  %v8843_v39 = vmax.f32 %v2162_v48, 0.0  ;;  %v2036_v48 = vperm.slane %v2032_v13, 0 }
 0x477   :  { %v2327_v22 = vmul.f32 %v8843_v39, %v8843_v39  ;;  %v2303_v18 = vadd.f32 %v8843_v39, %v8851_v53  ;;  %v2185_v10 = vadd.f32 %v2184_v1, %v2036_v48 }
 0x478   :  { %v2213_v8 = vpop.f32.mrf.mxu0 }
 0x479   :  { %v2331_v43 = vadd.f32 %v2327_v22, %v2325_v58 }
 0x47a   :  { %v2164_v11 = vpop.f32.mrf.mxu2 }
 0x47b   :  { %v2165_v56 = vadd.f32 %v2164_v11, %v2139_v36  ;;  %v2239_v1 = vpop.f32.mrf.mxu1 }
 0x47d   :  { %v8867_v50 = vmax.f32 %v2165_v56, 0.0  ;;  %v2187_v7 = vpop.f32.mrf.mxu3  ;;  %v2211_v56 = vadd.f32 %v2210_v26, %v2185_v10  ;;  %v2392_v26 = vld [vmem:[%s12413_s4 + $0x138] sm:$0xff] }
 0x47e   :  { %v2188_v16 = vadd.f32 %v2187_v7, %v2036_v48  ;;  %2468 = vmatpush.msrb.mxu1 %v2392_v26 }
 0x47f   :  { %v2304_v0 = vsel %vm12336_vm1, %v8867_v50, 0.0  ;;  %v2329_v30 = vmul.f32 %v8867_v50, %v8867_v50 }
 0x480   :  { %v2305_v20 = vadd.f32 %v2304_v0, %v2303_v18  ;;  %v2214_v22 = vadd.f32 %v2213_v8, %v2188_v16  ;;  %v2237_v18 = vadd.f32 %v2236_v51, %v2211_v56  ;;  %v2216_v13 = vpop.f32.mrf.mxu0  ;;  %v2388_v51 = vld [vmem:[%s12413_s4 + $0x118] sm:$0xff] }
 0x481   :  { %v2332_v40 = vsel %vm12336_vm1, %v2329_v30, 0.0 }
 0x482   :  { %v2306_v46 = vrot.slane %v2305_v20, 4  ;;  %v2333_v42 = vadd.f32 %v2332_v40, %v2331_v43  ;;  %v2262_v27 = vpop.f32.mrf.mxu2  ;;  %v2240_v30 = vadd.f32 %v2239_v1, %v2214_v22  ;;  %v2390_v40 = vld [vmem:[%s12413_s4 + $0x128] sm:$0xff] }
 0x483   :  { %v2263_v43 = vadd.f32 %v2262_v27, %v2237_v18  ;;  %2469 = vmatpush.msrb.mxu1 %v2390_v40 }
 0x484   :  { %v2307_v2 = vadd.f32 %v2306_v46, %v2305_v20  ;;  %v2334_v21 = vrot.slane %v2333_v42, 4 }
 0x485   :  { %v2190_v17 = vpop.f32.mrf.mxu3  ;;  %2470 = vmatpush.msrb.mxu1 %v2388_v51 }
 0x486   :  { %v2308_v55 = vrot.slane %v2307_v2, 2  ;;  %v2335_v14 = vadd.f32 %v2334_v21, %v2333_v42  ;;  %v2191_v0 = vadd.f32 %v2190_v17, %v2036_v48  ;;  %v2386_v17 = vld [vmem:[%s12413_s4 + $0x108] sm:$0xff]  ;;  %v2242_v48 = vpop.f32.mrf.mxu1 }
 0x487   :  { %2471 = vmatpush.msrb.mxu1 %v2386_v17 }
 0x488   :  { %v2309_v34 = vadd.f32 %v2308_v55, %v2307_v2  ;;  %v2336_v12 = vrot.slane %v2335_v14, 2  ;;  %v2217_v42 = vadd.f32 %v2216_v13, %v2191_v0 }
 0x48a   :  { %v2310_v52 = vrot.slane %v2309_v34, 1  ;;  %v2337_v47 = vadd.f32 %v2336_v12, %v2335_v14  ;;  %v2265_v7 = vpop.f32.mrf.mxu2 }
 0x48b   :  { %v2266_v20 = vadd.f32 %v2265_v7, %v2240_v30 }
 0x48c   :  { %v2338_v36 = vrot.slane %v2337_v47, 1  ;;  %v2311_v9 = vadd.f32 %v2310_v52, %v2309_v34  ;;  %v2243_v34 = vadd.f32 %v2242_v48, %v2217_v42 }
 0x48d   :  { %v2288_v11 = vpop.f32.mrf.mxu3 }
 0x48e   :  { %v2339_v3 = vadd.f32 %v2338_v36, %v2337_v47  ;;  %v2289_v2 = vadd.f32 %v2288_v11, %v2263_v43 }
 0x490   :  { %v2351_v58 = vsel %vm12343_vm4, %v2311_v9, %v2339_v3  ;;  %v8907_v14 = vmax.f32 %v2289_v2, 0.0 }
 0x491   :  { %2412 = vmatmul.f32.vlgmr.msra.gmra.mxu0 %v2351_v58  ;;  %2452 = vmatmul.f32.vlgmr.msrb.gmra.mxu2 %v2351_v58 }
 0x492   :  { %v2268_v55 = vpop.f32.mrf.mxu2  ;;  %v2326_v52 = vmul.f32 %v8907_v14, %v8907_v14  ;;  %v2313_v36 = vsel %vm12337_vm8, %v8907_v14, 0.0 }
 0x493   :  { %v2269_v12 = vadd.f32 %v2268_v55, %v2243_v34 }
 0x494   :  { %v2340_v56 = vsel %vm12337_vm8, %v2326_v52, 0.0 }
 0x495   :  { %v2291_v46 = vpop.f32.mrf.mxu3 }
 0x496   :  { %v2292_v21 = vadd.f32 %v2291_v46, %v2266_v20 }
 0x498   :  { %v8902_v27 = vmax.f32 %v2292_v21, 0.0 }
 0x49a   :  { %v2328_v10 = vmul.f32 %v8902_v27, %v8902_v27  ;;  %v2314_v47 = vsel %vm12337_vm8, %v8902_v27, 0.0 }
 0x49b   :  { %v2315_v33 = vadd.f32 %v2314_v47, %v2313_v36 }
 0x49c   :  { %v2341_v11 = vsel %vm12337_vm8, %v2328_v10, 0.0 }
 0x49d   :  { %v2294_v16 = vpop.f32.mrf.mxu3  ;;  %v2342_v3 = vadd.f32 %v2341_v11, %v2340_v56 }
 0x49e   :  { %v2295_v8 = vadd.f32 %v2294_v16, %v2269_v12 }
 0x4a0   :  { %v8918_v44 = vmax.f32 %v2295_v8, 0.0 }
 0x4a2   :  { %v2317_v22 = vsel %vm12335_vm9, %v8918_v44, 0.0  ;;  %v2330_v9 = vmul.f32 %v8918_v44, %v8918_v44 }
 0x4a3   :  { %v2318_v1 = vadd.f32 %v2317_v22, %v2315_v33 }
 0x4a4   :  { %v2343_v7 = vsel %vm12335_vm9, %v2330_v9, 0.0 }
 0x4a5   :  { %v2319_v61 = vrot.slane %v2318_v1, 4  ;;  %v2344_v58 = vadd.f32 %v2343_v7, %v2342_v3  ;;  %v2628_v3 = vld [vmem:[%s12317_s20 + $0xf0] sm:$0xff] }
 0x4a6   :  { %2647 = vmatpush.msra.mxu3 %v2628_v3 }
 0x4a7   :  { %v2320_v18 = vadd.f32 %v2319_v61, %v2318_v1  ;;  %v2345_v0 = vrot.slane %v2344_v58, 4  ;;  %v2629_v1 = vld [vmem:[%s12317_s20 + $0xf8] sm:$0xff] }
 0x4a9   :  { %v2321_v30 = vrot.slane %v2320_v18, 2  ;;  %v2346_v43 = vadd.f32 %v2345_v0, %v2344_v58  ;;  %v2627_v0 = vld [vmem:[%s12317_s20 + $0xe8] sm:$0xff] }
 0x4ab   :  { %v2322_v20 = vadd.f32 %v2321_v30, %v2320_v18  ;;  %v2347_v26 = vrot.slane %v2346_v43, 2  ;;  %v2626_v18 = vld [vmem:[%s12317_s20 + $0xe0] sm:$0xff] }
 0x4ac   :  { %2648 = vmatpush.msra.mxu3 %v2626_v18 }
 0x4ad   :  { %v2323_v40 = vrot.slane %v2322_v20, 1  ;;  %v2348_v13 = vadd.f32 %v2347_v26, %v2346_v43  ;;  %v2624_v43 = vld [vmem:[%s12317_s20 + $0xd0] sm:$0xff] }
 0x4ae   :  { %2649 = vmatpush.msra.mxu3 %v2624_v43  ;;  %v2637_v43 = vld [vmem:[%s12317_s20 + $0x138] sm:$0xff] }
 0x4af   :  { %v2349_v46 = vrot.slane %v2348_v13, 1  ;;  %v2324_v42 = vadd.f32 %v2323_v40, %v2322_v20  ;;  %v2625_v20 = vld [vmem:[%s12317_s20 + $0xd8] sm:$0xff]  ;;  %v2622_v40 = vld [vmem:[%s12317_s20 + $0xc0] sm:$0xff]  ;;  %2737 = vmatpush.msra.mxu2 %v2637_v43 }
 0x4b0   :  { %2650 = vmatpush.msra.mxu3 %v2622_v40 }
 0x4b1   :  { %v2350_v2 = vadd.f32 %v2349_v46, %v2348_v13  ;;  %v2623_v13 = vld [vmem:[%s12317_s20 + $0xc8] sm:$0xff] }
 0x4b3   :  { %v2352_v21 = vsel %vm12343_vm4, %v2324_v42, %v2350_v2  ;;  %v2528_v42 = vperm.slane %v8780_v15, 1  ;;  %v2620_v2 = vld [vmem:[%s12317_s20 + $0xb0] sm:$0xff] }
 0x4b4   :  { %6211 = vmatmul.msk.f32.vlgmr.msra.gmra.mxu1 %vm12337_vm8, %v2352_v21  ;;  %2651 = vmatpush.msra.mxu3 %v2620_v2 }
 0x4b5   :  { %2699 = vmatpush.msra.mxu1 %v2629_v1 }
 0x4b7   :  { %2700 = vmatpush.msra.mxu1 %v2627_v0 }
 0x4b9   :  { %2701 = vmatpush.msra.mxu1 %v2625_v20 }
 0x4bb   :  { %2702 = vmatpush.msra.mxu1 %v2623_v13 }
 0x4bc   :  { %6212 = vmatmul.msk.f32.vlgmr.msrb.gmra.mxu1 %vm12337_vm8, %v2352_v21  ;;  %v2621_v21 = vld [vmem:[%s12317_s20 + $0xb8] sm:$0xff] }
 0x4bd   :  { %2703 = vmatpush.msra.mxu1 %v2621_v21  ;;  %v2529_v21 = vperm.slane %v8780_v15, 5 }
 0x50e   :  { %v2413_v51 = vpop.f32.mrf.mxu0 }
 0x514   :  { %v2453_v10 = vpop.f32.mrf.mxu2 }
 0x531   :  { %v2433_v17 = vpop.f32.mrf.mxu1 }
 0x532   :  { %v2434_v48 = vadd.f32 %v2433_v17, %v2413_v51  ;;  %v2618_v51 = vld [vmem:[%s12317_s20 + $0xa0] sm:$0xff] }
 0x533   :  { %2652 = vmatpush.msra.mxu3 %v2618_v51  ;;  %v2608_v51 = vld [vmem:[%s12317_s20 + $0x50] sm:$0xff] }
 0x534   :  { %v2476_v55 = vmul.f32 0.005, %v2434_v48  ;;  %v2619_v48 = vld [vmem:[%s12317_s20 + $0xa8] sm:$0xff] }
 0x535   :  { %2704 = vmatpush.msra.mxu1 %v2619_v48 }
 0x536   :  { %v2478_v34 = vmul.f32 %v2476_v55, %v2476_v55  ;;  %v2490_v17 = vperm.slane %v2476_v55, 0 }
 0x538   :  { %v2482_v12 = vrot.slane %v2478_v34, 7  ;;  %v2496_v1 = vsub.f32 %v8867_v50, %v2490_v17  ;;  %v2610_v50 = vld [vmem:[%s12317_s20 + $0x60] sm:$0xff] }
 0x539   :  { %v2473_v52 = vpop.f32.mrf.mxu1 }
 0x53a   :  { %v2486_v16 = vsub.f32 %v2476_v55, %v2482_v12  ;;  %v2474_v47 = vadd.f32 %v2473_v52, %v2453_v10  ;;  %v2616_v10 = vld [vmem:[%s12317_s20 + $0x90] sm:$0xff]  ;;  %v2540_v55 = vperm.slane %v8780_v15, 2 }
 0x53b   :  { %2653 = vmatpush.msra.mxu3 %v2616_v10 }
 0x53c   :  { %v2488_v8 = vmax.f32 %v2486_v16, 0.0  ;;  %v8930_v36 = vmul.f32 0.005, %v2474_v47  ;;  %v2617_v16 = vld [vmem:[%s12317_s20 + $0x98] sm:$0xff] }
 0x53d   :  { %2705 = vmatpush.msra.mxu1 %v2617_v16  ;;  %v2632_v16 = vld [vmem:[%s12317_s20 + $0x110] sm:$0xff] }
 0x53e   :  { %v2498_v11 = vadd.f32 1e-05, %v2488_v8  ;;  %v2479_v33 = vmul.f32 %v8930_v36, %v8930_v36  ;;  %v2532_v8 = vperm.slane %v2528_v42, 1  ;;  %v2634_v42 = vld [vmem:[%s12317_s20 + $0x120] sm:$0xff]  ;;  %v2491_v2 = vperm.slane %v8930_v36, 0 }
 0x540   :  { %6308 = vrsqrt.f32 %v2498_v11  ;;  %v2483_v56 = vrot.slane %v2479_v33, 7  ;;  %vm2506_vm11 = vweird.f32 %v2498_v11  ;;  %v2615_v33 = vld [vmem:[%s12317_s20 + $0x88] sm:$0xff]  ;;  %v2497_v43 = vsub.f32 %v8918_v44, %v2491_v2  ;;  %v2601_v44 = vld [vmem:[%s12317_s20 + $0x18] sm:$0xff] }
 0x541   :  { %2706 = vmatpush.msra.mxu1 %v2615_v33 }
 0x542   :  { %v2487_v22 = vsub.f32 %v8930_v36, %v2483_v56  ;;  %v2492_v56 = vsub.f32 %v8851_v53, %v2490_v17  ;;  %v9002_v53 = vperm.slane %v2540_v55, 2  ;;  %v2609_v36 = vld [vmem:[%s12317_s20 + $0x58] sm:$0xff] }
 0x544   :  { %v2489_v9 = vmax.f32 %v2487_v22, 0.0  ;;  %v2494_v22 = vsub.f32 %v8843_v39, %v2490_v17  ;;  %v2635_v17 = vld [vmem:[%s12317_s20 + $0x128] sm:$0xff] }
 0x545   :  { %2738 = vmatpush.msra.mxu2 %v2635_v17 }
 0x546   :  { %v6309_v7 = vpop.eup %6308  ;;  %v8941_v58 = vadd.f32 1e-05, %v2489_v9 }
 0x547   :  { %v2501_v61 = vmul.f32 %v6309_v7, %v2498_v11  ;;  %vm2507_vm10 = vweird.f32 %v6309_v7  ;;  %v2614_v11 = vld [vmem:[%s12317_s20 + $0x80] sm:$0xff] }
 0x548   :  { %6310 = vrsqrt.f32 %v8941_v58  ;;  %vm2508_vm5 = vmor %vm2506_vm11, %vm2507_vm10  ;;  %2654 = vmatpush.msra.mxu3 %v2614_v11  ;;  %vm2516_vm10 = vweird.f32 %v8941_v58 }
 0x549   :  { %v2502_v30 = vmul.f32 %v6309_v7, %v2501_v61  ;;  %v2613_v61 = vld [vmem:[%s12317_s20 + $0x78] sm:$0xff] }
 0x54a   :  { %2707 = vmatpush.msra.mxu1 %v2613_v61  ;;  %v2631_v61 = vld [vmem:[%s12317_s20 + $0x108] sm:$0xff] }
 0x54b   :  { %v2503_v26 = vmul.f32 0.5, %v2502_v30  ;;  %v2636_v30 = vld [vmem:[%s12317_s20 + $0x130] sm:$0xff] }
 0x54c   :  { %2685 = vmatpush.msrb.mxu0 %v2636_v30 }
 0x54d   :  { %v2504_v46 = vsub.f32 1.5, %v2503_v26 }
 0x54e   :  { %v8975_v34 = vpop.eup %6310  ;;  %2686 = vmatpush.msrb.mxu0 %v2634_v42 }
 0x54f   :  { %v2505_v12 = vmul.f32 %v6309_v7, %v2504_v46  ;;  %v2511_v52 = vmul.f32 %v8975_v34, %v8941_v58  ;;  %v2611_v46 = vld [vmem:[%s12317_s20 + $0x68] sm:$0xff]  ;;  %v2606_v58 = vld [vmem:[%s12317_s20 + $0x40] sm:$0xff] }
 0x550   :  { %2708 = vmatpush.msra.mxu1 %v2611_v46  ;;  %2687 = vmatpush.msrb.mxu0 %v2632_v16 }
 0x551   :  { %v2509_v47 = vsel %vm2508_vm5, %v6309_v7, %v2505_v12  ;;  %v2512_v3 = vmul.f32 %v8975_v34, %v2511_v52  ;;  %v2612_v7 = vld [vmem:[%s12317_s20 + $0x70] sm:$0xff]  ;;  %vm2517_vm5 = vweird.f32 %v8975_v34  ;;  %v2541_v52 = vperm.slane %v8780_v15, 6  ;;  %v2607_v15 = vld [vmem:[%s12317_s20 + $0x48] sm:$0xff] }
 0x552   :  { %v2520_v9 = vperm.slane %v2509_v47, 1  ;;  %2655 = vmatpush.msra.mxu3 %v2612_v7  ;;  %vm9040_vm11 = vmor %vm2516_vm10, %vm2517_vm5  ;;  %v2633_v47 = vld [vmem:[%s12317_s20 + $0x118] sm:$0xff]  ;;  %v2533_v7 = vperm.slane %v2529_v21, 1  ;;  %2709 = vmatpush.msra.mxu1 %v2609_v36  ;;  %vm12342_vm5 = vcmask 254976   ;;  %vm12338_vm10 = vcmask 257026   ;;  %v2599_v21 = vld [vmem:[%s12317_s20 + $0x8] sm:$0xff] }
 0x553   :  { %v2513_v39 = vmul.f32 0.5, %v2512_v3  ;;  %v2495_v3 = vsub.f32 %v8902_v27, %v2491_v2  ;;  %2739 = vmatpush.msra.mxu2 %v2633_v47 }
 0x554   :  { %v2522_v18 = vmul.f32 %v2520_v9, %v2492_v56  ;;  %v2524_v0 = vmul.f32 %v2520_v9, %v2494_v22  ;;  %v2526_v20 = vmul.f32 %v2520_v9, %v2496_v1  ;;  %2656 = vmatpush.msra.mxu3 %v2610_v50  ;;  %v2630_v9 = vld [vmem:[%s12317_s20 + $0x100] sm:$0xff]  ;;  %2710 = vmatpush.msra.mxu1 %v2607_v15 }
 0x555   :  { %v2514_v13 = vsub.f32 1.5, %v2513_v39  ;;  %v2545_v39 = vperm.slane %v2541_v52, 2  ;;  %v2602_v50 = vld [vmem:[%s12317_s20 + $0x20] sm:$0xff]  ;;  %2688 = vmatpush.msrb.mxu0 %v2630_v9  ;;  %2740 = vmatpush.msra.mxu2 %v2631_v61 }
 0x556   :  { %v2534_v26 = vmul.f32 %v2532_v8, %v2522_v18  ;;  %v2536_v40 = vmul.f32 %v2532_v8, %v2524_v0  ;;  %v2538_v11 = vmul.f32 %v2532_v8, %v2526_v20  ;;  %2657 = vmatpush.msra.mxu3 %v2608_v51  ;;  %v2493_v8 = vsub.f32 %v8907_v14, %v2491_v2  ;;  %v2605_v14 = vld [vmem:[%s12317_s20 + $0x38] sm:$0xff]  ;;  %v2603_v20 = vld [vmem:[%s12317_s20 + $0x28] sm:$0xff]  ;;  %v2598_v2 = vld [vmem:[%s12317_s20] sm:$0xff] }
 0x557   :  { %v2515_v10 = vmul.f32 %v8975_v34, %v2514_v13  ;;  %2711 = vmatpush.msra.mxu1 %v2605_v14  ;;  %v2600_v13 = vld [vmem:[%s12317_s20 + $0x10] sm:$0xff] }
 0x558   :  { %v2546_v48 = vadd.f32 %v9002_v53, %v2534_v26  ;;  %v2548_v12 = vadd.f32 %v9002_v53, %v2536_v40  ;;  %2658 = vmatpush.msra.mxu3 %v2606_v58  ;;  %v2550_v30 = vadd.f32 %v9002_v53, %v2538_v11 }
 0x559   :  { %v2519_v22 = vsel %vm9040_vm11, %v8975_v34, %v2515_v10  ;;  %v2604_v34 = vld [vmem:[%s12317_s20 + $0x30] sm:$0xff]  ;;  %2712 = vmatpush.msra.mxu1 %v2603_v20  ;;  %vm12341_vm11 = vcmask 259076   ;;  %s6380_s20 = smov 48   ;;  %v2924_v20 = vld [vmem:[%s12417_s30 + $0x68] sm:$0xff] }
 0x55a   :  { %2552 = vst [vmem:[#allocation9] sm:$0x3] %v2546_v48  ;;  %v2560_v33 = vrot.slane %v2546_v48, 2  ;;  %v2571_v56 = vrot.slane %v2548_v12, 4  ;;  %v2521_v1 = vperm.slane %v2519_v22, 1  ;;  %v2580_v18 = vrot.slane %v2548_v12, 6  ;;  %2659 = vmatpush.msra.mxu3 %v2604_v34 }
 0x55b   :  { %2555 = vst [vmem:[#allocation9 + $0x10] sm:$0xc] %v2546_v48  ;;  %2713 = vmatpush.msra.mxu1 %v2601_v44 }
 0x55c   :  { %2564 = vst [vmem:[#allocation9] sm:$0xc] %v2560_v33  ;;  %v2523_v27 = vmul.f32 %v2521_v1, %v2493_v8  ;;  %v2525_v0 = vmul.f32 %v2521_v1, %v2495_v3  ;;  %v2527_v46 = vmul.f32 %v2521_v1, %v2497_v43  ;;  %2660 = vmatpush.msra.mxu3 %v2602_v50  ;;  %v2925_v43 = vld [vmem:[%s12417_s30 + $0x70] sm:$0xff] }
 0x55d   :  { %2566 = vst [vmem:[#allocation9 + $0x10] sm:$0x30] %v2560_v33  ;;  %2714 = vmatpush.msra.mxu1 %v2599_v21 }
 0x55e   :  { %2575 = vst [vmem:[#allocation9] sm:$0x30] %v2571_v56  ;;  %v2535_v26 = vmul.f32 %v2533_v7, %v2523_v27  ;;  %v2537_v40 = vmul.f32 %v2533_v7, %v2525_v0  ;;  %2661 = vmatpush.msra.mxu3 %v2600_v13  ;;  %v2539_v17 = vmul.f32 %v2533_v7, %v2527_v46 }
 0x55f   :  { %2577 = vst [vmem:[#allocation9 + $0x10] sm:$0xc0] %v2571_v56 }
 0x560   :  { %2584 = vst [vmem:[#allocation9] sm:$0xc0] %v2580_v18  ;;  %v2547_v53 = vadd.f32 %v2545_v39, %v2535_v26  ;;  %v2549_v42 = vadd.f32 %v2545_v39, %v2537_v40  ;;  %2662 = vmatpush.msra.mxu3 %v2598_v2  ;;  %v2551_v36 = vadd.f32 %v2545_v39, %v2539_v17  ;;  %v2923_v26 = vld [vmem:[%s12417_s30 + $0x60] sm:$0xff]  ;;  %v2922_v40 = vld [vmem:[%s12417_s30 + $0x58] sm:$0xff] }
 0x561   :  { %2586 = vst [vmem:[#allocation9 + $0x20] sm:$0x3] %v2580_v18 }
 0x562   :  { %2588 = vst [vmem:[#allocation9 + $0x10] sm:$0x3] %v2550_v30  ;;  %v2561_v51 = vrot.slane %v2547_v53, 2  ;;  %v2572_v48 = vrot.slane %v2549_v42, 4  ;;  %v2581_v12 = vrot.slane %v2549_v42, 6 }
 0x563   :  { %2590 = vst [vmem:[#allocation9 + $0x20] sm:$0xc] %v2550_v30  ;;  %v2926_v30 = vld [vmem:[%s12417_s30 + $0x78] sm:$0xff] }
 0x564   :  { %2554 = vst.msk [vmem:[#allocation9 + $0x8] sm:$0x3] %vm12342_vm5, %v2547_v53  ;;  %3009 = vmatpush.msra.mxu0 %v2926_v30  ;;  %v2974_v30 = vld [vmem:[%s12417_s30 + $0x1f8] sm:$0xff] }
 0x565   :  { %2557 = vst.msk [vmem:[#allocation9 + $0x18] sm:$0xc] %vm12338_vm10, %v2547_v53  ;;  %3069 = vmatpush.msrb.mxu1 %v2974_v30  ;;  %v2987_v30 = vld [vmem:[%s12417_s30 + $0x260] sm:$0xff] }
 0x566   :  { %2565 = vst.msk [vmem:[#allocation9 + $0x8] sm:$0xc] %vm12338_vm10, %v2561_v51  ;;  %3010 = vmatpush.msra.mxu0 %v2925_v43  ;;  %v2914_v43 = vld [vmem:[%s12417_s30 + $0x18] sm:$0xff] }
 0x567   :  { %2568 = vst.msk [vmem:[#allocation9 + $0x18] sm:$0x30] %vm12341_vm11, %v2561_v51  ;;  %v2592_v10 = vld [vmem:[#allocation9] sm:$0xff] }
 0x568   :  { %2576 = vst.msk [vmem:[#allocation9 + $0x8] sm:$0x30] %vm12341_vm11, %v2572_v48  ;;  %2663 = vmatmul.f32.vlgmr.msra.gmra.mxu3 %v2592_v10  ;;  %2715 = vmatmul.f32.vlgmr.msra.gmra.mxu1 %v2592_v10  ;;  %v2920_v10 = vld [vmem:[%s12417_s30 + $0x48] sm:$0xff] }
 0x569   :  { %2579 = vst.msk [vmem:[#allocation9 + $0x18] sm:$0xc0] %vm12339_vm13, %v2572_v48  ;;  %v2594_v16 = vld [vmem:[#allocation9 + $0x10] sm:$0xff]  ;;  %3011 = vmatpush.msra.mxu0 %v2924_v20 }
 0x56a   :  { %2585 = vst.msk [vmem:[#allocation9 + $0x8] sm:$0xc0] %vm12339_vm13, %v2581_v12  ;;  %v2596_v52 = vld [vmem:[#allocation9 + $0x20] sm:$0xf]  ;;  %v2921_v48 = vld [vmem:[%s12417_s30 + $0x50] sm:$0xff] }
 0x56b   :  { %2587 = vst.msk [vmem:[#allocation9 + $0x28] sm:$0x3] %vm12342_vm5, %v2581_v12  ;;  %3012 = vmatpush.msra.mxu0 %v2923_v26  ;;  %v2941_v20 = vld [vmem:[%s12417_s30 + $0xf0] sm:$0xff] }
 0x56c   :  { %2589 = vst.msk [vmem:[#allocation9 + $0x18] sm:$0x3] %vm12342_vm5, %v2551_v36  ;;  %v2957_v26 = vld [vmem:[%s12417_s30 + $0x170] sm:$0xff]  ;;  %vm3134_vm5 = vcmask 60418  }
 0x56d   :  { %2591 = vst.msk [vmem:[#allocation9 + $0x28] sm:$0xc] %vm12338_vm10, %v2551_v36  ;;  %3013 = vmatpush.msra.mxu0 %v2922_v40  ;;  %v2973_v40 = vld [vmem:[%s12417_s30 + $0x1f0] sm:$0xff] }
 0x56e   :  { %3070 = vmatpush.msrb.mxu1 %v2973_v40  ;;  %v2986_v40 = vld [vmem:[%s12417_s30 + $0x258] sm:$0xff] }
 0x56f   :  { %3014 = vmatpush.msra.mxu0 %v2921_v48  ;;  %v2971_v48 = vld [vmem:[%s12417_s30 + $0x1e0] sm:$0xff] }
 0x570   :  { %2666 = vmatmul.f32.gmra.mxu3 %v2594_v16  ;;  %2718 = vmatmul.f32.gmra.mxu1 %v2594_v16 }
 0x571   :  { %v2593_v55 = vld [vmem:[#allocation9 + $0x8] sm:$0xff]  ;;  %3015 = vmatpush.msra.mxu0 %v2920_v10  ;;  %v2911_v10 = vld [vmem:[%s12417_s30] sm:$0xff] }
 0x572   :  { %6213 = vmatmul.msk.f32.vlgmr.msrb.gmra.mxu0 %vm12337_vm8, %v2593_v55  ;;  %6216 = vmatmul.msk.f32.vlgmr.msra.gmra.mxu2 %vm12337_vm8, %v2593_v55  ;;  %v2919_v55 = vld [vmem:[%s12417_s30 + $0x40] sm:$0xff] }
 0x573   :  { %v2595_v58 = vld [vmem:[#allocation9 + $0x18] sm:$0xff]  ;;  %3016 = vmatpush.msra.mxu0 %v2919_v55 }
 0x574   :  { %v2597_v47 = vld [vmem:[#allocation9 + $0x28] sm:$0xf]  ;;  %v2970_v55 = vld [vmem:[%s12417_s30 + $0x1d8] sm:$0xff] }
 0x578   :  { %2669 = vmatmul.f32.gmra.mxu3 %v2596_v52  ;;  %2721 = vmatmul.f32.gmra.mxu1 %v2596_v52 }
 0x57a   :  { %6214 = vmatmul.msk.f32.gmra.mxu0 %vm12337_vm8, %v2595_v58  ;;  %6217 = vmatmul.msk.f32.gmra.mxu2 %vm12337_vm8, %v2595_v58 }
 0x582   :  { %6215 = vmatmul.msk.f32.gmra.mxu0 %vm12337_vm8, %v2597_v47  ;;  %6218 = vmatmul.msk.f32.gmra.mxu2 %vm12337_vm8, %v2597_v47 }
 0x5e5   :  { %v2716_v56 = vpop.f32.mrf.mxu1 }
 0x5eb   :  { %v2664_v11 = vpop.f32.mrf.mxu3 }
 0x5ed   :  { %v2719_v3 = vpop.f32.mrf.mxu1 }
 0x5ef   :  { %v2690_v33 = vpop.f32.mrf.mxu0 }
 0x5f0   :  { %v9119_v0 = vadd.f32 %v2690_v33, %v2664_v11  ;;  %v2918_v11 = vld [vmem:[%s12417_s30 + $0x38] sm:$0xff] }
 0x5f1   :  { %3017 = vmatpush.msra.mxu0 %v2918_v11  ;;  %v2969_v11 = vld [vmem:[%s12417_s30 + $0x1d0] sm:$0xff] }
 0x5f3   :  { %v2667_v22 = vpop.f32.mrf.mxu3 }
 0x5f5   :  { %v2742_v15 = vpop.f32.mrf.mxu2  ;;  %v2722_v14 = vpop.f32.mrf.mxu1 }
 0x5f6   :  { %v9123_v50 = vadd.f32 %v2742_v15, %v2716_v56  ;;  %v2916_v15 = vld [vmem:[%s12417_s30 + $0x28] sm:$0xff] }
 0x5f7   :  { %v2693_v9 = vpop.f32.mrf.mxu0 }
 0x5f8   :  { %v9107_v8 = vadd.f32 %v2693_v9, %v2667_v22  ;;  %v2917_v22 = vld [vmem:[%s12417_s30 + $0x30] sm:$0xff] }
 0x5f9   :  { %3018 = vmatpush.msra.mxu0 %v2917_v22  ;;  %v2936_v22 = vld [vmem:[%s12417_s30 + $0xc8] sm:$0xff] }
 0x5fa   :  { %2759 = vrot.lane.b32.xlu2 %v9107_v8, %s6380_s20 }
 0x5fb   :  { %v2670_v34 = vpop.f32.mrf.mxu3  ;;  %3019 = vmatpush.msra.mxu0 %v2916_v15  ;;  %v2952_v15 = vld [vmem:[%s12417_s30 + $0x148] sm:$0xff] }
 0x5fd   :  { %v2745_v1 = vpop.f32.mrf.mxu2 }
 0x5fe   :  { %v9111_v7 = vadd.f32 %v2745_v1, %v2719_v3  ;;  %v12350_v3 = vmov 0  }
 0x5ff   :  { %v2696_v61 = vpop.f32.mrf.mxu0 }
 0x600   :  { %v9113_v18 = vadd.f32 %v2696_v61, %v2670_v34  ;;  %2761 = vrot.lane.b32.xlu0 %v9111_v7, %s6380_s20  ;;  %v2915_v34 = vld [vmem:[%s12417_s30 + $0x20] sm:$0xff] }
 0x601   :  { %3020 = vmatpush.msra.mxu0 %v2915_v34  ;;  %v2935_v34 = vld [vmem:[%s12417_s30 + $0xc0] sm:$0xff] }
 0x602   :  { %2772 = vrot.lane.b32.xlu1 %v9113_v18, %s6380_s20  ;;  %v2951_v61 = vld [vmem:[%s12417_s30 + $0x140] sm:$0xff] }
 0x603   :  { %3021 = vmatpush.msra.mxu0 %v2914_v43  ;;  %v2934_v43 = vld [vmem:[%s12417_s30 + $0xb8] sm:$0xff] }
 0x605   :  { %v2748_v27 = vpop.f32.mrf.mxu2 }
 0x606   :  { %v9121_v39 = vadd.f32 %v2748_v27, %v2722_v14  ;;  %v2942_v14 = vld [vmem:[%s12417_s30 + $0xf8] sm:$0xff] }
 0x607   :  { %v2958_v27 = vld [vmem:[%s12417_s30 + $0x178] sm:$0xff]  ;;  %3029 = vmatpush.msrb.mxu3 %v2942_v14  ;;  %v2967_v14 = vld [vmem:[%s12417_s30 + $0x1c0] sm:$0xff] }
 0x608   :  { %2755 = vrot.lane.b32.xlu0 %v9119_v0, %s6380_s20  ;;  %2774 = vrot.lane.b32.xlu2 %v9121_v39, %s6380_s20 }
 0x609   :  { %3049 = vmatpush.msrb.mxu2 %v2958_v27  ;;  %3030 = vmatpush.msrb.mxu3 %v2941_v20  ;;  %v2950_v20 = vld [vmem:[%s12417_s30 + $0x138] sm:$0xff] }
 0x60a   :  { %2757 = vrot.lane.b32.xlu1 %v9123_v50, %s6380_s20 }
 0x60b   :  { %3050 = vmatpush.msrb.mxu2 %v2957_v26  ;;  %v2966_v26 = vld [vmem:[%s12417_s30 + $0x1b8] sm:$0xff] }
 0x654   :  { %v2760_v13 = vpop.permute.xlu2 %2759 }
 0x662   :  { %v2775_v44 = vpop.permute.xlu2 %2774 }
 0x672   :  { %v2762_v46 = vpop.permute.xlu0 %2761 }
 0x673   :  { %v2765_v42 = vsel %vm12345_vm15, %v2760_v13, %v2762_v46  ;;  %v2913_v13 = vld [vmem:[%s12417_s30 + $0x10] sm:$0xff]  ;;  %v2940_v46 = vld [vmem:[%s12417_s30 + $0xe8] sm:$0xff] }
 0x674   :  { %v2773_v53 = vpop.permute.xlu1 %2772  ;;  %v2769_v51 = vmax.f32 %v9107_v8, %v2765_v42  ;;  %3022 = vmatpush.msra.mxu0 %v2913_v13  ;;  %3031 = vmatpush.msrb.mxu3 %v2940_v46  ;;  %v2933_v13 = vld [vmem:[%s12417_s30 + $0xb0] sm:$0xff] }
 0x675   :  { %v2776_v2 = vsel %vm12345_vm15, %v2773_v53, %v2775_v44  ;;  %v2956_v44 = vld [vmem:[%s12417_s30 + $0x168] sm:$0xff]  ;;  %v2949_v46 = vld [vmem:[%s12417_s30 + $0x130] sm:$0xff] }
 0x676   :  { %v2778_v21 = vmax.f32 %v9113_v18, %v2776_v2  ;;  %v2781_v52 = vrot.slane %v2769_v51, 2  ;;  %v2972_v53 = vld [vmem:[%s12417_s30 + $0x1e8] sm:$0xff]  ;;  %3051 = vmatpush.msrb.mxu2 %v2956_v44  ;;  %v2965_v44 = vld [vmem:[%s12417_s30 + $0x1b0] sm:$0xff] }
 0x677   :  { %v2912_v2 = vld [vmem:[%s12417_s30 + $0x8] sm:$0xff]  ;;  %3071 = vmatpush.msrb.mxu1 %v2972_v53  ;;  %v2985_v53 = vld [vmem:[%s12417_s30 + $0x250] sm:$0xff] }
 0x678   :  { %v2782_v17 = vrot.slane %v2778_v21, 2  ;;  %v2939_v21 = vld [vmem:[%s12417_s30 + $0xe0] sm:$0xff]  ;;  %3023 = vmatpush.msra.mxu0 %v2912_v2  ;;  %v2948_v2 = vld [vmem:[%s12417_s30 + $0x128] sm:$0xff] }
 0x679   :  { %3032 = vmatpush.msrb.mxu3 %v2939_v21  ;;  %3072 = vmatpush.msrb.mxu1 %v2971_v48  ;;  %v2964_v21 = vld [vmem:[%s12417_s30 + $0x1a8] sm:$0xff]  ;;  %v2947_v48 = vld [vmem:[%s12417_s30 + $0x120] sm:$0xff] }
 0x67a   :  { %v9153_v12 = vmax.f32 %v2769_v51, %v2782_v17  ;;  %v2756_v36 = vpop.permute.xlu0 %2755  ;;  %v2783_v33 = vsel %vm12349_vm2, %v2781_v52, %v2782_v17  ;;  %v2955_v17 = vld [vmem:[%s12417_s30 + $0x160] sm:$0xff]  ;;  %v2990_v52 = vld [vmem:[%s12417_s30 + $0x278] sm:$0xff]  ;;  %3024 = vmatpush.msra.mxu0 %v2911_v10 }
 0x67b   :  { %3052 = vmatpush.msrb.mxu2 %v2955_v17  ;;  %3073 = vmatpush.msrb.mxu1 %v2970_v55  ;;  %v2931_v17 = vld [vmem:[%s12417_s30 + $0xa0] sm:$0xff] }
 0x67c   :  { %2908 = vst.msk [vmem:[#allocation4 + $0x8] sm:$0x3] %vm12347_vm14, %v9153_v12  ;;  %2794 = vrot.lane.b32.xlu0 %v9153_v12, %s6381_s0  ;;  %v2758_v16 = vpop.permute.xlu1 %2757  ;;  %vm12346_vm12 = vcmp.eq.f32.partialorder %v9107_v8, %v9153_v12  ;;  %3089 = vmatpush.msrb.mxu0 %v2990_v52  ;;  %v2963_v10 = vld [vmem:[%s12417_s30 + $0x1a0] sm:$0xff]  ;;  %v2946_v52 = vld [vmem:[%s12417_s30 + $0x118] sm:$0xff] }
 0x67d   :  { %v2764_v58 = vsel %vm12345_vm15, %v2756_v36, %v2758_v16  ;;  %vm9200_vm1 = vmxor %vm12346_vm12, %vm12367_vm6  ;;  %v2938_v36 = vld [vmem:[%s12417_s30 + $0xd8] sm:$0xff]  ;;  %3074 = vmatpush.msrb.mxu1 %v2969_v11  ;;  %v2929_v11 = vld [vmem:[%s12417_s30 + $0x90] sm:$0xff] }
 0x67e   :  { %v2768_v47 = vmax.f32 %v9119_v0, %v2764_v58  ;;  %v2805_v42 = vsel %vm9200_vm1, 1, %v12350_v3  ;;  %v2954_v16 = vld [vmem:[%s12417_s30 + $0x158] sm:$0xff]  ;;  %v2937_v58 = vld [vmem:[%s12417_s30 + $0xd0] sm:$0xff]  ;;  %3033 = vmatpush.msrb.mxu3 %v2938_v36  ;;  %v2983_v36 = vld [vmem:[%s12417_s30 + $0x240] sm:$0xff] }
 0x67f   :  { %3053 = vmatpush.msrb.mxu2 %v2954_v16  ;;  %v2930_v16 = vld [vmem:[%s12417_s30 + $0x98] sm:$0xff] }
 0x680   :  { %v9171_v56 = vmax.f32 %v2768_v47, %v2783_v33  ;;  %v2953_v47 = vld [vmem:[%s12417_s30 + $0x150] sm:$0xff]  ;;  %3034 = vmatpush.msrb.mxu3 %v2937_v58  ;;  %v2962_v58 = vld [vmem:[%s12417_s30 + $0x198] sm:$0xff] }
 0x681   :  { %v2989_v33 = vld [vmem:[%s12417_s30 + $0x270] sm:$0xff]  ;;  %3054 = vmatpush.msrb.mxu2 %v2953_v47  ;;  %v2982_v47 = vld [vmem:[%s12417_s30 + $0x238] sm:$0xff] }
 0x682   :  { %2892 = vst.msk [vmem:[#allocation4] sm:$0x3] %vm12347_vm14, %v9171_v56  ;;  %2792 = vrot.lane.b32.xlu2 %v9171_v56, %s6381_s0  ;;  %vm12344_vm7 = vcmp.eq.f32.partialorder %v9119_v0, %v9171_v56  ;;  %3090 = vmatpush.msrb.mxu0 %v2989_v33  ;;  %v2945_v33 = vld [vmem:[%s12417_s30 + $0x110] sm:$0xff] }
 0x683   :  { %2893 = vst.sshfl [vmem:[#allocation1] sm:$0xff pattern:$0x73625140] %v9171_v56  ;;  %vm2802_vm9 = vmxor %vm12344_vm7, %vm12367_vm6  ;;  %v2910_v9 = vld [vmem:[#allocation4 + $0x8] sm:$0x3]  ;;  %3035 = vmatpush.msrb.mxu3 %v2936_v22  ;;  %3055 = vmatpush.msrb.mxu2 %v2952_v15  ;;  %v2961_v22 = vld [vmem:[%s12417_s30 + $0x190] sm:$0xff] }
 0x684   :  { %v2804_v1 = vsel %vm2802_vm9, 1, %v12350_v3  ;;  %2998 = vst [vmem:[#allocation1 + $0x20] ss:$4 sm:$0xff] %v2910_v9  ;;  %v2968_v9 = vld [vmem:[%s12417_s30 + $0x1c8] sm:$0xff]  ;;  %v2981_v15 = vld [vmem:[%s12417_s30 + $0x230] sm:$0xff] }
 0x685   :  { %2806 = vrot.lane.b32.xlu1 %v2804_v1, %s6381_s0  ;;  %v2988_v1 = vld [vmem:[%s12417_s30 + $0x268] sm:$0xff]  ;;  %3075 = vmatpush.msrb.mxu1 %v2968_v9 }
 0x686   :  { %3091 = vmatpush.msrb.mxu0 %v2988_v1  ;;  %3036 = vmatpush.msrb.mxu3 %v2935_v34  ;;  %v2928_v9 = vld [vmem:[%s12417_s30 + $0x88] sm:$0xff] }
 0x687   :  { %3056 = vmatpush.msrb.mxu2 %v2951_v61  ;;  %3076 = vmatpush.msrb.mxu1 %v2967_v14  ;;  %v2944_v1 = vld [vmem:[%s12417_s30 + $0x108] sm:$0xff]  ;;  %v2927_v14 = vld [vmem:[%s12417_s30 + $0x80] sm:$0xff] }
 0x688   :  { %3092 = vmatpush.msrb.mxu0 %v2987_v30  ;;  %3037 = vmatpush.msrb.mxu3 %v2934_v43  ;;  %v2960_v34 = vld [vmem:[%s12417_s30 + $0x188] sm:$0xff]  ;;  %v2959_v30 = vld [vmem:[%s12417_s30 + $0x180] sm:$0xff] }
 0x689   :  { %3057 = vmatpush.msrb.mxu2 %v2950_v20  ;;  %3077 = vmatpush.msrb.mxu1 %v2966_v26  ;;  %v2980_v61 = vld [vmem:[%s12417_s30 + $0x228] sm:$0xff]  ;;  %v2979_v43 = vld [vmem:[%s12417_s30 + $0x220] sm:$0xff]  ;;  %v2978_v26 = vld [vmem:[%s12417_s30 + $0x218] sm:$0xff] }
 0x68a   :  { %v2895_v51 = vld [vmem:[#allocation1 + $0x1] ss:$4 sm:$0xff]  ;;  %2808 = vrot.lane.b32.xlu2 %v2805_v42, %s6381_s0  ;;  %3093 = vmatpush.msrb.mxu0 %v2986_v40 }
 0x68b   :  { %2897 = vst.msk [vmem:[#allocation4 + $0x2] sm:$0x3] %vm12347_vm14, %v2895_v51  ;;  %v2932_v42 = vld [vmem:[%s12417_s30 + $0xa8] sm:$0xff]  ;;  %3038 = vmatpush.msrb.mxu3 %v2933_v13  ;;  %3058 = vmatpush.msrb.mxu2 %v2949_v46  ;;  %v2977_v40 = vld [vmem:[%s12417_s30 + $0x210] sm:$0xff]  ;;  %v2975_v46 = vld [vmem:[%s12417_s30 + $0x200] sm:$0xff] }
 0x68c   :  { %2898 = vst.sshfl [vmem:[#allocation1] sm:$0xff pattern:$0x73625140] %v9171_v56  ;;  %3078 = vmatpush.msrb.mxu1 %v2965_v44  ;;  %v2984_v51 = vld [vmem:[%s12417_s30 + $0x248] sm:$0xff]  ;;  %3094 = vmatpush.msrb.mxu0 %v2985_v53 }
 0x68d   :  { %3039 = vmatpush.msrb.mxu3 %v2932_v42  ;;  %3059 = vmatpush.msrb.mxu2 %v2948_v2  ;;  %v2976_v13 = vld [vmem:[%s12417_s30 + $0x208] sm:$0xff] }
 0x68e   :  { %3079 = vmatpush.msrb.mxu1 %v2964_v21  ;;  %3095 = vmatpush.msrb.mxu0 %v2984_v51  ;;  %v3003_v21 = vld.sshfl [vmem:[#allocation1 + $0x20] sm:$0xff pattern:$0x73625140] }
 0x68f   :  { %3040 = vmatpush.msrb.mxu3 %v2931_v17  ;;  %3060 = vmatpush.msrb.mxu2 %v2947_v48  ;;  %v3162_v17 = vld [vmem:[%s12306_s9 + $0x78] sm:$0xff]  ;;  %v3161_v48 = vld [vmem:[%s12306_s9 + $0x70] sm:$0xff] }
 0x690   :  { %3080 = vmatpush.msrb.mxu1 %v2963_v10  ;;  %3096 = vmatpush.msrb.mxu0 %v2983_v36  ;;  %v3160_v10 = vld [vmem:[%s12306_s9 + $0x68] sm:$0xff]  ;;  %v3159_v36 = vld [vmem:[%s12306_s9 + $0x60] sm:$0xff] }
 0x691   :  { %3041 = vmatpush.msrb.mxu3 %v2930_v16  ;;  %3061 = vmatpush.msrb.mxu2 %v2946_v52 }
 0x692   :  { %3081 = vmatpush.msrb.mxu1 %v2962_v58  ;;  %3097 = vmatpush.msrb.mxu0 %v2982_v47  ;;  %v3178_v58 = vld [vmem:[%s12306_s9 + $0xf8] sm:$0xff]  ;;  %v3157_v47 = vld [vmem:[%s12306_s9 + $0x50] sm:$0xff] }
 0x693   :  { %v2900_v27 = vld [vmem:[#allocation1 + $0x2] ss:$4 sm:$0xff]  ;;  %3042 = vmatpush.msrb.mxu3 %v2929_v11  ;;  %3062 = vmatpush.msrb.mxu2 %v2945_v33 }
 0x694   :  { %2902 = vst.msk [vmem:[#allocation4 + $0x4] sm:$0x3] %vm12347_vm14, %v2900_v27  ;;  %3082 = vmatpush.msrb.mxu1 %v2961_v22  ;;  %3098 = vmatpush.msrb.mxu0 %v2981_v15  ;;  %v2943_v27 = vld [vmem:[%s12417_s30 + $0x100] sm:$0xff]  ;;  %v3194_v11 = vld [vmem:[%s12306_s9 + $0x178] sm:$0xff]  ;;  %v3177_v15 = vld [vmem:[%s12306_s9 + $0xf0] sm:$0xff]  ;;  %s12428_s30 = sld [smem:[#allocation44_spill]] }
 0x695   :  { %2903 = vst.sshfl [vmem:[#allocation1] sm:$0xff pattern:$0x73625140] %v9171_v56  ;;  %3043 = vmatpush.msrb.mxu3 %v2928_v9  ;;  %3063 = vmatpush.msrb.mxu2 %v2944_v1  ;;  %v3210_v33 = vld [vmem:[%s12306_s9 + $0x1f8] sm:$0xff]  ;;  %v3193_v9 = vld [vmem:[%s12306_s9 + $0x170] sm:$0xff] }
 0x696   :  { %3083 = vmatpush.msrb.mxu1 %v2960_v34  ;;  %3099 = vmatpush.msrb.mxu0 %v2980_v61  ;;  %v3156_v34 = vld [vmem:[%s12306_s9 + $0x48] sm:$0xff]  ;;  %v3209_v61 = vld [vmem:[%s12306_s9 + $0x1f0] sm:$0xff] }
 0x697   :  { %3044 = vmatpush.msrb.mxu3 %v2927_v14  ;;  %3064 = vmatpush.msrb.mxu2 %v2943_v27  ;;  %v3176_v14 = vld [vmem:[%s12306_s9 + $0xe8] sm:$0xff] }
 0x698   :  { %3084 = vmatpush.msrb.mxu1 %v2959_v30  ;;  %3100 = vmatpush.msrb.mxu0 %v2979_v43  ;;  %v3192_v27 = vld [vmem:[%s12306_s9 + $0x168] sm:$0xff]  ;;  %v3155_v43 = vld [vmem:[%s12306_s9 + $0x40] sm:$0xff] }
 0x699   :  { %3228 = vmatpush.msra.mxu3 %v3162_v17  ;;  %3251 = vmatpush.msra.mxu2 %v3178_v58  ;;  %v3208_v30 = vld [vmem:[%s12306_s9 + $0x1e8] sm:$0xff]  ;;  %v3207_v58 = vld [vmem:[%s12306_s9 + $0x1e0] sm:$0xff] }
 0x69a   :  { %3101 = vmatpush.msrb.mxu0 %v2978_v26  ;;  %3274 = vmatpush.msra.mxu1 %v3194_v11  ;;  %v3148_v17 = vld [vmem:[%s12306_s9 + $0x8] sm:$0xff]  ;;  %v3174_v11 = vld [vmem:[%s12306_s9 + $0xd8] sm:$0xff] }
 0x69b   :  { %3229 = vmatpush.msra.mxu3 %v3161_v48  ;;  %3252 = vmatpush.msra.mxu2 %v3177_v15  ;;  %v3206_v15 = vld [vmem:[%s12306_s9 + $0x1d8] sm:$0xff] }
 0x69c   :  { %v2905_v55 = vld [vmem:[#allocation1 + $0x3] ss:$4 sm:$0xff]  ;;  %3102 = vmatpush.msrb.mxu0 %v2977_v40  ;;  %3275 = vmatpush.msra.mxu1 %v3193_v9 }
 0x69d   :  { %2907 = vst.msk [vmem:[#allocation4 + $0x6] sm:$0x3] %vm12347_vm14, %v2905_v55  ;;  %3230 = vmatpush.msra.mxu3 %v3160_v10  ;;  %v3158_v55 = vld [vmem:[%s12306_s9 + $0x58] sm:$0xff]  ;;  %3253 = vmatpush.msra.mxu2 %v3176_v14  ;;  %v3153_v40 = vld [vmem:[%s12306_s9 + $0x30] sm:$0xff]  ;;  %v3147_v10 = vld [vmem:[%s12306_s9] sm:$0xff] }
 0x69e   :  { %3103 = vmatpush.msrb.mxu0 %v2976_v13  ;;  %3276 = vmatpush.msra.mxu1 %v3192_v27  ;;  %v3225_v9 = vld [vmem:[%s12306_s9 + $0x270] sm:$0xff]  ;;  %v3224_v14 = vld [vmem:[%s12306_s9 + $0x268] sm:$0xff] }
 0x69f   :  { %3231 = vmatpush.msra.mxu3 %v3159_v36  ;;  %v6348_v36 = vld [vmem:[#allocation5] sm:$0xff] }
 0x6a0   :  { %3104 = vmatpush.msrb.mxu0 %v2975_v46  ;;  %v3152_v46 = vld [vmem:[%s12306_s9 + $0x28] sm:$0xff] }
 0x6a1   :  { %3232 = vmatpush.msra.mxu3 %v3158_v55  ;;  %v3175_v55 = vld [vmem:[%s12306_s9 + $0xe0] sm:$0xff]  ;;  %v3172_v27 = vld [vmem:[%s12306_s9 + $0xc8] sm:$0xff] }
 0x6a2   :  { %3254 = vmatpush.msra.mxu2 %v3175_v55  ;;  %v3168_v55 = vld [vmem:[%s12306_s9 + $0xa8] sm:$0xff] }
 0x6a3   :  { %3233 = vmatpush.msra.mxu3 %v3157_v47  ;;  %v3226_v47 = vld [vmem:[%s12306_s9 + $0x278] sm:$0xff] }
 0x6a4   :  { %v2909_v20 = vld [vmem:[#allocation4] sm:$0xff]  ;;  %3255 = vmatpush.msra.mxu2 %v3174_v11  ;;  %v3167_v11 = vld [vmem:[%s12306_s9 + $0xa0] sm:$0xff] }
 0x6a5   :  { %2996 = vst [vmem:[#allocation1] ss:$4 sm:$0xff] %v2909_v20  ;;  %3234 = vmatpush.msra.mxu3 %v3156_v34  ;;  %v3154_v20 = vld [vmem:[%s12306_s9 + $0x38] sm:$0xff]  ;;  %v3189_v34 = vld [vmem:[%s12306_s9 + $0x150] sm:$0xff] }
 0x6a7   :  { %3235 = vmatpush.msra.mxu3 %v3155_v43  ;;  %v3204_v43 = vld [vmem:[%s12306_s9 + $0x1c8] sm:$0xff] }
 0x6a9   :  { %3236 = vmatpush.msra.mxu3 %v3154_v20  ;;  %v3223_v20 = vld [vmem:[%s12306_s9 + $0x260] sm:$0xff] }
 0x6ab   :  { %3237 = vmatpush.msra.mxu3 %v3153_v40  ;;  %v3187_v40 = vld [vmem:[%s12306_s9 + $0x140] sm:$0xff] }
 0x6ac   :  { %v2999_v44 = vld.sshfl [vmem:[#allocation1] sm:$0xff pattern:$0x73625140]  ;;  %v3000_v53 = vld.sshfl [vmem:[#allocation1 + $0x8] sm:$0xff pattern:$0x73625140] }
 0x6ad   :  { %3025 = vmatmul.f32.vlgmr.msra.gmra.mxu0 %v2999_v44  ;;  %3045 = vmatmul.f32.vlgmr.msrb.gmra.mxu3 %v3000_v53  ;;  %v3001_v42 = vld.sshfl [vmem:[#allocation1 + $0x10] sm:$0xff pattern:$0x73625140]  ;;  %v3002_v2 = vld.sshfl [vmem:[#allocation1 + $0x18] sm:$0xff pattern:$0x73625140] }
 0x6ae   :  { %3065 = vmatmul.f32.vlgmr.msrb.gmra.mxu2 %v3001_v42  ;;  %3085 = vmatmul.f32.vlgmr.msrb.gmra.mxu1 %v3002_v2  ;;  %v3151_v42 = vld [vmem:[%s12306_s9 + $0x20] sm:$0xff]  ;;  %v3150_v2 = vld [vmem:[%s12306_s9 + $0x18] sm:$0xff] }
 0x6af   :  { %3297 = vmatpush.msra.mxu0 %v3210_v33  ;;  %3238 = vmatpush.msra.mxu3 %v3152_v46  ;;  %v3190_v33 = vld [vmem:[%s12306_s9 + $0x158] sm:$0xff]  ;;  %v3203_v46 = vld [vmem:[%s12306_s9 + $0x1c0] sm:$0xff] }
 0x6b1   :  { %3298 = vmatpush.msra.mxu0 %v3209_v61  ;;  %3239 = vmatpush.msra.mxu3 %v3151_v42  ;;  %v3205_v61 = vld [vmem:[%s12306_s9 + $0x1d0] sm:$0xff]  ;;  %v3186_v42 = vld [vmem:[%s12306_s9 + $0x138] sm:$0xff] }
 0x6b3   :  { %3299 = vmatpush.msra.mxu0 %v3208_v30  ;;  %3240 = vmatpush.msra.mxu3 %v3150_v2  ;;  %v3188_v30 = vld [vmem:[%s12306_s9 + $0x148] sm:$0xff]  ;;  %v3202_v2 = vld [vmem:[%s12306_s9 + $0x1b8] sm:$0xff] }
 0x6b5   :  { %3105 = vmatmul.f32.vlgmr.msrb.gmra.mxu0 %v3003_v21 }
 0x6b6   :  { %3300 = vmatpush.msra.mxu0 %v3207_v58  ;;  %v3200_v58 = vld [vmem:[%s12306_s9 + $0x1a8] sm:$0xff] }
 0x6b8   :  { %3301 = vmatpush.msra.mxu0 %v3206_v15  ;;  %v3199_v15 = vld [vmem:[%s12306_s9 + $0x1a0] sm:$0xff] }
 0x6ba   :  { %3302 = vmatpush.msra.mxu0 %v3205_v61  ;;  %v3198_v61 = vld [vmem:[%s12306_s9 + $0x198] sm:$0xff] }
 0x6bc   :  { %3303 = vmatpush.msra.mxu0 %v3204_v43  ;;  %v3197_v43 = vld [vmem:[%s12306_s9 + $0x190] sm:$0xff] }
 0x6be   :  { %3304 = vmatpush.msra.mxu0 %v3203_v46  ;;  %v6302_v46 = vld [vmem:[%s12428_s30] ss:$0 sm:$0xff] }
 0x6c0   :  { %3305 = vmatpush.msra.mxu0 %v3202_v2  ;;  %v3163_v2 = vld [vmem:[%s12306_s9 + $0x80] sm:$0xff] }
 0x6dc   :  { %v2793_v51 = vpop.permute.xlu2 %2792 }
 0x6dd   :  { %vm2799_vm13 = vcmp.eq.f32.partialorder %v9123_v50, %v2793_v51 }
 0x6e4   :  { %v2809_v16 = vpop.permute.xlu2 %2808 }
 0x6e5   :  { %vm2811_vm1 = vcmp.ne.s32.totalorder %v2809_v16, 0  ;;  %v9532_v16 = vrot.slane %v9171_v56, 6 }
 0x6ee   :  { %v2795_v52 = vpop.permute.xlu0 %2794 }
 0x6ef   :  { %vm2800_vm9 = vcmp.eq.f32.partialorder %v9107_v8, %v2795_v52 }
 0x6f0   :  { %vm9447_vm8 = vmand %vm2800_vm9, %vm2811_vm1  ;;  %vm2798_vm9 = vcmp.eq.f32.partialorder %v9119_v0, %v2793_v51  ;;  %v3149_v51 = vld [vmem:[%s12306_s9 + $0x10] sm:$0xff] }
 0x6f1   :  { %v2825_v1 = vsel %vm9447_vm8, 1, %v12350_v3  ;;  %3241 = vmatpush.msra.mxu3 %v3149_v51  ;;  %v3221_v51 = vld [vmem:[%s12306_s9 + $0x250] sm:$0xff] }
 0x6f2   :  { %2831 = vrot.lane.b32.xlu2 %v2825_v1, %s6380_s20  ;;  %v3173_v1 = vld [vmem:[%s12306_s9 + $0xd0] sm:$0xff] }
 0x6f3   :  { %3242 = vmatpush.msra.mxu3 %v3148_v17  ;;  %3256 = vmatpush.msra.mxu2 %v3173_v1  ;;  %v3169_v17 = vld [vmem:[%s12306_s9 + $0xb0] sm:$0xff]  ;;  %v3166_v1 = vld [vmem:[%s12306_s9 + $0x98] sm:$0xff] }
 0x6f5   :  { %3243 = vmatpush.msra.mxu3 %v3147_v10  ;;  %3257 = vmatpush.msra.mxu2 %v3172_v27  ;;  %v3201_v10 = vld [vmem:[%s12306_s9 + $0x1b0] sm:$0xff] }
 0x6f6   :  { %3244 = vmatmul.f32.vlgmr.msra.gmra.mxu3 %v6348_v36  ;;  %v3220_v36 = vld [vmem:[%s12306_s9 + $0x248] sm:$0xff]  ;;  %3306 = vmatpush.msra.mxu0 %v3201_v10  ;;  %v3165_v27 = vld [vmem:[%s12306_s9 + $0x90] sm:$0xff] }
 0x6f7   :  { %v2807_v26 = vpop.permute.xlu1 %2806  ;;  %3320 = vmatpush.msrb.mxu3 %v3226_v47  ;;  %v3219_v47 = vld [vmem:[%s12306_s9 + $0x240] sm:$0xff] }
 0x6f8   :  { %vm2810_vm10 = vcmp.ne.s32.totalorder %v2807_v26, 0  ;;  %v3171_v26 = vld [vmem:[%s12306_s9 + $0xc0] sm:$0xff]  ;;  %3307 = vmatpush.msra.mxu0 %v3200_v58  ;;  %v3212_v58 = vld [vmem:[%s12306_s9 + $0x208] sm:$0xff] }
 0x6f9   :  { %vm9487_vm0 = vmand %vm2798_vm9, %vm2810_vm10  ;;  %3321 = vmatpush.msrb.mxu3 %v3225_v9  ;;  %3258 = vmatpush.msra.mxu2 %v3171_v26  ;;  %v3218_v9 = vld [vmem:[%s12306_s9 + $0x238] sm:$0xff]  ;;  %v3164_v26 = vld [vmem:[%s12306_s9 + $0x88] sm:$0xff]  ;;  %vm3126_vm9 = vcmask 64518  }
 0x6fa   :  { %vm9494_vm11 = vmand %vm2799_vm13, %vm2810_vm10  ;;  %v2823_v53 = vsel %vm9487_vm0, 1, %v12350_v3  ;;  %vm2801_vm13 = vcmp.eq.f32.partialorder %v9111_v7, %v2795_v52  ;;  %v3191_v52 = vld [vmem:[%s12306_s9 + $0x160] sm:$0xff]  ;;  %3308 = vmatpush.msra.mxu0 %v3199_v15 }
 0x6fb   :  { %v2824_v50 = vsel %vm9494_vm11, 1, %v12350_v3  ;;  %2827 = vrot.lane.b32.xlu0 %v2823_v53, %s6380_s20  ;;  %vm9514_vm10 = vmand %vm2801_vm13, %vm2811_vm1  ;;  %3277 = vmatpush.msra.mxu1 %v3191_v52  ;;  %v3222_v53 = vld [vmem:[%s12306_s9 + $0x258] sm:$0xff]  ;;  %v3184_v52 = vld [vmem:[%s12306_s9 + $0x128] sm:$0xff]  ;;  %vm3109_vm1 = vcmask 58368   ;;  %vm3130_vm13 = vcmask 62468  }
 0x6fc   :  { %2829 = vrot.lane.b32.xlu1 %v2824_v50, %s6380_s20  ;;  %v2826_v48 = vsel %vm9514_vm10, 1, %v12350_v3  ;;  %3322 = vmatpush.msrb.mxu3 %v3224_v14  ;;  %v3170_v50 = vld [vmem:[%s12306_s9 + $0xb8] sm:$0xff]  ;;  %v3217_v14 = vld [vmem:[%s12306_s9 + $0x230] sm:$0xff] }
 0x6fd   :  { %3278 = vmatpush.msra.mxu1 %v3190_v33  ;;  %3259 = vmatpush.msra.mxu2 %v3170_v50  ;;  %v3183_v33 = vld [vmem:[%s12306_s9 + $0x120] sm:$0xff] }
 0x6fe   :  { %3323 = vmatpush.msrb.mxu3 %v3223_v20  ;;  %v3216_v20 = vld [vmem:[%s12306_s9 + $0x228] sm:$0xff]  ;;  %3309 = vmatpush.msra.mxu0 %v3198_v61  ;;  %v3215_v50 = vld [vmem:[%s12306_s9 + $0x220] sm:$0xff] }
 0x6ff   :  { %3279 = vmatpush.msra.mxu1 %v3189_v34  ;;  %3260 = vmatpush.msra.mxu2 %v3169_v17  ;;  %v3182_v34 = vld [vmem:[%s12306_s9 + $0x118] sm:$0xff]  ;;  %v3195_v17 = vld [vmem:[%s12306_s9 + $0x180] sm:$0xff] }
 0x700   :  { %3324 = vmatpush.msrb.mxu3 %v3222_v53  ;;  %v3196_v53 = vld [vmem:[%s12306_s9 + $0x188] sm:$0xff]  ;;  %3310 = vmatpush.msra.mxu0 %v3197_v43 }
 0x701   :  { %3280 = vmatpush.msra.mxu1 %v3188_v30  ;;  %3261 = vmatpush.msra.mxu2 %v3168_v55  ;;  %v3181_v30 = vld [vmem:[%s12306_s9 + $0x110] sm:$0xff] }
 0x702   :  { %3325 = vmatpush.msrb.mxu3 %v3221_v51  ;;  %v3179_v51 = vld [vmem:[%s12306_s9 + $0x100] sm:$0xff]  ;;  %3311 = vmatpush.msra.mxu0 %v3196_v53  ;;  %v3144_v53 = vld [vmem:[#allocation5 + $0x38] sm:$0x3] }
 0x703   :  { %2833 = vrot.lane.b32.xlu0 %v2826_v48, %s6380_s20  ;;  %3281 = vmatpush.msra.mxu1 %v3187_v40  ;;  %v3185_v48 = vld [vmem:[%s12306_s9 + $0x130] sm:$0xff]  ;;  %v3180_v40 = vld [vmem:[%s12306_s9 + $0x108] sm:$0xff] }
 0x704   :  { %3326 = vmatpush.msrb.mxu3 %v3220_v36  ;;  %3262 = vmatpush.msra.mxu2 %v3167_v11  ;;  %v3213_v36 = vld [vmem:[%s12306_s9 + $0x210] sm:$0xff] }
 0x705   :  { %3282 = vmatpush.msra.mxu1 %v3186_v42  ;;  %3312 = vmatpush.msra.mxu0 %v3195_v17 }
 0x706   :  { %3327 = vmatpush.msrb.mxu3 %v3219_v47  ;;  %3263 = vmatpush.msra.mxu2 %v3166_v1 }
 0x707   :  { %3283 = vmatpush.msra.mxu1 %v3185_v48  ;;  %v3214_v48 = vld [vmem:[%s12306_s9 + $0x218] sm:$0xff] }
 0x708   :  { %3328 = vmatpush.msrb.mxu3 %v3218_v9  ;;  %3264 = vmatpush.msra.mxu2 %v3165_v27 }
 0x709   :  { %3284 = vmatpush.msra.mxu1 %v3184_v52 }
 0x70a   :  { %3329 = vmatpush.msrb.mxu3 %v3217_v14  ;;  %3265 = vmatpush.msra.mxu2 %v3164_v26 }
 0x70b   :  { %2852 = vrot.lane.b32.xlu0 %v9532_v16, %s6381_s0  ;;  %3285 = vmatpush.msra.mxu1 %v3183_v33  ;;  %v3211_v33 = vld [vmem:[%s12306_s9 + $0x200] sm:$0xff] }
 0x70c   :  { %3330 = vmatpush.msrb.mxu3 %v3216_v20  ;;  %3266 = vmatpush.msra.mxu2 %v3163_v2 }
 0x70d   :  { %3286 = vmatpush.msra.mxu1 %v3182_v34 }
 0x70e   :  { %3331 = vmatpush.msrb.mxu3 %v3215_v50  ;;  %v3145_v50 = vld [vmem:[#allocation5 + $0x40] sm:$0x3] }
 0x70f   :  { %3287 = vmatpush.msra.mxu1 %v3181_v30 }
 0x710   :  { %3332 = vmatpush.msrb.mxu3 %v3214_v48  ;;  %v3375_v48 = vld [vmem:[%s12308_s11 + $0x40] sm:$0xff] }
 0x711   :  { %3288 = vmatpush.msra.mxu1 %v3180_v40 }
 0x712   :  { %3333 = vmatpush.msrb.mxu3 %v3213_v36 }
 0x713   :  { %3289 = vmatpush.msra.mxu1 %v3179_v51 }
 0x714   :  { %3334 = vmatpush.msrb.mxu3 %v3212_v58 }
 0x716   :  { %3335 = vmatpush.msrb.mxu3 %v3211_v33 }
 0x72a   :  { %v3026_v42 = vpop.f32.mrf.mxu0 }
 0x72b   :  { %v3027_v10 = vadd.f32 %v6302_v46, %v3026_v42  ;;  %v3086_v15 = vpop.f32.mrf.mxu1  ;;  %v3143_v46 = vld [vmem:[#allocation5 + $0x30] sm:$0x3]  ;;  %v3146_v42 = vld [vmem:[#allocation5 + $0x48] sm:$0x3] }
 0x730   :  { %v3046_v55 = vpop.f32.mrf.mxu3 }
 0x731   :  { %v3047_v52 = vadd.f32 %v3046_v55, %v3027_v10  ;;  %v3066_v47 = vpop.f32.mrf.mxu2 }
 0x732   :  { %v3106_v1 = vpop.f32.mrf.mxu0 }
 0x733   :  { %v3067_v11 = vadd.f32 %v3066_v47, %v3047_v52 }
 0x735   :  { %v3087_v9 = vadd.f32 %v3086_v15, %v3067_v11  ;;  %v2817_v11 = vrot.slane %v9153_v12, 6 }
 0x737   :  { %v3107_v34 = vadd.f32 %v3106_v1, %v3087_v9  ;;  %v9733_v15 = vsel %vm12348_vm3, %v9532_v16, %v2817_v11  ;;  %v3373_v11 = vld [vmem:[%s12308_s11 + $0x30] sm:$0xff] }
 0x739   :  { %3122 = vst.msk [vmem:[#allocation5 + $0x28] sm:$0x3] %vm3109_vm1, %v3107_v34  ;;  %v3124_v61 = vrot.slane %v3107_v34, 2  ;;  %v3128_v14 = vrot.slane %v3107_v34, 4  ;;  %v3132_v27 = vrot.slane %v3107_v34, 6 }
 0x73a   :  { %3136 = vst.msk [vmem:[#allocation5 + $0x20] sm:$0x3] %vm3109_vm1, %v3107_v34 }
 0x73b   :  { %3127 = vst.msk [vmem:[#allocation5 + $0x8] sm:$0xc0] %vm3126_vm9, %v3124_v61 }
 0x73c   :  { %3131 = vst.msk [vmem:[#allocation5 + $0x10] sm:$0x30] %vm3130_vm13, %v3128_v14 }
 0x73d   :  { %3135 = vst.msk [vmem:[#allocation5 + $0x18] sm:$0xc] %vm3134_vm5, %v3132_v27 }
 0x73e   :  { %3110 = vst.msk [vmem:[#allocation12] sm:$0x3] %vm3109_vm1, %v3107_v34 }
 0x73f   :  { %6187 = dma.vmem_to_hbm [thread:$0]  %s6183_s3, 32, %s6185_s27, [#allocation13]  }
 0x740   :  { %v3142_v30 = vld [vmem:[#allocation5 + $0x28] sm:$0x3] }
 0x741   :  { %3247 = vmatmul.f32.gmra.mxu3 %v3142_v30  ;;  %v3141_v40 = vld [vmem:[#allocation5 + $0x20] sm:$0xff] }
 0x742   :  { %v3138_v43 = vld [vmem:[#allocation5 + $0x8] sm:$0xff] }
 0x743   :  { %3267 = vmatmul.f32.vlgmr.msra.gmra.mxu2 %v3138_v43  ;;  %v3139_v20 = vld [vmem:[#allocation5 + $0x10] sm:$0xff] }
 0x744   :  { %3290 = vmatmul.f32.vlgmr.msra.gmra.mxu1 %v3139_v20  ;;  %v3140_v26 = vld [vmem:[#allocation5 + $0x18] sm:$0xff] }
 0x745   :  { %3313 = vmatmul.f32.vlgmr.msra.gmra.mxu0 %v3140_v26 }
 0x749   :  { %3336 = vmatmul.f32.vlgmr.msrb.gmra.mxu3 %v3141_v40 }
 0x74b   :  { %3270 = vmatmul.f32.gmra.mxu2 %v3143_v46 }
 0x74c   :  { %3293 = vmatmul.f32.gmra.mxu1 %v3144_v53  ;;  %v2832_v55 = vpop.permute.xlu2 %2831 }
 0x74d   :  { %3316 = vmatmul.f32.gmra.mxu0 %v3145_v50 }
 0x751   :  { %3339 = vmatmul.f32.gmra.mxu3 %v3146_v42  ;;  %v9771_v42 = vld [vmem:[%s12307_s10] sm:$0x7] }
 0x76d   :  { %v2828_v2 = vpop.permute.xlu0 %2827 }
 0x76e   :  { %v2830_v51 = vpop.permute.xlu1 %2829 }
 0x76f   :  { %v2835_v17 = vsel %vm12345_vm15, %v2828_v2, %v2830_v51  ;;  %v3227_v2 = vperm.slane %v9771_v42, 0 }
 0x770   :  { %vm2837_vm5 = vcmp.ne.s32.totalorder %v2835_v17, 0  ;;  %v3376_v17 = vld [vmem:[%s12308_s11 + $0x48] sm:$0xff] }
 0x771   :  { %vm9708_vm1 = vmor %vm12344_vm7, %vm2837_vm5  ;;  %vm2821_vm7 = vcmp.eq.f32.partialorder %v9107_v8, %v9532_v16  ;;  %3386 = vmatpush.msrb.mxu2 %v3376_v17  ;;  %v3369_v17 = vld [vmem:[%s12308_s11 + $0x10] sm:$0xff] }
 0x772   :  { %vm2841_vm9 = vmxor %vm9708_vm1, %vm12367_vm6 }
 0x773   :  { %v2843_v10 = vsel %vm2841_vm9, 1, %v12350_v3  ;;  %3387 = vmatpush.msrb.mxu2 %v3375_v48 }
 0x774   :  { %v2845_v36 = vrot.slane %v2843_v10, 6 }
 0x775   :  { %v2834_v52 = vpop.permute.xlu0 %2833 }
 0x776   :  { %v2836_v58 = vsel %vm12345_vm15, %v2832_v55, %v2834_v52  ;;  %vm2848_vm4 = vcmp.ne.s32.totalorder %v2845_v36, 0  ;;  %v3374_v52 = vld [vmem:[%s12308_s11 + $0x38] sm:$0xff] }
 0x777   :  { %vm2838_vm13 = vcmp.ne.s32.totalorder %v2836_v58, 0  ;;  %vm9735_vm15 = vmand %vm2821_vm7, %vm2848_vm4  ;;  %3388 = vmatpush.msrb.mxu2 %v3374_v52 }
 0x778   :  { %vm9720_vm5 = vmor %vm12346_vm12, %vm2838_vm13  ;;  %v2862_v61 = vsel %vm9735_vm15, 1, %v12350_v3  ;;  %vm2822_vm13 = vcmp.eq.f32.partialorder %v9113_v18, %v9733_v15 }
 0x779   :  { %vm2842_vm9 = vmxor %vm9720_vm5, %vm12367_vm6  ;;  %v2864_v27 = vrot.slane %v2862_v61, 2  ;;  %v3245_v50 = vpop.f32.mrf.mxu3  ;;  %3389 = vmatpush.msrb.mxu2 %v3373_v11 }
 0x77a   :  { %v2844_v33 = vsel %vm2842_vm9, 1, %v12350_v3  ;;  %v3246_v10 = vadd.f32 %v3245_v50, %v3227_v2 }
 0x77b   :  { %v2846_v1 = vrot.slane %v2844_v33, 6 }
 0x77d   :  { %v2847_v34 = vsel %vm12348_vm3, %v2845_v36, %v2846_v1  ;;  %v3372_v1 = vld [vmem:[%s12308_s11 + $0x28] sm:$0xff] }
 0x77e   :  { %vm2849_vm12 = vcmp.ne.s32.totalorder %v2847_v34, 0  ;;  %3390 = vmatpush.msrb.mxu2 %v3372_v1 }
 0x77f   :  { %vm9745_vm9 = vmand %vm2822_vm13, %vm2849_vm12 }
 0x780   :  { %v2863_v16 = vsel %vm9745_vm9, 1, %v12350_v3 }
 0x781   :  { %v2865_v30 = vrot.slane %v2863_v16, 2  ;;  %v3371_v16 = vld [vmem:[%s12308_s11 + $0x20] sm:$0xff] }
 0x782   :  { %3391 = vmatpush.msrb.mxu2 %v3371_v16 }
 0x783   :  { %vm2868_vm4 = vcmp.ne.s32.totalorder %v2865_v30, 0  ;;  %v2866_v43 = vsel %vm12349_vm2, %v2864_v27, %v2865_v30  ;;  %vm12437_vm2 = vcmask 1041408  }
 0x784   :  { %vm2870_vm7 = vmor %vm9720_vm5, %vm2868_vm4  ;;  %vm2867_vm14 = vcmp.ne.s32.totalorder %v2866_v43, 0 }
 0x785   :  { %vm2872_vm3 = vmxor %vm2870_vm7, %vm12367_vm6 }
 0x786   :  { %v2874_v20 = vsel %vm2872_vm3, 1, %v12350_v3  ;;  %vm2869_vm12 = vmor %vm9708_vm1, %vm2867_vm14  ;;  %vm12438_vm3 = vcmask 648192   ;;  %vm12440_vm1 = vcmp.eq.s32.totalorder %v7625_v4, 0 }
 0x787   :  { %vm2871_vm13 = vmxor %vm2869_vm12, %vm12367_vm6  ;;  %v2876_v26 = vrot.slane %v2874_v20, 6  ;;  %v3370_v20 = vld [vmem:[%s12308_s11 + $0x18] sm:$0xff]  ;;  %vm12441_vm12 = vcmp.eq.f32.partialorder %v9119_v0, %v9171_v56 }
 0x788   :  { %v9761_v40 = vsel %vm2871_vm13, 1, %v12350_v3  ;;  %3392 = vmatpush.msrb.mxu2 %v3370_v20  ;;  %vm12439_vm14 = vmmov %vm12438_vm3  ;;  %v9898_v3 = vld [vmem:[%s12318_s21 + $0x18] sm:$0xff]  ;;  %vm12442_vm13 = vcmask 1041408  }
 0x789   :  { %v12352_v46 = vrot.slane %v9761_v40, 6  ;;  %v12444_v0 = vrot.slane %v9761_v40, 6 }
 0x78a   :  { %3393 = vmatpush.msrb.mxu2 %v3369_v17 }
 0x78b   :  { %v2877_v53 = vsel %vm12437_vm2, %v12352_v46, %v2876_v26  ;;  %vm3345_vm2 = vcmask 654336  }
 0x78c   :  { %2880 = vrot.lane.b32.xlu0 %v2877_v53, %s6381_s0 }
 0x7c1   :  { %v3291_v36 = vpop.f32.mrf.mxu1 }
 0x7c2   :  { %v3314_v47 = vpop.f32.mrf.mxu0 }
 0x7c4   :  { %v3248_v51 = vpop.f32.mrf.mxu3 }
 0x7c5   :  { %v3249_v27 = vadd.f32 %v3248_v51, %v3227_v2  ;;  %v3368_v2 = vld [vmem:[%s12308_s11 + $0x8] sm:$0xff] }
 0x7c6   :  { %v3268_v55 = vpop.f32.mrf.mxu2  ;;  %3394 = vmatpush.msrb.mxu2 %v3368_v2 }
 0x7c7   :  { %v3269_v58 = vadd.f32 %v3268_v55, %v3246_v10  ;;  %v3367_v55 = vld [vmem:[%s12308_s11] sm:$0xff] }
 0x7c8   :  { %3395 = vmatpush.msrb.mxu2 %v3367_v55 }
 0x7c9   :  { %v3292_v33 = vadd.f32 %v3291_v36, %v3269_v58  ;;  %v3294_v43 = vpop.f32.mrf.mxu1 }
 0x7ca   :  { %v3317_v50 = vpop.f32.mrf.mxu0 }
 0x7cb   :  { %v3315_v34 = vadd.f32 %v3314_v47, %v3292_v33 }
 0x7cc   :  { %v3337_v61 = vpop.f32.mrf.mxu3 }
 0x7cd   :  { %v3338_v26 = vadd.f32 %v3337_v61, %v3315_v34 }
 0x7ce   :  { %v3271_v30 = vpop.f32.mrf.mxu2 }
 0x7cf   :  { %v3272_v53 = vadd.f32 %v3271_v30, %v3249_v27  ;;  %v9801_v51 = vmax.f32 %v3338_v26, 0.0 }
 0x7d1   :  { %v3295_v48 = vadd.f32 %v3294_v43, %v3272_v53  ;;  %v3355_v58 = vmul.f32 %v9801_v51, %v9801_v51  ;;  %v3346_v11 = vsel %vm3345_vm2, %v9801_v51, 0.0 }
 0x7d3   :  { %v3318_v10 = vadd.f32 %v3317_v50, %v3295_v48  ;;  %v3357_v61 = vsel %vm3345_vm2, %v3355_v58, 0.0  ;;  %v3448_v58 = vld [vmem:[%s12318_s21 + $0x90] sm:$0xff] }
 0x7d4   :  { %v3340_v36 = vpop.f32.mrf.mxu3  ;;  %3560 = vmatpush.msra.mxu2 %v3448_v58 }
 0x7d5   :  { %v3341_v52 = vadd.f32 %v3340_v36, %v3318_v10 }
 0x7d7   :  { %v9808_v47 = vmax.f32 %v3341_v52, 0.0 }
 0x7d9   :  { %v3347_v33 = vsel %vm12438_vm3, %v9808_v47, 0.0  ;;  %v3356_v1 = vmul.f32 %v9808_v47, %v9808_v47  ;;  %vm12443_vm3 = vcmask 1045504  }
 0x7da   :  { %v3348_v34 = vadd.f32 %v3347_v33, %v3346_v11  ;;  %v3446_v11 = vld [vmem:[%s12318_s21 + $0x80] sm:$0xff]  ;;  %v9830_v33 = vld [vmem:[%s12318_s21 + $0x98] sm:$0xff] }
 0x7db   :  { %v3358_v16 = vsel %vm12439_vm14, %v3356_v1, 0.0  ;;  %v3444_v1 = vld [vmem:[%s12318_s21 + $0x70] sm:$0xff]  ;;  %3725 = vmatpush.msra.mxu3 %v9830_v33  ;;  %3561 = vmatpush.msra.mxu2 %v3446_v11  ;;  %vm12445_vm14 = vcmp.eq.f32.partialorder %v9107_v8, %v9153_v12  ;;  %v2853_v12 = vpop.permute.xlu0 %2852 }
 0x7dc   :  { %v3349_v27 = vrot.slane %v3348_v34, 4  ;;  %v3359_v30 = vadd.f32 %v3358_v16, %v3357_v61  ;;  %v9844_v61 = vld [vmem:[%s12318_s21 + $0x78] sm:$0xff]  ;;  %v3442_v16 = vld [vmem:[%s12318_s21 + $0x60] sm:$0xff] }
 0x7dd   :  { %3562 = vmatpush.msra.mxu2 %v3444_v1 }
 0x7de   :  { %v3350_v43 = vadd.f32 %v3349_v27, %v3348_v34  ;;  %v3360_v20 = vrot.slane %v3359_v30, 4  ;;  %v9839_v34 = vld [vmem:[%s12318_s21 + $0x88] sm:$0xff] }
 0x7df   :  { %3726 = vmatpush.msra.mxu3 %v9839_v34  ;;  %v9853_v27 = vld [vmem:[%s12318_s21 + $0x68] sm:$0xff]  ;;  %3563 = vmatpush.msra.mxu2 %v3442_v16 }
 0x7e0   :  { %v3351_v26 = vrot.slane %v3350_v43, 2  ;;  %v3361_v53 = vadd.f32 %v3360_v20, %v3359_v30 }
 0x7e1   :  { %3727 = vmatpush.msra.mxu3 %v9844_v61 }
 0x7e2   :  { %v3352_v50 = vadd.f32 %v3351_v26, %v3350_v43  ;;  %v3362_v17 = vrot.slane %v3361_v53, 2  ;;  %v3440_v43 = vld [vmem:[%s12318_s21 + $0x50] sm:$0xff]  ;;  %v9862_v26 = vld [vmem:[%s12318_s21 + $0x58] sm:$0xff] }
 0x7e3   :  { %3728 = vmatpush.msra.mxu3 %v9853_v27  ;;  %3564 = vmatpush.msra.mxu2 %v3440_v43 }
 0x7e4   :  { %v3353_v48 = vrot.slane %v3352_v50, 1  ;;  %v3363_v2 = vadd.f32 %v3362_v17, %v3361_v53  ;;  %v3438_v53 = vld [vmem:[%s12318_s21 + $0x40] sm:$0xff]  ;;  %v9871_v17 = vld [vmem:[%s12318_s21 + $0x48] sm:$0xff] }
 0x7e5   :  { %3729 = vmatpush.msra.mxu3 %v9862_v26  ;;  %3565 = vmatpush.msra.mxu2 %v3438_v53 }
 0x7e6   :  { %v3364_v10 = vrot.slane %v3363_v2, 1  ;;  %v3354_v36 = vadd.f32 %v3353_v48, %v3352_v50  ;;  %v3436_v48 = vld [vmem:[%s12318_s21 + $0x30] sm:$0xff] }
 0x7e7   :  { %3730 = vmatpush.msra.mxu3 %v9871_v17  ;;  %3566 = vmatpush.msra.mxu2 %v3436_v48 }
 0x7e8   :  { %v3365_v55 = vadd.f32 %v3364_v10, %v3363_v2  ;;  %v9880_v10 = vld [vmem:[%s12318_s21 + $0x38] sm:$0xff] }
 0x7e9   :  { %3731 = vmatpush.msra.mxu3 %v9880_v10 }
 0x7ea   :  { %v3366_v52 = vsel %vm12440_vm1, %v3354_v36, %v3365_v55  ;;  %v3434_v36 = vld [vmem:[%s12318_s21 + $0x20] sm:$0xff] }
 0x7eb   :  { %6219 = vmatmul.msk.f32.vlgmr.msrb.gmra.mxu2 %vm3345_vm2, %v3366_v52  ;;  %v3432_v52 = vld [vmem:[%s12318_s21 + $0x10] sm:$0xff] }
 0x7ec   :  { %3567 = vmatpush.msra.mxu2 %v3434_v36 }
 0x7ee   :  { %3568 = vmatpush.msra.mxu2 %v3432_v52 }
 0x86e   :  { %v3397_v30 = vpop.f32.mrf.mxu2 }
 0x86f   :  { %v3400_v20 = vmul.f32 0.02, %v3397_v30 }
 0x871   :  { %v3401_v50 = vmul.f32 %v3400_v20, %v3400_v20  ;;  %v3407_v41 = vperm.slane %v3400_v20, 0 }
 0x873   :  { %v3403_v2 = vrot.slane %v3401_v50, 7  ;;  %v9893_v50 = vld [vmem:[%s12318_s21 + $0x28] sm:$0xff] }
 0x874   :  { %3732 = vmatpush.msra.mxu3 %v9893_v50 }
 0x875   :  { %v3405_v55 = vsub.f32 %v3400_v20, %v3403_v2  ;;  %v3430_v2 = vld [vmem:[%s12318_s21] sm:$0xff] }
 0x876   :  { %3733 = vmatpush.msra.mxu3 %v9898_v3  ;;  %3569 = vmatpush.msra.mxu2 %v3430_v2 }
 0x877   :  { %v3406_v30 = vmax.f32 %v3405_v55, 0.0  ;;  %v9907_v55 = vld [vmem:[%s12318_s21 + $0x8] sm:$0xff]  ;;  %s6384_s21 = smov 84  }
 0x878   :  { %3702 = vmatpush.msrb.mxu2 %v3448_v58  ;;  %3734 = vmatpush.msra.mxu3 %v9907_v55 }
 0x879   :  { %v3410_v46 = vadd.f32 1e-05, %v3406_v30 }
 0x87a   :  { %3703 = vmatpush.msrb.mxu2 %v3446_v11  ;;  %v3408_v11 = vsub.f32 %v9801_v51, %v3407_v41 }
 0x87b   :  { %6312 = vrsqrt.f32 %v3410_v46  ;;  %vm3417_vm4 = vweird.f32 %v3410_v46 }
 0x87c   :  { %3704 = vmatpush.msrb.mxu2 %v3444_v1  ;;  %v3409_v1 = vsub.f32 %v9808_v47, %v3407_v41 }
 0x87e   :  { %3705 = vmatpush.msrb.mxu2 %v3442_v16  ;;  %v3427_v16 = vperm.slane %v9771_v42, 2 }
 0x880   :  { %3706 = vmatpush.msrb.mxu2 %v3440_v43 }
 0x881   :  { %v6313_v37 = vpop.eup %6312 }
 0x882   :  { %v3412_v35 = vmul.f32 %v6313_v37, %v3410_v46  ;;  %3707 = vmatpush.msrb.mxu2 %v3438_v53  ;;  %vm3418_vm5 = vweird.f32 %v6313_v37 }
 0x883   :  { %vm3419_vm7 = vmor %vm3417_vm4, %vm3418_vm5  ;;  %vm2858_vm5 = vcmp.eq.f32.partialorder %v9107_v8, %v2853_v12  ;;  %vm2859_vm4 = vcmp.eq.f32.partialorder %v9111_v7, %v2853_v12  ;;  %v12448_v8 = vmov 0   ;;  %v10063_v12 = vld [vmem:[%s12319_s22 + $0x38] sm:$0xff] }
 0x884   :  { %v3413_v62 = vmul.f32 %v6313_v37, %v3412_v35  ;;  %3708 = vmatpush.msrb.mxu2 %v3436_v48  ;;  %v3424_v35 = vperm.slane %v9771_v42, 1 }
 0x886   :  { %v3414_v30 = vmul.f32 0.5, %v3413_v62  ;;  %3709 = vmatpush.msrb.mxu2 %v3434_v36 }
 0x888   :  { %v3415_v45 = vsub.f32 1.5, %v3414_v30  ;;  %3710 = vmatpush.msrb.mxu2 %v3432_v52  ;;  %v2881_v30 = vpop.permute.xlu0 %2880 }
 0x88a   :  { %v3416_v4 = vmul.f32 %v6313_v37, %v3415_v45  ;;  %3711 = vmatpush.msrb.mxu2 %v3430_v2 }
 0x88c   :  { %v3420_v58 = vsel %vm3419_vm7, %v6313_v37, %v3416_v4 }
 0x88d   :  { %v3421_v32 = vperm.slane %v3420_v58, 1 }
 0x88f   :  { %v3423_v62 = vmul.f32 %v3421_v32, %v3409_v1  ;;  %v3422_v43 = vmul.f32 %v3421_v32, %v3408_v11 }
 0x891   :  { %v3426_v53 = vmul.f32 %v3424_v35, %v3423_v62  ;;  %v3425_v20 = vmul.f32 %v3424_v35, %v3422_v43 }
 0x893   :  { %v3429_v46 = vadd.f32 %v3427_v16, %v3426_v53  ;;  %v3428_v45 = vadd.f32 %v3427_v16, %v3425_v20 }
 0x895   :  { %3476 = vrot.lane.b32.xlu2 %v3429_v46, %s6381_s0  ;;  %v3601_v4 = vrot.slane %v3429_v46, 6  ;;  %v3600_v37 = vrot.slane %v3428_v45, 6  ;;  %3474 = vrot.lane.b32.xlu1 %v3428_v45, %s6381_s0  ;;  %v9920_v41 = vsel %vm12441_vm12, %v3428_v45, 0.0  ;;  %v9939_v56 = vsel %vm12445_vm14, %v3429_v46, 0.0  ;;  %v9994_v46 = vld [vmem:[%s12319_s22 + $0x98] sm:$0xff]  ;;  %v10002_v45 = vld [vmem:[%s12319_s22 + $0x88] sm:$0xff] }
 0x896   :  { %6224 = vmatmul.msk.f32.vlgmr.msra.gmra.mxu2 %vm3345_vm2, %v9920_v41  ;;  %3531 = vmatpush.msrb.mxu0 %v9994_v46 }
 0x897   :  { %v3602_v32 = vsel %vm12442_vm13, %v3600_v37, %v3601_v4  ;;  %v3605_v42 = vsel %vm9735_vm15, %v3600_v37, 0.0  ;;  %vm2883_vm15 = vcmp.ne.s32.totalorder %v2881_v30, 0  ;;  %vm12447_vm13 = vmmov %vm12443_vm3  ;;  %v3468_v4 = vld [vmem:[%s12319_s22 + $0x90] sm:$0xff]  ;;  %v10087_v30 = vld [vmem:[%s12319_s22 + $0x8] sm:$0xff] }
 0x898   :  { %v3606_v51 = vsel %vm9745_vm9, %v3602_v32, 0.0  ;;  %v3689_v47 = vrot.slane %v3605_v42, 2  ;;  %3508 = vmatpush.msrb.mxu1 %v3468_v4  ;;  %3532 = vmatpush.msrb.mxu0 %v10002_v45  ;;  %v3464_v42 = vld [vmem:[%s12319_s22 + $0x70] sm:$0xff] }
 0x899   :  { %v3690_v48 = vrot.slane %v3606_v51, 2 }
 0x89b   :  { %v3691_v36 = vsel %vm12443_vm3, %v3689_v47, %v3690_v48  ;;  %v10034_v47 = vld [vmem:[%s12319_s22 + $0x68] sm:$0xff] }
 0x89c   :  { %6234 = vmatmul.msk.f32.vlgmr.msra.gmra.mxu3 %vm3345_vm2, %v3691_v36 }
 0x89d   :  { %2854 = vrot.lane.b32.xlu1 %v9733_v15, %s6381_s0  ;;  %2878 = vrot.lane.b32.xlu2 %v12444_v0, %s6381_s0 }
 0x89e   :  { %6225 = vmatmul.msk.f32.gmra.mxu2 %vm3345_vm2, %v9939_v56 }
 0x8a4   :  { %6235 = vmatmul.msk.f32.gmra.mxu3 %vm3345_vm2, %v3690_v48 }
 0x8a5   :  { %3607 = vrot.lane.b32.xlu1 %v3600_v37, %s6381_s0  ;;  %3609 = vrot.lane.b32.xlu2 %v3602_v32, %s6381_s0  ;;  %v3466_v37 = vld [vmem:[%s12319_s22 + $0x80] sm:$0xff]  ;;  %v10020_v32 = vld [vmem:[%s12319_s22 + $0x78] sm:$0xff] }
 0x8a6   :  { %6232 = vmatmul.msk.f32.vlgmr.msrb.gmra.mxu2 %vm3345_vm2, %v3691_v36  ;;  %3509 = vmatpush.msrb.mxu1 %v3466_v37  ;;  %v3462_v36 = vld [vmem:[%s12319_s22 + $0x60] sm:$0xff] }
 0x8a7   :  { %3533 = vmatpush.msrb.mxu0 %v10020_v32 }
 0x8a8   :  { %3510 = vmatpush.msrb.mxu1 %v3464_v42 }
 0x8a9   :  { %3534 = vmatpush.msrb.mxu0 %v10034_v47 }
 0x8aa   :  { %3511 = vmatpush.msrb.mxu1 %v3462_v36 }
 0x8ae   :  { %6233 = vmatmul.msk.f32.gmra.mxu2 %vm3345_vm2, %v3690_v48  ;;  %v10041_v48 = vld [vmem:[%s12319_s22 + $0x58] sm:$0xff] }
 0x8af   :  { %3535 = vmatpush.msrb.mxu0 %v10041_v48 }
 0x8ef   :  { %v3477_v15 = vpop.permute.xlu2 %3476 }
 0x8f0   :  { %v3482_v9 = vsel %vm9447_vm8, %v3477_v15, 0.0  ;;  %v3483_v22 = vsel %vm9514_vm10, %v3477_v15, 0.0  ;;  %vm12446_vm10 = vmmov %vm12443_vm3  ;;  %vm12364_vm3 = vcmp.eq.f32.partialorder %v8087_v31, %v8428_v23  ;;  %v10054_v15 = vld [vmem:[%s12319_s22 + $0x48] sm:$0xff] }
 0x8f1   :  { %3492 = vrot.lane.b32.xlu2 %v3482_v9, %s6380_s20  ;;  %vm1628_vm14 = vmxor %vm12364_vm3, %vm12367_vm6  ;;  %v3460_v9 = vld [vmem:[%s12319_s22 + $0x50] sm:$0xff]  ;;  %3536 = vmatpush.msrb.mxu0 %v10054_v15 }
 0x8f2   :  { %v1632_v7 = vsel %vm1628_vm14, 1, %v12448_v8  ;;  %3512 = vmatpush.msrb.mxu1 %v3460_v9 }
 0x8f3   :  { %3537 = vmatpush.msrb.mxu0 %v10063_v12 }
 0x8f7   :  { %v2879_v2 = vpop.permute.xlu2 %2878 }
 0x8ff   :  { %v3610_v13 = vpop.permute.xlu2 %3609 }
 0x907   :  { %v3475_v14 = vpop.permute.xlu1 %3474 }
 0x908   :  { %v3481_v40 = vsel %vm9494_vm11, %v3475_v14, 0.0  ;;  %v3480_v52 = vsel %vm9487_vm0, %v3475_v14, 0.0  ;;  %vm2882_vm11 = vcmp.ne.s32.totalorder %v2879_v2, 0  ;;  %v3458_v14 = vld [vmem:[%s12319_s22 + $0x40] sm:$0xff]  ;;  %v10081_v2 = vld [vmem:[%s12319_s22 + $0x18] sm:$0xff] }
 0x909   :  { %3490 = vrot.lane.b32.xlu1 %v3481_v40, %s6380_s20  ;;  %3488 = vrot.lane.b32.xlu0 %v3480_v52, %s6380_s20  ;;  %vm2884_vm7 = vmand %vm2858_vm5, %vm2882_vm11  ;;  %v10072_v40 = vld [vmem:[%s12319_s22 + $0x28] sm:$0xff]  ;;  %v3456_v52 = vld [vmem:[%s12319_s22 + $0x30] sm:$0xff]  ;;  %vm12449_vm5 = vcmask 392192  }
 0x90a   :  { %vm2885_vm12 = vmand %vm2859_vm4, %vm2882_vm11  ;;  %vm12366_vm11 = vcmp.eq.f32.partialorder %v8115_v5, %v8578_v63  ;;  %3513 = vmatpush.msrb.mxu1 %v3458_v14  ;;  %3538 = vmatpush.msrb.mxu0 %v10072_v40 }
 0x90b   :  { %vm12450_vm4 = vmmov %vm12449_vm5 }
 0x90c   :  { %3514 = vmatpush.msrb.mxu1 %v3456_v52  ;;  %3539 = vmatpush.msrb.mxu0 %v10081_v2 }
 0x90e   :  { %3540 = vmatpush.msrb.mxu0 %v10087_v30 }
 0x90f   :  { %v2855_v58 = vpop.permute.xlu1 %2854 }
 0x910   :  { %vm2860_vm8 = vcmp.eq.f32.partialorder %v9113_v18, %v2855_v58  ;;  %vm2861_vm9 = vcmp.eq.f32.partialorder %v9121_v39, %v2855_v58  ;;  %3583 = vmatpush.msra.mxu0 %v9830_v33  ;;  %v3454_v33 = vld [vmem:[%s12319_s22 + $0x20] sm:$0xff] }
 0x911   :  { %vm2886_vm1 = vmand %vm2860_vm8, %vm2883_vm15  ;;  %3494 = vrot.lane.b32.xlu0 %v3483_v22, %s6380_s20  ;;  %3515 = vmatpush.msrb.mxu1 %v3454_v33 }
 0x912   :  { %vm2887_vm0 = vmand %vm2861_vm9, %vm2883_vm15  ;;  %v3615_v44 = vsel %vm2886_vm1, %v3610_v13, 0.0  ;;  %vm12363_vm15 = vcmp.eq.f32.partialorder %v8083_v25, %v8426_v19  ;;  %vm12365_vm9 = vcmp.eq.f32.partialorder %v8095_v57, %v8529_v49  ;;  %3584 = vmatpush.msra.mxu0 %v9839_v34  ;;  %v3452_v34 = vld [vmem:[%s12319_s22 + $0x10] sm:$0xff] }
 0x913   :  { %v3616_v11 = vsel %vm2887_vm0, %v3610_v13, 0.0  ;;  %v3622_v1 = vrot.slane %v3615_v44, 2  ;;  %vm1627_vm8 = vmxor %vm12363_vm15, %vm12367_vm6  ;;  %3516 = vmatpush.msrb.mxu1 %v3452_v34  ;;  %v12451_v13 = vmov 0  ;;  %v12454_v44 = vmov 0 }
 0x914   :  { %v3625_v21 = vrot.slane %v3616_v11, 2  ;;  %v1631_v20 = vsel %vm1627_vm8, 1, %v12448_v8  ;;  %vm1630_vm1 = vmxor %vm12365_vm9, %vm12367_vm6  ;;  %3585 = vmatpush.msra.mxu0 %v9844_v61  ;;  %v3450_v61 = vld [vmem:[%s12319_s22] sm:$0xff] }
 0x915   :  { %v1634_v51 = vsel %vm1630_vm1, 1, %v12448_v8  ;;  %vm1629_vm0 = vmxor %vm12366_vm11, %vm12367_vm6  ;;  %3517 = vmatpush.msrb.mxu1 %v3450_v61 }
 0x916   :  { %v1633_v0 = vsel %vm1629_vm0, 1, %v12448_v8  ;;  %3586 = vmatpush.msra.mxu0 %v9853_v27  ;;  %vm12457_vm8 = vmmov %vm12450_vm4 }
 0x917   :  { %v3608_v18 = vpop.permute.xlu1 %3607  ;;  %3647 = vmatpush.msra.mxu1 %v3468_v4  ;;  %vm12458_vm1 = vmmov %vm12450_vm4 }
 0x918   :  { %v3613_v39 = vsel %vm2884_vm7, %v3608_v18, 0.0  ;;  %v3614_v35 = vsel %vm2885_vm12, %v3608_v18, 0.0  ;;  %3587 = vmatpush.msra.mxu0 %v9862_v26 }
 0x919   :  { %v3621_v62 = vrot.slane %v3613_v39, 2  ;;  %v3624_v16 = vrot.slane %v3614_v35, 2  ;;  %3631 = vrot.lane.b32.xlu0 %v3622_v1, %s6380_s20  ;;  %3648 = vmatpush.msra.mxu1 %v3466_v37  ;;  %v12468_v37 = vmov 0 }
 0x91a   :  { %3588 = vmatpush.msra.mxu0 %v9871_v17 }
 0x91b   :  { %v3626_v43 = vsel %vm12446_vm10, %v3624_v16, %v3625_v21  ;;  %v3623_v53 = vsel %vm12447_vm13, %v3621_v62, %v3622_v1  ;;  %3649 = vmatpush.msra.mxu1 %v3464_v42 }
 0x91c   :  { %3629 = vrot.lane.b32.xlu2 %v3626_v43, %s6380_s20  ;;  %3627 = vrot.lane.b32.xlu1 %v3623_v53, %s6380_s20  ;;  %v12462_v43 = vmov 0 }
 0x91d   :  { %3589 = vmatpush.msra.mxu0 %v9880_v10  ;;  %3650 = vmatpush.msra.mxu1 %v3462_v36  ;;  %v3988_v36 = vld [vmem:[%s12309_s12 + $0x70] sm:$0xff] }
 0x91f   :  { %3590 = vmatpush.msra.mxu0 %v9893_v50  ;;  %3651 = vmatpush.msra.mxu1 %v3460_v9  ;;  %v3986_v9 = vld [vmem:[%s12309_s12 + $0x60] sm:$0xff] }
 0x921   :  { %1609 = vrot.lane.b32.xlu0 %v8428_v23, %s6384_s21  ;;  %3591 = vmatpush.msra.mxu0 %v9898_v3 }
 0x922   :  { %3652 = vmatpush.msra.mxu1 %v3458_v14  ;;  %v4005_v14 = vld [vmem:[%s12309_s12 + $0xf8] sm:$0xff] }
 0x923   :  { %3592 = vmatpush.msra.mxu0 %v9907_v55 }
 0x924   :  { %1607 = vrot.lane.b32.xlu2 %v8426_v19, %s6384_s21  ;;  %3633 = vrot.lane.b32.xlu1 %v3625_v21, %s6380_s20 }
 0x925   :  { %3653 = vmatpush.msra.mxu1 %v3456_v52  ;;  %v3985_v52 = vld [vmem:[%s12309_s12 + $0x58] sm:$0xff] }
 0x927   :  { %3654 = vmatpush.msra.mxu1 %v3454_v33  ;;  %v3982_v33 = vld [vmem:[%s12309_s12 + $0x40] sm:$0xff] }
 0x929   :  { %1637 = vrot.lane.b32.xlu0 %v1632_v7, %s6384_s21  ;;  %3655 = vmatpush.msra.mxu1 %v3452_v34  ;;  %v4004_v34 = vld [vmem:[%s12309_s12 + $0xf0] sm:$0xff] }
 0x92b   :  { %3656 = vmatpush.msra.mxu1 %v3450_v61  ;;  %v4018_v61 = vld [vmem:[%s12309_s12 + $0x160] sm:$0xff] }
 0x92c   :  { %1635 = vrot.lane.b32.xlu2 %v1631_v20, %s6384_s21  ;;  %1611 = vrot.lane.b32.xlu1 %v8578_v63, %s6384_s21 }
 0x931   :  { %1641 = vrot.lane.b32.xlu0 %v1634_v51, %s6384_s21 }
 0x934   :  { %1613 = vrot.lane.b32.xlu2 %v8529_v49, %s6384_s21  ;;  %1639 = vrot.lane.b32.xlu1 %v1633_v0, %s6384_s21  ;;  %v3987_v0 = vld [vmem:[%s12309_s12 + $0x68] sm:$0xff] }
 0x94b   :  { %v3493_v3 = vpop.permute.xlu2 %3492 }
 0x976   :  { %v3630_v27 = vpop.permute.xlu2 %3629 }
 0x97b   :  { %v3491_v26 = vpop.permute.xlu1 %3490  ;;  %v3489_v17 = vpop.permute.xlu0 %3488 }
 0x97c   :  { %v3496_v10 = vsel %vm12449_vm5, %v3489_v17, %v3491_v26  ;;  %v3571_v26 = vpop.f32.mrf.mxu2  ;;  %v3980_v17 = vld [vmem:[%s12309_s12 + $0x30] sm:$0xff] }
 0x97d   :  { %6220 = vmatmul.msk.f32.vlgmr.msrb.gmra.mxu1 %vm3345_vm2, %v3496_v10  ;;  %6222 = vmatmul.msk.f32.vlgmr.msrb.gmra.mxu0 %vm3345_vm2, %v3496_v10  ;;  %v4017_v10 = vld [vmem:[%s12309_s12 + $0x158] sm:$0xff] }
 0x97e   :  { %v1608_v50 = vpop.permute.xlu2 %1607  ;;  %3670 = vmatpush.msrb.mxu0 %v9994_v46  ;;  %v12465_v46 = vmov 0 }
 0x97f   :  { %vm1619_vm7 = vcmp.eq.f32.partialorder %v8083_v25, %v1608_v50  ;;  %vm1620_vm10 = vcmp.eq.f32.partialorder %v8079_v24, %v1608_v50  ;;  %v4002_v50 = vld [vmem:[%s12309_s12 + $0xe0] sm:$0xff] }
 0x980   :  { %3671 = vmatpush.msrb.mxu0 %v10002_v45 }
 0x982   :  { %3672 = vmatpush.msrb.mxu0 %v10020_v32  ;;  %v12471_v32 = vmov 0 }
 0x983   :  { %v3495_v55 = vpop.permute.xlu0 %3494 }
 0x984   :  { %v3497_v58 = vsel %vm12450_vm4, %v3493_v3, %v3495_v55  ;;  %3673 = vmatpush.msrb.mxu0 %v10034_v47  ;;  %v4003_v3 = vld [vmem:[%s12309_s12 + $0xe8] sm:$0xff]  ;;  %v4016_v55 = vld [vmem:[%s12309_s12 + $0x150] sm:$0xff] }
 0x985   :  { %6221 = vmatmul.msk.f32.gmra.mxu1 %vm3345_vm2, %v3497_v58  ;;  %6223 = vmatmul.msk.f32.gmra.mxu0 %vm3345_vm2, %v3497_v58  ;;  %v4001_v58 = vld [vmem:[%s12309_s12 + $0xd8] sm:$0xff] }
 0x986   :  { %v1636_v22 = vpop.permute.xlu2 %1635  ;;  %3674 = vmatpush.msrb.mxu0 %v10041_v48  ;;  %v3989_v48 = vld [vmem:[%s12309_s12 + $0x78] sm:$0xff] }
 0x987   :  { %vm1643_vm12 = vcmp.ne.s32.totalorder %v1636_v22, 0  ;;  %4135 = vmatpush.msrb.mxu1 %v3989_v48  ;;  %v3979_v22 = vld [vmem:[%s12309_s12 + $0x28] sm:$0xff]  ;;  %v4013_v48 = vld [vmem:[%s12309_s12 + $0x138] sm:$0xff] }
 0x988   :  { %vm10123_vm13 = vmand %vm1619_vm7, %vm1643_vm12  ;;  %3675 = vmatpush.msrb.mxu0 %v10054_v15  ;;  %v4021_v15 = vld [vmem:[%s12309_s12 + $0x178] sm:$0xff] }
 0x989   :  { %v12452_v13 = vsel %vm10123_vm13, 4294967295, %v12451_v13  ;;  %vm10128_vm14 = vmand %vm1620_vm10, %vm1643_vm12  ;;  %v1670_v11 = vsel %vm10123_vm13, 1, %v12448_v8  ;;  %4136 = vmatpush.msrb.mxu1 %v3988_v36  ;;  %4193 = vmatpush.msra.mxu2 %v4021_v15  ;;  %v3998_v36 = vld [vmem:[%s12309_s12 + $0xc0] sm:$0xff]  ;;  %v3975_v15 = vld [vmem:[%s12309_s12 + $0x8] sm:$0xff] }
 0x98a   :  { %12453 = vst [vmem:[#allocation24_spill] sm:$0xff] %v12452_v13  ;;  %v12455_v44 = vsel %vm10128_vm14, 4294967295, %v12454_v44  ;;  %v1671_v18 = vsel %vm10128_vm14, 1, %v12448_v8  ;;  %1678 = vrot.lane.b32.xlu1 %v1670_v11, %s6379_s17  ;;  %3676 = vmatpush.msrb.mxu0 %v10063_v12  ;;  %v4020_v12 = vld [vmem:[%s12309_s12 + $0x170] sm:$0xff]  ;;  %v4015_v11 = vld [vmem:[%s12309_s12 + $0x148] sm:$0xff] }
 0x98b   :  { %12456 = vst [vmem:[#allocation25_spill] sm:$0xff] %v12455_v44  ;;  %1680 = vrot.lane.b32.xlu2 %v1671_v18, %s6379_s17  ;;  %v3632_v24 = vpop.permute.xlu0 %3631  ;;  %4137 = vmatpush.msrb.mxu1 %v3987_v0  ;;  %v3978_v18 = vld [vmem:[%s12309_s12 + $0x20] sm:$0xff]  ;;  %v4035_v0 = vld [vmem:[%s12309_s12 + $0x1e8] sm:$0xff] }
 0x98c   :  { %3677 = vmatpush.msrb.mxu0 %v10072_v40  ;;  %v4019_v40 = vld [vmem:[%s12309_s12 + $0x168] sm:$0xff]  ;;  %4194 = vmatpush.msra.mxu2 %v4020_v12  ;;  %v3997_v12 = vld [vmem:[%s12309_s12 + $0xb8] sm:$0xff] }
 0x98d   :  { %6226 = vmatmul.msk.f32.vlgmr.msra.gmra.mxu0 %vm3345_vm2, %v9920_v41  ;;  %v12459_v41 = vmov 0  ;;  %4138 = vmatpush.msrb.mxu1 %v3986_v9  ;;  %v4012_v9 = vld [vmem:[%s12309_s12 + $0x130] sm:$0xff] }
 0x98e   :  { %v3628_v1 = vpop.permute.xlu1 %3627  ;;  %3678 = vmatpush.msrb.mxu0 %v10081_v2  ;;  %v1614_v7 = vpop.permute.xlu2 %1613  ;;  %v3984_v2 = vld [vmem:[%s12309_s12 + $0x50] sm:$0xff]  ;;  %4195 = vmatpush.msra.mxu2 %v4019_v40  ;;  %v3974_v40 = vld [vmem:[%s12309_s12] sm:$0xff] }
 0x98f   :  { %v3635_v39 = vsel %vm12457_vm8, %v3628_v1, %v3630_v27  ;;  %vm1625_vm10 = vcmp.eq.f32.partialorder %v8095_v57, %v1614_v7  ;;  %4139 = vmatpush.msrb.mxu1 %v3985_v52  ;;  %v3981_v27 = vld [vmem:[%s12309_s12 + $0x38] sm:$0xff]  ;;  %v4011_v52 = vld [vmem:[%s12309_s12 + $0x128] sm:$0xff] }
 0x990   :  { %6228 = vmatmul.msk.f32.vlgmr.msra.gmra.mxu1 %vm3345_vm2, %v3635_v39  ;;  %3679 = vmatpush.msrb.mxu0 %v10087_v30  ;;  %v3983_v30 = vld [vmem:[%s12309_s12 + $0x48] sm:$0xff] }
 0x991   :  { %4140 = vmatpush.msrb.mxu1 %v3984_v2  ;;  %4196 = vmatpush.msra.mxu2 %v4018_v61  ;;  %v3996_v2 = vld [vmem:[%s12309_s12 + $0xb0] sm:$0xff]  ;;  %v3995_v61 = vld [vmem:[%s12309_s12 + $0xa8] sm:$0xff] }
 0x992   :  { %4164 = vmatpush.msra.mxu0 %v4005_v14  ;;  %v4034_v14 = vld [vmem:[%s12309_s12 + $0x1e0] sm:$0xff] }
 0x993   :  { %v1610_v35 = vpop.permute.xlu0 %1609  ;;  %4141 = vmatpush.msrb.mxu1 %v3983_v30  ;;  %4197 = vmatpush.msra.mxu2 %v4017_v10  ;;  %v4033_v30 = vld [vmem:[%s12309_s12 + $0x1d8] sm:$0xff] }
 0x994   :  { %vm1621_vm0 = vcmp.eq.f32.partialorder %v8087_v31, %v1610_v35  ;;  %vm1622_vm4 = vcmp.eq.f32.partialorder %v8103_v6, %v1610_v35  ;;  %4165 = vmatpush.msra.mxu0 %v4004_v34  ;;  %v4053_v34 = vld [vmem:[%s12309_s12 + $0x278] sm:$0xff] }
 0x995   :  { %6227 = vmatmul.msk.f32.gmra.mxu0 %vm3345_vm2, %v9939_v56  ;;  %4142 = vmatpush.msrb.mxu1 %v3982_v33  ;;  %v4010_v33 = vld [vmem:[%s12309_s12 + $0x120] sm:$0xff]  ;;  %v4009_v10 = vld [vmem:[%s12309_s12 + $0x118] sm:$0xff] }
 0x996   :  { %v3634_v21 = vpop.permute.xlu1 %3633  ;;  %4166 = vmatpush.msra.mxu0 %v4003_v3  ;;  %4198 = vmatpush.msra.mxu2 %v4016_v55 }
 0x997   :  { %v3636_v62 = vsel %vm12458_vm1, %v3632_v24, %v3634_v21  ;;  %4143 = vmatpush.msrb.mxu1 %v3981_v27 }
 0x998   :  { %6229 = vmatmul.msk.f32.gmra.mxu1 %vm3345_vm2, %v3636_v62  ;;  %4167 = vmatpush.msra.mxu0 %v4002_v50 }
 0x999   :  { %4144 = vmatpush.msrb.mxu1 %v3980_v17  ;;  %4199 = vmatpush.msra.mxu2 %v4015_v11  ;;  %v4032_v17 = vld [vmem:[%s12309_s12 + $0x1d0] sm:$0xff] }
 0x99a   :  { %4168 = vmatpush.msra.mxu0 %v4001_v58  ;;  %v4052_v58 = vld [vmem:[%s12309_s12 + $0x270] sm:$0xff] }
 0x99b   :  { %v1638_v16 = vpop.permute.xlu0 %1637  ;;  %4145 = vmatpush.msrb.mxu1 %v3979_v22  ;;  %v3994_v22 = vld [vmem:[%s12309_s12 + $0xa0] sm:$0xff] }
 0x99c   :  { %vm1644_vm5 = vcmp.ne.s32.totalorder %v1638_v16, 0  ;;  %v4000_v16 = vld [vmem:[%s12309_s12 + $0xd0] sm:$0xff] }
 0x99d   :  { %vm10154_vm7 = vmand %vm1621_vm0, %vm1644_vm5  ;;  %6230 = vmatmul.msk.f32.vlgmr.msrb.gmra.mxu0 %vm3345_vm2, %v3635_v39  ;;  %4146 = vmatpush.msrb.mxu1 %v3978_v18  ;;  %v4031_v18 = vld [vmem:[%s12309_s12 + $0x1c8] sm:$0xff] }
 0x99e   :  { %v12460_v41 = vsel %vm10154_vm7, 4294967295, %v12459_v41  ;;  %vm10159_vm12 = vmand %vm1622_vm4, %vm1644_vm5  ;;  %v1612_v56 = vpop.permute.xlu1 %1611  ;;  %v1672_v53 = vsel %vm10154_vm7, 1, %v12448_v8  ;;  %4169 = vmatpush.msra.mxu0 %v4000_v16 }
 0x99f   :  { %12461 = vst [vmem:[#allocation26_spill] sm:$0xff] %v12460_v41  ;;  %v12463_v43 = vsel %vm10159_vm12, 4294967295, %v12462_v43  ;;  %1682 = vrot.lane.b32.xlu0 %v1672_v53, %s6379_s17  ;;  %v1673_v6 = vsel %vm10159_vm12, 1, %v12448_v8  ;;  %vm1623_vm0 = vcmp.eq.f32.partialorder %v8115_v5, %v1612_v56  ;;  %vm1624_vm4 = vcmp.eq.f32.partialorder %v8131_v38, %v1612_v56  ;;  %v4037_v56 = vld [vmem:[%s12309_s12 + $0x1f8] sm:$0xff] }
 0x9a0   :  { %12464 = vst [vmem:[#allocation27_spill] sm:$0xff] %v12463_v43  ;;  %1684 = vrot.lane.b32.xlu1 %v1673_v6, %s6379_s17  ;;  %v12474_v38 = vmov 0  ;;  %v3977_v53 = vld [vmem:[%s12309_s12 + $0x18] sm:$0xff]  ;;  %v4014_v6 = vld [vmem:[%s12309_s12 + $0x140] sm:$0xff]  ;;  %4222 = vmatpush.msrb.mxu3 %v4037_v56 }
 0x9a1   :  { %4147 = vmatpush.msrb.mxu1 %v3977_v53  ;;  %4200 = vmatpush.msra.mxu2 %v4014_v6  ;;  %v4007_v53 = vld [vmem:[%s12309_s12 + $0x108] sm:$0xff] }
 0x9a3   :  { %v1642_v20 = vpop.permute.xlu0 %1641  ;;  %4201 = vmatpush.msra.mxu2 %v4013_v48  ;;  %v4029_v48 = vld [vmem:[%s12309_s12 + $0x1b8] sm:$0xff] }
 0x9a4   :  { %vm1646_vm8 = vcmp.ne.s32.totalorder %v1642_v20, 0  ;;  %v3999_v20 = vld [vmem:[%s12309_s12 + $0xc8] sm:$0xff] }
 0x9a5   :  { %vm10173_vm1 = vmand %vm1625_vm10, %vm1646_vm8  ;;  %6231 = vmatmul.msk.f32.gmra.mxu0 %vm3345_vm2, %v3636_v62  ;;  %vm1626_vm2 = vcmp.eq.f32.partialorder %v8091_v29, %v1614_v7  ;;  %v3574_v7 = vpop.f32.mrf.mxu2  ;;  %4202 = vmatpush.msra.mxu2 %v4012_v9  ;;  %v4468_v29 = vld [vmem:[%s12311_s14 + $0x40] sm:$0xff] }
 0x9a6   :  { %v12466_v46 = vsel %vm10173_vm1, 4294967295, %v12465_v46  ;;  %v1640_v45 = vpop.permute.xlu1 %1639  ;;  %v1676_v4 = vsel %vm10173_vm1, 1, %v12448_v8  ;;  %4170 = vmatpush.msra.mxu0 %v3999_v20  ;;  %vm12521_vm1 = vcmask 254976  }
 0x9a7   :  { %12467 = vst [vmem:[#allocation28_spill] sm:$0xff] %v12466_v46  ;;  %vm1645_vm5 = vcmp.ne.s32.totalorder %v1640_v45, 0  ;;  %v4036_v45 = vld [vmem:[%s12309_s12 + $0x1f0] sm:$0xff]  ;;  %4203 = vmatpush.msra.mxu2 %v4011_v52 }
 0x9a8   :  { %vm10183_vm15 = vmand %vm1623_vm0, %vm1645_vm5  ;;  %1690 = vrot.lane.b32.xlu1 %v1676_v4, %s6379_s17  ;;  %4223 = vmatpush.msrb.mxu3 %v4036_v45 }
 0x9a9   :  { %v12469_v37 = vsel %vm10183_vm15, 4294967295, %v12468_v37  ;;  %vm10188_vm10 = vmand %vm1624_vm4, %vm1645_vm5  ;;  %v1674_v42 = vsel %vm10183_vm15, 1, %v12448_v8  ;;  %4171 = vmatpush.msra.mxu0 %v3998_v36  ;;  %4204 = vmatpush.msra.mxu2 %v4010_v33  ;;  %vm12478_vm5 = vcmask 259076   ;;  %v4006_v36 = vld [vmem:[%s12309_s12 + $0x100] sm:$0xff]  ;;  %v4027_v33 = vld [vmem:[%s12309_s12 + $0x1a8] sm:$0xff] }
 0x9aa   :  { %12470 = vst [vmem:[#allocation29_spill] sm:$0xff] %v12469_v37  ;;  %v12472_v32 = vsel %vm10188_vm10, 4294967295, %v12471_v32  ;;  %v1675_v51 = vsel %vm10188_vm10, 1, %v12448_v8  ;;  %1686 = vrot.lane.b32.xlu2 %v1674_v42, %s6379_s17  ;;  %vm10202_vm0 = vmand %vm1626_vm2, %vm1646_vm8  ;;  %4224 = vmatpush.msrb.mxu3 %v4035_v0  ;;  %vm12477_vm8 = vcmask 254976   ;;  %v4049_v0 = vld [vmem:[%s12309_s12 + $0x258] sm:$0xff]  ;;  %vm12566_vm10 = vcmask 1043456  }
 0x9ab   :  { %12473 = vst [vmem:[#allocation30_spill] sm:$0xff] %v12472_v32  ;;  %1688 = vrot.lane.b32.xlu0 %v1675_v51, %s6379_s17  ;;  %v12475_v38 = vsel %vm10202_vm0, 4294967295, %v12474_v38  ;;  %v1677_v47 = vsel %vm10202_vm0, 1, %v12448_v8  ;;  %4172 = vmatpush.msra.mxu0 %v3997_v12  ;;  %vm12479_vm4 = vmmov %vm12477_vm8  ;;  %v3991_v12 = vld [vmem:[%s12309_s12 + $0x88] sm:$0xff] }
 0x9ac   :  { %12476 = vst [vmem:[#allocation31_spill] sm:$0xff] %v12475_v38  ;;  %4225 = vmatpush.msrb.mxu3 %v4034_v14  ;;  %4205 = vmatpush.msra.mxu2 %v4009_v10  ;;  %vm12480_vm2 = vmmov %vm12478_vm5  ;;  %v4028_v14 = vld [vmem:[%s12309_s12 + $0x1b0] sm:$0xff]  ;;  %v4469_v38 = vld [vmem:[%s12311_s14 + $0x48] sm:$0xff] }
 0x9ad   :  { %v3713_v3 = vpop.f32.mrf.mxu2  ;;  %4173 = vmatpush.msra.mxu0 %v3996_v2  ;;  %v4085_v2 = vld [vmem:[%s12309_s12 + $0x378] sm:$0xff]  ;;  %v4084_v10 = vld [vmem:[%s12309_s12 + $0x370] sm:$0xff] }
 0x9ae   :  { %4226 = vmatpush.msrb.mxu3 %v4033_v30  ;;  %v3990_v30 = vld [vmem:[%s12309_s12 + $0x80] sm:$0xff] }
 0x9af   :  { %4174 = vmatpush.msra.mxu0 %v3995_v61  ;;  %v4069_v61 = vld [vmem:[%s12309_s12 + $0x2f8] sm:$0xff] }
 0x9b0   :  { %4227 = vmatpush.msrb.mxu3 %v4032_v17 }
 0x9b1   :  { %4175 = vmatpush.msra.mxu0 %v3994_v22  ;;  %v4046_v22 = vld [vmem:[%s12309_s12 + $0x240] sm:$0xff] }
 0x9b2   :  { %1692 = vrot.lane.b32.xlu2 %v1677_v47, %s6379_s17  ;;  %v3976_v47 = vld [vmem:[%s12309_s12 + $0x10] sm:$0xff]  ;;  %4228 = vmatpush.msrb.mxu3 %v4031_v18  ;;  %v4083_v18 = vld [vmem:[%s12309_s12 + $0x368] sm:$0xff] }
 0x9b3   :  { %4148 = vmatpush.msrb.mxu1 %v3976_v47 }
 0x9b5   :  { %4149 = vmatpush.msrb.mxu1 %v3975_v15 }
 0x9b7   :  { %4150 = vmatpush.msrb.mxu1 %v3974_v40  ;;  %v4048_v40 = vld [vmem:[%s12309_s12 + $0x250] sm:$0xff] }
 0x9b9   :  { %4251 = vmatpush.msra.mxu1 %v4053_v34  ;;  %v3716_v34 = vpop.f32.mrf.mxu2 }
 0x9ba   :  { %1731 = vrot.lane.b32.xlu2 %v8470_v60, %s6384_s21 }
 0x9bb   :  { %4252 = vmatpush.msra.mxu1 %v4052_v58 }
 0x9e5   :  { %v10351_v27 = vpop.permute.xlu2 %1680 }
 0x9fa   :  { %v3519_v24 = vpop.f32.mrf.mxu1  ;;  %v10284_v1 = vpop.f32.mrf.mxu0 }
 0x9fb   :  { %v3572_v39 = vadd.f32 %v3571_v26, %v3519_v24  ;;  %v10353_v26 = vld [vmem:[#allocation5] sm:$0xff]  ;;  %v4008_v24 = vld [vmem:[%s12309_s12 + $0x110] sm:$0xff] }
 0x9fc   :  { %4151 = vmatmul.f32.vlgmr.msrb.gmra.mxu1 %v10353_v26  ;;  %v10362_v50 = vpop.permute.xlu1 %1678  ;;  %4206 = vmatpush.msra.mxu2 %v4008_v24  ;;  %v4025_v24 = vld [vmem:[%s12309_s12 + $0x198] sm:$0xff] }
 0x9fd   :  { %3742 = vst [vmem:[#allocation10] sm:$0x3] %v3572_v39  ;;  %v3754_v35 = vrot.slane %v3572_v39, 6  ;;  %v3766_v21 = vrot.slane %v3572_v39, 4  ;;  %v3778_v62 = vrot.slane %v3572_v39, 2  ;;  %v4051_v39 = vld [vmem:[%s12309_s12 + $0x268] sm:$0xff] }
 0x9fe   :  { %4253 = vmatpush.msra.mxu1 %v4051_v39  ;;  %4207 = vmatpush.msra.mxu2 %v4007_v53  ;;  %v3736_v39 = vpop.f32.mrf.mxu3  ;;  %v4024_v53 = vld [vmem:[%s12309_s12 + $0x190] sm:$0xff] }
 0x9ff   :  { %3758 = vst [vmem:[#allocation10] sm:$0x30] %v3754_v35  ;;  %v4030_v35 = vld [vmem:[%s12309_s12 + $0x1c0] sm:$0xff] }
 0xa00   :  { %3770 = vst [vmem:[#allocation10 + $0x10] sm:$0x3] %v3766_v21  ;;  %4229 = vmatpush.msrb.mxu3 %v4030_v35  ;;  %4208 = vmatpush.msra.mxu2 %v4006_v36  ;;  %v4045_v35 = vld [vmem:[%s12309_s12 + $0x238] sm:$0xff] }
 0xa01   :  { %3782 = vst [vmem:[#allocation10 + $0x10] sm:$0x30] %v3778_v62 }
 0xa02   :  { %v3522_v4 = vpop.f32.mrf.mxu1  ;;  %v10304_v42 = vpop.f32.mrf.mxu0  ;;  %4230 = vmatpush.msrb.mxu3 %v4029_v48  ;;  %4309 = vmatpush.msrb.mxu2 %v4085_v2 }
 0xa03   :  { %v3575_v51 = vadd.f32 %v3574_v7, %v3522_v4  ;;  %v4050_v7 = vld [vmem:[%s12309_s12 + $0x260] sm:$0xff] }
 0xa04   :  { %v10398_v47 = vpop.permute.xlu2 %1686  ;;  %4254 = vmatpush.msra.mxu1 %v4050_v7  ;;  %4231 = vmatpush.msrb.mxu3 %v4028_v14 }
 0xa05   :  { %3786 = vst [vmem:[#allocation10 + $0x20] sm:$0x3] %v3575_v51  ;;  %v3992_v51 = vld [vmem:[%s12309_s12 + $0x90] sm:$0xff]  ;;  %4310 = vmatpush.msrb.mxu2 %v4084_v10  ;;  %v4101_v10 = vld [vmem:[%s12309_s12 + $0x3f8] sm:$0xff] }
 0xa06   :  { %4255 = vmatpush.msra.mxu1 %v4049_v0  ;;  %4232 = vmatpush.msrb.mxu3 %v4027_v33  ;;  %v4043_v0 = vld [vmem:[%s12309_s12 + $0x228] sm:$0xff] }
 0xa07   :  { %4311 = vmatpush.msrb.mxu2 %v4083_v18  ;;  %v3739_v18 = vpop.f32.mrf.mxu3 }
 0xa08   :  { %4256 = vmatpush.msra.mxu1 %v4048_v40 }
 0xa0a   :  { %v3594_v55 = vpop.f32.mrf.mxu0 }
 0xa0b   :  { %v3595_v11 = vadd.f32 %v3594_v55, %v10284_v1  ;;  %v3993_v1 = vld [vmem:[%s12309_s12 + $0x98] sm:$0xff]  ;;  %v4026_v55 = vld [vmem:[%s12309_s12 + $0x1a0] sm:$0xff] }
 0xa0c   :  { %4176 = vmatpush.msra.mxu0 %v3993_v1  ;;  %4233 = vmatpush.msrb.mxu3 %v4026_v55  ;;  %v4067_v1 = vld [vmem:[%s12309_s12 + $0x2e8] sm:$0xff]  ;;  %v1693_v48 = vpop.permute.xlu2 %1692  ;;  %v4041_v55 = vld [vmem:[%s12309_s12 + $0x218] sm:$0xff] }
 0xa0d   :  { %3743 = vst.msk [vmem:[#allocation10 + $0x8] sm:$0x3] %vm12477_vm8, %v3595_v11  ;;  %v3755_v21 = vrot.slane %v3595_v11, 6  ;;  %v3767_v62 = vrot.slane %v3595_v11, 4  ;;  %v3779_v16 = vrot.slane %v3595_v11, 2  ;;  %v3658_v56 = vpop.f32.mrf.mxu1  ;;  %vm12481_vm8 = vmmov %vm12479_vm4  ;;  %v4068_v11 = vld [vmem:[%s12309_s12 + $0x2f0] sm:$0xff] }
 0xa0e   :  { %v3714_v6 = vadd.f32 %v3713_v3, %v3658_v56  ;;  %4177 = vmatpush.msra.mxu0 %v3992_v51  ;;  %4234 = vmatpush.msrb.mxu3 %v4025_v24  ;;  %v4023_v51 = vld [vmem:[%s12309_s12 + $0x188] sm:$0xff] }
 0xa0f   :  { %3759 = vst.msk [vmem:[#allocation10 + $0x8] sm:$0x30] %vm12478_vm5, %v3755_v21  ;;  %v4082_v21 = vld [vmem:[%s12309_s12 + $0x360] sm:$0xff]  ;;  %vm12482_vm5 = vcmask 359424  }
 0xa10   :  { %3771 = vst.msk [vmem:[#allocation10 + $0x18] sm:$0x3] %vm12479_vm4, %v3767_v62  ;;  %v3746_v20 = vrot.slane %v3714_v6, 6  ;;  %v3760_v45 = vrot.slane %v3714_v6, 4  ;;  %v3772_v4 = vrot.slane %v3714_v6, 2  ;;  %4178 = vmatpush.msra.mxu0 %v3991_v12  ;;  %4312 = vmatpush.msrb.mxu2 %v4082_v21  ;;  %vm12483_vm4 = vcmask 261126  }
 0xa11   :  { %3783 = vst.msk [vmem:[#allocation10 + $0x18] sm:$0x30] %vm12480_vm2, %v3779_v16  ;;  %v10437_v3 = vpop.permute.xlu0 %1682  ;;  %4235 = vmatpush.msrb.mxu3 %v4024_v53  ;;  %vm12484_vm2 = vmmov %vm12482_vm5 }
 0xa12   :  { %3750 = vst [vmem:[#allocation10] sm:$0xc] %v3746_v20  ;;  %v10410_v15 = vpop.permute.xlu1 %1684  ;;  %v3597_v9 = vpop.f32.mrf.mxu0  ;;  %4179 = vmatpush.msra.mxu0 %v3990_v30  ;;  %v4080_v30 = vld [vmem:[%s12309_s12 + $0x350] sm:$0xff] }
 0xa13   :  { %3764 = vst [vmem:[#allocation10] sm:$0xc0] %v3760_v45  ;;  %v3598_v52 = vadd.f32 %v3597_v9, %v10304_v42  ;;  %v4047_v42 = vld [vmem:[%s12309_s12 + $0x248] sm:$0xff]  ;;  %4180 = vmatmul.f32.vlgmr.msra.gmra.mxu0 %v10353_v26  ;;  %v4044_v45 = vld [vmem:[%s12309_s12 + $0x230] sm:$0xff]  ;;  %v4065_v9 = vld [vmem:[%s12309_s12 + $0x2d8] sm:$0xff]  ;;  %4236 = vmatpush.msrb.mxu3 %v4023_v51 }
 0xa14   :  { %3776 = vst [vmem:[#allocation10 + $0x10] sm:$0xc] %v3772_v4  ;;  %4257 = vmatpush.msra.mxu1 %v4047_v42  ;;  %4280 = vmatpush.msrb.mxu0 %v4069_v61  ;;  %v4081_v4 = vld [vmem:[%s12309_s12 + $0x358] sm:$0xff]  ;;  %v4064_v42 = vld [vmem:[%s12309_s12 + $0x2d0] sm:$0xff]  ;;  %v4039_v51 = vld [vmem:[%s12309_s12 + $0x208] sm:$0xff] }
 0xa15   :  { %3784 = vst [vmem:[#allocation10 + $0x10] sm:$0xc0] %v3714_v6  ;;  %v3661_v17 = vpop.f32.mrf.mxu1  ;;  %v4066_v6 = vld [vmem:[%s12309_s12 + $0x2e0] sm:$0xff]  ;;  %4313 = vmatpush.msrb.mxu2 %v4081_v4  ;;  %v4099_v4 = vld [vmem:[%s12309_s12 + $0x3e8] sm:$0xff] }
 0xa16   :  { %3787 = vst.msk [vmem:[#allocation10 + $0x28] sm:$0x3] %vm12481_vm8, %v3598_v52  ;;  %v3717_v58 = vadd.f32 %v3716_v34, %v3661_v17  ;;  %4258 = vmatpush.msra.mxu1 %v4046_v22  ;;  %4281 = vmatpush.msrb.mxu0 %v4068_v11  ;;  %v4022_v34 = vld [vmem:[%s12309_s12 + $0x180] sm:$0xff]  ;;  %vm12485_vm8 = vcmask 257026   ;;  %v4079_v17 = vld [vmem:[%s12309_s12 + $0x348] sm:$0xff] }
 0xa17   :  { %4314 = vmatpush.msrb.mxu2 %v4080_v30  ;;  %4237 = vmatpush.msrb.mxu3 %v4022_v34  ;;  %v4063_v11 = vld [vmem:[%s12309_s12 + $0x2c8] sm:$0xff]  ;;  %v4060_v34 = vld [vmem:[%s12309_s12 + $0x2b0] sm:$0xff] }
 0xa18   :  { %v3790_v26 = vrot.slane %v3717_v58, 6  ;;  %4282 = vmatpush.msrb.mxu0 %v4067_v1  ;;  %4259 = vmatpush.msra.mxu1 %v4045_v35  ;;  %v4129_v1 = vld [vmem:[%s12309_s12 + $0x4d8] sm:$0xff] }
 0xa19   :  { %4315 = vmatpush.msrb.mxu2 %v4079_v17  ;;  %4338 = vmatpush.msra.mxu3 %v4101_v10  ;;  %v4075_v17 = vld [vmem:[%s12309_s12 + $0x328] sm:$0xff]  ;;  %v4097_v10 = vld [vmem:[%s12309_s12 + $0x3d8] sm:$0xff] }
 0xa1a   :  { %3794 = vst [vmem:[#allocation10 + $0x20] sm:$0xc] %v3790_v26  ;;  %v1691_v62 = vpop.permute.xlu1 %1690  ;;  %v3681_v16 = vpop.f32.mrf.mxu0  ;;  %v10468_v56 = vld [vmem:[#allocation10] sm:$0xff]  ;;  %4283 = vmatpush.msrb.mxu0 %v4066_v6  ;;  %4260 = vmatpush.msra.mxu1 %v4044_v45  ;;  %v4062_v6 = vld [vmem:[%s12309_s12 + $0x2c0] sm:$0xff] }
 0xa1b   :  { %v3737_v7 = vadd.f32 %v3736_v39, %v3681_v16  ;;  %4154 = vmatmul.f32.gmra.mxu1 %v10468_v56  ;;  %v3855_v20 = vrot.slane %v10468_v56, 2  ;;  %v1697_v12 = vsel %vm12482_vm5, %v1691_v62, %v1693_v48  ;;  %v4078_v39 = vld [vmem:[%s12309_s12 + $0x340] sm:$0xff]  ;;  %v4100_v26 = vld [vmem:[%s12309_s12 + $0x3f0] sm:$0xff]  ;;  %v4057_v48 = vld [vmem:[%s12309_s12 + $0x298] sm:$0xff] }
 0xa1c   :  { %v10487_v36 = vld [vmem:[#allocation10 + $0x10] sm:$0xff]  ;;  %4284 = vmatpush.msrb.mxu0 %v4065_v9  ;;  %4261 = vmatpush.msra.mxu1 %v4043_v0  ;;  %v4040_v62 = vld [vmem:[%s12309_s12 + $0x210] sm:$0xff]  ;;  %v4061_v0 = vld [vmem:[%s12309_s12 + $0x2b8] sm:$0xff] }
 0xa1d   :  { %v3747_v14 = vrot.slane %v3737_v7, 6  ;;  %v3761_v40 = vrot.slane %v3737_v7, 4  ;;  %v3773_v52 = vrot.slane %v3737_v7, 2  ;;  %3785 = vst.msk [vmem:[#allocation10 + $0x18] sm:$0xc0] %vm12483_vm4, %v3737_v7  ;;  %v1689_v2 = vpop.permute.xlu0 %1688  ;;  %v3857_v61 = vrot.slane %v10487_v36, 2  ;;  %4316 = vmatpush.msrb.mxu2 %v4078_v39  ;;  %4339 = vmatpush.msra.mxu3 %v4100_v26 }
 0xa1e   :  { %v1696_v33 = vsel %vm12484_vm2, %v10398_v47, %v1689_v2  ;;  %3873 = vst [vmem:[#allocation6 + $0x10] sm:$0xc0] %v3855_v20  ;;  %v4042_v47 = vld [vmem:[%s12309_s12 + $0x220] sm:$0xff]  ;;  %vm1701_vm4 = vcmp.ne.s32.totalorder %v1697_v12, 0  ;;  %vm12486_vm2 = vcmask 261126   ;;  %4285 = vmatpush.msrb.mxu0 %v4064_v42  ;;  %v4077_v7 = vld [vmem:[%s12309_s12 + $0x338] sm:$0xff] }
 0xa1f   :  { %3751 = vst.msk [vmem:[#allocation10 + $0x8] sm:$0xc] %vm12485_vm8, %v3747_v14  ;;  %vm1700_vm5 = vcmp.ne.s32.totalorder %v1696_v33, 0  ;;  %4262 = vmatpush.msra.mxu1 %v4042_v47  ;;  %v4076_v9 = vld [vmem:[%s12309_s12 + $0x330] sm:$0xff]  ;;  %4317 = vmatpush.msrb.mxu2 %v4077_v7  ;;  %v4074_v39 = vld [vmem:[%s12309_s12 + $0x320] sm:$0xff] }
 0xa20   :  { %3765 = vst.msk [vmem:[#allocation10 + $0x8] sm:$0xc0] %vm12486_vm2, %v3761_v40  ;;  %vm10529_vm3 = vmor %vm12366_vm11, %vm1700_vm5  ;;  %vm12491_vm2 = vcmask 1045504   ;;  %4286 = vmatpush.msrb.mxu0 %v4063_v11  ;;  %v4098_v40 = vld [vmem:[%s12309_s12 + $0x3e0] sm:$0xff]  ;;  %4340 = vmatpush.msra.mxu3 %v4099_v4  ;;  %v4117_v11 = vld [vmem:[%s12309_s12 + $0x478] sm:$0xff]  ;;  %v3883_v4 = vrot.slane %v10487_v36, 4 }
 0xa21   :  { %v10523_v58 = vld [vmem:[#allocation10 + $0x20] sm:$0xf]  ;;  %3777 = vst.msk [vmem:[#allocation10 + $0x18] sm:$0xc] %vm12485_vm8, %v3773_v52  ;;  %vm10548_vm5 = vmor %vm12365_vm9, %vm1701_vm4  ;;  %v10554_v21 = vsel %vm12491_vm2, %v3855_v20, %v3857_v61  ;;  %4263 = vmatpush.msra.mxu1 %v4041_v55  ;;  %vm12496_vm2 = vcmask 257026   ;;  %v4038_v52 = vld [vmem:[%s12309_s12 + $0x200] sm:$0xff]  ;;  %4318 = vmatpush.msrb.mxu2 %v4076_v9 }
 0xa22   :  { %3847 = vst [vmem:[#allocation6 + $0xf0] sm:$0xf] %v10523_v58  ;;  %v3684_v24 = vpop.f32.mrf.mxu0  ;;  %vm10562_vm8 = vmxor %vm10529_vm3, %vm12367_vm6  ;;  %v3861_v53 = vrot.slane %v10523_v58, 2  ;;  %4287 = vmatpush.msrb.mxu0 %v4062_v6  ;;  %vm12497_vm9 = vcmask 261120   ;;  %4341 = vmatpush.msra.mxu3 %v4098_v40  ;;  %v4059_v55 = vld [vmem:[%s12309_s12 + $0x2a8] sm:$0xff]  ;;  %v4058_v26 = vld [vmem:[%s12309_s12 + $0x2a0] sm:$0xff] }
 0xa23   :  { %3932 = vst [vmem:[#allocation6 + $0xe0] sm:$0xf] %v10523_v58  ;;  %v3740_v35 = vadd.f32 %v3739_v18, %v3684_v24  ;;  %4157 = vmatmul.f32.gmra.mxu1 %v10487_v36  ;;  %vm10582_vm4 = vmxor %vm10548_vm5, %vm12367_vm6  ;;  %v10595_v12 = vsel %vm10562_vm8, 1, %v12448_v8  ;;  %vm12498_vm8 = vcmask 1045504   ;;  %v4096_v18 = vld [vmem:[%s12309_s12 + $0x3d0] sm:$0xff]  ;;  %4319 = vmatpush.msrb.mxu2 %v4075_v17  ;;  %v4071_v17 = vld [vmem:[%s12309_s12 + $0x308] sm:$0xff] }
 0xa24   :  { %4264 = vmatpush.msra.mxu1 %v4040_v62  ;;  %v10610_v30 = vsel %vm12498_vm8, %v3857_v61, %v3861_v53  ;;  %v1713_v47 = vsel %vm10582_vm4, 1, %v12448_v8  ;;  %4288 = vmatpush.msrb.mxu0 %v4061_v0  ;;  %vm12500_vm8 = vcmask 261126   ;;  %3879 = vst [vmem:[#allocation6 + $0x100] sm:$0x3] %v3861_v53  ;;  %v3881_v62 = vrot.slane %v10468_v56, 4  ;;  %v4116_v16 = vld [vmem:[%s12309_s12 + $0x470] sm:$0xff] }
 0xa25   :  { %v3791_v20 = vrot.slane %v3740_v35, 6  ;;  %v3936_v45 = vld [vmem:[#allocation6 + $0x10] sm:$0xff]  ;;  %v1719_v24 = vrot.slane %v1713_v47, 4  ;;  %4342 = vmatpush.msra.mxu3 %v4097_v10  ;;  %v1660_v35 = vrot.slane %v8529_v49, 4  ;;  %4320 = vmatpush.msrb.mxu2 %v4074_v39  ;;  %v4072_v40 = vld [vmem:[%s12309_s12 + $0x310] sm:$0xff]  ;;  %v3887_v47 = vrot.slane %v10523_v58, 4 }
 0xa26   :  { %4209 = vmatmul.f32.vlgmr.msra.gmra.mxu2 %v3936_v45  ;;  %4265 = vmatpush.msra.mxu1 %v4039_v51  ;;  %v4095_v45 = vld [vmem:[%s12309_s12 + $0x3c8] sm:$0xff]  ;;  %3897 = vst [vmem:[#allocation6 + $0x20] sm:$0xf0] %v3881_v62  ;;  %v4114_v10 = vld [vmem:[%s12309_s12 + $0x460] sm:$0xff] }
 0xa27   :  { %3795 = vst.msk [vmem:[#allocation10 + $0x28] sm:$0xc] %vm12496_vm2, %v3791_v20  ;;  %v10598_v14 = vld [vmem:[#allocation10 + $0x8] sm:$0xff]  ;;  %vm12499_vm2 = vcmask 359424   ;;  %4289 = vmatpush.msrb.mxu0 %v4060_v34  ;;  %4343 = vmatpush.msra.mxu3 %v4096_v18 }
 0xa28   :  { %3844 = vst.msk [vmem:[#allocation6 + $0x58] sm:$0xff] %vm12497_vm9, %v10598_v14  ;;  %v3856_v2 = vrot.slane %v10598_v14, 2  ;;  %v10612_v33 = vld [vmem:[#allocation10 + $0x18] sm:$0xff]  ;;  %v1695_v42 = vsel %vm12499_vm2, %v10437_v3, %v10410_v15  ;;  %v1717_v15 = vrot.slane %v10595_v12, 4  ;;  %4266 = vmatpush.msra.mxu1 %v4038_v52  ;;  %vm12501_vm2 = vmmov %vm12497_vm9  ;;  %v4073_v20 = vld [vmem:[%s12309_s12 + $0x318] sm:$0xff] }
 0xa29   :  { %3929 = vst.msk [vmem:[#allocation6 + $0x48] sm:$0xff] %vm12497_vm9, %v10598_v14  ;;  %v3964_v61 = vld [vmem:[#allocation6 + $0xf0] sm:$0xf]  ;;  %v3859_v3 = vrot.slane %v10612_v33, 2  ;;  %vm1699_vm4 = vcmp.ne.s32.totalorder %v1695_v42, 0  ;;  %4290 = vmatpush.msrb.mxu0 %v4059_v55  ;;  %vm12502_vm9 = vcmask 1043456   ;;  %4321 = vmatpush.msrb.mxu2 %v4073_v20 }
 0xa2a   :  { %3874 = vst.msk [vmem:[#allocation6 + $0x18] sm:$0xc0] %vm12500_vm8, %v3856_v2  ;;  %4367 = vmatpush.msrb.mxu1 %v4117_v11  ;;  %v1720_v53 = vsel %vm12502_vm9, %v1717_v15, %v1719_v24  ;;  %vm12503_vm8 = vmmov %vm12501_vm2  ;;  %vm12505_vm9 = vcmp.eq.f32.partialorder %v8087_v31, %v8428_v23  ;;  %v4115_v52 = vld [vmem:[%s12309_s12 + $0x468] sm:$0xff]  ;;  %4344 = vmatpush.msra.mxu3 %v4095_v45  ;;  %v4056_v42 = vld [vmem:[%s12309_s12 + $0x290] sm:$0xff]  ;;  %v3904_v55 = vrot.slane %v10468_v56, 6  ;;  %v3906_v11 = vrot.slane %v10487_v36, 6 }
 0xa2b   :  { %4160 = vmatmul.f32.gmra.mxu1 %v3964_v61  ;;  %3846 = vst.msk [vmem:[#allocation6 + $0xa8] sm:$0xff] %vm12501_vm2, %v10612_v33  ;;  %vm12504_vm2 = vcmask 1045504   ;;  %vm10676_vm11 = vmor %vm12505_vm9, %vm1699_vm4  ;;  %4291 = vmatpush.msrb.mxu0 %v4058_v26  ;;  %vm1724_vm9 = vcmp.ne.s32.totalorder %v1720_v53, 0  ;;  %v4093_v18 = vld [vmem:[%s12309_s12 + $0x3b8] sm:$0xff]  ;;  %v3882_v24 = vrot.slane %v10598_v14, 4  ;;  %v3885_v39 = vrot.slane %v10612_v33, 4 }
 0xa2c   :  { %3931 = vst.msk [vmem:[#allocation6 + $0x98] sm:$0xff] %vm12503_vm8, %v10612_v33  ;;  %v3860_v7 = vsel %vm12504_vm2, %v3856_v2, %v3859_v3  ;;  %vm12508_vm8 = vcmask 257024   ;;  %vm12509_vm2 = vcmask 1043456   ;;  %4368 = vmatpush.msrb.mxu1 %v4116_v16  ;;  %4322 = vmatpush.msrb.mxu2 %v4072_v40  ;;  %v12518_v26 = vmov 0  ;;  %v4113_v53 = vld [vmem:[%s12309_s12 + $0x458] sm:$0xff]  ;;  %v4092_v45 = vld [vmem:[%s12309_s12 + $0x3b0] sm:$0xff] }
 0xa2d   :  { %v10688_v9 = vsel %vm12509_vm2, %v8591_v54, %v1660_v35  ;;  %vm12511_vm4 = vmmov %vm12508_vm8  ;;  %v4094_v54 = vld [vmem:[%s12309_s12 + $0x3c0] sm:$0xff]  ;;  %vm12513_vm2 = vcmask 1045504   ;;  %4292 = vmatpush.msrb.mxu0 %v4057_v48  ;;  %v4055_v35 = vld [vmem:[%s12309_s12 + $0x288] sm:$0xff]  ;;  %v3910_v20 = vrot.slane %v10523_v58, 6  ;;  %3920 = vst [vmem:[#allocation6 + $0x30] sm:$0xfc] %v3904_v55 }
 0xa2e   :  { %v10659_v6 = vld [vmem:[#allocation10 + $0x28] sm:$0xf]  ;;  %4212 = vmatmul.f32.gmra.mxu2 %v10554_v21  ;;  %12510 = vst [vmem:[#allocation32_spill] sm:$0xff] %v10688_v9  ;;  %4369 = vmatpush.msrb.mxu1 %v4115_v52  ;;  %v3905_v40 = vrot.slane %v10598_v14, 6  ;;  %v3908_v52 = vrot.slane %v10612_v33, 6  ;;  %v3938_v61 = vld [vmem:[#allocation6 + $0x20] sm:$0xff] }
 0xa2f   :  { %3848 = vst.msk [vmem:[#allocation6 + $0xf8] sm:$0xf] %vm12508_vm8, %v10659_v6  ;;  %v3945_v51 = vld [vmem:[#allocation6 + $0x58] sm:$0xff]  ;;  %v3863_v0 = vrot.slane %v10659_v6, 2  ;;  %vm12512_vm8 = vcmask 261120   ;;  %4345 = vmatpush.msra.mxu3 %v4094_v54  ;;  %4293 = vmatpush.msrb.mxu0 %v4056_v42  ;;  %v3912_v42 = vrot.slane %v10659_v6, 6 }
 0xa30   :  { %3933 = vst.msk [vmem:[#allocation6 + $0xe8] sm:$0xf] %vm12511_vm4, %v10659_v6  ;;  %4183 = vmatmul.f32.gmra.mxu0 %v3945_v51  ;;  %vm10710_vm4 = vmxor %vm10676_vm11, %vm12367_vm6  ;;  %vm12517_vm6 = vcmask 261120   ;;  %4323 = vmatpush.msrb.mxu2 %v4071_v17  ;;  %v4054_v51 = vld [vmem:[%s12309_s12 + $0x280] sm:$0xff]  ;;  %v4112_v54 = vld [vmem:[%s12309_s12 + $0x450] sm:$0xff] }
 0xa31   :  { %v3937_v2 = vld [vmem:[#allocation6 + $0x18] sm:$0xff]  ;;  %3876 = vst.msk [vmem:[#allocation6 + $0x68] sm:$0xff] %vm12512_vm8, %v3860_v7  ;;  %v3864_v34 = vsel %vm12513_vm2, %v3859_v3, %v3863_v0  ;;  %vm12516_vm8 = vcmask 1043456   ;;  %vm1669_vm2 = vcmp.eq.f32.partialorder %v8123_v59, %v10688_v9  ;;  %v10748_v16 = vsel %vm10710_vm4, 1, %v12448_v8  ;;  %4370 = vmatpush.msrb.mxu1 %v4114_v10  ;;  %4346 = vmatpush.msra.mxu3 %v4093_v18  ;;  %v4133_v14 = vld [vmem:[%s12309_s12 + $0x4f8] sm:$0xff] }
 0xa32   :  { %4238 = vmatmul.f32.vlgmr.msrb.gmra.mxu3 %v3937_v2  ;;  %v10721_v3 = vsel %vm12516_vm8, %v3881_v62, %v3883_v4  ;;  %3878 = vst.msk [vmem:[#allocation6 + $0xb8] sm:$0xff] %vm12517_vm6, %v3864_v34  ;;  %vm10734_vm8 = vmand %vm1669_vm2, %vm1724_vm9  ;;  %v4070_v62 = vld [vmem:[%s12309_s12 + $0x300] sm:$0xff]  ;;  %vm3898_vm6 = vcmask 261124   ;;  %vm12523_vm9 = vcmask 1041408   ;;  %4294 = vmatpush.msrb.mxu0 %v4055_v35  ;;  %v12372_v2 = vrot.slane %v10748_v16, 4  ;;  %v4091_v34 = vld [vmem:[%s12309_s12 + $0x3a8] sm:$0xff] }
 0xa33   :  { %v12519_v26 = vsel %vm10734_vm8, 4294967295, %v12518_v26  ;;  %3880 = vst.msk [vmem:[#allocation6 + $0x108] sm:$0x3] %vm12521_vm1, %v3863_v0  ;;  %vm12522_vm1 = vcmask 1043456   ;;  %v10765_v48 = vsel %vm12523_vm9, %v3904_v55, %v3906_v11  ;;  %v10771_v58 = vsel %vm10734_vm8, 1, %v12448_v8  ;;  %4324 = vmatpush.msrb.mxu2 %v4070_v62  ;;  %4371 = vmatpush.msrb.mxu1 %v4113_v53  ;;  %v4111_v10 = vld [vmem:[%s12309_s12 + $0x448] sm:$0xff] }
 0xa34   :  { %12520 = vst [vmem:[#allocation33_spill] sm:$0xff] %v12519_v26  ;;  %v10754_v7 = vsel %vm12522_vm1, %v3883_v4, %v3887_v47  ;;  %v3889_v4 = vrot.slane %v10659_v6, 4  ;;  %vm12524_vm4 = vmmov %vm12522_vm1  ;;  %vm3921_vm2 = vcmask 261122   ;;  %4347 = vmatpush.msra.mxu3 %v4092_v45  ;;  %4295 = vmatpush.msrb.mxu0 %v4054_v51  ;;  %v1758_v17 = vrot.slane %v10771_v58, 4  ;;  %v4090_v6 = vld [vmem:[%s12309_s12 + $0x3a0] sm:$0xff]  ;;  %v4132_v18 = vld [vmem:[%s12309_s12 + $0x4f0] sm:$0xff] }
 0xa35   :  { %3899 = vst.msk [vmem:[#allocation6 + $0x28] sm:$0xf0] %vm3898_vm6, %v3882_v24  ;;  %v3886_v0 = vsel %vm12524_vm4, %v3882_v24, %v3885_v39  ;;  %vm12525_vm6 = vmmov %vm12523_vm9  ;;  %4267 = vmatmul.f32.vlgmr.msra.gmra.mxu1 %v3938_v61  ;;  %vm12526_vm1 = vcmask 261120   ;;  %v4089_v12 = vld [vmem:[%s12309_s12 + $0x398] sm:$0xff]  ;;  %v3966_v35 = vld [vmem:[#allocation6 + $0x100] sm:$0xf] }
 0xa36   :  { %4215 = vmatmul.f32.gmra.mxu2 %v10610_v30  ;;  %v3955_v30 = vld [vmem:[#allocation6 + $0xa8] sm:$0xff]  ;;  %v3911_v33 = vsel %vm12525_vm6, %v3906_v11, %v3910_v20  ;;  %3901 = vst.msk [vmem:[#allocation6 + $0x78] sm:$0xff] %vm12526_vm1, %v3886_v0  ;;  %vm12527_vm9 = vmmov %vm12524_vm4  ;;  %v1718_v11 = vsel %vm12524_vm4, %v12372_v2, %v1717_v15  ;;  %4372 = vmatpush.msrb.mxu1 %v4112_v54  ;;  %vm12529_vm4 = vcmask 261120   ;;  %v4131_v53 = vld [vmem:[%s12309_s12 + $0x4e8] sm:$0xff] }
 0xa37   :  { %v3890_v55 = vsel %vm12527_vm9, %v3885_v39, %v3889_v4  ;;  %4348 = vmatpush.msra.mxu3 %v4091_v34  ;;  %3922 = vst.msk [vmem:[#allocation6 + $0x38] sm:$0xfc] %vm3921_vm2, %v3905_v40  ;;  %v3909_v24 = vsel %vm12525_vm6, %v3905_v40, %v3908_v52  ;;  %4396 = vmatpush.msra.mxu0 %v4133_v14  ;;  %v4110_v39 = vld [vmem:[%s12309_s12 + $0x440] sm:$0xff]  ;;  %vm12528_vm1 = vmmov %vm12525_vm6  ;;  %vm3926_vm9 = vcmask 259072   ;;  %vm1723_vm2 = vcmp.ne.s32.totalorder %v1718_v11, 0  ;;  %v4109_v62 = vld [vmem:[%s12309_s12 + $0x438] sm:$0xff] }
 0xa38   :  { %4186 = vmatmul.f32.gmra.mxu0 %v3955_v30  ;;  %v3947_v47 = vld [vmem:[#allocation6 + $0x68] sm:$0xff]  ;;  %3925 = vst [vmem:[#allocation6 + $0xd0] sm:$0x3f] %v3911_v33  ;;  %v3913_v15 = vsel %vm12528_vm1, %v3908_v52, %v3912_v42  ;;  %4373 = vmatpush.msrb.mxu1 %v4111_v10  ;;  %vm12530_vm6 = vmmov %vm12529_vm4  ;;  %vm10823_vm1 = vcmp.ne.s32.totalorder %v1758_v17, 0  ;;  %v3965_v45 = vld [vmem:[#allocation6 + $0xf8] sm:$0xf] }
 0xa39   :  { %4349 = vmatpush.msra.mxu3 %v4090_v6  ;;  %3903 = vst.msk [vmem:[#allocation6 + $0xc8] sm:$0xff] %vm12529_vm4, %v3890_v55  ;;  %4397 = vmatpush.msra.mxu0 %v4132_v18  ;;  %v12533_v51 = vld [vmem:[#allocation20_spill] sm:$0xff]  ;;  %v4088_v4 = vld [vmem:[%s12309_s12 + $0x390] sm:$0xff]  ;;  %v12534_v30 = vmov 0  ;;  %v4087_v54 = vld [vmem:[%s12309_s12 + $0x388] sm:$0xff] }
 0xa3a   :  { %4241 = vmatmul.f32.gmra.mxu3 %v3947_v47  ;;  %3924 = vst.msk [vmem:[#allocation6 + $0x88] sm:$0xff] %vm12530_vm6, %v3909_v24  ;;  %4374 = vmatpush.msrb.mxu1 %v4110_v39  ;;  %vm1668_vm4 = vcmp.eq.f32.partialorder %v12533_v51, %v8613_v28  ;;  %v4108_v58 = vld [vmem:[%s12309_s12 + $0x430] sm:$0xff]  ;;  %v4130_v40 = vld [vmem:[%s12309_s12 + $0x4e0] sm:$0xff]  ;;  %v4107_v34 = vld [vmem:[%s12309_s12 + $0x428] sm:$0xff] }
 0xa3b   :  { %4350 = vmatpush.msra.mxu3 %v4089_v12  ;;  %3927 = vst.msk [vmem:[#allocation6 + $0xd8] sm:$0x3f] %vm3926_vm9, %v3913_v15  ;;  %vm10836_vm6 = vmand %vm1668_vm4, %vm1723_vm2  ;;  %v3957_v0 = vld [vmem:[#allocation6 + $0xb8] sm:$0xff]  ;;  %4398 = vmatpush.msra.mxu0 %v4131_v53  ;;  %v4106_v47 = vld [vmem:[%s12309_s12 + $0x420] sm:$0xff] }
 0xa3c   :  { %v12535_v30 = vsel %vm10836_vm6, 4294967295, %v12534_v30  ;;  %4375 = vmatpush.msrb.mxu1 %v4109_v62  ;;  %v10846_v52 = vsel %vm10836_vm6, 1, %v12448_v8  ;;  %vm1767_vm9 = vmor %vm10548_vm5, %vm10823_vm1  ;;  %vm12537_vm5 = vmmov 1   ;;  %vm12538_vm1 = vcmask 1043456   ;;  %v3940_v14 = vld [vmem:[#allocation6 + $0x30] sm:$0xff]  ;;  %v4128_v33 = vld [vmem:[%s12309_s12 + $0x4d0] sm:$0xff] }
 0xa3d   :  { %12536 = vst [vmem:[#allocation34_spill] sm:$0xff] %v12535_v30  ;;  %4270 = vmatmul.f32.gmra.mxu1 %v10721_v3  ;;  %v12371_v42 = vrot.slane %v10846_v52, 4  ;;  %4351 = vmatpush.msra.mxu3 %v4088_v4  ;;  %vm1771_vm2 = vmxor %vm1767_vm9, %vm12537_vm5  ;;  %v4086_v3 = vld [vmem:[%s12309_s12 + $0x380] sm:$0xff]  ;;  %v4105_v10 = vld [vmem:[%s12309_s12 + $0x418] sm:$0xff] }
 0xa3e   :  { %4218 = vmatmul.f32.gmra.mxu2 %v3966_v35  ;;  %4376 = vmatpush.msrb.mxu1 %v4108_v58  ;;  %v1775_v6 = vsel %vm1771_vm2, 1, %v12448_v8  ;;  %v3939_v55 = vld [vmem:[#allocation6 + $0x28] sm:$0xff]  ;;  %v4104_v11 = vld [vmem:[%s12309_s12 + $0x410] sm:$0xff]  ;;  %v4103_v12 = vld [vmem:[%s12309_s12 + $0x408] sm:$0xff] }
 0xa3f   :  { %4399 = vmatpush.msra.mxu0 %v4130_v40  ;;  %v1759_v61 = vsel %vm12538_vm1, %v12371_v42, %v1758_v17  ;;  %4352 = vmatpush.msra.mxu3 %v4087_v54  ;;  %v4127_v17 = vld [vmem:[%s12309_s12 + $0x4c8] sm:$0xff]  ;;  %v3967_v18 = vld [vmem:[#allocation6 + $0x108] sm:$0xf]  ;;  %v1781_v24 = vrot.slane %v1775_v6, 4  ;;  %v4126_v39 = vld [vmem:[%s12309_s12 + $0x4c0] sm:$0xff] }
 0xa40   :  { %4189 = vmatmul.f32.gmra.mxu0 %v3965_v45  ;;  %4377 = vmatpush.msrb.mxu1 %v4107_v34  ;;  %vm1762_vm4 = vcmp.ne.s32.totalorder %v1759_v61, 0  ;;  %v4125_v35 = vld [vmem:[%s12309_s12 + $0x4b8] sm:$0xff]  ;;  %v4124_v53 = vld [vmem:[%s12309_s12 + $0x4b0] sm:$0xff]  ;;  %v3968_v45 = vld [vmem:[#allocation6 + $0x110] sm:$0xf] }
 0xa41   :  { %4400 = vmatpush.msra.mxu0 %v4129_v1  ;;  %4353 = vmatpush.msra.mxu3 %v4086_v3  ;;  %vm1766_vm9 = vmor %vm10529_vm3, %vm1762_vm4  ;;  %v3949_v20 = vld [vmem:[#allocation6 + $0x78] sm:$0xff]  ;;  %v3960_v40 = vld [vmem:[#allocation6 + $0xd0] sm:$0xff]  ;;  %vm12541_vm4 = vcmask 687104  }
 0xa42   :  { %4244 = vmatmul.f32.gmra.mxu3 %v3957_v0  ;;  %4378 = vmatpush.msrb.mxu1 %v4106_v47  ;;  %vm1770_vm2 = vmxor %vm1766_vm9, %vm12537_vm5  ;;  %v4123_v4 = vld [vmem:[%s12309_s12 + $0x4a8] sm:$0xff]  ;;  %v4121_v0 = vld [vmem:[%s12309_s12 + $0x498] sm:$0xff] }
 0xa43   :  { %4401 = vmatpush.msra.mxu0 %v4128_v33  ;;  %v10897_v22 = vsel %vm1770_vm2, 1, %v12448_v8  ;;  %vm12539_vm3 = vmmov %vm12538_vm1  ;;  %v3941_v58 = vld [vmem:[#allocation6 + $0x38] sm:$0xff]  ;;  %v3959_v34 = vld [vmem:[#allocation6 + $0xc8] sm:$0xff] }
 0xa44   :  { %4379 = vmatpush.msrb.mxu1 %v4105_v10  ;;  %v12370_v15 = vrot.slane %v10897_v22, 4  ;;  %v4120_v54 = vld [vmem:[%s12309_s12 + $0x490] sm:$0xff]  ;;  %v4119_v1 = vld [vmem:[%s12309_s12 + $0x488] sm:$0xff]  ;;  %v3951_v3 = vld [vmem:[#allocation6 + $0x88] sm:$0xff] }
 0xa45   :  { %4273 = vmatmul.f32.gmra.mxu1 %v10754_v7  ;;  %4402 = vmatpush.msra.mxu0 %v4127_v17  ;;  %v4102_v7 = vld [vmem:[%s12309_s12 + $0x400] sm:$0xff]  ;;  %v3970_v61 = vld [vmem:[#allocation6 + $0x120] sm:$0xf]  ;;  %v3961_v33 = vld [vmem:[#allocation6 + $0xd8] sm:$0xff] }
 0xa46   :  { %4325 = vmatmul.f32.vlgmr.msrb.gmra.mxu2 %v3940_v14  ;;  %4380 = vmatpush.msrb.mxu1 %v4104_v11  ;;  %v10909_v62 = vsel %vm12539_vm3, %v12370_v15, %v1781_v24  ;;  %v4118_v47 = vld [vmem:[%s12309_s12 + $0x480] sm:$0xff]  ;;  %v3969_v14 = vld [vmem:[#allocation6 + $0x118] sm:$0xf]  ;;  %v3971_v6 = vld [vmem:[#allocation6 + $0x128] sm:$0xf] }
 0xa47   :  { %4403 = vmatpush.msra.mxu0 %v4126_v39  ;;  %12540 = vst [vmem:[#allocation35_spill] sm:$0xff] %v10909_v62  ;;  %v3943_v10 = vld [vmem:[#allocation6 + $0x48] sm:$0xff]  ;;  %v3972_v17 = vld [vmem:[#allocation6 + $0x130] sm:$0xf]  ;;  %vm12542_vm9 = vmmov %vm12541_vm4 }
 0xa48   :  { %4296 = vmatmul.f32.vlgmr.msrb.gmra.mxu0 %v3939_v55  ;;  %4381 = vmatpush.msrb.mxu1 %v4103_v12  ;;  %v3962_v55 = vld [vmem:[#allocation6 + $0xe0] sm:$0xff]  ;;  %v3963_v11 = vld [vmem:[#allocation6 + $0xe8] sm:$0xff]  ;;  %vm12543_vm2 = vmmov %vm12541_vm4 }
 0xa49   :  { %4404 = vmatpush.msra.mxu0 %v4125_v35  ;;  %vm12544_vm3 = vmmov %vm12543_vm2 }
 0xa4a   :  { %4247 = vmatmul.f32.gmra.mxu3 %v3967_v18  ;;  %4382 = vmatpush.msrb.mxu1 %v4102_v7  ;;  %v3973_v18 = vld [vmem:[#allocation6 + $0x138] sm:$0xf] }
 0xa4b   :  { %4405 = vmatpush.msra.mxu0 %v4124_v53 }
 0xa4d   :  { %4276 = vmatmul.f32.gmra.mxu1 %v3968_v45  ;;  %4406 = vmatpush.msra.mxu0 %v4123_v4 }
 0xa4e   :  { %4328 = vmatmul.f32.gmra.mxu2 %v10765_v48  ;;  %v4122_v48 = vld [vmem:[%s12309_s12 + $0x4a0] sm:$0xff] }
 0xa4f   :  { %4407 = vmatpush.msra.mxu0 %v4122_v48 }
 0xa50   :  { %4299 = vmatmul.f32.gmra.mxu0 %v3949_v20 }
 0xa51   :  { %4408 = vmatpush.msra.mxu0 %v4121_v0 }
 0xa52   :  { %4354 = vmatmul.f32.vlgmr.msra.gmra.mxu3 %v3941_v58 }
 0xa53   :  { %4409 = vmatpush.msra.mxu0 %v4120_v54 }
 0xa55   :  { %4383 = vmatmul.f32.vlgmr.msrb.gmra.mxu1 %v10468_v56  ;;  %4410 = vmatpush.msra.mxu0 %v4119_v1  ;;  %v3953_v56 = vld [vmem:[#allocation6 + $0x98] sm:$0xff] }
 0xa56   :  { %4331 = vmatmul.f32.gmra.mxu2 %v3960_v40 }
 0xa57   :  { %4411 = vmatpush.msra.mxu0 %v4118_v47 }
 0xa58   :  { %4302 = vmatmul.f32.gmra.mxu0 %v3959_v34 }
 0xa5a   :  { %4357 = vmatmul.f32.gmra.mxu3 %v3951_v3 }
 0xa5d   :  { %4386 = vmatmul.f32.gmra.mxu1 %v10487_v36 }
 0xa5e   :  { %4334 = vmatmul.f32.gmra.mxu2 %v3970_v61 }
 0xa60   :  { %4305 = vmatmul.f32.gmra.mxu0 %v3969_v14 }
 0xa62   :  { %4360 = vmatmul.f32.gmra.mxu3 %v3961_v33  ;;  %v10938_v33 = vld [vmem:[%s12310_s13] sm:$0x7] }
 0xa65   :  { %4389 = vmatmul.f32.gmra.mxu1 %v3962_v55 }
 0xa68   :  { %4412 = vmatmul.f32.vlgmr.msra.gmra.mxu0 %v3943_v10 }
 0xa6a   :  { %4363 = vmatmul.f32.gmra.mxu3 %v3971_v6  ;;  %v4134_v6 = vperm.slane %v10938_v33, 0 }
 0xa6d   :  { %4392 = vmatmul.f32.gmra.mxu1 %v3972_v17  ;;  %v4470_v17 = vld [vmem:[%s12311_s14 + $0x50] sm:$0xf] }
 0xa6e   :  { %6236 = vmatpush.msk.msra.mxu2 %vm12538_vm1, %v4470_v17  ;;  %vm12545_vm1 = vmmov %vm12543_vm2 }
 0xa6f   :  { %vm12546_vm0 = vmmov %vm12545_vm1 }
 0xa70   :  { %4415 = vmatmul.f32.gmra.mxu0 %v3953_v56  ;;  %4483 = vmatpush.msra.mxu2 %v4469_v38 }
 0xa72   :  { %4484 = vmatpush.msra.mxu2 %v4468_v29 }
 0xa78   :  { %4418 = vmatmul.f32.gmra.mxu0 %v3963_v11 }
 0xa79   :  { %v4152_v24 = vpop.f32.mrf.mxu1 }
 0xa80   :  { %4421 = vmatmul.f32.gmra.mxu0 %v3973_v18  ;;  %v4153_v18 = vadd.f32 %v4152_v24, %v4134_v6 }
 0xa90   :  { %v4181_v35 = vpop.f32.mrf.mxu0 }
 0xa91   :  { %v4182_v2 = vadd.f32 %v4181_v35, %v4153_v18 }
 0xa98   :  { %v4155_v39 = vpop.f32.mrf.mxu1 }
 0xa99   :  { %v4156_v15 = vadd.f32 %v4155_v39, %v4134_v6 }
 0xaa0   :  { %v4158_v12 = vpop.f32.mrf.mxu1 }
 0xaa1   :  { %v4159_v59 = vadd.f32 %v4158_v12, %v4134_v6 }
 0xaa8   :  { %v4161_v7 = vpop.f32.mrf.mxu1 }
 0xaa9   :  { %v4210_v36 = vpop.f32.mrf.mxu2  ;;  %v4162_v35 = vadd.f32 %v4161_v7, %v4134_v6  ;;  %v4466_v7 = vld [vmem:[%s12311_s14 + $0x30] sm:$0xff] }
 0xaaa   :  { %v4211_v32 = vadd.f32 %v4210_v36, %v4182_v2 }
 0xaad   :  { %v4184_v53 = vpop.f32.mrf.mxu0 }
 0xaae   :  { %v4185_v42 = vadd.f32 %v4184_v53, %v4156_v15 }
 0xab1   :  { %v4213_v4 = vpop.f32.mrf.mxu2 }
 0xab2   :  { %v4268_v58 = vpop.f32.mrf.mxu1  ;;  %v4214_v9 = vadd.f32 %v4213_v4, %v4185_v42 }
 0xab5   :  { %v4187_v20 = vpop.f32.mrf.mxu0  ;;  %v4239_v45 = vpop.f32.mrf.mxu3 }
 0xab6   :  { %v4188_v37 = vadd.f32 %v4187_v20, %v4159_v59  ;;  %v4240_v39 = vadd.f32 %v4239_v45, %v4211_v32 }
 0xab8   :  { %v4269_v43 = vadd.f32 %v4268_v58, %v4240_v39  ;;  %v4464_v58 = vld [vmem:[%s12311_s14 + $0x20] sm:$0xff] }
 0xab9   :  { %v4216_v54 = vpop.f32.mrf.mxu2 }
 0xaba   :  { %v4271_v40 = vpop.f32.mrf.mxu1  ;;  %v4217_v12 = vadd.f32 %v4216_v54, %v4188_v37  ;;  %v4467_v37 = vld [vmem:[%s12311_s14 + $0x38] sm:$0xff] }
 0xabb   :  { %4485 = vmatpush.msra.mxu2 %v4467_v37 }
 0xabd   :  { %v4190_v48 = vpop.f32.mrf.mxu0  ;;  %v4242_v0 = vpop.f32.mrf.mxu3  ;;  %4486 = vmatpush.msra.mxu2 %v4466_v7 }
 0xabe   :  { %v4243_v24 = vadd.f32 %v4242_v0, %v4214_v9  ;;  %v4191_v41 = vadd.f32 %v4190_v48, %v4162_v35 }
 0xac0   :  { %v4272_v53 = vadd.f32 %v4271_v40, %v4243_v24 }
 0xac1   :  { %v4219_v47 = vpop.f32.mrf.mxu2 }
 0xac2   :  { %v4274_v3 = vpop.f32.mrf.mxu1  ;;  %v4220_v59 = vadd.f32 %v4219_v47, %v4191_v41 }
 0xac5   :  { %v4245_v34 = vpop.f32.mrf.mxu3  ;;  %v4297_v1 = vpop.f32.mrf.mxu0 }
 0xac6   :  { %v4246_v18 = vadd.f32 %v4245_v34, %v4217_v12  ;;  %v4298_v26 = vadd.f32 %v4297_v1, %v4269_v43  ;;  %v4463_v34 = vld [vmem:[%s12311_s14 + $0x18] sm:$0xff] }
 0xac8   :  { %v4275_v30 = vadd.f32 %v4274_v3, %v4246_v18 }
 0xac9   :  { %v4326_v55 = vpop.f32.mrf.mxu2 }
 0xaca   :  { %v4277_v10 = vpop.f32.mrf.mxu1  ;;  %v4327_v9 = vadd.f32 %v4326_v55, %v4298_v26 }
 0xacd   :  { %v4248_v61 = vpop.f32.mrf.mxu3  ;;  %v4300_v14 = vpop.f32.mrf.mxu0 }
 0xace   :  { %v4301_v13 = vadd.f32 %v4300_v14, %v4272_v53  ;;  %v4249_v29 = vadd.f32 %v4248_v61, %v4220_v59  ;;  %v4462_v61 = vld [vmem:[%s12311_s14 + $0x10] sm:$0xff] }
 0xad0   :  { %v4278_v41 = vadd.f32 %v4277_v10, %v4249_v29 }
 0xad1   :  { %v4329_v17 = vpop.f32.mrf.mxu2 }
 0xad2   :  { %v4384_v51 = vpop.f32.mrf.mxu1  ;;  %v4330_v38 = vadd.f32 %v4329_v17, %v4301_v13  ;;  %v4465_v13 = vld [vmem:[%s12311_s14 + $0x28] sm:$0xff] }
 0xad3   :  { %4487 = vmatpush.msra.mxu2 %v4465_v13 }
 0xad5   :  { %v4303_v56 = vpop.f32.mrf.mxu0  ;;  %v4355_v11 = vpop.f32.mrf.mxu3  ;;  %4488 = vmatpush.msra.mxu2 %v4464_v58 }
 0xad6   :  { %v4304_v20 = vadd.f32 %v4303_v56, %v4275_v30  ;;  %v4356_v45 = vadd.f32 %v4355_v11, %v4327_v9  ;;  %v4460_v11 = vld [vmem:[%s12311_s14] sm:$0xff] }
 0xad7   :  { %4489 = vmatpush.msra.mxu2 %v4463_v34 }
 0xad8   :  { %v4385_v48 = vadd.f32 %v4384_v51, %v4356_v45  ;;  %v4461_v51 = vld [vmem:[%s12311_s14 + $0x8] sm:$0xff] }
 0xad9   :  { %v4332_v42 = vpop.f32.mrf.mxu2  ;;  %4490 = vmatpush.msra.mxu2 %v4462_v61 }
 0xada   :  { %v4387_v44 = vpop.f32.mrf.mxu1  ;;  %v4333_v43 = vadd.f32 %v4332_v42, %v4304_v20 }
 0xadb   :  { %4491 = vmatpush.msra.mxu2 %v4461_v51  ;;  %v11022_v51 = vld [vmem:[%s12315_s18 + $0x90] sm:$0xff] }
 0xadd   :  { %v4306_v46 = vpop.f32.mrf.mxu0  ;;  %v4358_v15 = vpop.f32.mrf.mxu3  ;;  %4492 = vmatpush.msra.mxu2 %v4460_v11  ;;  %v11043_v11 = vld [vmem:[%s12315_s18 + $0x88] sm:$0xff] }
 0xade   :  { %v4359_v36 = vadd.f32 %v4358_v15, %v4330_v38  ;;  %v4307_v0 = vadd.f32 %v4306_v46, %v4278_v41 }
 0xae0   :  { %v4388_v26 = vadd.f32 %v4387_v44, %v4359_v36 }
 0xae1   :  { %v4335_v54 = vpop.f32.mrf.mxu2 }
 0xae2   :  { %v4390_v4 = vpop.f32.mrf.mxu1  ;;  %v4336_v14 = vadd.f32 %v4335_v54, %v4307_v0 }
 0xae5   :  { %v4413_v62 = vpop.f32.mrf.mxu0  ;;  %v4361_v2 = vpop.f32.mrf.mxu3 }
 0xae6   :  { %v4362_v30 = vadd.f32 %v4361_v2, %v4333_v43  ;;  %v4414_v1 = vadd.f32 %v4413_v62, %v4385_v48 }
 0xae8   :  { %v4391_v3 = vadd.f32 %v4390_v4, %v4362_v30  ;;  %v10974_v6 = vmax.f32 %v4414_v1, 0.0 }
 0xaea   :  { %v4393_v56 = vpop.f32.mrf.mxu1  ;;  %v4442_v24 = vmul.f32 %v10974_v6, %v10974_v6  ;;  %v4429_v53 = vsel %vm12542_vm9, %v10974_v6, 0.0 }
 0xaec   :  { %v4446_v20 = vsel %vm12545_vm1, %v4442_v24, 0.0 }
 0xaed   :  { %v4416_v32 = vpop.f32.mrf.mxu0  ;;  %v4364_v44 = vpop.f32.mrf.mxu3 }
 0xaee   :  { %v4417_v40 = vadd.f32 %v4416_v32, %v4388_v26  ;;  %v4365_v62 = vadd.f32 %v4364_v44, %v4336_v14  ;;  %v12549_v44 = vld [vmem:[#allocation15_spill] sm:$0xff]  ;;  %v11012_v14 = vld [vmem:[%s12315_s18 + $0xa0] sm:$0xf] }
 0xaf0   :  { %v10969_v10 = vmax.f32 %v4417_v40, 0.0  ;;  %v4394_v39 = vadd.f32 %v4393_v56, %v4365_v62  ;;  %v11038_v56 = vld [vmem:[%s12315_s18 + $0x80] sm:$0xff] }
 0xaf2   :  { %v4443_v17 = vmul.f32 %v10969_v10, %v10969_v10  ;;  %v4430_v15 = vsel %vm12541_vm4, %v10969_v10, 0.0  ;;  %vm12547_vm4 = vcmask 683008  }
 0xaf3   :  { %v4431_v38 = vadd.f32 %v4430_v15, %v4429_v53  ;;  %vm12548_vm9 = vmmov %vm12547_vm4  ;;  %v11059_v15 = vld [vmem:[%s12315_s18 + $0x70] sm:$0xff]  ;;  %v11079_v53 = vld [vmem:[%s12315_s18 + $0x68] sm:$0xff] }
 0xaf4   :  { %v4447_v18 = vsel %vm12543_vm2, %v4443_v17, 0.0  ;;  %vm12551_vm2 = vmmov %vm12545_vm1 }
 0xaf5   :  { %v4419_v47 = vpop.f32.mrf.mxu0  ;;  %v4448_v29 = vadd.f32 %v4447_v18, %v4446_v20 }
 0xaf6   :  { %v4420_v46 = vadd.f32 %v4419_v47, %v4391_v3 }
 0xaf8   :  { %v10976_v55 = vmax.f32 %v4420_v46, 0.0  ;;  %v11017_v46 = vld [vmem:[%s12315_s18 + $0xa8] sm:$0xf] }
 0xafa   :  { %v4444_v12 = vmul.f32 %v10976_v55, %v10976_v55  ;;  %v4432_v42 = vsel %vm12544_vm3, %v10976_v55, 0.0  ;;  %vm12552_vm3 = vcmask 359424  }
 0xafb   :  { %v4433_v36 = vadd.f32 %v4432_v42, %v4431_v38  ;;  %v1694_v61 = vsel %vm12552_vm3, %v10362_v50, %v10351_v27  ;;  %v11031_v27 = vld [vmem:[%s12315_s18 + $0x98] sm:$0xff]  ;;  %v11087_v42 = vld [vmem:[%s12315_s18 + $0x50] sm:$0xff] }
 0xafc   :  { %v4449_v2 = vsel %vm12546_vm0, %v4444_v12, 0.0  ;;  %vm12550_vm0 = vcmp.eq.s32.totalorder %v12549_v44, 0  ;;  %vm1698_vm1 = vcmp.ne.s32.totalorder %v1694_v61, 0 }
 0xafd   :  { %v4422_v35 = vpop.f32.mrf.mxu0  ;;  %v4450_v7 = vadd.f32 %v4449_v2, %v4448_v29  ;;  %v11100_v2 = vld [vmem:[%s12315_s18 + $0x40] sm:$0xff]  ;;  %v11105_v29 = vld [vmem:[%s12315_s18 + $0x48] sm:$0xff] }
 0xafe   :  { %v4423_v59 = vadd.f32 %v4422_v35, %v4394_v39  ;;  %v11064_v39 = vld [vmem:[%s12315_s18 + $0x78] sm:$0xff]  ;;  %v11074_v35 = vld [vmem:[%s12315_s18 + $0x60] sm:$0xff] }
 0xb00   :  { %v10996_v9 = vmax.f32 %v4423_v59, 0.0  ;;  %v11092_v59 = vld [vmem:[%s12315_s18 + $0x58] sm:$0xff] }
 0xb02   :  { %v4434_v32 = vsel %vm12547_vm4, %v10996_v9, 0.0  ;;  %v4445_v37 = vmul.f32 %v10996_v9, %v10996_v9  ;;  %vm12553_vm4 = vcmask 1043456  }
 0xb03   :  { %v4435_v45 = vadd.f32 %v4434_v32, %v4433_v36  ;;  %6248 = vmatpush.msk.msrb.mxu2 %vm12553_vm4, %v11012_v14 }
 0xb04   :  { %v4451_v43 = vsel %vm12548_vm9, %v4445_v37, 0.0  ;;  %vm12554_vm9 = vmmov %vm12553_vm4  ;;  %v11112_v37 = vld [vmem:[%s12315_s18 + $0x30] sm:$0xff] }
 0xb05   :  { %v4436_v13 = vrot.slane %v4435_v45, 4  ;;  %v4452_v41 = vadd.f32 %v4451_v43, %v4450_v7  ;;  %6253 = vmatpush.msk.msrb.mxu0 %vm12554_vm9, %v11017_v46  ;;  %4731 = vmatpush.msrb.mxu2 %v11022_v51  ;;  %v11117_v7 = vld [vmem:[%s12315_s18 + $0x38] sm:$0xff] }
 0xb07   :  { %v4437_v26 = vadd.f32 %v4436_v13, %v4435_v45  ;;  %v4453_v30 = vrot.slane %v4452_v41, 4  ;;  %4760 = vmatpush.msrb.mxu0 %v11031_v27  ;;  %4732 = vmatpush.msrb.mxu2 %v11038_v56  ;;  %v12558_v45 = vrot.slane %v10748_v16, 4  ;;  %v11127_v13 = vld [vmem:[%s12315_s18 + $0x20] sm:$0xff]  ;;  %v11139_v16 = vld [vmem:[%s12315_s18 + $0x10] sm:$0xff] }
 0xb09   :  { %v4438_v4 = vrot.slane %v4437_v26, 2  ;;  %v4454_v58 = vadd.f32 %v4453_v30, %v4452_v41  ;;  %4761 = vmatpush.msrb.mxu0 %v11043_v11  ;;  %4733 = vmatpush.msrb.mxu2 %v11059_v15  ;;  %v11132_v41 = vld [vmem:[%s12315_s18 + $0x28] sm:$0xff]  ;;  %v11151_v30 = vld [vmem:[%s12315_s18] sm:$0xff] }
 0xb0b   :  { %v4439_v48 = vadd.f32 %v4438_v4, %v4437_v26  ;;  %v4455_v0 = vrot.slane %v4454_v58, 2  ;;  %4762 = vmatpush.msrb.mxu0 %v11064_v39  ;;  %4734 = vmatpush.msrb.mxu2 %v11074_v35  ;;  %v11144_v26 = vld [vmem:[%s12315_s18 + $0x18] sm:$0xff]  ;;  %v11156_v4 = vld [vmem:[%s12315_s18 + $0x8] sm:$0xff] }
 0xb0d   :  { %v4440_v40 = vrot.slane %v4439_v48, 1  ;;  %v4456_v54 = vadd.f32 %v4455_v0, %v4454_v58  ;;  %4763 = vmatpush.msrb.mxu0 %v11079_v53  ;;  %4735 = vmatpush.msrb.mxu2 %v11087_v42  ;;  %v12560_v58 = vld [vmem:[#allocation19_spill] sm:$0xff] }
 0xb0f   :  { %v4457_v34 = vrot.slane %v4456_v54, 1  ;;  %v4441_v1 = vadd.f32 %v4440_v40, %v4439_v48  ;;  %4764 = vmatpush.msrb.mxu0 %v11092_v59  ;;  %4736 = vmatpush.msrb.mxu2 %v11100_v2  ;;  %v12563_v40 = vld [vmem:[#allocation23_spill] sm:$0xff] }
 0xb11   :  { %v4458_v3 = vadd.f32 %v4457_v34, %v4456_v54  ;;  %4765 = vmatpush.msrb.mxu0 %v11105_v29  ;;  %4737 = vmatpush.msrb.mxu2 %v11112_v37 }
 0xb13   :  { %v4459_v47 = vsel %vm12550_vm0, %v4441_v1, %v4458_v3  ;;  %vm12555_vm0 = vcmp.eq.f32.partialorder %v8083_v25, %v8426_v19  ;;  %4766 = vmatpush.msrb.mxu0 %v11117_v7  ;;  %4738 = vmatpush.msrb.mxu2 %v11127_v13 }
 0xb14   :  { %6237 = vmatmul.msk.f32.vlgmr.msra.gmra.mxu2 %vm12551_vm2, %v4459_v47  ;;  %vm11048_vm2 = vmor %vm12555_vm0, %vm1698_vm1  ;;  %vm1667_vm0 = vcmp.eq.f32.partialorder %v12560_v58, %v8470_v60 }
 0xb15   :  { %vm1706_vm3 = vmxor %vm11048_vm2, %vm12537_vm5  ;;  %4767 = vmatpush.msrb.mxu0 %v11132_v41  ;;  %4739 = vmatpush.msrb.mxu2 %v11139_v16 }
 0xb16   :  { %v1710_v38 = vsel %vm1706_vm3, 1, %v12448_v8  ;;  %vm12559_vm1 = vmmov %vm12553_vm4 }
 0xb17   :  { %v1714_v36 = vrot.slane %v1710_v38, 4  ;;  %4768 = vmatpush.msrb.mxu0 %v11144_v26  ;;  %4740 = vmatpush.msrb.mxu2 %v11151_v30 }
 0xb19   :  { %v1716_v43 = vsel %vm12559_vm1, %v1714_v36, %v12558_v45  ;;  %vm1721_vm9 = vcmp.ne.s32.totalorder %v1714_v36, 0  ;;  %vm1666_vm1 = vcmp.eq.f32.partialorder %v8095_v57, %v12563_v40  ;;  %4769 = vmatpush.msrb.mxu0 %v11156_v4  ;;  %6268 = vmatpush.msk.msra.mxu2 %vm12566_vm10, %v11012_v14 }
 0xb1a   :  { %vm1722_vm4 = vcmp.ne.s32.totalorder %v1716_v43, 0  ;;  %vm11170_vm15 = vmand %vm1666_vm1, %vm1721_vm9 }
 0xb1b   :  { %vm11162_vm3 = vmand %vm1667_vm0, %vm1722_vm4  ;;  %4951 = vmatpush.msra.mxu2 %v11022_v51  ;;  %v1749_v3 = vsel %vm11170_vm15, 1, %v12448_v8 }
 0xb1c   :  { %vm12567_vm4 = vmmov %vm12566_vm10  ;;  %v1750_v60 = vsel %vm11162_vm3, 1, %v12448_v8  ;;  %v1753_v14 = vrot.slane %v1749_v3, 4 }
 0xb1d   :  { %6273 = vmatpush.msk.msra.mxu0 %vm12567_vm4, %v11017_v46  ;;  %v1754_v47 = vrot.slane %v1750_v60, 4  ;;  %4952 = vmatpush.msra.mxu2 %v11038_v56  ;;  %vm12568_vm1 = vmmov %vm12567_vm4  ;;  %v4525_v56 = vperm.slane %v10938_v33, 1 }
 0xb1f   :  { %4980 = vmatpush.msra.mxu0 %v11031_v27  ;;  %4953 = vmatpush.msra.mxu2 %v11059_v15 }
 0xb21   :  { %4981 = vmatpush.msra.mxu0 %v11043_v11  ;;  %4954 = vmatpush.msra.mxu2 %v11074_v35 }
 0xb23   :  { %4982 = vmatpush.msra.mxu0 %v11064_v39  ;;  %4955 = vmatpush.msra.mxu2 %v11087_v42 }
 0xb25   :  { %4983 = vmatpush.msra.mxu0 %v11079_v53  ;;  %4956 = vmatpush.msra.mxu2 %v11100_v2 }
 0xb27   :  { %4984 = vmatpush.msra.mxu0 %v11092_v59  ;;  %4957 = vmatpush.msra.mxu2 %v11112_v37 }
 0xb29   :  { %4985 = vmatpush.msra.mxu0 %v11105_v29  ;;  %4958 = vmatpush.msra.mxu2 %v11127_v13 }
 0xb2b   :  { %4986 = vmatpush.msra.mxu0 %v11117_v7  ;;  %4959 = vmatpush.msra.mxu2 %v11139_v16 }
 0xb2d   :  { %4987 = vmatpush.msra.mxu0 %v11132_v41  ;;  %4960 = vmatpush.msra.mxu2 %v11151_v30  ;;  %v4575_v30 = vld [vmem:[%s12316_s19 + $0x90] sm:$0xff] }
 0xb2f   :  { %4988 = vmatpush.msra.mxu0 %v11144_v26 }
 0xb31   :  { %4989 = vmatpush.msra.mxu0 %v11156_v4 }
 0xb97   :  { %v4494_v62 = vpop.f32.mrf.mxu2 }
 0xb98   :  { %v11033_v50 = vmul.f32 0.0025510204, %v4494_v62  ;;  %v1755_v62 = vsel %vm12568_vm1, %v1753_v14, %v1754_v47  ;;  %v4562_v14 = vld [vmem:[%s12316_s19 + $0x28] sm:$0xff] }
 0xb99   :  { %vm1760_vm4 = vcmp.ne.s32.totalorder %v1755_v62, 0 }
 0xb9a   :  { %v4498_v24 = vmul.f32 %v11033_v50, %v11033_v50  ;;  %v4504_v46 = vperm.slane %v11033_v50, 0 }
 0xb9c   :  { %v4500_v12 = vrot.slane %v4498_v24, 7  ;;  %v4506_v24 = vsub.f32 %v10969_v10, %v4504_v46  ;;  %v4507_v15 = vsub.f32 %v10976_v55, %v4504_v46 }
 0xb9e   :  { %v4502_v18 = vsub.f32 %v11033_v50, %v4500_v12  ;;  %v4505_v50 = vsub.f32 %v10974_v6, %v4504_v46  ;;  %v4530_v12 = vperm.slane %v10938_v33, 2  ;;  %v12569_v6 = vrot.slane %v10846_v52, 4 }
 0xba0   :  { %v4503_v20 = vmax.f32 %v4502_v18, 0.0 }
 0xba2   :  { %v4509_v32 = vadd.f32 1e-05, %v4503_v20 }
 0xba4   :  { %6314 = vrsqrt.f32 %v4509_v32  ;;  %vm4516_vm9 = vweird.f32 %v4509_v32 }
 0xbaa   :  { %v6315_v48 = vpop.eup %6314 }
 0xbab   :  { %v4511_v54 = vmul.f32 %v6315_v48, %v4509_v32  ;;  %vm4517_vm10 = vweird.f32 %v6315_v48 }
 0xbac   :  { %vm4518_vm0 = vmor %vm4516_vm9, %vm4517_vm10 }
 0xbad   :  { %v4512_v1 = vmul.f32 %v6315_v48, %v4511_v54  ;;  %vm12570_vm10 = vmmov %vm12568_vm1  ;;  %vm12571_vm1 = vcmp.eq.f32.partialorder %v8083_v25, %v8426_v19  ;;  %v4508_v25 = vsub.f32 %v10996_v9, %v4504_v46  ;;  %v4569_v54 = vld [vmem:[%s12316_s19 + $0x60] sm:$0xff] }
 0xbae   :  { %v1757_v55 = vsel %vm12570_vm10, %v1754_v47, %v12569_v6  ;;  %vm1764_vm9 = vmor %vm11048_vm2, %vm1760_vm4  ;;  %vm12572_vm4 = vcmask 687104   ;;  %v12612_v6 = vld [vmem:[#allocation16_spill] sm:$0xff] }
 0xbaf   :  { %v4513_v44 = vmul.f32 0.5, %v4512_v1  ;;  %vm1768_vm2 = vmxor %vm1764_vm9, %vm12537_vm5  ;;  %v1732_v1 = vpop.permute.xlu2 %1731  ;;  %v4564_v47 = vld [vmem:[%s12316_s19 + $0x38] sm:$0xff] }
 0xbb0   :  { %vm12573_vm10 = vmmov %vm12572_vm4  ;;  %v1772_v17 = vsel %vm1768_vm2, 1, %v12448_v8  ;;  %vm12579_vm2 = vcmp.eq.f32.partialorder %v8115_v5, %v8578_v63 }
 0xbb1   :  { %v4514_v61 = vsub.f32 1.5, %v4513_v44  ;;  %v1776_v19 = vrot.slane %v1772_v17, 4  ;;  %v12616_v17 = vld [vmem:[#allocation31_spill] sm:$0xff] }
 0xbb3   :  { %v4515_v51 = vmul.f32 %v6315_v48, %v4514_v61 }
 0xbb5   :  { %v4519_v27 = vsel %vm4518_vm0, %v6315_v48, %v4515_v51  ;;  %vm1761_vm0 = vcmp.ne.s32.totalorder %v1757_v55, 0  ;;  %v4560_v51 = vld [vmem:[%s12316_s19 + $0x18] sm:$0xff] }
 0xbb6   :  { %v4520_v11 = vperm.slane %v4519_v27, 1  ;;  %vm1765_vm12 = vmor %vm10676_vm11, %vm1761_vm0  ;;  %vm12574_vm11 = vcmp.eq.f32.partialorder %v8087_v31, %v8428_v23 }
 0xbb7   :  { %vm1769_vm9 = vmxor %vm1765_vm12, %vm12537_vm5  ;;  %vm12577_vm5 = vcmask 1043456  }
 0xbb8   :  { %v4522_v39 = vmul.f32 %v4520_v11, %v4506_v24  ;;  %v4521_v35 = vmul.f32 %v4520_v11, %v4505_v50  ;;  %v4523_v53 = vmul.f32 %v4520_v11, %v4507_v15  ;;  %v4524_v20 = vmul.f32 %v4520_v11, %v4508_v25  ;;  %vm12575_vm0 = vmmov %vm12572_vm4  ;;  %v12604_v24 = vld [vmem:[#allocation27_spill] sm:$0xff] }
 0xbb9   :  { %v1773_v9 = vsel %vm1769_vm9, 1, %v12448_v8  ;;  %vm12576_vm12 = vmmov %vm12575_vm0  ;;  %v12583_v8 = vrot.slane %v10897_v22, 4  ;;  %v12606_v15 = vld [vmem:[#allocation35_spill] sm:$0xff] }
 0xbba   :  { %v4527_v18 = vmul.f32 %v4525_v56, %v4522_v39  ;;  %v4526_v10 = vmul.f32 %v4525_v56, %v4521_v35  ;;  %v4528_v38 = vmul.f32 %v4525_v56, %v4523_v53  ;;  %v4529_v29 = vmul.f32 %v4525_v56, %v4524_v20  ;;  %v12607_v39 = vld [vmem:[#allocation30_spill] sm:$0xff]  ;;  %v12609_v53 = vld [vmem:[#allocation29_spill] sm:$0xff] }
 0xbbb   :  { %v1777_v36 = vrot.slane %v1773_v9, 4 }
 0xbbc   :  { %v4532_v33 = vadd.f32 %v4530_v12, %v4527_v18  ;;  %v4531_v42 = vadd.f32 %v4530_v12, %v4526_v10  ;;  %v4533_v59 = vadd.f32 %v4530_v12, %v4528_v38  ;;  %v4534_v7 = vadd.f32 %v4530_v12, %v4529_v29  ;;  %v12611_v38 = vld [vmem:[#allocation32_spill] sm:$0xff] }
 0xbbd   :  { %v1778_v45 = vsel %vm12577_vm5, %v1776_v19, %v1777_v36 }
 0xbbe   :  { %4589 = vrot.lane.b32.xlu1 %v4532_v33, %s6384_s21  ;;  %4587 = vrot.lane.b32.xlu0 %v4531_v42, %s6384_s21  ;;  %v4579_v52 = vsel %vm12571_vm1, %v4531_v42, 0.0  ;;  %v4783_v2 = vrot.slane %v4531_v42, 4  ;;  %v4580_v21 = vsel %vm12574_vm11, %v4532_v33, 0.0  ;;  %v4784_v32 = vrot.slane %v4532_v33, 4  ;;  %vm12578_vm1 = vmmov %vm12577_vm5  ;;  %v12615_v42 = vld [vmem:[#allocation17_spill] sm:$0xff] }
 0xbbf   :  { %4591 = vrot.lane.b32.xlu2 %v4533_v59, %s6384_s21  ;;  %6249 = vmatmul.msk.f32.vlgmr.msrb.gmra.mxu2 %vm12572_vm4, %v4579_v52  ;;  %v4786_v37 = vrot.slane %v4533_v59, 4  ;;  %v4581_v31 = vsel %vm12579_vm2, %v4533_v59, 0.0  ;;  %vm12580_vm4 = vmmov %vm12575_vm0  ;;  %v4788_v4 = vrot.slane %v4534_v7, 4 }
 0xbc0   :  { %6254 = vmatmul.msk.f32.vlgmr.msrb.gmra.mxu0 %vm12573_vm10, %v4579_v52  ;;  %vm12581_vm10 = vmmov %vm12575_vm0  ;;  %v4794_v63 = vsel %vm11170_vm15, %v4783_v2, 0.0 }
 0xbc1   :  { %v4787_v43 = vsel %vm12578_vm1, %v4784_v32, %v4786_v37  ;;  %vm12582_vm9 = vmmov %vm12578_vm1  ;;  %v4930_v22 = vrot.slane %v4794_v63, 4 }
 0xbc2   :  { %v4785_v23 = vsel %vm12582_vm9, %v4783_v2, %v4784_v32  ;;  %vm12584_vm11 = vmmov %vm12578_vm1 }
 0xbc3   :  { %v1780_v13 = vsel %vm12584_vm11, %v1777_v36, %v12583_v8  ;;  %v4795_v41 = vsel %vm11162_vm3, %v4785_v23, 0.0  ;;  %vm12587_vm5 = vmmov %vm12580_vm4 }
 0xbc4   :  { %v4931_v16 = vrot.slane %v4795_v41, 4  ;;  %vm12589_vm2 = vmmov %vm12580_vm4 }
 0xbc5   :  { %vm12590_vm15 = vmmov %vm12589_vm2 }
 0xbc6   :  { %1729 = vrot.lane.b32.xlu1 %v12563_v40, %s6384_s21  ;;  %1783 = vrot.lane.b32.xlu0 %v1776_v19, %s6384_s21  ;;  %v4932_v26 = vsel %vm12578_vm1, %v4930_v22, %v4931_v16  ;;  %vm12591_vm3 = vmmov %vm12578_vm1  ;;  %v12618_v19 = vld [vmem:[#allocation28_spill] sm:$0xff] }
 0xbc7   :  { %4798 = vrot.lane.b32.xlu2 %v4783_v2, %s6384_s21  ;;  %6250 = vmatmul.msk.f32.gmra.mxu2 %vm12575_vm0, %v4580_v21  ;;  %vm12585_vm0 = vcmp.eq.f32.partialorder %v8095_v57, %v8529_v49  ;;  %v4796_v49 = vsel %vm10836_vm6, %v4787_v43, 0.0  ;;  %v4789_v0 = vsel %vm12591_vm3, %v4786_v37, %v4788_v4  ;;  %vm12595_vm9 = vmmov %vm12589_vm2  ;;  %v4573_v4 = vld [vmem:[%s12316_s19 + $0x80] sm:$0xff] }
 0xbc8   :  { %6255 = vmatmul.msk.f32.gmra.mxu0 %vm12576_vm12, %v4580_v21  ;;  %v4582_v5 = vsel %vm12585_vm0, %v4534_v7, 0.0  ;;  %vm12586_vm12 = vmmov %vm12580_vm4  ;;  %v4933_v48 = vrot.slane %v4796_v49, 4  ;;  %v4797_v34 = vsel %vm10734_vm8, %v4789_v0, 0.0  ;;  %vm12605_vm8 = vnez %v12604_v24  ;;  %v4576_v49 = vld [vmem:[%s12316_s19 + $0x98] sm:$0xff] }
 0xbc9   :  { %vm12596_vm11 = vmmov %vm12578_vm1 }
 0xbca   :  { %vm12597_vm6 = vmmov %vm12589_vm2 }
 0xbcb   :  { %vm12598_vm0 = vmmov %vm12589_vm2 }
 0xbce   :  { %4593 = vrot.lane.b32.xlu0 %v4534_v7, %s6384_s21  ;;  %1785 = vrot.lane.b32.xlu1 %v1778_v45, %s6384_s21  ;;  %v12621_v45 = vld [vmem:[#allocation20_spill] sm:$0xff] }
 0xbcf   :  { %4802 = vrot.lane.b32.xlu2 %v4787_v43, %s6384_s21  ;;  %6251 = vmatmul.msk.f32.gmra.mxu2 %vm12580_vm4, %v4581_v31  ;;  %vm12592_vm4 = vmmov %vm12578_vm1  ;;  %vm12610_vm1 = vnez %v12609_v53  ;;  %v12622_v43 = vld [vmem:[#allocation18_spill] sm:$0xff] }
 0xbd0   :  { %6256 = vmatmul.msk.f32.gmra.mxu0 %vm12581_vm10, %v4581_v31  ;;  %v4934_v40 = vsel %vm12592_vm4, %v4931_v16, %v4933_v48  ;;  %vm12593_vm10 = vmmov %vm12589_vm2  ;;  %vm1743_vm4 = vcmp.eq.f32.partialorder %v12560_v58, %v1732_v1  ;;  %v4577_v16 = vld [vmem:[%s12316_s19 + $0xa0] sm:$0xf] }
 0xbd6   :  { %4800 = vrot.lane.b32.xlu0 %v4785_v23, %s6384_s21  ;;  %1787 = vrot.lane.b32.xlu1 %v1780_v13, %s6384_s21 }
 0xbd7   :  { %6252 = vmatmul.msk.f32.gmra.mxu2 %vm12586_vm12, %v4582_v5  ;;  %vm12599_vm12 = vmmov %vm12598_vm0 }
 0xbd8   :  { %6257 = vmatmul.msk.f32.gmra.mxu0 %vm12587_vm5, %v4582_v5  ;;  %vm12600_vm5 = vmmov %vm12598_vm0 }
 0xbde   :  { %1733 = vrot.lane.b32.xlu0 %v8613_v28, %s6384_s21  ;;  %v4935_v28 = vrot.slane %v4797_v34, 4  ;;  %v4570_v34 = vld [vmem:[%s12316_s19 + $0x68] sm:$0xff] }
 0xbdf   :  { %6269 = vmatmul.msk.f32.vlgmr.msra.gmra.mxu2 %vm12589_vm2, %v4932_v26 }
 0xbe0   :  { %6274 = vmatmul.msk.f32.vlgmr.msra.gmra.mxu0 %vm12590_vm15, %v4932_v26  ;;  %v4936_v60 = vsel %vm12596_vm11, %v4933_v48, %v4935_v28  ;;  %v4578_v26 = vld [vmem:[%s12316_s19 + $0xa8] sm:$0xf] }
 0xbe1   :  { %v4574_v48 = vld [vmem:[%s12316_s19 + $0x88] sm:$0xff] }
 0xbe7   :  { %6270 = vmatmul.msk.f32.gmra.mxu2 %vm12593_vm10, %v4934_v40 }
 0xbe8   :  { %6275 = vmatmul.msk.f32.gmra.mxu0 %vm12595_vm9, %v4934_v40  ;;  %vm1744_vm9 = vcmp.eq.f32.partialorder %v12615_v42, %v1732_v1  ;;  %v4572_v40 = vld [vmem:[%s12316_s19 + $0x78] sm:$0xff]  ;;  %v4565_v1 = vld [vmem:[%s12316_s19 + $0x40] sm:$0xff] }
 0xbef   :  { %6271 = vmatmul.msk.f32.gmra.mxu2 %vm12597_vm6, %v4936_v60 }
 0xbf0   :  { %6276 = vmatmul.msk.f32.gmra.mxu0 %vm12598_vm0, %v4936_v60  ;;  %vm12617_vm0 = vnez %v12616_v17  ;;  %v4568_v60 = vld [vmem:[%s12316_s19 + $0x58] sm:$0xff] }
 0xbf7   :  { %6272 = vmatmul.msk.f32.gmra.mxu2 %vm12599_vm12, %v4935_v28  ;;  %vm12619_vm12 = vnez %v12618_v19 }
 0xbf8   :  { %6277 = vmatmul.msk.f32.gmra.mxu0 %vm12600_vm5, %v4935_v28  ;;  %vm12620_vm5 = vcmask 1043456   ;;  %v4567_v28 = vld [vmem:[%s12316_s19 + $0x50] sm:$0xff] }
 0xc19   :  { %v4592_v27 = vpop.permute.xlu2 %4591 }
 0xc1a   :  { %v4603_v18 = vsel %vm12610_vm1, %v4592_v27, 0.0 }
 0xc21   :  { %v4799_v55 = vpop.permute.xlu2 %4798 }
 0xc29   :  { %v4803_v23 = vpop.permute.xlu2 %4802 }
 0xc30   :  { %v4588_v3 = vpop.permute.xlu0 %4587  ;;  %v4590_v44 = vpop.permute.xlu1 %4589 }
 0xc31   :  { %v4600_v61 = vsel %vm10128_vm14, %v4588_v3, 0.0  ;;  %v4599_v46 = vsel %vm10123_vm13, %v4588_v3, 0.0  ;;  %v4601_v62 = vsel %vm10154_vm7, %v4590_v44, 0.0  ;;  %v4602_v50 = vsel %vm12605_vm8, %v4590_v44, 0.0  ;;  %v4566_v3 = vld [vmem:[%s12316_s19 + $0x48] sm:$0xff]  ;;  %v4563_v44 = vld [vmem:[%s12316_s19 + $0x30] sm:$0xff] }
 0xc32   :  { %4617 = vrot.lane.b32.xlu2 %v4600_v61, %s6379_s17  ;;  %4615 = vrot.lane.b32.xlu1 %v4599_v46, %s6379_s17  ;;  %vm12608_vm13 = vnez %v12607_v39  ;;  %v4561_v61 = vld [vmem:[%s12316_s19 + $0x20] sm:$0xff]  ;;  %v4559_v46 = vld [vmem:[%s12316_s19 + $0x10] sm:$0xff] }
 0xc33   :  { %4619 = vrot.lane.b32.xlu0 %v4601_v62, %s6379_s17  ;;  %v4604_v12 = vsel %vm12608_vm13, %v4592_v27, 0.0  ;;  %v4557_v62 = vld [vmem:[%s12316_s19] sm:$0xff]  ;;  %v4558_v27 = vld [vmem:[%s12316_s19 + $0x8] sm:$0xff] }
 0xc38   :  { %v1784_v56 = vpop.permute.xlu0 %1783  ;;  %v1730_v11 = vpop.permute.xlu1 %1729 }
 0xc39   :  { %vm1791_vm14 = vcmp.ne.s32.totalorder %v1784_v56, 0  ;;  %vm1741_vm7 = vcmp.eq.f32.partialorder %v8095_v57, %v1730_v11  ;;  %vm1742_vm2 = vcmp.eq.f32.partialorder %v12612_v6, %v1730_v11  ;;  %v12638_v6 = vld [vmem:[#allocation22_spill] sm:$0xff] }
 0xc3a   :  { %1789 = vrot.lane.b32.xlu2 %v12606_v15, %s6384_s21  ;;  %4621 = vrot.lane.b32.xlu1 %v4602_v50, %s6379_s17  ;;  %vm1795_vm15 = vmand %vm1741_vm7, %vm1791_vm14 }
 0xc3b   :  { %4625 = vrot.lane.b32.xlu0 %v4604_v12, %s6379_s17  ;;  %vm11309_vm10 = vmand %vm1742_vm2, %vm1791_vm14  ;;  %v4810_v33 = vsel %vm1795_vm15, %v4799_v55, 0.0 }
 0xc3c   :  { %v4826_v2 = vrot.slane %v4810_v33, 4  ;;  %v4811_v9 = vsel %vm11309_vm10, %v4799_v55, 0.0  ;;  %vm12623_vm7 = vmmov %vm12620_vm5 }
 0xc3d   :  { %v4829_v37 = vrot.slane %v4811_v9, 4  ;;  %vm12624_vm15 = vmmov %vm12620_vm5 }
 0xc40   :  { %v4594_v35 = vpop.permute.xlu0 %4593  ;;  %v1786_v10 = vpop.permute.xlu1 %1785 }
 0xc41   :  { %vm1792_vm3 = vcmp.ne.s32.totalorder %v1786_v10, 0  ;;  %v4606_v25 = vsel %vm12617_vm0, %v4594_v35, 0.0  ;;  %v4605_v20 = vsel %vm12619_vm12, %v4594_v35, 0.0  ;;  %vm12631_vm0 = vcmask 687104  }
 0xc42   :  { %4623 = vrot.lane.b32.xlu2 %v4603_v18, %s6379_s17  ;;  %1735 = vrot.lane.b32.xlu1 %v12611_v38, %s6384_s21  ;;  %vm1797_vm11 = vmand %vm1743_vm4, %vm1792_vm3  ;;  %v12637_v38 = vld [vmem:[#allocation21_spill] sm:$0xff] }
 0xc43   :  { %4804 = vrot.lane.b32.xlu0 %v4789_v0, %s6384_s21  ;;  %vm1798_vm6 = vmand %vm1744_vm9, %vm1792_vm3  ;;  %v4571_v0 = vld [vmem:[%s12316_s19 + $0x70] sm:$0xff] }
 0xc44   :  { %vm12625_vm3 = vmmov %vm12620_vm5 }
 0xc45   :  { %vm12626_vm4 = vmmov %vm12625_vm3 }
 0xc46   :  { %6238 = vmatpush.msk.msrb.mxu3 %vm12626_vm4, %v4577_v16  ;;  %vm12627_vm10 = vmmov %vm12625_vm3 }
 0xc47   :  { %6243 = vmatpush.msk.msra.mxu1 %vm12627_vm10, %v4578_v26  ;;  %vm12628_vm9 = vmmov %vm12625_vm3 }
 0xc48   :  { %v4801_v59 = vpop.permute.xlu0 %4800  ;;  %v1788_v32 = vpop.permute.xlu1 %1787  ;;  %4655 = vmatpush.msrb.mxu3 %v4575_v30  ;;  %vm12632_vm12 = vmmov %vm12631_vm0 }
 0xc49   :  { %v4812_v52 = vsel %vm1797_vm11, %v4801_v59, 0.0  ;;  %v4813_v21 = vsel %vm1798_vm6, %v4801_v59, 0.0  ;;  %vm1793_vm8 = vcmp.ne.s32.totalorder %v1788_v32, 0  ;;  %4684 = vmatpush.msra.mxu1 %v4576_v49  ;;  %vm12629_vm11 = vmmov %vm12625_vm3  ;;  %vm12630_vm6 = vcmask 359424   ;;  %v4771_v32 = vpop.f32.mrf.mxu0 }
 0xc4a   :  { %v4827_v58 = vrot.slane %v4812_v52, 4  ;;  %4629 = vrot.lane.b32.xlu2 %v4606_v25, %s6379_s17  ;;  %4627 = vrot.lane.b32.xlu1 %v4605_v20, %s6379_s17  ;;  %v4830_v36 = vrot.slane %v4813_v21, 4  ;;  %vm12640_vm4 = vmmov %vm12631_vm0 }
 0xc4b   :  { %4656 = vmatpush.msrb.mxu3 %v4573_v4  ;;  %4685 = vmatpush.msra.mxu1 %v4574_v48 }
 0xc4c   :  { %v4828_v29 = vsel %vm12620_vm5, %v4826_v2, %v4827_v58  ;;  %v4831_v31 = vsel %vm12623_vm7, %v4829_v37, %v4830_v36  ;;  %vm12633_vm5 = vmmov %vm12630_vm6  ;;  %v5585_v37 = vld [vmem:[%s12312_s15 + $0xf8] sm:$0xff] }
 0xc4d   :  { %4840 = vrot.lane.b32.xlu0 %v4828_v29, %s6379_s17  ;;  %4657 = vmatpush.msrb.mxu3 %v4571_v0  ;;  %vm12636_vm7 = vmmov %vm12633_vm5 }
 0xc4e   :  { %4686 = vmatpush.msra.mxu1 %v4572_v40 }
 0xc4f   :  { %4658 = vmatpush.msrb.mxu3 %v4569_v54 }
 0xc50   :  { %v1734_v7 = vpop.permute.xlu0 %1733  ;;  %4687 = vmatpush.msra.mxu1 %v4570_v34 }
 0xc51   :  { %vm1745_vm13 = vcmp.eq.f32.partialorder %v12621_v45, %v1734_v7  ;;  %vm1746_vm14 = vcmp.eq.f32.partialorder %v12622_v43, %v1734_v7  ;;  %4659 = vmatpush.msrb.mxu3 %v4567_v28  ;;  %v5584_v7 = vld [vmem:[%s12312_s15 + $0xf0] sm:$0xff]  ;;  %v5583_v45 = vld [vmem:[%s12312_s15 + $0xe8] sm:$0xff]  ;;  %v5569_v43 = vld [vmem:[%s12312_s15 + $0x78] sm:$0xff] }
 0xc52   :  { %vm1799_vm1 = vmand %vm1745_vm13, %vm1793_vm8  ;;  %4842 = vrot.lane.b32.xlu1 %v4831_v31, %s6379_s17  ;;  %4688 = vmatpush.msra.mxu1 %v4568_v60  ;;  %v5582_v31 = vld [vmem:[%s12312_s15 + $0xe0] sm:$0xff] }
 0xc53   :  { %vm1800_vm2 = vmand %vm1746_vm14, %vm1793_vm8  ;;  %v4814_v8 = vsel %vm1799_vm1, %v4803_v23, 0.0  ;;  %4660 = vmatpush.msrb.mxu3 %v4565_v1 }
 0xc54   :  { %v4815_v13 = vsel %vm1800_vm2, %v4803_v23, 0.0  ;;  %v11328_v5 = vrot.slane %v4814_v8, 4  ;;  %4689 = vmatpush.msra.mxu1 %v4566_v3  ;;  %vm12634_vm8 = vmmov %vm12631_vm0  ;;  %v4742_v23 = vpop.f32.mrf.mxu2  ;;  %v5568_v8 = vld [vmem:[%s12312_s15 + $0x70] sm:$0xff] }
 0xc55   :  { %v11330_v63 = vrot.slane %v4815_v13, 4  ;;  %4661 = vmatpush.msrb.mxu3 %v4563_v44  ;;  %vm12635_vm13 = vmmov %vm12631_vm0  ;;  %v5581_v13 = vld [vmem:[%s12312_s15 + $0xd8] sm:$0xff] }
 0xc56   :  { %v4833_v41 = vsel %vm12624_vm15, %v4827_v58, %v11328_v5  ;;  %4690 = vmatpush.msra.mxu1 %v4564_v47 }
 0xc57   :  { %v4835_v22 = vsel %vm12625_vm3, %v4830_v36, %v11330_v63  ;;  %4844 = vrot.lane.b32.xlu2 %v4833_v41, %s6379_s17  ;;  %4662 = vmatpush.msrb.mxu3 %v4561_v61  ;;  %vm12639_vm3 = vmmov %vm12631_vm0  ;;  %v5580_v41 = vld [vmem:[%s12312_s15 + $0xd0] sm:$0xff] }
 0xc58   :  { %4846 = vrot.lane.b32.xlu0 %v4835_v22, %s6379_s17  ;;  %4691 = vmatpush.msra.mxu1 %v4562_v14  ;;  %v5617_v22 = vld [vmem:[%s12312_s15 + $0x1f8] sm:$0xff] }
 0xc59   :  { %4663 = vmatpush.msrb.mxu3 %v4559_v46  ;;  %5840 = vmatpush.msrb.mxu0 %v5617_v22 }
 0xc5a   :  { %4692 = vmatpush.msra.mxu1 %v4560_v51 }
 0xc5b   :  { %4664 = vmatpush.msrb.mxu3 %v4557_v62 }
 0xc5c   :  { %4693 = vmatpush.msra.mxu1 %v4558_v27 }
 0xc5d   :  { %6258 = vmatpush.msk.msra.mxu3 %vm12628_vm9, %v4577_v16 }
 0xc5e   :  { %6263 = vmatpush.msk.msrb.mxu1 %vm12629_vm11, %v4578_v26  ;;  %vm12641_vm11 = vmmov %vm12628_vm9  ;;  %v5566_v26 = vld [vmem:[%s12312_s15 + $0x60] sm:$0xff] }
 0xc5f   :  { %4874 = vmatpush.msra.mxu3 %v4575_v30  ;;  %v5616_v30 = vld [vmem:[%s12312_s15 + $0x1f0] sm:$0xff] }
 0xc60   :  { %4903 = vmatpush.msrb.mxu1 %v4576_v49  ;;  %5841 = vmatpush.msrb.mxu0 %v5616_v30  ;;  %v5595_v30 = vld [vmem:[%s12312_s15 + $0x148] sm:$0xff] }
 0xc61   :  { %4875 = vmatpush.msra.mxu3 %v4573_v4  ;;  %v5579_v4 = vld [vmem:[%s12312_s15 + $0xc8] sm:$0xff] }
 0xc62   :  { %4904 = vmatpush.msrb.mxu1 %v4574_v48  ;;  %v5565_v48 = vld [vmem:[%s12312_s15 + $0x58] sm:$0xff] }
 0xc63   :  { %4876 = vmatpush.msra.mxu3 %v4571_v0  ;;  %v5578_v0 = vld [vmem:[%s12312_s15 + $0xc0] sm:$0xff] }
 0xc64   :  { %4905 = vmatpush.msrb.mxu1 %v4572_v40  ;;  %v5615_v40 = vld [vmem:[%s12312_s15 + $0x1e8] sm:$0xff] }
 0xc65   :  { %4877 = vmatpush.msra.mxu3 %v4569_v54  ;;  %5842 = vmatpush.msrb.mxu0 %v5615_v40  ;;  %v5594_v40 = vld [vmem:[%s12312_s15 + $0x140] sm:$0xff] }
 0xc66   :  { %4906 = vmatpush.msrb.mxu1 %v4570_v34 }
 0xc67   :  { %4878 = vmatpush.msra.mxu3 %v4567_v28 }
 0xc68   :  { %4907 = vmatpush.msrb.mxu1 %v4568_v60  ;;  %v5564_v60 = vld [vmem:[%s12312_s15 + $0x50] sm:$0xff] }
 0xc69   :  { %4879 = vmatpush.msra.mxu3 %v4565_v1  ;;  %v5601_v1 = vld [vmem:[%s12312_s15 + $0x178] sm:$0xff] }
 0xc6a   :  { %4908 = vmatpush.msrb.mxu1 %v4566_v3  ;;  %v5614_v3 = vld [vmem:[%s12312_s15 + $0x1e0] sm:$0xff]  ;;  %5799 = vmatpush.msrb.mxu2 %v5601_v1  ;;  %v5593_v1 = vld [vmem:[%s12312_s15 + $0x138] sm:$0xff] }
 0xc6b   :  { %4880 = vmatpush.msra.mxu3 %v4563_v44  ;;  %v5577_v44 = vld [vmem:[%s12312_s15 + $0xb8] sm:$0xff]  ;;  %5843 = vmatpush.msrb.mxu0 %v5614_v3 }
 0xc6c   :  { %4909 = vmatpush.msrb.mxu1 %v4564_v47  ;;  %v4745_v47 = vpop.f32.mrf.mxu2 }
 0xc6d   :  { %4881 = vmatpush.msra.mxu3 %v4561_v61 }
 0xc6e   :  { %4910 = vmatpush.msrb.mxu1 %v4562_v14 }
 0xc6f   :  { %4882 = vmatpush.msra.mxu3 %v4559_v46  ;;  %v5563_v46 = vld [vmem:[%s12312_s15 + $0x48] sm:$0xff] }
 0xc70   :  { %4911 = vmatpush.msrb.mxu1 %v4560_v51  ;;  %v5576_v51 = vld [vmem:[%s12312_s15 + $0xb0] sm:$0xff] }
 0xc71   :  { %4883 = vmatpush.msra.mxu3 %v4557_v62  ;;  %v5600_v62 = vld [vmem:[%s12312_s15 + $0x170] sm:$0xff] }
 0xc72   :  { %4912 = vmatpush.msrb.mxu1 %v4558_v27  ;;  %5800 = vmatpush.msrb.mxu2 %v5600_v62  ;;  %v5592_v62 = vld [vmem:[%s12312_s15 + $0x130] sm:$0xff] }
 0xc8c   :  { %v4618_v56 = vpop.permute.xlu2 %4617 }
 0xc94   :  { %v1790_v15 = vpop.permute.xlu2 %1789 }
 0xc95   :  { %vm1794_vm14 = vcmp.ne.s32.totalorder %v1790_v15, 0 }
 0xc9c   :  { %v4624_v53 = vpop.permute.xlu2 %4623 }
 0xca4   :  { %v4616_v11 = vpop.permute.xlu1 %4615  ;;  %v4630_v25 = vpop.permute.xlu2 %4629 }
 0xca5   :  { %v4620_v24 = vpop.permute.xlu0 %4619  ;;  %v4631_v50 = vsel %vm12630_vm6, %v4616_v11, %v4618_v56  ;;  %vm12642_vm6 = vmmov %vm12633_vm5  ;;  %v5613_v56 = vld [vmem:[%s12312_s15 + $0x1d8] sm:$0xff]  ;;  %v5562_v11 = vld [vmem:[%s12312_s15 + $0x40] sm:$0xff] }
 0xca6   :  { %6239 = vmatmul.msk.f32.vlgmr.msrb.gmra.mxu3 %vm12631_vm0, %v4631_v50  ;;  %6244 = vmatmul.msk.f32.vlgmr.msra.gmra.mxu1 %vm12632_vm12, %v4631_v50  ;;  %vm12643_vm12 = vmmov %vm12631_vm0 }
 0xca7   :  { %5758 = vmatpush.msra.mxu1 %v5585_v37  ;;  %5717 = vmatpush.msrb.mxu3 %v5569_v43 }
 0xca8   :  { %5844 = vmatpush.msrb.mxu0 %v5613_v56  ;;  %v5605_v56 = vld [vmem:[%s12312_s15 + $0x198] sm:$0xff] }
 0xca9   :  { %5759 = vmatpush.msra.mxu1 %v5584_v7  ;;  %5718 = vmatpush.msrb.mxu3 %v5568_v8  ;;  %v5596_v8 = vld [vmem:[%s12312_s15 + $0x150] sm:$0xff] }
 0xcab   :  { %5760 = vmatpush.msra.mxu1 %v5583_v45  ;;  %v5559_v45 = vld [vmem:[%s12312_s15 + $0x28] sm:$0xff] }
 0xcac   :  { %v4622_v39 = vpop.permute.xlu1 %4621 }
 0xcad   :  { %v4626_v12 = vpop.permute.xlu0 %4625  ;;  %v4632_v35 = vsel %vm12633_vm5, %v4620_v24, %v4622_v39  ;;  %5761 = vmatpush.msra.mxu1 %v5582_v31 }
 0xcae   :  { %6240 = vmatmul.msk.f32.gmra.mxu3 %vm12634_vm8, %v4632_v35  ;;  %6245 = vmatmul.msk.f32.gmra.mxu1 %vm12635_vm13, %v4632_v35  ;;  %v4633_v10 = vsel %vm12636_vm7, %v4624_v53, %v4626_v12  ;;  %vm12644_vm8 = vmmov %vm12631_vm0  ;;  %v5599_v35 = vld [vmem:[%s12312_s15 + $0x168] sm:$0xff] }
 0xcaf   :  { %vm12645_vm13 = vmmov %vm12631_vm0  ;;  %5762 = vmatpush.msra.mxu1 %v5581_v13  ;;  %5801 = vmatpush.msrb.mxu2 %v5599_v35  ;;  %v5609_v13 = vld [vmem:[%s12312_s15 + $0x1b8] sm:$0xff] }
 0xcb0   :  { %vm12647_vm7 = vmmov %vm12631_vm0 }
 0xcb1   :  { %v4845_v29 = vpop.permute.xlu2 %4844  ;;  %5763 = vmatpush.msra.mxu1 %v5580_v41  ;;  %v5558_v41 = vld [vmem:[%s12312_s15 + $0x20] sm:$0xff] }
 0xcb3   :  { %5764 = vmatpush.msra.mxu1 %v5579_v4 }
 0xcb4   :  { %v1736_v18 = vpop.permute.xlu1 %1735 }
 0xcb5   :  { %vm1747_vm1 = vcmp.eq.f32.partialorder %v12637_v38, %v1736_v18  ;;  %vm1748_vm2 = vcmp.eq.f32.partialorder %v12638_v6, %v1736_v18  ;;  %v4805_v55 = vpop.permute.xlu0 %4804  ;;  %5765 = vmatpush.msra.mxu1 %v5578_v0  ;;  %v5612_v38 = vld [vmem:[%s12312_s15 + $0x1d0] sm:$0xff]  ;;  %v5561_v6 = vld [vmem:[%s12312_s15 + $0x38] sm:$0xff]  ;;  %v5570_v0 = vld [vmem:[%s12312_s15 + $0x80] sm:$0xff] }
 0xcb6   :  { %vm1801_vm15 = vmand %vm1747_vm1, %vm1794_vm14  ;;  %6241 = vmatmul.msk.f32.gmra.mxu3 %vm12639_vm3, %v4633_v10  ;;  %6246 = vmatmul.msk.f32.gmra.mxu1 %vm12640_vm4, %v4633_v10  ;;  %v5575_v10 = vld [vmem:[%s12312_s15 + $0xa8] sm:$0xff] }
 0xcb7   :  { %vm1802_vm10 = vmand %vm1748_vm2, %vm1794_vm14  ;;  %v4816_v57 = vsel %vm1801_vm15, %v4805_v55, 0.0  ;;  %vm12649_vm2 = vcmask 320512   ;;  %vm12650_vm15 = vcmask 324612   ;;  %5766 = vmatpush.msra.mxu1 %v5577_v44  ;;  %5845 = vmatpush.msrb.mxu0 %v5612_v38  ;;  %v5606_v44 = vld [vmem:[%s12312_s15 + $0x1a0] sm:$0xff]  ;;  %v5589_v38 = vld [vmem:[%s12312_s15 + $0x118] sm:$0xff] }
 0xcb8   :  { %v4817_v33 = vsel %vm1802_vm10, %v4805_v55, 0.0  ;;  %v4836_v42 = vrot.slane %v4816_v57, 4  ;;  %vm12646_vm14 = vmmov %vm12633_vm5 }
 0xcb9   :  { %v4838_v59 = vrot.slane %v4817_v33, 4  ;;  %vm12648_vm1 = vmmov %vm12631_vm0  ;;  %5767 = vmatpush.msra.mxu1 %v5576_v51  ;;  %v5598_v33 = vld [vmem:[%s12312_s15 + $0x160] sm:$0xff] }
 0xcba   :  { %4852 = vrot.lane.b32.xlu0 %v4836_v42, %s6379_s17  ;;  %v4837_v52 = vsel %vm12628_vm9, %v11328_v5, %v4836_v42  ;;  %v4774_v5 = vpop.f32.mrf.mxu0  ;;  %vm12651_vm3 = vmmov %vm12649_vm2  ;;  %5802 = vmatpush.msrb.mxu2 %v5598_v33 }
 0xcbb   :  { %v4839_v17 = vsel %vm12641_vm11, %v11330_v63, %v4838_v59  ;;  %4848 = vrot.lane.b32.xlu1 %v4837_v52, %s6379_s17  ;;  %v5567_v63 = vld [vmem:[%s12312_s15 + $0x68] sm:$0xff]  ;;  %vm12652_vm4 = vmmov %vm12650_vm15  ;;  %5768 = vmatpush.msra.mxu1 %v5575_v10 }
 0xcbc   :  { %4850 = vrot.lane.b32.xlu2 %v4839_v17, %s6379_s17  ;;  %v4628_v19 = vpop.permute.xlu1 %4627  ;;  %5719 = vmatpush.msrb.mxu3 %v5567_v63  ;;  %vm12653_vm10 = vmmov %vm12633_vm5  ;;  %v5611_v52 = vld [vmem:[%s12312_s15 + $0x1c8] sm:$0xff] }
 0xcbd   :  { %v4634_v20 = vsel %vm12642_vm6, %v4628_v19, %v4630_v25  ;;  %vm12654_vm9 = vmmov %vm12631_vm0  ;;  %v5560_v25 = vld [vmem:[%s12312_s15 + $0x30] sm:$0xff]  ;;  %v5597_v19 = vld [vmem:[%s12312_s15 + $0x158] sm:$0xff]  ;;  %5846 = vmatpush.msrb.mxu0 %v5611_v52 }
 0xcbe   :  { %6242 = vmatmul.msk.f32.gmra.mxu3 %vm12631_vm0, %v4634_v20  ;;  %6247 = vmatmul.msk.f32.gmra.mxu1 %vm12643_vm12, %v4634_v20  ;;  %vm12655_vm11 = vmmov %vm12631_vm0 }
 0xcbf   :  { %v4841_v2 = vpop.permute.xlu0 %4840  ;;  %5720 = vmatpush.msrb.mxu3 %v5566_v26  ;;  %vm12656_vm6 = vmmov %vm12649_vm2  ;;  %5803 = vmatpush.msrb.mxu2 %v5597_v19  ;;  %v5571_v26 = vld [vmem:[%s12312_s15 + $0x88] sm:$0xff] }
 0xcc0   :  { %vm12657_vm0 = vmmov %vm12652_vm4 }
 0xcc1   :  { %5721 = vmatpush.msrb.mxu3 %v5565_v48  ;;  %vm12658_vm12 = vmmov %vm12649_vm2  ;;  %5804 = vmatpush.msrb.mxu2 %v5596_v8  ;;  %v5557_v48 = vld [vmem:[%s12312_s15 + $0x18] sm:$0xff] }
 0xcc2   :  { %v4777_v24 = vpop.f32.mrf.mxu0 }
 0xcc3   :  { %4854 = vrot.lane.b32.xlu1 %v4838_v59, %s6379_s17  ;;  %5722 = vmatpush.msrb.mxu3 %v5564_v60  ;;  %v5574_v59 = vld [vmem:[%s12312_s15 + $0xa0] sm:$0xff] }
 0xcc4   :  { %v4843_v21 = vpop.permute.xlu1 %4842  ;;  %5769 = vmatpush.msra.mxu1 %v5574_v59  ;;  %5805 = vmatpush.msrb.mxu2 %v5595_v30 }
 0xcc5   :  { %v4856_v58 = vsel %vm12633_vm5, %v4841_v2, %v4843_v21  ;;  %5723 = vmatpush.msrb.mxu3 %v5563_v46  ;;  %v5573_v2 = vld [vmem:[%s12312_s15 + $0x98] sm:$0xff]  ;;  %v5610_v21 = vld [vmem:[%s12312_s15 + $0x1c0] sm:$0xff]  ;;  %vm12659_vm5 = vmmov %vm12657_vm0 }
 0xcc6   :  { %6259 = vmatmul.msk.f32.vlgmr.msra.gmra.mxu3 %vm12644_vm8, %v4856_v58  ;;  %6264 = vmatmul.msk.f32.vlgmr.msrb.gmra.mxu1 %vm12645_vm13, %v4856_v58  ;;  %vm12660_vm8 = vmmov %vm12653_vm10 }
 0xcc7   :  { %5724 = vmatpush.msrb.mxu3 %v5562_v11  ;;  %5847 = vmatpush.msrb.mxu0 %v5610_v21  ;;  %vm12661_vm13 = vmmov %vm12648_vm1  ;;  %v5554_v11 = vld [vmem:[%s12312_s15] sm:$0xff] }
 0xcc8   :  { %5770 = vmatpush.msra.mxu1 %v5573_v2  ;;  %5806 = vmatpush.msrb.mxu2 %v5594_v40 }
 0xcc9   :  { %5725 = vmatpush.msrb.mxu3 %v5561_v6  ;;  %5848 = vmatpush.msrb.mxu0 %v5609_v13 }
 0xcca   :  { %v4847_v9 = vpop.permute.xlu0 %4846  ;;  %v4780_v22 = vpop.f32.mrf.mxu0  ;;  %5807 = vmatpush.msrb.mxu2 %v5593_v1 }
 0xccb   :  { %v4857_v36 = vsel %vm12646_vm14, %v4845_v29, %v4847_v9  ;;  %5726 = vmatpush.msrb.mxu3 %v5560_v25  ;;  %v4748_v9 = vpop.f32.mrf.mxu2  ;;  %vm12662_vm14 = vmmov %vm12648_vm1  ;;  %v5587_v25 = vld [vmem:[%s12312_s15 + $0x108] sm:$0xff] }
 0xccc   :  { %5808 = vmatpush.msrb.mxu2 %v5592_v62 }
 0xccd   :  { %5727 = vmatpush.msrb.mxu3 %v5559_v45 }
 0xcce   :  { %6260 = vmatmul.msk.f32.gmra.mxu3 %vm12647_vm7, %v4857_v36  ;;  %6265 = vmatmul.msk.f32.gmra.mxu1 %vm12648_vm1, %v4857_v36  ;;  %vm12663_vm7 = vmmov %vm12649_vm2 }
 0xccf   :  { %5728 = vmatpush.msrb.mxu3 %v5558_v41  ;;  %vm12664_vm1 = vmmov %vm12657_vm0 }
 0xcd1   :  { %5729 = vmatpush.msrb.mxu3 %v5557_v48 }
 0xcd2   :  { %v4991_v35 = vpop.f32.mrf.mxu0 }
 0xd16   :  { %v4851_v53 = vpop.permute.xlu2 %4850 }
 0xd23   :  { %v4695_v16 = vpop.f32.mrf.mxu1 }
 0xd24   :  { %v4772_v49 = vadd.f32 %v4771_v32, %v4695_v16 }
 0xd26   :  { %5004 = vst.msk [vmem:[#allocation11 + $0x8] sm:$0x3] %vm12649_vm2, %v4772_v49  ;;  %v5016_v54 = vrot.slane %v4772_v49, 6  ;;  %v5028_v34 = vrot.slane %v4772_v49, 4  ;;  %v5040_v28 = vrot.slane %v4772_v49, 2  ;;  %v5608_v49 = vld [vmem:[%s12312_s15 + $0x1b0] sm:$0xff] }
 0xd27   :  { %5849 = vmatpush.msrb.mxu0 %v5608_v49 }
 0xd28   :  { %5020 = vst.msk [vmem:[#allocation11 + $0x8] sm:$0x30] %vm12650_vm15, %v5016_v54  ;;  %vm12665_vm15 = vmmov %vm12657_vm0 }
 0xd29   :  { %5032 = vst.msk [vmem:[#allocation11 + $0x18] sm:$0x3] %vm12651_vm3, %v5028_v34  ;;  %v4666_v61 = vpop.f32.mrf.mxu3  ;;  %v5607_v34 = vld [vmem:[%s12312_s15 + $0x1a8] sm:$0xff]  ;;  %vm12666_vm3 = vmmov %vm12649_vm2 }
 0xd2a   :  { %5044 = vst.msk [vmem:[#allocation11 + $0x18] sm:$0x30] %vm12652_vm4, %v5040_v28  ;;  %v4743_v14 = vadd.f32 %v4742_v23, %v4666_v61  ;;  %v5572_v23 = vld [vmem:[%s12312_s15 + $0x90] sm:$0xff]  ;;  %5850 = vmatpush.msrb.mxu0 %v5607_v34  ;;  %vm12667_vm4 = vmmov %vm12657_vm0 }
 0xd2b   :  { %v4698_v27 = vpop.f32.mrf.mxu1  ;;  %5771 = vmatpush.msra.mxu1 %v5572_v23  ;;  %v5556_v28 = vld [vmem:[%s12312_s15 + $0x10] sm:$0xff] }
 0xd2c   :  { %5003 = vst [vmem:[#allocation11] sm:$0x3] %v4743_v14  ;;  %v5015_v50 = vrot.slane %v4743_v14, 6  ;;  %v5027_v15 = vrot.slane %v4743_v14, 4  ;;  %v5039_v39 = vrot.slane %v4743_v14, 2  ;;  %v4775_v12 = vadd.f32 %v4774_v5, %v4698_v27  ;;  %v4853_v43 = vpop.permute.xlu0 %4852  ;;  %5730 = vmatpush.msrb.mxu3 %v5556_v28  ;;  %v4751_v27 = vpop.f32.mrf.mxu2  ;;  %5851 = vmatpush.msrb.mxu0 %v5606_v44  ;;  %v5633_v28 = vld [vmem:[%s12312_s15 + $0x278] sm:$0xff] }
 0xd2d   :  { %v4849_v18 = vpop.permute.xlu1 %4848  ;;  %5772 = vmatpush.msra.mxu1 %v5571_v26 }
 0xd2e   :  { %5019 = vst [vmem:[#allocation11] sm:$0x30] %v5015_v50  ;;  %v5060_v55 = vrot.slane %v4775_v12, 6  ;;  %v4858_v57 = vsel %vm12653_vm10, %v4849_v18, %v4851_v53  ;;  %v5072_v42 = vrot.slane %v4775_v12, 4  ;;  %v5084_v17 = vrot.slane %v4775_v12, 2  ;;  %v5591_v50 = vld [vmem:[%s12312_s15 + $0x128] sm:$0xff]  ;;  %5852 = vmatpush.msrb.mxu0 %v5605_v56 }
 0xd2f   :  { %5031 = vst [vmem:[#allocation11 + $0x10] sm:$0x3] %v5027_v15  ;;  %6261 = vmatmul.msk.f32.gmra.mxu3 %vm12654_vm9, %v4858_v57  ;;  %6266 = vmatmul.msk.f32.gmra.mxu1 %vm12655_vm11, %v4858_v57  ;;  %v6350_v15 = vld [vmem:[#allocation5] sm:$0xff]  ;;  %vm12668_vm10 = vcmask 326662   ;;  %vm12669_vm9 = vcmask 322562  }
 0xd30   :  { %5043 = vst [vmem:[#allocation11 + $0x10] sm:$0x30] %v5039_v39  ;;  %5773 = vmatpush.msra.mxu1 %v5570_v0  ;;  %v5604_v39 = vld [vmem:[%s12312_s15 + $0x190] sm:$0xff]  ;;  %5809 = vmatpush.msrb.mxu2 %v5591_v50  ;;  %v5603_v18 = vld [vmem:[%s12312_s15 + $0x188] sm:$0xff]  ;;  %vm12670_vm11 = vmmov %vm12668_vm10 }
 0xd31   :  { %5048 = vst.msk [vmem:[#allocation11 + $0x28] sm:$0x3] %vm12656_vm6, %v4775_v12  ;;  %v4669_v20 = vpop.f32.mrf.mxu3  ;;  %v5590_v12 = vld [vmem:[%s12312_s15 + $0x120] sm:$0xff]  ;;  %5853 = vmatpush.msrb.mxu0 %v5604_v39  ;;  %vm12671_vm6 = vmmov %vm12669_vm9 }
 0xd32   :  { %5064 = vst.msk [vmem:[#allocation11 + $0x28] sm:$0x30] %vm12657_vm0, %v5060_v55  ;;  %v4746_v58 = vadd.f32 %v4745_v47, %v4669_v20  ;;  %v5555_v47 = vld [vmem:[%s12312_s15 + $0x8] sm:$0xff]  ;;  %5810 = vmatpush.msrb.mxu2 %v5590_v12  ;;  %v5602_v55 = vld [vmem:[%s12312_s15 + $0x180] sm:$0xff]  ;;  %vm12672_vm0 = vmmov %vm12671_vm6 }
 0xd33   :  { %5076 = vst.msk [vmem:[#allocation11 + $0x38] sm:$0x3] %vm12658_vm12, %v5072_v42  ;;  %v4701_v29 = vpop.f32.mrf.mxu1  ;;  %5731 = vmatpush.msrb.mxu3 %v5555_v47  ;;  %5854 = vmatpush.msrb.mxu0 %v5603_v18  ;;  %v5588_v42 = vld [vmem:[%s12312_s15 + $0x110] sm:$0xff]  ;;  %v5586_v20 = vld [vmem:[%s12312_s15 + $0x100] sm:$0xff]  ;;  %vm12673_vm12 = vmmov %vm12668_vm10 }
 0xd34   :  { %5088 = vst.msk [vmem:[#allocation11 + $0x38] sm:$0x30] %vm12659_vm5, %v5084_v17  ;;  %v5059_v36 = vrot.slane %v4746_v58, 6  ;;  %v5071_v32 = vrot.slane %v4746_v58, 4  ;;  %v5083_v37 = vrot.slane %v4746_v58, 2  ;;  %v4778_v7 = vadd.f32 %v4777_v24, %v4701_v29  ;;  %5811 = vmatpush.msrb.mxu2 %v5589_v38  ;;  %v4962_v19 = vpop.f32.mrf.mxu2  ;;  %vm12674_vm5 = vmmov %vm12672_vm0  ;;  %v5631_v47 = vld [vmem:[%s12312_s15 + $0x268] sm:$0xff] }
 0xd35   :  { %5047 = vst [vmem:[#allocation11 + $0x20] sm:$0x3] %v4746_v58  ;;  %v4855_v31 = vpop.permute.xlu1 %4854  ;;  %5732 = vmatpush.msrb.mxu3 %v5554_v11  ;;  %5855 = vmatpush.msrb.mxu0 %v5602_v55  ;;  %v4994_v58 = vpop.f32.mrf.mxu0 }
 0xd36   :  { %5063 = vst [vmem:[#allocation11 + $0x20] sm:$0x30] %v5059_v36  ;;  %v5104_v5 = vrot.slane %v4778_v7, 6  ;;  %v4859_v63 = vsel %vm12660_vm8, %v4853_v43, %v4855_v31  ;;  %v5116_v16 = vrot.slane %v4778_v7, 4  ;;  %v5128_v4 = vrot.slane %v4778_v7, 2  ;;  %5812 = vmatpush.msrb.mxu2 %v5588_v42  ;;  %vm12675_vm8 = vmmov %vm12668_vm10 }
 0xd37   :  { %5075 = vst [vmem:[#allocation11 + $0x30] sm:$0x3] %v5071_v32  ;;  %6262 = vmatmul.msk.f32.gmra.mxu3 %vm12661_vm13, %v4859_v63  ;;  %6267 = vmatmul.msk.f32.gmra.mxu1 %vm12662_vm14, %v4859_v63  ;;  %vm12676_vm13 = vcmask 326656  }
 0xd38   :  { %5087 = vst [vmem:[#allocation11 + $0x30] sm:$0x30] %v5083_v37  ;;  %5813 = vmatpush.msrb.mxu2 %v5587_v25  ;;  %vm12677_vm14 = vmmov %vm12676_vm13  ;;  %5881 = vmatpush.msra.mxu3 %v5633_v28  ;;  %v5624_v28 = vld [vmem:[%s12312_s15 + $0x230] sm:$0xff] }
 0xd39   :  { %5092 = vst.msk [vmem:[#allocation11 + $0x48] sm:$0x3] %vm12663_vm7, %v4778_v7  ;;  %v4672_v54 = vpop.f32.mrf.mxu3  ;;  %vm12678_vm7 = vmmov %vm12675_vm8 }
 0xd3a   :  { %5108 = vst.msk [vmem:[#allocation11 + $0x48] sm:$0x30] %vm12664_vm1, %v5104_v5  ;;  %v4749_v60 = vadd.f32 %v4748_v9, %v4672_v54  ;;  %5814 = vmatpush.msrb.mxu2 %v5586_v20  ;;  %vm12679_vm1 = vmmov %vm12676_vm13 }
 0xd3b   :  { %5120 = vst.msk [vmem:[#allocation11 + $0x58] sm:$0x3] %vm12649_vm2, %v5116_v16  ;;  %v4704_v3 = vpop.f32.mrf.mxu1  ;;  %vm12680_vm2 = vcmask 1045504  }
 0xd3c   :  { %5132 = vst.msk [vmem:[#allocation11 + $0x58] sm:$0x30] %vm12665_vm15, %v5128_v4  ;;  %v5103_v61 = vrot.slane %v4749_v60, 6  ;;  %v5115_v14 = vrot.slane %v4749_v60, 4  ;;  %v5127_v46 = vrot.slane %v4749_v60, 2  ;;  %v4781_v51 = vadd.f32 %v4780_v22, %v4704_v3  ;;  %v4965_v31 = vpop.f32.mrf.mxu2  ;;  %vm12681_vm15 = vmmov %vm12679_vm1  ;;  %v5649_v3 = vld [vmem:[%s12312_s15 + $0x2f8] sm:$0xff] }
 0xd3d   :  { %5091 = vst [vmem:[#allocation11 + $0x40] sm:$0x3] %v4749_v60  ;;  %v5632_v60 = vld [vmem:[%s12312_s15 + $0x270] sm:$0xff]  ;;  %5922 = vmatpush.msrb.mxu1 %v5649_v3  ;;  %v5681_v3 = vld [vmem:[%s12312_s15 + $0x3f8] sm:$0xff] }
 0xd3e   :  { %5107 = vst [vmem:[#allocation11 + $0x40] sm:$0x30] %v5103_v61  ;;  %v5148_v24 = vrot.slane %v4781_v51, 6  ;;  %v5648_v61 = vld [vmem:[%s12312_s15 + $0x2f0] sm:$0xff]  ;;  %5882 = vmatpush.msra.mxu3 %v5632_v60  ;;  %v5642_v60 = vld [vmem:[%s12312_s15 + $0x2c0] sm:$0xff]  ;;  %6004 = vmatpush.msra.mxu0 %v5681_v3  ;;  %v5635_v3 = vld [vmem:[%s12312_s15 + $0x288] sm:$0xff] }
 0xd3f   :  { %5119 = vst [vmem:[#allocation11 + $0x50] sm:$0x3] %v5115_v14  ;;  %5774 = vmatmul.f32.vlgmr.msra.gmra.mxu1 %v6350_v15  ;;  %5733 = vmatmul.f32.vlgmr.msrb.gmra.mxu3 %v6350_v15 }
 0xd40   :  { %5131 = vst [vmem:[#allocation11 + $0x50] sm:$0x30] %v5127_v46  ;;  %5923 = vmatpush.msrb.mxu1 %v5648_v61  ;;  %5883 = vmatpush.msra.mxu3 %v5631_v47  ;;  %v5680_v47 = vld [vmem:[%s12312_s15 + $0x3f0] sm:$0xff] }
 0xd41   :  { %5136 = vst.msk [vmem:[#allocation11 + $0x68] sm:$0x3] %vm12666_vm3, %v4781_v51  ;;  %v4675_v53 = vpop.f32.mrf.mxu3  ;;  %vm12682_vm3 = vmmov %vm12679_vm1  ;;  %6005 = vmatpush.msra.mxu0 %v5680_v47 }
 0xd42   :  { %5152 = vst.msk [vmem:[#allocation11 + $0x68] sm:$0x30] %vm12667_vm4, %v5148_v24  ;;  %v4752_v10 = vadd.f32 %v4751_v27, %v4675_v53  ;;  %vm12683_vm4 = vmmov %vm12680_vm2  ;;  %v5630_v27 = vld [vmem:[%s12312_s15 + $0x260] sm:$0xff] }
 0xd43   :  { %v4914_v6 = vpop.f32.mrf.mxu1  ;;  %5884 = vmatpush.msra.mxu3 %v5630_v27  ;;  %v5622_v27 = vld [vmem:[%s12312_s15 + $0x220] sm:$0xff] }
 0xd44   :  { %5135 = vst [vmem:[#allocation11 + $0x60] sm:$0x3] %v4752_v10  ;;  %v5147_v57 = vrot.slane %v4752_v10, 6  ;;  %v4992_v33 = vadd.f32 %v4991_v35, %v4914_v6 }
 0xd46   :  { %5151 = vst [vmem:[#allocation11 + $0x60] sm:$0x30] %v5147_v57  ;;  %v5008_v59 = vrot.slane %v4992_v33, 6  ;;  %v5022_v52 = vrot.slane %v4992_v33, 4  ;;  %v5034_v17 = vrot.slane %v4992_v33, 2 }
 0xd47   :  { %5046 = vst.msk [vmem:[#allocation11 + $0x18] sm:$0xc0] %vm12668_vm10, %v4992_v33  ;;  %vm12684_vm10 = vmmov %vm12679_vm1 }
 0xd48   :  { %5012 = vst.msk [vmem:[#allocation11 + $0x8] sm:$0xc] %vm12669_vm9, %v5008_v59  ;;  %vm12685_vm9 = vmmov %vm12680_vm2 }
 0xd49   :  { %5026 = vst.msk [vmem:[#allocation11 + $0x8] sm:$0xc0] %vm12670_vm11, %v5022_v52  ;;  %v4885_v2 = vpop.f32.mrf.mxu3  ;;  %vm12686_vm11 = vmmov %vm12679_vm1 }
 0xd4a   :  { %5038 = vst.msk [vmem:[#allocation11 + $0x18] sm:$0xc] %vm12671_vm6, %v5034_v17  ;;  %v4963_v21 = vadd.f32 %v4962_v19, %v4885_v2  ;;  %vm12687_vm6 = vmmov %vm12679_vm1 }
 0xd4b   :  { %v4917_v9 = vpop.f32.mrf.mxu1 }
 0xd4c   :  { %v5007_v29 = vrot.slane %v4963_v21, 6  ;;  %v5021_v36 = vrot.slane %v4963_v21, 4  ;;  %v5033_v32 = vrot.slane %v4963_v21, 2  ;;  %5045 = vst [vmem:[#allocation11 + $0x10] sm:$0xc0] %v4963_v21  ;;  %v4995_v37 = vadd.f32 %v4994_v58, %v4917_v9 }
 0xd4e   :  { %5011 = vst [vmem:[#allocation11] sm:$0xc] %v5007_v29  ;;  %v5052_v7 = vrot.slane %v4995_v37, 6  ;;  %v5066_v45 = vrot.slane %v4995_v37, 4  ;;  %v5078_v43 = vrot.slane %v4995_v37, 2 }
 0xd4f   :  { %5025 = vst [vmem:[#allocation11] sm:$0xc0] %v5021_v36 }
 0xd50   :  { %5037 = vst [vmem:[#allocation11 + $0x10] sm:$0xc] %v5033_v32  ;;  %v11656_v41 = vld [vmem:[#allocation11 + $0x8] sm:$0xff] }
 0xd51   :  { %5056 = vst.msk [vmem:[#allocation11 + $0x28] sm:$0xc] %vm12672_vm0, %v5052_v7  ;;  %v4888_v23 = vpop.f32.mrf.mxu3  ;;  %v5283_v16 = vrot.slane %v11656_v41, 2  ;;  %v11662_v26 = vld [vmem:[#allocation11 + $0x18] sm:$0xff]  ;;  %vm12688_vm0 = vmmov %vm12680_vm2  ;;  %v5342_v53 = vrot.slane %v11656_v41, 4  ;;  %v5402_v42 = vrot.slane %v11656_v41, 6 }
 0xd52   :  { %5070 = vst.msk [vmem:[#allocation11 + $0x28] sm:$0xc0] %vm12673_vm12, %v5066_v45  ;;  %v4966_v8 = vadd.f32 %v4965_v31, %v4888_v23  ;;  %v5286_v30 = vrot.slane %v11662_v26, 2  ;;  %vm12689_vm12 = vmmov %vm12679_vm1  ;;  %v5345_v18 = vrot.slane %v11662_v26, 4  ;;  %v5405_v59 = vrot.slane %v11662_v26, 6 }
 0xd53   :  { %5082 = vst.msk [vmem:[#allocation11 + $0x38] sm:$0xc] %vm12674_vm5, %v5078_v43  ;;  %vm12690_vm5 = vmmov %vm12688_vm0 }
 0xd54   :  { %5090 = vst.msk [vmem:[#allocation11 + $0x38] sm:$0xc0] %vm12675_vm8, %v4995_v37  ;;  %v5051_v13 = vrot.slane %v4966_v8, 6  ;;  %v5065_v5 = vrot.slane %v4966_v8, 4  ;;  %v5077_v63 = vrot.slane %v4966_v8, 2  ;;  %v5287_v0 = vsel %vm12680_vm2, %v5283_v16, %v5286_v30  ;;  %vm12691_vm8 = vmmov %vm12679_vm1 }
 0xd55   :  { %5089 = vst [vmem:[#allocation11 + $0x30] sm:$0xc0] %v4966_v8  ;;  %vm5444_vm2 = vcmask 326658  }
 0xd56   :  { %5055 = vst [vmem:[#allocation11 + $0x20] sm:$0xc] %v5051_v13  ;;  %v11658_v22 = vld [vmem:[#allocation11] sm:$0xff] }
 0xd57   :  { %5069 = vst [vmem:[#allocation11 + $0x20] sm:$0xc0] %v5065_v5  ;;  %5736 = vmatmul.f32.gmra.mxu3 %v11658_v22  ;;  %v5282_v49 = vrot.slane %v11658_v22, 2  ;;  %v11671_v4 = vld [vmem:[#allocation11 + $0x10] sm:$0xff]  ;;  %v5341_v38 = vrot.slane %v11658_v22, 4  ;;  %v5401_v20 = vrot.slane %v11658_v22, 6 }
 0xd58   :  { %5081 = vst [vmem:[#allocation11 + $0x30] sm:$0xc] %v5077_v63  ;;  %v5284_v40 = vrot.slane %v11671_v4, 2  ;;  %v5343_v6 = vrot.slane %v11671_v4, 4  ;;  %v5403_v21 = vrot.slane %v11671_v4, 6 }
 0xd59   :  { %5255 = vst.msk [vmem:[#allocation7 + $0x58] sm:$0xff] %vm12676_vm13, %v11656_v41  ;;  %v11674_v48 = vld [vmem:[#allocation11 + $0x28] sm:$0xff]  ;;  %vm12692_vm13 = vmmov %vm12679_vm1 }
 0xd5a   :  { %5461 = vst.msk [vmem:[#allocation7 + $0x48] sm:$0xff] %vm12677_vm14, %v11656_v41  ;;  %v5290_v34 = vrot.slane %v11674_v48, 2  ;;  %v5285_v14 = vsel %vm12683_vm4, %v5282_v49, %v5284_v40  ;;  %vm12693_vm14 = vmmov %vm12688_vm0  ;;  %v5349_v55 = vrot.slane %v11674_v48, 4  ;;  %v5409_v9 = vrot.slane %v11674_v48, 6 }
 0xd5b   :  { %5325 = vst.msk [vmem:[#allocation7 + $0x18] sm:$0xc0] %vm12678_vm7, %v5283_v16  ;;  %v11704_v46 = vld [vmem:[#allocation11 + $0x38] sm:$0xff]  ;;  %vm5384_vm7 = vcmask 326660   ;;  %v5647_v16 = vld [vmem:[%s12312_s15 + $0x2e8] sm:$0xff] }
 0xd5c   :  { %5460 = vst [vmem:[#allocation7 + $0x40] sm:$0xff] %v11658_v22  ;;  %v5291_v51 = vsel %vm12685_vm9, %v5286_v30, %v5290_v34  ;;  %v5294_v56 = vrot.slane %v11704_v46, 2  ;;  %v5353_v2 = vrot.slane %v11704_v46, 4  ;;  %vm12698_vm9 = vmmov %vm12682_vm3  ;;  %v5413_v43 = vrot.slane %v11704_v46, 6  ;;  %v5629_v22 = vld [vmem:[%s12312_s15 + $0x258] sm:$0xff]  ;;  %5924 = vmatpush.msrb.mxu1 %v5647_v16  ;;  %v5646_v30 = vld [vmem:[%s12312_s15 + $0x2e0] sm:$0xff] }
 0xd5d   :  { %5257 = vst.msk [vmem:[#allocation7 + $0xa8] sm:$0xff] %vm12679_vm1, %v11662_v26  ;;  %vm12694_vm1 = vcmask 1043456   ;;  %5885 = vmatpush.msra.mxu3 %v5629_v22  ;;  %v5661_v22 = vld [vmem:[%s12312_s15 + $0x358] sm:$0xff]  ;;  %v5674_v16 = vld [vmem:[%s12312_s15 + $0x3c0] sm:$0xff] }
 0xd5e   :  { %5463 = vst.msk [vmem:[#allocation7 + $0x98] sm:$0xff] %vm12681_vm15, %v11662_v26  ;;  %v11691_v1 = vld [vmem:[#allocation11 + $0x20] sm:$0xff]  ;;  %v5295_v35 = vsel %vm12690_vm5, %v5290_v34, %v5294_v56  ;;  %v5346_v33 = vsel %vm12694_vm1, %v5342_v53, %v5345_v18  ;;  %vm12695_vm15 = vmmov %vm12694_vm1  ;;  %v5628_v26 = vld [vmem:[%s12312_s15 + $0x250] sm:$0xff]  ;;  %5925 = vmatpush.msrb.mxu1 %v5646_v30 }
 0xd5f   :  { %5739 = vmatmul.f32.gmra.mxu3 %v11671_v4  ;;  %5324 = vst [vmem:[#allocation7 + $0x10] sm:$0xc0] %v5282_v49  ;;  %v5288_v62 = vrot.slane %v11691_v1, 2  ;;  %v11716_v11 = vld [vmem:[#allocation11 + $0x30] sm:$0xff]  ;;  %v11743_v17 = vsel %vm12695_vm15, %v5341_v38, %v5343_v6  ;;  %v5347_v25 = vrot.slane %v11691_v1, 4  ;;  %vm12696_vm4 = vmmov %vm12694_vm1  ;;  %v5407_v37 = vrot.slane %v11691_v1, 6 }
 0xd60   :  { %v5485_v54 = vld [vmem:[#allocation7 + $0x58] sm:$0xff]  ;;  %5327 = vst.msk [vmem:[#allocation7 + $0x68] sm:$0xff] %vm12682_vm3, %v5287_v0  ;;  %v5292_v39 = vrot.slane %v11716_v11, 2  ;;  %v5350_v19 = vsel %vm12696_vm4, %v5345_v18, %v5349_v55  ;;  %v5351_v36 = vrot.slane %v11716_v11, 4  ;;  %v5411_v23 = vrot.slane %v11716_v11, 6  ;;  %5886 = vmatpush.msra.mxu3 %v5628_v26  ;;  %v5678_v18 = vld [vmem:[%s12312_s15 + $0x3e0] sm:$0xff] }
 0xd61   :  { %5777 = vmatmul.f32.gmra.mxu1 %v5485_v54  ;;  %5462 = vst [vmem:[#allocation7 + $0x90] sm:$0xff] %v11671_v4  ;;  %v5289_v15 = vsel %vm12688_vm0, %v5284_v40, %v5288_v62  ;;  %vm12701_vm0 = vmmov %vm12682_vm3  ;;  %v5627_v49 = vld [vmem:[%s12312_s15 + $0x248] sm:$0xff]  ;;  %v5645_v4 = vld [vmem:[%s12312_s15 + $0x2d8] sm:$0xff]  ;;  %v4997_v54 = vpop.f32.mrf.mxu0  ;;  %vm12712_vm4 = vcmask 322562  }
 0xd62   :  { %v5477_v44 = vld [vmem:[#allocation7 + $0x18] sm:$0xff]  ;;  %5259 = vst.msk [vmem:[#allocation7 + $0xf8] sm:$0xff] %vm12684_vm10, %v11674_v48  ;;  %v5293_v10 = vsel %vm12693_vm14, %v5288_v62, %v5292_v39  ;;  %vm12697_vm10 = vcmask 1041408   ;;  %vm12710_vm15 = vmmov %vm12701_vm0  ;;  %5887 = vmatpush.msra.mxu3 %v5627_v49  ;;  %5926 = vmatpush.msrb.mxu1 %v5645_v4  ;;  %v5625_v40 = vld [vmem:[%s12312_s15 + $0x238] sm:$0xff] }
 0xd63   :  { %5856 = vmatmul.f32.vlgmr.msrb.gmra.mxu0 %v5477_v44  ;;  %5465 = vst.msk [vmem:[#allocation7 + $0xe8] sm:$0xff] %vm12686_vm11, %v11674_v48  ;;  %v5406_v58 = vsel %vm12697_vm10, %v5402_v42, %v5405_v59  ;;  %vm12699_vm11 = vmmov %vm12694_vm1  ;;  %v5626_v48 = vld [vmem:[%s12312_s15 + $0x240] sm:$0xff]  ;;  %v5644_v0 = vld [vmem:[%s12312_s15 + $0x2d0] sm:$0xff] }
 0xd64   :  { %5329 = vst.msk [vmem:[#allocation7 + $0xb8] sm:$0xff] %vm12687_vm6, %v5291_v51  ;;  %v5495_v50 = vld [vmem:[#allocation7 + $0xa8] sm:$0xff]  ;;  %v11755_v29 = vsel %vm12699_vm11, %v5343_v6, %v5347_v25  ;;  %vm12700_vm6 = vmmov %vm12694_vm1  ;;  %5888 = vmatpush.msra.mxu3 %v5626_v48  ;;  %5927 = vmatpush.msrb.mxu1 %v5644_v0  ;;  %v5643_v34 = vld [vmem:[%s12312_s15 + $0x2c8] sm:$0xff] }
 0xd65   :  { %5261 = vst.msk [vmem:[#allocation7 + $0x148] sm:$0xff] %vm12689_vm12, %v11704_v46  ;;  %v5354_v32 = vsel %vm12700_vm6, %v5349_v55, %v5353_v2  ;;  %vm12702_vm12 = vmmov %vm12697_vm10  ;;  %v5641_v51 = vld [vmem:[%s12312_s15 + $0x2b8] sm:$0xff]  ;;  %v5679_v62 = vld [vmem:[%s12312_s15 + $0x3e8] sm:$0xff] }
 0xd66   :  { %v5476_v24 = vld [vmem:[#allocation7 + $0x10] sm:$0xff]  ;;  %5467 = vst.msk [vmem:[#allocation7 + $0x138] sm:$0xff] %vm12691_vm8, %v11704_v46  ;;  %v11764_v45 = vsel %vm12702_vm12, %v5401_v20, %v5403_v21  ;;  %vm12703_vm5 = vmmov %vm12697_vm10  ;;  %5889 = vmatpush.msra.mxu3 %v5625_v40  ;;  %5928 = vmatpush.msrb.mxu1 %v5643_v34  ;;  %v5677_v6 = vld [vmem:[%s12312_s15 + $0x3d8] sm:$0xff]  ;;  %vm12717_vm12 = vcmask 1045504  }
 0xd67   :  { %5742 = vmatmul.f32.gmra.mxu3 %v11691_v1  ;;  %5815 = vmatmul.f32.vlgmr.msrb.gmra.mxu2 %v5476_v24  ;;  %v5487_v12 = vld [vmem:[#allocation7 + $0x68] sm:$0xff]  ;;  %5331 = vst.msk [vmem:[#allocation7 + $0x108] sm:$0xff] %vm12692_vm13, %v5295_v35  ;;  %v5410_v31 = vsel %vm12703_vm5, %v5405_v59, %v5409_v9  ;;  %vm12704_vm8 = vmmov %vm12701_vm0  ;;  %v5640_v35 = vld [vmem:[%s12312_s15 + $0x2b0] sm:$0xff] }
 0xd68   :  { %5385 = vst.msk [vmem:[#allocation7 + $0x28] sm:$0xf0] %vm5384_vm7, %v5342_v53  ;;  %vm12705_vm13 = vmmov %vm12694_vm1  ;;  %5890 = vmatpush.msra.mxu3 %v5624_v28  ;;  %5929 = vmatpush.msrb.mxu1 %v5642_v60  ;;  %v5665_v24 = vld [vmem:[%s12312_s15 + $0x378] sm:$0xff]  ;;  %v4968_v53 = vpop.f32.mrf.mxu2  ;;  %v5639_v55 = vld [vmem:[%s12312_s15 + $0x2a8] sm:$0xff] }
 0xd69   :  { %5780 = vmatmul.f32.gmra.mxu1 %v5495_v50  ;;  %v5505_v57 = vld [vmem:[#allocation7 + $0xf8] sm:$0xff]  ;;  %5383 = vst [vmem:[#allocation7 + $0x20] sm:$0xf0] %v5341_v38  ;;  %v11773_v13 = vsel %vm12705_vm13, %v5347_v25, %v5351_v36  ;;  %vm12706_vm14 = vmmov %vm12703_vm5  ;;  %5963 = vmatpush.msra.mxu2 %v5665_v24  ;;  %v5000_v59 = vpop.f32.mrf.mxu0  ;;  %v5673_v60 = vld [vmem:[%s12312_s15 + $0x3b8] sm:$0xff] }
 0xd6a   :  { %5387 = vst.msk [vmem:[#allocation7 + $0x78] sm:$0xff] %vm12682_vm3, %v5346_v33  ;;  %v11776_v5 = vsel %vm12706_vm14, %v5403_v21, %v5407_v37  ;;  %vm12707_vm7 = vmmov %vm12701_vm0  ;;  %vm12711_vm3 = vcmask 326662   ;;  %5930 = vmatpush.msrb.mxu1 %v5641_v51  ;;  %6006 = vmatpush.msra.mxu0 %v5679_v62  ;;  %v5664_v38 = vld [vmem:[%s12312_s15 + $0x370] sm:$0xff]  ;;  %v5621_v33 = vld [vmem:[%s12312_s15 + $0x218] sm:$0xff] }
 0xd6b   :  { %5859 = vmatmul.f32.gmra.mxu0 %v5487_v12  ;;  %v5497_v52 = vld [vmem:[#allocation7 + $0xb8] sm:$0xff]  ;;  %5445 = vst.msk [vmem:[#allocation7 + $0x38] sm:$0xfc] %vm5444_vm2, %v5402_v42  ;;  %vm12708_vm1 = vmmov %vm12703_vm5  ;;  %5964 = vmatpush.msra.mxu2 %v5664_v38  ;;  %v11942_v24 = vld [vmem:[%s12313_s16] ss:$0 sm:$0xff] }
 0xd6c   :  { %5389 = vst.msk [vmem:[#allocation7 + $0xc8] sm:$0xff] %vm12698_vm9, %v5350_v19  ;;  %v5515_v7 = vld [vmem:[#allocation7 + $0x148] sm:$0xff]  ;;  %v5414_v63 = vsel %vm12708_vm1, %v5409_v9, %v5413_v43  ;;  %vm12709_vm2 = vmmov %vm12708_vm1  ;;  %5931 = vmatpush.msrb.mxu1 %v5640_v35  ;;  %6007 = vmatpush.msra.mxu0 %v5678_v18  ;;  %v5663_v42 = vld [vmem:[%s12312_s15 + $0x368] sm:$0xff] }
 0xd6d   :  { %5443 = vst [vmem:[#allocation7 + $0x30] sm:$0xfc] %v5401_v20  ;;  %v11785_v41 = vsel %vm12709_vm2, %v5407_v37, %v5411_v23  ;;  %vm12713_vm10 = vmmov %vm12711_vm3  ;;  %v5676_v25 = vld [vmem:[%s12312_s15 + $0x3d0] sm:$0xff]  ;;  %v5638_v19 = vld [vmem:[%s12312_s15 + $0x2a0] sm:$0xff]  ;;  %5965 = vmatpush.msra.mxu2 %v5663_v42 }
 0xd6e   :  { %5447 = vst.msk [vmem:[#allocation7 + $0x88] sm:$0xff] %vm12701_vm0, %v5406_v58  ;;  %v5507_v8 = vld [vmem:[#allocation7 + $0x108] sm:$0xff]  ;;  %vm12714_vm9 = vmmov %vm12712_vm4  ;;  %5932 = vmatpush.msrb.mxu1 %v5639_v55  ;;  %6008 = vmatpush.msra.mxu0 %v5677_v6  ;;  %v5675_v37 = vld [vmem:[%s12312_s15 + $0x3c8] sm:$0xff] }
 0xd6f   :  { %5745 = vmatmul.f32.gmra.mxu3 %v11716_v11  ;;  %5818 = vmatmul.f32.gmra.mxu2 %v5285_v14  ;;  %5391 = vst.msk [vmem:[#allocation7 + $0x118] sm:$0xff] %vm12704_vm8, %v5354_v32  ;;  %v5623_v14 = vld [vmem:[%s12312_s15 + $0x228] sm:$0xff]  ;;  %v5662_v32 = vld [vmem:[%s12312_s15 + $0x360] sm:$0xff]  ;;  %vm12715_vm11 = vmmov %vm12712_vm4 }
 0xd70   :  { %5449 = vst.msk [vmem:[#allocation7 + $0xd8] sm:$0xff] %vm12707_vm7, %v5410_v31  ;;  %5891 = vmatpush.msra.mxu3 %v5623_v14  ;;  %5933 = vmatpush.msrb.mxu1 %v5638_v19  ;;  %v5620_v31 = vld [vmem:[%s12312_s15 + $0x210] sm:$0xff]  ;;  %v4971_v30 = vpop.f32.mrf.mxu2  ;;  %vm12716_vm6 = vmmov %vm12711_vm3  ;;  %v5659_v14 = vld [vmem:[%s12312_s15 + $0x348] sm:$0xff] }
 0xd71   :  { %5783 = vmatmul.f32.gmra.mxu1 %v5505_v57  ;;  %5451 = vst.msk [vmem:[#allocation7 + $0x128] sm:$0xff] %vm12710_vm15, %v5414_v63  ;;  %6009 = vmatpush.msra.mxu0 %v5676_v25  ;;  %v5636_v48 = vld [vmem:[%s12312_s15 + $0x290] sm:$0xff]  ;;  %vm12718_vm5 = vmmov %vm12701_vm0  ;;  %v5671_v35 = vld [vmem:[%s12312_s15 + $0x3a8] sm:$0xff] }
 0xd72   :  { %5892 = vmatpush.msra.mxu3 %v5622_v27  ;;  %5966 = vmatpush.msra.mxu2 %v5662_v32  ;;  %vm12719_vm8 = vmmov %vm12701_vm0  ;;  %v5660_v28 = vld [vmem:[%s12312_s15 + $0x350] sm:$0xff]  ;;  %v5634_v27 = vld [vmem:[%s12312_s15 + $0x280] sm:$0xff] }
 0xd73   :  { %5862 = vmatmul.f32.gmra.mxu0 %v5497_v52  ;;  %v5672_v62 = vld [vmem:[%s12312_s15 + $0x3b0] sm:$0xff]  ;;  %vm12720_vm13 = vmmov %vm12717_vm12  ;;  %v5670_v6 = vld [vmem:[%s12312_s15 + $0x3a0] sm:$0xff] }
 0xd74   :  { %5893 = vmatpush.msra.mxu3 %v5621_v33  ;;  %6010 = vmatpush.msra.mxu0 %v5675_v37  ;;  %vm12721_vm14 = vmmov %vm12701_vm0  ;;  %v5656_v42 = vld [vmem:[%s12312_s15 + $0x330] sm:$0xff]  ;;  %v5697_v32 = vld [vmem:[%s12312_s15 + $0x478] sm:$0xff] }
 0xd75   :  { %5967 = vmatpush.msra.mxu2 %v5661_v22  ;;  %vm12722_vm7 = vmmov %vm12701_vm0  ;;  %v5712_v46 = vld [vmem:[%s12312_s15 + $0x4f0] sm:$0xff] }
 0xd76   :  { %5894 = vmatpush.msra.mxu3 %v5620_v31  ;;  %6011 = vmatpush.msra.mxu0 %v5674_v16  ;;  %vm12723_vm1 = vmmov %vm12701_vm0 }
 0xd77   :  { %5821 = vmatmul.f32.gmra.mxu2 %v5289_v15  ;;  %vm12724_vm2 = vmmov %vm12701_vm0 }
 0xd78   :  { %5968 = vmatpush.msra.mxu2 %v5660_v28  ;;  %6012 = vmatpush.msra.mxu0 %v5673_v60  ;;  %vm12725_vm15 = vmmov %vm12717_vm12 }
 0xd79   :  { %5786 = vmatmul.f32.gmra.mxu1 %v5515_v7  ;;  %v5637_v7 = vld [vmem:[%s12312_s15 + $0x298] sm:$0xff] }
 0xd7a   :  { %5934 = vmatpush.msrb.mxu1 %v5637_v7  ;;  %5969 = vmatpush.msra.mxu2 %v5659_v14  ;;  %v5654_v7 = vld [vmem:[%s12312_s15 + $0x320] sm:$0xff] }
 0xd7b   :  { %5865 = vmatmul.f32.gmra.mxu0 %v5507_v8 }
 0xd7c   :  { %5935 = vmatpush.msrb.mxu1 %v5636_v48  ;;  %6013 = vmatpush.msra.mxu0 %v5672_v62  ;;  %v5650_v62 = vld [vmem:[%s12312_s15 + $0x300] sm:$0xff] }
 0xd7e   :  { %5936 = vmatpush.msrb.mxu1 %v5635_v3  ;;  %6014 = vmatpush.msra.mxu0 %v5671_v35  ;;  %v5651_v3 = vld [vmem:[%s12312_s15 + $0x308] sm:$0xff] }
 0xd7f   :  { %5824 = vmatmul.f32.gmra.mxu2 %v5293_v10 }
 0xd80   :  { %5937 = vmatpush.msrb.mxu1 %v5634_v27  ;;  %6015 = vmatpush.msra.mxu0 %v5670_v6  ;;  %v5478_v6 = vld [vmem:[#allocation7 + $0x20] sm:$0xff] }
 0xdac   :  { %v4920_v44 = vpop.f32.mrf.mxu1 }
 0xdad   :  { %v4998_v61 = vadd.f32 %v4997_v54, %v4920_v44 }
 0xdaf   :  { %v5096_v50 = vrot.slane %v4998_v61, 6  ;;  %v5110_v15 = vrot.slane %v4998_v61, 4  ;;  %v5122_v12 = vrot.slane %v4998_v61, 2  ;;  %5134 = vst.msk [vmem:[#allocation11 + $0x58] sm:$0xc0] %vm12711_vm3, %v4998_v61  ;;  %v5619_v61 = vld [vmem:[%s12312_s15 + $0x208] sm:$0xff]  ;;  %vm12726_vm3 = vmmov %vm12701_vm0 }
 0xdb0   :  { %5895 = vmatpush.msra.mxu3 %v5619_v61 }
 0xdb1   :  { %5100 = vst.msk [vmem:[#allocation11 + $0x48] sm:$0xc] %vm12712_vm4, %v5096_v50  ;;  %vm12727_vm4 = vmmov %vm12717_vm12 }
 0xdb2   :  { %5114 = vst.msk [vmem:[#allocation11 + $0x48] sm:$0xc0] %vm12713_vm10, %v5110_v15  ;;  %v4891_v10 = vpop.f32.mrf.mxu3  ;;  %vm12728_vm10 = vmmov %vm12727_vm4 }
 0xdb3   :  { %5126 = vst.msk [vmem:[#allocation11 + $0x58] sm:$0xc] %vm12714_vm9, %v5122_v12  ;;  %v4969_v57 = vadd.f32 %v4968_v53, %v4891_v10  ;;  %v5658_v12 = vld [vmem:[%s12312_s15 + $0x340] sm:$0xff]  ;;  %v5657_v10 = vld [vmem:[%s12312_s15 + $0x338] sm:$0xff]  ;;  %vm12729_vm9 = vmmov %vm12727_vm4 }
 0xdb4   :  { %v4923_v52 = vpop.f32.mrf.mxu1  ;;  %5970 = vmatpush.msra.mxu2 %v5658_v12 }
 0xdb5   :  { %v5095_v20 = vrot.slane %v4969_v57, 6  ;;  %v5109_v21 = vrot.slane %v4969_v57, 4  ;;  %v5121_v58 = vrot.slane %v4969_v57, 2  ;;  %5133 = vst [vmem:[#allocation11 + $0x50] sm:$0xc0] %v4969_v57  ;;  %v5001_v9 = vadd.f32 %v5000_v59, %v4923_v52  ;;  %v5669_v59 = vld [vmem:[%s12312_s15 + $0x398] sm:$0xff] }
 0xdb6   :  { %5971 = vmatpush.msra.mxu2 %v5657_v10  ;;  %6016 = vmatpush.msra.mxu0 %v5669_v59 }
 0xdb7   :  { %5099 = vst [vmem:[#allocation11 + $0x40] sm:$0xc] %v5095_v20  ;;  %v5140_v8 = vrot.slane %v5001_v9, 6  ;;  %v5154_v63 = vrot.slane %v5001_v9, 4  ;;  %v5668_v9 = vld [vmem:[%s12312_s15 + $0x390] sm:$0xff] }
 0xdb8   :  { %5113 = vst [vmem:[#allocation11 + $0x40] sm:$0xc0] %v5109_v21  ;;  %5972 = vmatpush.msra.mxu2 %v5656_v42  ;;  %6017 = vmatpush.msra.mxu0 %v5668_v9  ;;  %v5692_v9 = vld [vmem:[%s12312_s15 + $0x450] sm:$0xff] }
 0xdb9   :  { %5125 = vst [vmem:[#allocation11 + $0x50] sm:$0xc] %v5121_v58  ;;  %v11894_v26 = vld [vmem:[#allocation11 + $0x48] sm:$0xff] }
 0xdba   :  { %5144 = vst.msk [vmem:[#allocation11 + $0x68] sm:$0xc] %vm12715_vm11, %v5140_v8  ;;  %v4894_v49 = vpop.f32.mrf.mxu3  ;;  %v5298_v4 = vrot.slane %v11894_v26, 2  ;;  %v11922_v44 = vld [vmem:[#allocation11 + $0x58] sm:$0xff]  ;;  %v5655_v58 = vld [vmem:[%s12312_s15 + $0x328] sm:$0xff]  ;;  %v5357_v22 = vrot.slane %v11894_v26, 4  ;;  %vm12730_vm11 = vmmov %vm12701_vm0 }
 0xdbb   :  { %5158 = vst.msk [vmem:[#allocation11 + $0x68] sm:$0xc0] %vm12716_vm6, %v5154_v63  ;;  %v4972_v0 = vadd.f32 %v4971_v30, %v4894_v49  ;;  %v5302_v18 = vrot.slane %v11922_v44, 2  ;;  %5973 = vmatpush.msra.mxu2 %v5655_v58  ;;  %v5667_v8 = vld [vmem:[%s12312_s15 + $0x388] sm:$0xff]  ;;  %v5653_v49 = vld [vmem:[%s12312_s15 + $0x318] sm:$0xff]  ;;  %vm5339_vm6 = vcmask 324608  }
 0xdbc   :  { %5263 = vst.msk [vmem:[#allocation7 + $0x198] sm:$0xff] %vm12701_vm0, %v11894_v26  ;;  %v5299_v40 = vsel %vm12717_vm12, %v5294_v56, %v5298_v4  ;;  %v5775_v19 = vpop.f32.mrf.mxu1  ;;  %6018 = vmatpush.msra.mxu0 %v5667_v8  ;;  %vm12731_vm0 = vcmask 1043456   ;;  %v5421_v12 = vrot.slane %v11922_v44, 6 }
 0xdbd   :  { %v5139_v54 = vrot.slane %v4972_v0, 6  ;;  %v5153_v34 = vrot.slane %v4972_v0, 4  ;;  %5469 = vst.msk [vmem:[#allocation7 + $0x188] sm:$0xff] %vm12718_vm5, %v11894_v26  ;;  %v5303_v25 = vsel %vm12725_vm15, %v5298_v4, %v5302_v18  ;;  %5974 = vmatpush.msra.mxu2 %v5654_v7  ;;  %v5666_v4 = vld [vmem:[%s12312_s15 + $0x380] sm:$0xff]  ;;  %v5696_v0 = vld [vmem:[%s12312_s15 + $0x470] sm:$0xff]  ;;  %v5358_v28 = vsel %vm12731_vm0, %v5353_v2, %v5357_v22  ;;  %vm12732_vm12 = vmmov %vm12731_vm0 }
 0xdbe   :  { %5333 = vst.msk [vmem:[#allocation7 + $0x158] sm:$0xff] %vm12719_vm8, %v5299_v40  ;;  %v5361_v40 = vrot.slane %v11922_v44, 4  ;;  %6019 = vmatpush.msra.mxu0 %v5666_v4  ;;  %vm12733_vm5 = vmmov %vm12731_vm0  ;;  %v5691_v7 = vld [vmem:[%s12312_s15 + $0x448] sm:$0xff] }
 0xdbf   :  { %5143 = vst [vmem:[#allocation11 + $0x60] sm:$0xc] %v5139_v54  ;;  %v11919_v56 = vld [vmem:[#allocation11 + $0x40] sm:$0xff]  ;;  %5975 = vmatpush.msra.mxu2 %v5653_v49  ;;  %v5652_v54 = vld [vmem:[%s12312_s15 + $0x310] sm:$0xff]  ;;  %vm12734_vm8 = vmmov %vm12723_vm1 }
 0xdc0   :  { %5157 = vst [vmem:[#allocation11 + $0x60] sm:$0xc0] %v5153_v34  ;;  %5748 = vmatmul.f32.gmra.mxu3 %v11919_v56  ;;  %v5296_v47 = vrot.slane %v11919_v56, 2  ;;  %v11931_v51 = vld [vmem:[#allocation11 + $0x50] sm:$0xff]  ;;  %v5355_v48 = vrot.slane %v11919_v56, 4  ;;  %v5417_v34 = vrot.slane %v11894_v26, 6  ;;  %v5362_v27 = vsel %vm12733_vm5, %v5357_v22, %v5361_v40  ;;  %vm12747_vm5 = vmmov %vm12724_vm2 }
 0xdc1   :  { %5265 = vst.msk [vmem:[#allocation7 + $0x1e8] sm:$0xff] %vm12723_vm1, %v11922_v44  ;;  %v5300_v33 = vrot.slane %v11931_v51, 2  ;;  %v5359_v60 = vrot.slane %v11931_v51, 4  ;;  %5976 = vmatpush.msra.mxu2 %v5652_v54  ;;  %v5713_v26 = vld [vmem:[%s12312_s15 + $0x4f8] sm:$0xff]  ;;  %v5480_v49 = vld [vmem:[#allocation7 + $0x30] sm:$0xff]  ;;  %v5489_v4 = vld [vmem:[#allocation7 + $0x78] sm:$0xff] }
 0xdc2   :  { %v11944_v50 = vld [vmem:[#allocation11 + $0x68] sm:$0xff]  ;;  %v5297_v15 = vsel %vm12720_vm13, %v5292_v39, %v5296_v47  ;;  %v5618_v39 = vld [vmem:[%s12312_s15 + $0x200] sm:$0xff]  ;;  %v5734_v38 = vpop.f32.mrf.mxu3  ;;  %5471 = vst.msk [vmem:[#allocation7 + $0x1d8] sm:$0xff] %vm12724_vm2, %v11922_v44  ;;  %v12042_v2 = vsel %vm12732_vm12, %v5351_v36, %v5355_v48  ;;  %6086 = vmatpush.msra.mxu1 %v5713_v26  ;;  %vm12735_vm13 = vcmask 1041408  }
 0xdc3   :  { %5267 = vst.msk [vmem:[#allocation7 + $0x238] sm:$0xff] %vm12721_vm14, %v11944_v50  ;;  %v5525_v53 = vld [vmem:[#allocation7 + $0x198] sm:$0xff]  ;;  %5827 = vmatmul.f32.gmra.mxu2 %v5297_v15  ;;  %v5735_v57 = vadd.f32 %v11942_v24, %v5734_v38  ;;  %5896 = vmatpush.msra.mxu3 %v5618_v39  ;;  %v5306_v20 = vrot.slane %v11944_v50, 2  ;;  %v5301_v31 = vsel %vm12727_vm4, %v5296_v47, %v5300_v33  ;;  %v5365_v61 = vrot.slane %v11944_v50, 4  ;;  %vm12736_vm14 = vmmov %vm12731_vm0  ;;  %v5694_v39 = vld [vmem:[%s12312_s15 + $0x460] sm:$0xff] }
 0xdc4   :  { %5473 = vst.msk [vmem:[#allocation7 + $0x228] sm:$0xff] %vm12722_vm7, %v11944_v50  ;;  %5789 = vmatmul.f32.gmra.mxu1 %v5525_v53  ;;  %v5695_v47 = vld [vmem:[%s12312_s15 + $0x468] sm:$0xff]  ;;  %v5415_v15 = vrot.slane %v11919_v56, 6  ;;  %5977 = vmatpush.msra.mxu2 %v5651_v3  ;;  %v5418_v36 = vsel %vm12735_vm13, %v5413_v43, %v5417_v34  ;;  %v12057_v35 = vsel %vm12736_vm14, %v5355_v48, %v5359_v60  ;;  %vm12737_vm7 = vmmov %vm12723_vm1  ;;  %v5419_v38 = vrot.slane %v11931_v51, 6  ;;  %v5706_v3 = vld [vmem:[%s12312_s15 + $0x4c0] sm:$0xff] }
 0xdc5   :  { %v5517_v55 = vld [vmem:[#allocation7 + $0x158] sm:$0xff]  ;;  %v11996_v37 = vadd.f32 %v5775_v19, %v5735_v57  ;;  %6045 = vmatpush.msrb.mxu3 %v5697_v32  ;;  %5335 = vst.msk [vmem:[#allocation7 + $0x1a8] sm:$0xff] %vm12726_vm3, %v5303_v25  ;;  %v5307_v63 = vsel %vm12728_vm10, %v5302_v18, %v5306_v20  ;;  %vm12738_vm1 = vmmov %vm12731_vm0  ;;  %6087 = vmatpush.msra.mxu1 %v5712_v46  ;;  %v5425_v57 = vrot.slane %v11944_v50, 6  ;;  %v5710_v32 = vld [vmem:[%s12312_s15 + $0x4e0] sm:$0xff] }
 0xdc6   :  { %5868 = vmatmul.f32.gmra.mxu0 %v5517_v55  ;;  %5337 = vst.msk [vmem:[#allocation7 + $0x1f8] sm:$0xff] %vm12730_vm11, %v5307_v63  ;;  %5978 = vmatpush.msra.mxu2 %v5650_v62  ;;  %v5366_v43 = vsel %vm12738_vm1, %v5361_v40, %v5365_v61  ;;  %vm12739_vm15 = vmmov %vm12735_vm13  ;;  %vm5399_vm11 = vcmask 322560   ;;  %v5708_v40 = vld [vmem:[%s12312_s15 + $0x4d0] sm:$0xff]  ;;  %v5707_v54 = vld [vmem:[%s12312_s15 + $0x4c8] sm:$0xff] }
 0xdc7   :  { %v11981_v52 = vld [vmem:[#allocation11 + $0x60] sm:$0xff]  ;;  %6046 = vmatpush.msrb.mxu3 %v5696_v0  ;;  %5340 = vst.msk [vmem:[#allocation7 + $0x248] sm:$0x3f] %vm5339_vm6, %v5306_v20  ;;  %v12072_v44 = vsel %vm12739_vm15, %v5411_v23, %v5415_v15  ;;  %vm12740_vm3 = vmmov %vm12735_vm13  ;;  %v5479_v20 = vld [vmem:[#allocation7 + $0x28] sm:$0xff] }
 0xdc8   :  { %5751 = vmatmul.f32.gmra.mxu3 %v11931_v51  ;;  %v5304_v21 = vrot.slane %v11981_v52, 2  ;;  %v5535_v16 = vld [vmem:[#allocation7 + $0x1e8] sm:$0xff]  ;;  %5393 = vst.msk [vmem:[#allocation7 + $0x168] sm:$0xff] %vm12734_vm8, %v5358_v28  ;;  %v5363_v53 = vrot.slane %v11981_v52, 4  ;;  %v5422_v10 = vsel %vm12740_vm3, %v5417_v34, %v5421_v12  ;;  %vm12741_vm4 = vmmov %vm12724_vm2  ;;  %v5711_v23 = vld [vmem:[%s12312_s15 + $0x4e8] sm:$0xff]  ;;  %v5423_v59 = vrot.slane %v11981_v52, 6 }
 0xdc9   :  { %6047 = vmatpush.msrb.mxu3 %v5695_v47  ;;  %5395 = vst.msk [vmem:[#allocation7 + $0x1b8] sm:$0xff] %vm12737_vm7, %v5362_v27  ;;  %vm12742_vm10 = vmmov %vm12731_vm0  ;;  %6088 = vmatpush.msra.mxu1 %v5711_v23  ;;  %vm12748_vm8 = vcmask 320512   ;;  %v5690_v0 = vld [vmem:[%s12312_s15 + $0x440] sm:$0xff]  ;;  %v5688_v28 = vld [vmem:[%s12312_s15 + $0x430] sm:$0xff] }
 0xdca   :  { %v5305_v30 = vsel %vm12729_vm9, %v5300_v33, %v5304_v21  ;;  %5338 = vst [vmem:[#allocation7 + $0x240] sm:$0x3f] %v5304_v21  ;;  %v5545_v18 = vld [vmem:[#allocation7 + $0x238] sm:$0xff]  ;;  %v12078_v55 = vsel %vm12742_vm10, %v5359_v60, %v5363_v53  ;;  %v5693_v33 = vld [vmem:[%s12312_s15 + $0x458] sm:$0xff]  ;;  %vm12743_vm9 = vmmov %vm12724_vm2 }
 0xdcb   :  { %5830 = vmatmul.f32.gmra.mxu2 %v5301_v31  ;;  %6048 = vmatpush.msrb.mxu3 %v5694_v39  ;;  %5453 = vst.msk [vmem:[#allocation7 + $0x178] sm:$0xff] %vm12724_vm2, %v5418_v36  ;;  %vm12744_vm6 = vmmov %vm12740_vm3  ;;  %v5709_v31 = vld [vmem:[%s12312_s15 + $0x4d8] sm:$0xff]  ;;  %v5481_v47 = vld [vmem:[#allocation7 + $0x38] sm:$0xff] }
 0xdcc   :  { %5792 = vmatmul.f32.gmra.mxu1 %v5535_v16  ;;  %v5527_v14 = vld [vmem:[#allocation7 + $0x1a8] sm:$0xff]  ;;  %5397 = vst.msk [vmem:[#allocation7 + $0x208] sm:$0xff] %vm12741_vm4, %v5366_v43  ;;  %v12090_v19 = vsel %vm12744_vm6, %v5415_v15, %v5419_v38  ;;  %vm12745_vm0 = vmmov %vm12740_vm3  ;;  %v5704_v15 = vld [vmem:[%s12312_s15 + $0x4b0] sm:$0xff] }
 0xdcd   :  { %v5537_v42 = vld [vmem:[#allocation7 + $0x1f8] sm:$0xff]  ;;  %6049 = vmatpush.msrb.mxu3 %v5693_v33  ;;  %5455 = vst.msk [vmem:[#allocation7 + $0x1c8] sm:$0xff] %vm12743_vm9, %v5422_v10  ;;  %v5426_v58 = vsel %vm12745_vm0, %v5421_v12, %v5425_v57  ;;  %vm12746_vm12 = vmmov %vm12745_vm0  ;;  %6089 = vmatpush.msra.mxu1 %v5710_v32  ;;  %v5686_v27 = vld [vmem:[%s12312_s15 + $0x420] sm:$0xff] }
 0xdce   :  { %5871 = vmatmul.f32.gmra.mxu0 %v5527_v14  ;;  %5398 = vst [vmem:[#allocation7 + $0x250] sm:$0xf] %v5363_v53  ;;  %v12107_v8 = vsel %vm12746_vm12, %v5419_v38, %v5423_v59  ;;  %v5547_v16 = vld [vmem:[#allocation7 + $0x248] sm:$0xff]  ;;  %v5703_v53 = vld [vmem:[%s12312_s15 + $0x4a8] sm:$0xff]  ;;  %v5684_v43 = vld [vmem:[%s12312_s15 + $0x410] sm:$0xff] }
 0xdcf   :  { %5400 = vst.msk [vmem:[#allocation7 + $0x258] sm:$0xf] %vm5399_vm11, %v5365_v61  ;;  %6050 = vmatpush.msrb.mxu3 %v5692_v9  ;;  %6090 = vmatpush.msra.mxu1 %v5709_v31  ;;  %v5687_v61 = vld [vmem:[%s12312_s15 + $0x428] sm:$0xff]  ;;  %v5705_v14 = vld [vmem:[%s12312_s15 + $0x4b8] sm:$0xff]  ;;  %v5702_v39 = vld [vmem:[%s12312_s15 + $0x4a0] sm:$0xff] }
 0xdd0   :  { %5754 = vmatmul.f32.gmra.mxu3 %v11981_v52  ;;  %5457 = vst.msk [vmem:[#allocation7 + $0x218] sm:$0xff] %vm12747_vm5, %v5426_v58  ;;  %v5509_v46 = vld [vmem:[#allocation7 + $0x118] sm:$0xff]  ;;  %v5682_v33 = vld [vmem:[%s12312_s15 + $0x400] sm:$0xff] }
 0xdd1   :  { %v5546_v50 = vld [vmem:[#allocation7 + $0x240] sm:$0xff]  ;;  %6051 = vmatpush.msrb.mxu3 %v5691_v7  ;;  %5459 = vst.msk [vmem:[#allocation7 + $0x268] sm:$0x3] %vm12748_vm8, %v5425_v57  ;;  %6091 = vmatpush.msra.mxu1 %v5708_v40  ;;  %v5683_v38 = vld [vmem:[%s12312_s15 + $0x408] sm:$0xff]  ;;  %v5519_v57 = vld [vmem:[#allocation7 + $0x168] sm:$0xff] }
 0xdd2   :  { %5458 = vst [vmem:[#allocation7 + $0x260] sm:$0x3] %v5423_v59  ;;  %v5700_v10 = vld [vmem:[%s12312_s15 + $0x490] sm:$0xff]  ;;  %v5492_v58 = vld [vmem:[#allocation7 + $0x90] sm:$0xff]  ;;  %v5503_v32 = vld [vmem:[#allocation7 + $0xe8] sm:$0xff] }
 0xdd3   :  { %5833 = vmatmul.f32.gmra.mxu2 %v5305_v30  ;;  %6052 = vmatpush.msrb.mxu3 %v5690_v0  ;;  %v5529_v23 = vld [vmem:[#allocation7 + $0x1b8] sm:$0xff]  ;;  %v5539_v59 = vld [vmem:[#allocation7 + $0x208] sm:$0xff] }
 0xdd4   :  { %5795 = vmatmul.f32.gmra.mxu1 %v5545_v18  ;;  %v5685_v18 = vld [vmem:[%s12312_s15 + $0x418] sm:$0xff]  ;;  %v5493_v9 = vld [vmem:[#allocation7 + $0x98] sm:$0xff] }
 0xdd5   :  { %6092 = vmatpush.msra.mxu1 %v5707_v54  ;;  %v5513_v7 = vld [vmem:[#allocation7 + $0x138] sm:$0xff] }
 0xdd6   :  { %5874 = vmatmul.f32.gmra.mxu0 %v5537_v42  ;;  %v5521_v42 = vld [vmem:[#allocation7 + $0x178] sm:$0xff] }
 0xdd7   :  { %6093 = vmatpush.msra.mxu1 %v5706_v3 }
 0xdd8   :  { %5897 = vmatmul.f32.vlgmr.msra.gmra.mxu3 %v5478_v6  ;;  %v5699_v6 = vld [vmem:[%s12312_s15 + $0x488] sm:$0xff] }
 0xdd9   :  { %6094 = vmatpush.msra.mxu1 %v5705_v14 }
 0xdda   :  { %v5737_v25 = vpop.f32.mrf.mxu3 }
 0xddb   :  { %v5738_v21 = vadd.f32 %v11942_v24, %v5737_v25  ;;  %5836 = vmatmul.f32.gmra.mxu2 %v5546_v50  ;;  %6095 = vmatpush.msra.mxu1 %v5704_v15  ;;  %v5548_v25 = vld [vmem:[#allocation7 + $0x250] sm:$0xff]  ;;  %v5531_v50 = vld [vmem:[#allocation7 + $0x1c8] sm:$0xff] }
 0xddc   :  { %5938 = vmatmul.f32.vlgmr.msrb.gmra.mxu1 %v5479_v20  ;;  %v5482_v20 = vld [vmem:[#allocation7 + $0x40] sm:$0xff] }
 0xddd   :  { %6096 = vmatpush.msra.mxu1 %v5703_v53 }
 0xdde   :  { %v5778_v63 = vpop.f32.mrf.mxu1  ;;  %5877 = vmatmul.f32.gmra.mxu0 %v5547_v16  ;;  %v5523_v16 = vld [vmem:[#allocation7 + $0x188] sm:$0xff] }
 0xddf   :  { %v12110_v22 = vadd.f32 %v5778_v63, %v5738_v21  ;;  %6097 = vmatpush.msra.mxu1 %v5702_v39  ;;  %v5550_v21 = vld [vmem:[#allocation7 + $0x260] sm:$0xff] }
 0xde0   :  { %5900 = vmatmul.f32.gmra.mxu3 %v11743_v17  ;;  %v5689_v17 = vld [vmem:[%s12312_s15 + $0x438] sm:$0xff] }
 0xde1   :  { %6053 = vmatpush.msrb.mxu3 %v5689_v17 }
 0xde2   :  { %v5740_v30 = vpop.f32.mrf.mxu3 }
 0xde3   :  { %v5741_v48 = vadd.f32 %v11942_v24, %v5740_v30  ;;  %5979 = vmatmul.f32.vlgmr.msra.gmra.mxu2 %v5480_v49  ;;  %6054 = vmatpush.msrb.mxu3 %v5688_v28  ;;  %v5857_v30 = vpop.f32.mrf.mxu0 }
 0xde4   :  { %5941 = vmatmul.f32.gmra.mxu1 %v5489_v4 }
 0xde5   :  { %6055 = vmatpush.msrb.mxu3 %v5687_v61 }
 0xde6   :  { %v5781_v34 = vpop.f32.mrf.mxu1  ;;  %6020 = vmatmul.f32.vlgmr.msra.gmra.mxu0 %v5481_v47 }
 0xde7   :  { %v12130_v60 = vadd.f32 %v5781_v34, %v5741_v48  ;;  %6056 = vmatpush.msrb.mxu3 %v5686_v27  ;;  %v5533_v48 = vld [vmem:[#allocation7 + $0x1d8] sm:$0xff]  ;;  %v5543_v34 = vld [vmem:[#allocation7 + $0x228] sm:$0xff] }
 0xde8   :  { %5903 = vmatmul.f32.gmra.mxu3 %v11755_v29  ;;  %v5499_v29 = vld [vmem:[#allocation7 + $0xc8] sm:$0xff] }
 0xde9   :  { %6057 = vmatpush.msrb.mxu3 %v5685_v18 }
 0xdea   :  { %v5743_v26 = vpop.f32.mrf.mxu3  ;;  %v5816_v31 = vpop.f32.mrf.mxu2 }
 0xdeb   :  { %v5744_v62 = vadd.f32 %v11942_v24, %v5743_v26  ;;  %5982 = vmatmul.f32.gmra.mxu2 %v11764_v45  ;;  %v5491_v45 = vld [vmem:[#allocation7 + $0x88] sm:$0xff]  ;;  %6058 = vmatpush.msrb.mxu3 %v5684_v43  ;;  %v5860_v40 = vpop.f32.mrf.mxu0 }
 0xdec   :  { %5944 = vmatmul.f32.gmra.mxu1 %v5499_v29 }
 0xded   :  { %6059 = vmatpush.msrb.mxu3 %v5683_v38 }
 0xdee   :  { %v5784_v36 = vpop.f32.mrf.mxu1  ;;  %6023 = vmatmul.f32.gmra.mxu0 %v5491_v45 }
 0xdef   :  { %v12150_v12 = vadd.f32 %v5784_v36, %v5744_v62  ;;  %6060 = vmatpush.msrb.mxu3 %v5682_v33 }
 0xdf0   :  { %5906 = vmatmul.f32.gmra.mxu3 %v11773_v13  ;;  %v5701_v13 = vld [vmem:[%s12312_s15 + $0x498] sm:$0xff] }
 0xdf1   :  { %6098 = vmatpush.msra.mxu1 %v5701_v13 }
 0xdf2   :  { %v12196_v63 = vpop.f32.mrf.mxu3  ;;  %v5819_v49 = vpop.f32.mrf.mxu2 }
 0xdf3   :  { %5985 = vmatmul.f32.gmra.mxu2 %v11776_v5  ;;  %v5501_v5 = vld [vmem:[#allocation7 + $0xd8] sm:$0xff]  ;;  %6099 = vmatpush.msra.mxu1 %v5700_v10  ;;  %v5863_v47 = vpop.f32.mrf.mxu0 }
 0xdf4   :  { %5947 = vmatmul.f32.gmra.mxu1 %v5509_v46 }
 0xdf5   :  { %6100 = vmatpush.msra.mxu1 %v5699_v6 }
 0xdf6   :  { %6026 = vmatmul.f32.gmra.mxu0 %v5501_v5 }
 0xdf8   :  { %5909 = vmatmul.f32.gmra.mxu3 %v12042_v2  ;;  %v5698_v2 = vld [vmem:[%s12312_s15 + $0x480] sm:$0xff] }
 0xdf9   :  { %6101 = vmatpush.msra.mxu1 %v5698_v2 }
 0xdfb   :  { %5988 = vmatmul.f32.gmra.mxu2 %v11785_v41  ;;  %v5511_v41 = vld [vmem:[#allocation7 + $0x128] sm:$0xff]  ;;  %v12209_v27 = vpop.f32.mrf.mxu0 }
 0xdfc   :  { %5950 = vmatmul.f32.gmra.mxu1 %v5519_v57 }
 0xdfe   :  { %6029 = vmatmul.f32.gmra.mxu0 %v5511_v41 }
 0xe00   :  { %5912 = vmatmul.f32.gmra.mxu3 %v12057_v35  ;;  %v5549_v35 = vld [vmem:[#allocation7 + $0x258] sm:$0xff] }
 0xe03   :  { %5991 = vmatmul.f32.gmra.mxu2 %v12072_v44  ;;  %v5541_v44 = vld [vmem:[#allocation7 + $0x218] sm:$0xff] }
 0xe04   :  { %5953 = vmatmul.f32.gmra.mxu1 %v5529_v23 }
 0xe06   :  { %6032 = vmatmul.f32.gmra.mxu0 %v5521_v42 }
 0xe08   :  { %5915 = vmatmul.f32.gmra.mxu3 %v12078_v55  ;;  %v5483_v55 = vld [vmem:[#allocation7 + $0x48] sm:$0xff] }
 0xe0b   :  { %5994 = vmatmul.f32.gmra.mxu2 %v12090_v19  ;;  %v5551_v19 = vld [vmem:[#allocation7 + $0x268] sm:$0xff] }
 0xe0c   :  { %5956 = vmatmul.f32.gmra.mxu1 %v5539_v59 }
 0xe0e   :  { %6035 = vmatmul.f32.gmra.mxu0 %v5531_v50 }
 0xe10   :  { %5918 = vmatmul.f32.gmra.mxu3 %v5548_v25  ;;  %v5817_v25 = vadd.f32 %v5816_v31, %v11996_v37 }
 0xe13   :  { %5997 = vmatmul.f32.gmra.mxu2 %v12107_v8  ;;  %v12194_v8 = vpop.f32.mrf.mxu1 }
 0xe14   :  { %5959 = vmatmul.f32.gmra.mxu1 %v5549_v35 }
 0xe16   :  { %6038 = vmatmul.f32.gmra.mxu0 %v5541_v44  ;;  %v5858_v44 = vadd.f32 %v5857_v30, %v5817_v25 }
 0xe18   :  { %6061 = vmatmul.f32.vlgmr.msrb.gmra.mxu3 %v5482_v20 }
 0xe1b   :  { %6000 = vmatmul.f32.gmra.mxu2 %v5550_v21 }
 0xe1c   :  { %6102 = vmatmul.f32.vlgmr.msra.gmra.mxu1 %v5483_v55 }
 0xe1e   :  { %6041 = vmatmul.f32.gmra.mxu0 %v5551_v19 }
 0xe20   :  { %6064 = vmatmul.f32.gmra.mxu3 %v5492_v58  ;;  %v5820_v58 = vadd.f32 %v5819_v49, %v12110_v22 }
 0xe24   :  { %6105 = vmatmul.f32.gmra.mxu1 %v5493_v9 }
 0xe28   :  { %6067 = vmatmul.f32.gmra.mxu3 %v11691_v1 }
 0xe2c   :  { %6108 = vmatmul.f32.gmra.mxu1 %v5503_v32 }
 0xe30   :  { %6070 = vmatmul.f32.gmra.mxu3 %v11716_v11 }
 0xe34   :  { %6111 = vmatmul.f32.gmra.mxu1 %v5513_v7 }
 0xe38   :  { %6073 = vmatmul.f32.gmra.mxu3 %v11919_v56  ;;  %v5822_v56 = vpop.f32.mrf.mxu2 }
 0xe39   :  { %v5823_v31 = vadd.f32 %v5822_v56, %v12130_v60  ;;  %v5747_v60 = vadd.f32 %v11942_v24, %v12196_v63 }
 0xe3c   :  { %6114 = vmatmul.f32.gmra.mxu1 %v5523_v16  ;;  %v5861_v16 = vadd.f32 %v5860_v40, %v5820_v58 }
 0xe40   :  { %6076 = vmatmul.f32.gmra.mxu3 %v11931_v51  ;;  %v6351_v51 = vld [vmem:[#allocation5] sm:$0xff]  ;;  %v5825_v14 = vpop.f32.mrf.mxu2 }
 0xe41   :  { %v5790_v1 = vpop.f32.mrf.mxu1 }
 0xe43   :  { %v5749_v4 = vpop.f32.mrf.mxu3  ;;  %v12213_v53 = vpop.f32.mrf.mxu0 }
 0xe44   :  { %v5750_v11 = vadd.f32 %v11942_v24, %v5749_v4  ;;  %6117 = vmatmul.f32.gmra.mxu1 %v5533_v48 }
 0xe46   :  { %v12200_v0 = vadd.f32 %v5790_v1, %v5750_v11 }
 0xe48   :  { %6079 = vmatmul.f32.gmra.mxu3 %v11981_v52  ;;  %v12211_v36 = vpop.f32.mrf.mxu2 }
 0xe49   :  { %v5793_v17 = vpop.f32.mrf.mxu1 }
 0xe4b   :  { %v5752_v54 = vpop.f32.mrf.mxu3  ;;  %v12220_v43 = vpop.f32.mrf.mxu0 }
 0xe4c   :  { %v5753_v28 = vadd.f32 %v11942_v24, %v5752_v54  ;;  %6120 = vmatmul.f32.gmra.mxu1 %v5543_v34  ;;  %v5864_v34 = vadd.f32 %v5863_v47, %v5823_v31 }
 0xe4e   :  { %v12204_v3 = vadd.f32 %v5793_v17, %v5753_v28 }
 0xe50   :  { %6082 = vmatmul.f32.gmra.mxu3 %v6351_v51  ;;  %v12215_v39 = vpop.f32.mrf.mxu2 }
 0xe51   :  { %v5796_v26 = vpop.f32.mrf.mxu1 }
 0xe53   :  { %v5755_v61 = vpop.f32.mrf.mxu3  ;;  %v12224_v6 = vpop.f32.mrf.mxu0 }
 0xe54   :  { %v5756_v62 = vadd.f32 %v11942_v24, %v5755_v61  ;;  %6123 = vmatmul.f32.gmra.mxu1 %v6351_v51  ;;  %v5826_v61 = vadd.f32 %v5825_v14, %v12150_v12 }
 0xe56   :  { %v12207_v29 = vadd.f32 %v5796_v26, %v5756_v62  ;;  %v5867_v47 = vadd.f32 %v12209_v27, %v5826_v61 }
 0xe58   :  { %v12222_v5 = vpop.f32.mrf.mxu2 }
 0xe59   :  { %v5939_v52 = vpop.f32.mrf.mxu1 }
 0xe5b   :  { %v5898_v15 = vpop.f32.mrf.mxu3  ;;  %v12232_v41 = vpop.f32.mrf.mxu0 }
 0xe5c   :  { %v5899_v55 = vadd.f32 %v5898_v15, %v5858_v44 }
 0xe5e   :  { %v5940_v32 = vadd.f32 %v5939_v52, %v5899_v55 }
 0xe60   :  { %v12226_v57 = vpop.f32.mrf.mxu2 }
 0xe61   :  { %v5942_v45 = vpop.f32.mrf.mxu1 }
 0xe63   :  { %v5901_v18 = vpop.f32.mrf.mxu3  ;;  %v6021_v35 = vpop.f32.mrf.mxu0 }
 0xe64   :  { %v5902_v4 = vadd.f32 %v5901_v18, %v5861_v16 }
 0xe66   :  { %v5943_v30 = vadd.f32 %v5942_v45, %v5902_v4 }
 0xe68   :  { %v5980_v59 = vpop.f32.mrf.mxu2 }
 0xe69   :  { %v5945_v46 = vpop.f32.mrf.mxu1  ;;  %v5981_v1 = vadd.f32 %v5980_v59, %v5940_v32 }
 0xe6b   :  { %v5904_v13 = vpop.f32.mrf.mxu3  ;;  %v6024_v7 = vpop.f32.mrf.mxu0  ;;  %v6022_v11 = vadd.f32 %v6021_v35, %v5981_v1 }
 0xe6c   :  { %v5905_v51 = vadd.f32 %v5904_v13, %v5864_v34  ;;  %v5788_v13 = vadd.f32 %v12194_v8, %v5747_v60 }
 0xe6e   :  { %v5946_v56 = vadd.f32 %v5945_v46, %v5905_v51 }
 0xe70   :  { %v5983_v21 = vpop.f32.mrf.mxu2 }
 0xe71   :  { %v5948_v10 = vpop.f32.mrf.mxu1  ;;  %v5984_v28 = vadd.f32 %v5983_v21, %v5943_v30  ;;  %v5829_v21 = vadd.f32 %v12211_v36, %v5788_v13  ;;  %v5832_v36 = vadd.f32 %v12215_v39, %v12200_v0 }
 0xe73   :  { %v5907_v38 = vpop.f32.mrf.mxu3  ;;  %v6027_v49 = vpop.f32.mrf.mxu0  ;;  %v6025_v15 = vadd.f32 %v6024_v7, %v5984_v28  ;;  %v5870_v27 = vadd.f32 %v12213_v53, %v5829_v21 }
 0xe74   :  { %v5908_v35 = vadd.f32 %v5907_v38, %v5867_v47 }
 0xe76   :  { %v5949_v63 = vadd.f32 %v5948_v10, %v5908_v35 }
 0xe78   :  { %v5986_v37 = vpop.f32.mrf.mxu2 }
 0xe79   :  { %v12228_v2 = vpop.f32.mrf.mxu1  ;;  %v5987_v59 = vadd.f32 %v5986_v37, %v5946_v56 }
 0xe7b   :  { %v12230_v33 = vpop.f32.mrf.mxu3  ;;  %v6030_v12 = vpop.f32.mrf.mxu0  ;;  %v6028_v32 = vadd.f32 %v6027_v49, %v5987_v59 }
 0xe7c   :  { %v5911_v38 = vadd.f32 %v12230_v33, %v5870_v27  ;;  %v5873_v33 = vadd.f32 %v12220_v43, %v5832_v36 }
 0xe7e   :  { %v5952_v34 = vadd.f32 %v12228_v2, %v5911_v38 }
 0xe80   :  { %v5989_v62 = vpop.f32.mrf.mxu2 }
 0xe81   :  { %v12234_v23 = vpop.f32.mrf.mxu1  ;;  %v5990_v1 = vadd.f32 %v5989_v62, %v5949_v63 }
 0xe83   :  { %v12236_v42 = vpop.f32.mrf.mxu3  ;;  %v6033_v10 = vpop.f32.mrf.mxu0 }
 0xe88   :  { %v5992_v46 = vpop.f32.mrf.mxu2 }
 0xe89   :  { %v12239_v50 = vpop.f32.mrf.mxu1  ;;  %v5993_v28 = vadd.f32 %v5992_v46, %v5952_v34 }
 0xe8b   :  { %v12241_v20 = vpop.f32.mrf.mxu3  ;;  %v6034_v62 = vadd.f32 %v6033_v10, %v5993_v28 }
 0xe90   :  { %v5995_v0 = vpop.f32.mrf.mxu2 }
 0xe91   :  { %v12244_v19 = vpop.f32.mrf.mxu1 }
 0xe93   :  { %v12246_v9 = vpop.f32.mrf.mxu3 }
 0xe99   :  { %v6103_v48 = vpop.f32.mrf.mxu1 }
 0xe9b   :  { %v6062_v17 = vpop.f32.mrf.mxu3 }
 0xe9c   :  { %v6063_v54 = vadd.f32 %v6062_v17, %v6022_v11  ;;  %v6031_v11 = vadd.f32 %v6030_v12, %v5990_v1 }
 0xe9e   :  { %v6104_v22 = vadd.f32 %v6103_v48, %v6063_v54 }
 0xea0   :  { %v6127_v26 = vsub.f32 0.0, %v6104_v22  ;;  %v5914_v22 = vadd.f32 %v12236_v42, %v5873_v33  ;;  %v6036_v42 = vpop.f32.mrf.mxu0 }
 0xea1   :  { %v6106_v40 = vpop.f32.mrf.mxu1 }
 0xea2   :  { %v6135_v52 = vmul.f32 1.442695, %v6127_v26  ;;  %v5835_v26 = vadd.f32 %v12222_v5, %v12204_v3 }
 0xea3   :  { %v6065_v18 = vpop.f32.mrf.mxu3 }
 0xea4   :  { %6316 = vpow2.f32 %v6135_v52  ;;  %v6066_v45 = vadd.f32 %v6065_v18, %v6025_v15  ;;  %v5955_v18 = vadd.f32 %v12234_v23, %v5914_v22  ;;  %v5876_v60 = vadd.f32 %v12224_v6, %v5835_v26 }
 0xea5   :  { %v5838_v23 = vadd.f32 %v12226_v57, %v12207_v29 }
 0xea6   :  { %v6107_v25 = vadd.f32 %v6106_v40, %v6066_v45  ;;  %v5996_v56 = vadd.f32 %v5995_v0, %v5955_v18  ;;  %v5917_v5 = vadd.f32 %v12241_v20, %v5876_v60  ;;  %v5998_v45 = vpop.f32.mrf.mxu2 }
 0xea7   :  { %v5879_v20 = vadd.f32 %v12232_v41, %v5838_v23 }
 0xea8   :  { %v6128_v44 = vsub.f32 0.0, %v6107_v25  ;;  %v6037_v35 = vadd.f32 %v6036_v42, %v5996_v56  ;;  %v5958_v21 = vadd.f32 %v12239_v50, %v5917_v5  ;;  %v6039_v29 = vpop.f32.mrf.mxu0 }
 0xea9   :  { %v6109_v55 = vpop.f32.mrf.mxu1  ;;  %v5920_v57 = vadd.f32 %v12246_v9, %v5879_v20 }
 0xeaa   :  { %v6317_v14 = vpop.eup %6316  ;;  %v6137_v58 = vmul.f32 1.442695, %v6128_v44 }
 0xeab   :  { %v6151_v7 = vadd.f32 1.0, %v6317_v14  ;;  %v6068_v24 = vpop.f32.mrf.mxu3 }
 0xeac   :  { %6318 = vpow2.f32 %v6137_v58  ;;  %v6069_v16 = vadd.f32 %v6068_v24, %v6028_v32 }
 0xead   :  { %6320 = vrcp.f32 %v6151_v7 }
 0xeae   :  { %v6110_v8 = vadd.f32 %v6109_v55, %v6069_v16  ;;  %v5999_v55 = vadd.f32 %v5998_v45, %v5958_v21  ;;  %v6001_v24 = vpop.f32.mrf.mxu2 }
 0xeb0   :  { %v6129_v4 = vsub.f32 0.0, %v6110_v8  ;;  %v6040_v46 = vadd.f32 %v6039_v29, %v5999_v55  ;;  %v5961_v8 = vadd.f32 %v12244_v19, %v5920_v57 }
 0xeb1   :  { %v6112_v31 = vpop.f32.mrf.mxu1 }
 0xeb2   :  { %v6319_v37 = vpop.eup %6318  ;;  %v6139_v48 = vmul.f32 1.442695, %v6129_v4  ;;  %v6002_v38 = vadd.f32 %v6001_v24, %v5961_v8 }
 0xeb3   :  { %v6321_v17 = vpop.eup %6320  ;;  %v6152_v30 = vadd.f32 1.0, %v6319_v37  ;;  %v6071_v54 = vpop.f32.mrf.mxu3 }
 0xeb4   :  { %6167 = vst [vmem:[%s12320_s23] sm:$0xff] %v6321_v17  ;;  %6322 = vpow2.f32 %v6139_v48  ;;  %v6072_v53 = vadd.f32 %v6071_v54, %v6031_v11  ;;  %v6042_v37 = vpop.f32.mrf.mxu0 }
 0xeb5   :  { %6324 = vrcp.f32 %v6152_v30  ;;  %v6043_v48 = vadd.f32 %v6042_v37, %v6002_v38 }
 0xeb6   :  { %v6113_v39 = vadd.f32 %v6112_v31, %v6072_v53 }
 0xeb8   :  { %v6130_v49 = vsub.f32 0.0, %v6113_v39 }
 0xeb9   :  { %v6115_v2 = vpop.f32.mrf.mxu1 }
 0xeba   :  { %v6323_v51 = vpop.eup %6322  ;;  %v6141_v61 = vmul.f32 1.442695, %v6130_v49 }
 0xebb   :  { %v6325_v40 = vpop.eup %6324  ;;  %v6153_v52 = vadd.f32 1.0, %v6323_v51  ;;  %v6074_v15 = vpop.f32.mrf.mxu3 }
 0xebc   :  { %6168 = vst [vmem:[%s12320_s23 + $0x8] sm:$0xff] %v6325_v40  ;;  %6326 = vpow2.f32 %v6141_v61  ;;  %v6075_v43 = vadd.f32 %v6074_v15, %v6034_v62 }
 0xebd   :  { %6328 = vrcp.f32 %v6153_v52 }
 0xebe   :  { %v6116_v3 = vadd.f32 %v6115_v2, %v6075_v43 }
 0xec0   :  { %v6131_v47 = vsub.f32 0.0, %v6116_v3 }
 0xec1   :  { %v6118_v25 = vpop.f32.mrf.mxu1 }
 0xec2   :  { %v6327_v59 = vpop.eup %6326  ;;  %v6143_v13 = vmul.f32 1.442695, %v6131_v47 }
 0xec3   :  { %v6329_v44 = vpop.eup %6328  ;;  %v6154_v12 = vadd.f32 1.0, %v6327_v59  ;;  %v6077_v14 = vpop.f32.mrf.mxu3 }
 0xec4   :  { %6169 = vst [vmem:[%s12320_s23 + $0x10] sm:$0xff] %v6329_v44  ;;  %6330 = vpow2.f32 %v6143_v13  ;;  %v6078_v6 = vadd.f32 %v6077_v14, %v6037_v35 }
 0xec5   :  { %6332 = vrcp.f32 %v6154_v12 }
 0xec6   :  { %v6119_v58 = vadd.f32 %v6118_v25, %v6078_v6 }
 0xec8   :  { %v6132_v32 = vsub.f32 0.0, %v6119_v58 }
 0xec9   :  { %v6121_v27 = vpop.f32.mrf.mxu1 }
 0xeca   :  { %v6331_v7 = vpop.eup %6330  ;;  %v6145_v63 = vmul.f32 1.442695, %v6132_v32 }
 0xecb   :  { %v6333_v50 = vpop.eup %6332  ;;  %v6155_v16 = vadd.f32 1.0, %v6331_v7  ;;  %v6080_v1 = vpop.f32.mrf.mxu3 }
 0xecc   :  { %6170 = vst [vmem:[%s12320_s23 + $0x18] sm:$0xff] %v6333_v50  ;;  %6334 = vpow2.f32 %v6145_v63  ;;  %v6081_v41 = vadd.f32 %v6080_v1, %v6040_v46 }
 0xecd   :  { %6336 = vrcp.f32 %v6155_v16 }
 0xece   :  { %v6122_v9 = vadd.f32 %v6121_v27, %v6081_v41 }
 0xed0   :  { %v6133_v4 = vsub.f32 0.0, %v6122_v9 }
 0xed1   :  { %v6124_v30 = vpop.f32.mrf.mxu1 }
 0xed2   :  { %v6335_v36 = vpop.eup %6334  ;;  %v6147_v31 = vmul.f32 1.442695, %v6133_v4 }
 0xed3   :  { %v6337_v11 = vpop.eup %6336  ;;  %v6156_v17 = vadd.f32 1.0, %v6335_v36  ;;  %v6083_v10 = vpop.f32.mrf.mxu3 }
 0xed4   :  { %6171 = vst [vmem:[%s12320_s23 + $0x20] sm:$0xff] %v6337_v11  ;;  %6338 = vpow2.f32 %v6147_v31  ;;  %v6084_v19 = vadd.f32 %v6083_v10, %v6043_v48 }
 0xed5   :  { %6340 = vrcp.f32 %v6156_v17 }
 0xed6   :  { %v6125_v54 = vadd.f32 %v6124_v30, %v6084_v19 }
 0xed8   :  { %v6134_v34 = vsub.f32 0.0, %v6125_v54 }
 0xeda   :  { %v6339_v53 = vpop.eup %6338  ;;  %v6149_v33 = vmul.f32 1.442695, %v6134_v34 }
 0xedb   :  { %v6341_v28 = vpop.eup %6340  ;;  %v6157_v0 = vadd.f32 1.0, %v6339_v53 }
 0xedc   :  { %6172 = vst [vmem:[%s12320_s23 + $0x28] sm:$0xff] %v6341_v28  ;;  %6342 = vpow2.f32 %v6149_v33 }
 0xedd   :  { %6344 = vrcp.f32 %v6157_v0 }
 0xee2   :  { %v6343_v39 = vpop.eup %6342 }
 0xee3   :  { %v6345_v22 = vpop.eup %6344  ;;  %v6158_v49 = vadd.f32 1.0, %v6343_v39 }
 0xee4   :  { %6173 = vst [vmem:[%s12320_s23 + $0x30] sm:$0xff] %v6345_v22 }
 0xee5   :  { %6346 = vrcp.f32 %v6158_v49 }
 0xeeb   :  { %v6347_v51 = vpop.eup %6346 }
 0xeec   :  { %6174 = vst [vmem:[%s12320_s23 + $0x38] sm:$0xff] %v6347_v51 }
 0xeed   :  { %6376 = dma.done.wait [#allocation13], 32  }
 0xeee   :  { %6377 = vsyncadd [#allocation13], 4294967264 }
 0xeef   :  { %6194 = vsyncpa [#allocation13], 1 }

</bundles_post_ra>
